<compile_context>
chip_gen: v5e
topology: v5e:2x2
jax: 0.10.0
libtpu: 0.0.40
codegen_flags: <defaults>
</compile_context>

<pallas_src>
import jax
import jax.numpy as jnp
from jax import lax
from jax.experimental import pallas as pl
from jax.experimental.pallas import tpu as pltpu

# -----------------------------------------------------------------------------
# Static problem configuration (toy size: n_feats=8, 16x16 spatial, batch=2)
# -----------------------------------------------------------------------------
N = 2                 # batch
C = 8                 # n_feats
CI = C // 2           # NonLocal inter_channels
H = 16
W = 16
H2, W2 = H // 2, W // 2
LN = W * C            # 128 flat lanes, full res
LN2 = W2 * C          # 64 flat lanes, half res
LPAD = (W + 2) * C    # 144 padded row width, full res
LPAD2 = (W2 + 2) * C  # 80 padded row width, half res

MXU_DT = jnp.bfloat16  # MXU operand dtype (accumulation stays f32)

_PPAR = pltpu.CompilerParams(dimension_semantics=("parallel",))


# -----------------------------------------------------------------------------
# In-kernel helpers (banded row-conv, fused ResBlock)
# -----------------------------------------------------------------------------
def _conv_rows(ps, img, w_ref, b_ref, idx, hh, lane_w, relu=False):
    """3x3 stride-1 conv on a row-flattened image.

    ps   : (hh+2, lane_w+2*C) f32 VMEM scratch; border rows/lanes stay zero.
    img  : (hh, lane_w) f32 value.
    w_ref: (n, 3, lane_w+2*C, lane_w) bf16 banded weights (row-permuted to the
           scratch layout [data | left pad | right pad]).
    b_ref: (n, 1, lane_w) f32 flat bias.
    """
    ps[1:hh + 1, 0:lane_w] = img
    acc = None
    for ky in range(3):
        rows = ps[ky:ky + hh, :].astype(MXU_DT)
        d = jnp.dot(rows, w_ref[idx, ky], preferred_element_type=jnp.float32)
        acc = d if acc is None else acc + d
    y = acc + b_ref[idx]
    if relu:
        y = jnp.maximum(y, 0.0)
    return y


def _resblock(ps, img, w_ref, b_ref, i0, hh, lane_w):
    """EDSR ResBlock: conv3x3 -> ReLU -> conv3x3 (+ img), res_scale = 1."""
    h = _conv_rows(ps, img, w_ref, b_ref, i0, hh, lane_w, relu=True)
    return _conv_rows(ps, h, w_ref, b_ref, i0 + 1, hh, lane_w, relu=False) + img


# -----------------------------------------------------------------------------
# Pallas kernels
# -----------------------------------------------------------------------------
def _kernel_A(x_ref, w_ref, b_ref, r1_ref, tx_ref, ps):
    """RA_RB1 + trunk branch (3 fused ResBlocks)."""
    ps[...] = jnp.zeros_like(ps)
    x = x_ref[0]                                            # (H, W*C)
    r1 = _resblock(ps, x, w_ref, b_ref, 0, H, LN)           # RA_RB1
    r1_ref[0] = r1
    t = _resblock(ps, r1, w_ref, b_ref, 2, H, LN)           # trunk RB 0
    t = _resblock(ps, t, w_ref, b_ref, 4, H, LN)            # trunk RB 1
    tx_ref[0] = t


def _kernel_NL(x_ref, wg_ref, bg_ref, wt_ref, bt_ref, wp_ref, bp_ref,
               ww_ref, bw_ref, o_ref):
    """Embedded-Gaussian NonLocalBlock2D for one batch element (x: (HW, C))."""
    # TODO(synk): at larger H*W the (HW, HW) attention matrix should be tiled
    # flash-style (query tiles + online softmax) to fit v7x's smaller VMEM.
    x = x_ref[0]                                            # (HW, C) f32
    xb = x.astype(MXU_DT)
    g = jnp.dot(xb, wg_ref[...], preferred_element_type=jnp.float32) + bg_ref[...]
    th = jnp.dot(xb, wt_ref[...], preferred_element_type=jnp.float32) + bt_ref[...]
    ph = jnp.dot(xb, wp_ref[...], preferred_element_type=jnp.float32) + bp_ref[...]
    f = lax.dot_general(th.astype(MXU_DT), ph.astype(MXU_DT),
                        (((1,), (1,)), ((), ())),
                        preferred_element_type=jnp.float32)  # (HW, HW)
    f = f - jnp.max(f, axis=-1, keepdims=True)
    e = jnp.exp(f)
    p = e * pl.reciprocal(jnp.sum(e, axis=-1, keepdims=True), approx=True)
    y = jnp.dot(p.astype(MXU_DT), g.astype(MXU_DT),
                preferred_element_type=jnp.float32)          # (HW, CI)
    wy = jnp.dot(y.astype(MXU_DT), ww_ref[...],
                 preferred_element_type=jnp.float32) + bw_ref[...]
    o_ref[0] = wy + x


def _kernel_BC(z_ref, tx_ref, r1_ref,
               wf_ref, bf_ref, wdn_ref, bdn_ref,
               wrb2_ref, brb2_ref, wup_ref, bup_ref,
               w1_ref, b1_ref,
               o_ref,
               ps16, ps8, ev, od, mubuf):
    """Mask branch (down/up) fused with the tail of the module.

    wf_ref indices: 0-1 MB_RB1, 2-3 MB_RB3, 4-7 tail (2 ResBlocks), 8 last conv.
    """
    ps16[...] = jnp.zeros_like(ps16)
    ps8[...] = jnp.zeros_like(ps8)
    ev[...] = jnp.zeros_like(ev)
    od[...] = jnp.zeros_like(od)

    z = z_ref[0]                                            # (H, W*C)
    m1 = _resblock(ps16, z, wf_ref, bf_ref, 0, H, LN)       # MB_RB1

    # Split m1 rows (with vertical zero padding) by parity for the stride-2 conv.
    for r in range(H):
        if r % 2 == 0:
            od[r // 2:r // 2 + 1, 0:LN] = m1[r:r + 1, :]
        else:
            ev[(r + 1) // 2:(r + 1) // 2 + 1, 0:LN] = m1[r:r + 1, :]

    # MB_Down: 3x3 / stride 2 / pad 1 conv, 16x16 -> 8x8.
    vsets = (ev[0:H2, :], od[0:H2, :], ev[1:H2 + 1, :])
    acc = None
    for ky in range(3):
        d = jnp.dot(vsets[ky].astype(MXU_DT), wdn_ref[ky],
                    preferred_element_type=jnp.float32)
        acc = d if acc is None else acc + d
    md = acc + bdn_ref[...]                                 # (H2, W2*C)

    # MB_RB2: two ResBlocks at 8x8.
    m2 = _resblock(ps8, md, wrb2_ref, brb2_ref, 0, H2, LN2)
    m2 = _resblock(ps8, m2, wrb2_ref, brb2_ref, 2, H2, LN2)

    # MB_Up: ConvTranspose2d(k=6, s=2, p=2) as stride-phase 3x3 sub-convs.
    # Column (x) interleave is baked into wup_ref, so we only emit one
    # lane-dense (H2, W*C) map per output-row parity.
    ps8[1:H2 + 1, 0:LN2] = m2
    mu_e = None
    mu_o = None
    for jy in range(3):
        rows = ps8[2 - jy:2 - jy + H2, :].astype(MXU_DT)
        de = jnp.dot(rows, wup_ref[0, jy], preferred_element_type=jnp.float32)
        do = jnp.dot(rows, wup_ref[1, jy], preferred_element_type=jnp.float32)
        mu_e = de if mu_e is None else mu_e + de
        mu_o = do if mu_o is None else mu_o + do
    mu_e = mu_e + bup_ref[...]
    mu_o = mu_o + bup_ref[...]

    # Row (y) interleave of the two parities into the 16x16 up-sampled map.
    for i in range(H2):
        mubuf[2 * i:2 * i + 1, :] = mu_e[i:i + 1, :]
        mubuf[2 * i + 1:2 * i + 2, :] = mu_o[i:i + 1, :]
    pre3 = m1 + mubuf[...]

    # MB_RB3 -> 1x1 conv + sigmoid -> hx = tx*mx + r1 -> tail -> last conv.
    m3 = _resblock(ps16, pre3, wf_ref, bf_ref, 2, H, LN)
    v = jnp.dot(m3.astype(MXU_DT), w1_ref[...],
                preferred_element_type=jnp.float32) + b1_ref[...]
    # numerically stable sigmoid; reciprocal goes to the EUP slot
    e = jnp.exp(-jnp.abs(v))
    rinv = pl.reciprocal(1.0 + e, approx=True)
    mx = jnp.where(v >= 0, rinv, e * rinv)

    hx = tx_ref[0] * mx + r1_ref[0]                         # tx*mx + RA_RB1_x
    hx = _resblock(ps16, hx, wf_ref, bf_ref, 4, H, LN)      # RA_tail 0
    hx = _resblock(ps16, hx, wf_ref, bf_ref, 6, H, LN)      # RA_tail 1
    o_ref[0] = _conv_rows(ps16, hx, wf_ref, bf_ref, 8, H, LN)   # last conv


# -----------------------------------------------------------------------------
# pallas_call wrappers
# -----------------------------------------------------------------------------
def _full_spec(a):
    nd = a.ndim
    return pl.BlockSpec(a.shape, lambda b, _nd=nd: (0,) * _nd)


def _batch_spec(shape):
    nd = len(shape)
    return pl.BlockSpec((1,) + tuple(shape),
                        lambda b, _nd=nd: (b,) + (0,) * _nd)


def stage_a(x, p):
    return pl.pallas_call(
        _kernel_A,
        grid=(N,),
        in_specs=[_batch_spec((H, LN)), _full_spec(p["wA"]), _full_spec(p["bA"])],
        out_specs=[_batch_spec((H, LN)), _batch_spec((H, LN))],
        out_shape=[jax.ShapeDtypeStruct((N, H, LN), jnp.float32),
                   jax.ShapeDtypeStruct((N, H, LN), jnp.float32)],
        scratch_shapes=[pltpu.VMEM((H + 2, LPAD), jnp.float32)],
        compiler_params=_PPAR,
    )(x, p["wA"], p["bA"])


def stage_nl(r1, p):
    r1f = r1.reshape(N, H * W, C)          # contiguous reshape: free in XLA
    nl = p["NL"]
    args = [r1f, nl["wg"], nl["bg"], nl["wt"], nl["bt"],
            nl["wp"], nl["bp"], nl["ww"], nl["bw"]]
    z = pl.pallas_call(
        _kernel_NL,
        grid=(N,),
        in_specs=[_batch_spec((H * W, C))] + [_full_spec(a) for a in args[1:]],
        out_specs=_batch_spec((H * W, C)),
        out_shape=jax.ShapeDtypeStruct((N, H * W, C), jnp.float32),
        compiler_params=_PPAR,
    )(*args)
    return z.reshape(N, H, LN)             # contiguous reshape: free in XLA


def stage_bc(z, tx, r1, p):
    return pl.pallas_call(
        _kernel_BC,
        grid=(N,),
        in_specs=[_batch_spec((H, LN))] * 3
                 + [_full_spec(p["wF"]), _full_spec(p["bF"]),
                    _full_spec(p["wDown"]), _full_spec(p["bDown"]),
                    _full_spec(p["wRB2"]), _full_spec(p["bRB2"]),
                    _full_spec(p["wUpI"]), _full_spec(p["bUp"]),
                    _full_spec(p["w1x1"]), _full_spec(p["b1x1"])],
        out_specs=_batch_spec((H, LN)),
        out_shape=jax.ShapeDtypeStruct((N, H, LN), jnp.float32),
        scratch_shapes=[pltpu.VMEM((H + 2, LPAD), jnp.float32),      # ps16
                        pltpu.VMEM((H2 + 2, LPAD2), jnp.float32),    # ps8
                        pltpu.VMEM((H2 + 1, LPAD), jnp.float32),     # ev
                        pltpu.VMEM((H2, LPAD), jnp.float32),         # od
                        pltpu.VMEM((H, LN), jnp.float32)],           # mubuf
        compiler_params=_PPAR,
    )(z, tx, r1, p["wF"], p["bF"], p["wDown"], p["bDown"],
      p["wRB2"], p["bRB2"], p["wUpI"], p["bUp"], p["w1x1"], p["b1x1"])


def nl_res_group_forward(x_nchw, params):
    x = jnp.transpose(x_nchw, (0, 2, 3, 1)).reshape(N, H, LN)  # NCHW -> row-flat NHWC
    r1, tx = stage_a(x, params)                                # RA_RB1 + trunk
    z = stage_nl(r1, params)                                   # NonLocalBlock2D
    out = stage_bc(z, tx, r1, params)                          # mask branch + tail
    return jnp.transpose(out.reshape(N, H, W, C), (0, 3, 1, 2))


# -----------------------------------------------------------------------------
# Parameter construction: natural 3x3 weights -> banded row-matmul matrices
# -----------------------------------------------------------------------------
def _row_perm(Wd):
    # scratch row layout: [x = 0..Wd-1 data | left pad | right pad]
    return jnp.concatenate([jnp.arange(C, (Wd + 1) * C),
                            jnp.arange(0, C),
                            jnp.arange((Wd + 1) * C, (Wd + 2) * C)])


def _band(w, Wd, stride=1, flip=False):
    """w: (3, 3, C, C) -> (3, (Wd+2)*C, Wo*C) banded matrices (bf16), rows
    permuted to the in-kernel padded-row scratch layout."""
    Wo = Wd // stride
    perm = _row_perm(Wd)
    cols = jnp.arange(Wo)
    out = []
    for ky in range(3):
        B = jnp.zeros(((Wd + 2) * C, Wo * C), jnp.float32)
        for kx in range(3):
            off = (2 - kx) if flip else kx
            rows = stride * cols + off
            P = jnp.zeros((Wd + 2, Wo), jnp.float32).at[rows, cols].set(1.0)
            B = B + jnp.kron(P, w[ky, kx])
        out.append(B[perm])
    return jnp.stack(out).astype(MXU_DT)


def _interleave_phase_cols(ba, bb):
    """Interleave the output columns of two stride-phase bands (px=0, px=1)
    so a single matmul emits a lane-dense full-width (W*C) row."""
    ba = ba.reshape(3, LPAD2, W2, C)
    bb = bb.reshape(3, LPAD2, W2, C)
    return jnp.stack([ba, bb], axis=3).reshape(3, LPAD2, W * C)


def _bias_flat(b, Wd):
    return jnp.tile(b, (Wd,))[None, :]    # (1, Wd*C) f32


def prepare_params(nat):
    p = {}
    convs_a = nat["RA_RB1"] + nat["TB"]                       # 6 convs
    p["wA"] = jnp.stack([_band(w, W) for (w, b) in convs_a])
    p["bA"] = jnp.stack([_bias_flat(b, W) for (w, b) in convs_a])

    nl = nat["NL"]
    p["NL"] = {"wg": nl["wg"].astype(MXU_DT), "bg": nl["bg"][None, :],
               "wt": nl["wt"].astype(MXU_DT), "bt": nl["bt"][None, :],
               "wp": nl["wp"].astype(MXU_DT), "bp": nl["bp"][None, :],
               "ww": nl["ww"].astype(MXU_DT), "bw": nl["bw"][None, :]}

    # Full-res 3x3 convs of the BC kernel: MB_RB1(2) + MB_RB3(2) + tail(4) + last(1)
    convs_f = nat["MB_RB1"] + nat["MB_RB3"] + nat["tail"] + [nat["last"]]
    p["wF"] = jnp.stack([_band(w, W) for (w, b) in convs_f])
    p["bF"] = jnp.stack([_bias_flat(b, W) for (w, b) in convs_f])

    wdn, bdn = nat["MB_Down"]
    p["wDown"] = _band(wdn, W, stride=2)
    p["bDown"] = _bias_flat(bdn, W2)

    p["wRB2"] = jnp.stack([_band(w, W2) for (w, b) in nat["MB_RB2"]])
    p["bRB2"] = jnp.stack([_bias_flat(b, W2) for (w, b) in nat["MB_RB2"]])

    wup_list, bup = nat["MB_Up"]                              # phases p00,p01,p10,p11
    bands = [_band(w, W2, flip=True) for w in wup_list]
    p["wUpI"] = jnp.stack([_interleave_phase_cols(bands[0], bands[1]),   # py = 0
                           _interleave_phase_cols(bands[2], bands[3])])  # py = 1
    p["bUp"] = _bias_flat(bup, W)

    w1, b1 = nat["MB_1x1"]
    p["w1x1"] = jnp.kron(jnp.eye(W, dtype=jnp.float32), w1).astype(MXU_DT)
    p["b1x1"] = _bias_flat(b1, W)
    return p


def init_params(key):
    keys = iter(jax.random.split(key, 64))

    def wfn(shape, scale=0.05):
        return jax.random.normal(next(keys), shape, jnp.float32) * scale

    def conv_wb():
        return wfn((3, 3, C, C)), wfn((C,))

    nat = {
        "RA_RB1": [conv_wb(), conv_wb()],
        "TB": [conv_wb(), conv_wb(), conv_wb(), conv_wb()],
        # TODO(synk): reference NonLocalBlock2D zero-inits its W conv; random
        # init is used so the attention path is exercised.
        "NL": {"wg": wfn((C, CI)), "bg": wfn((CI,)),
               "wt": wfn((C, CI)), "bt": wfn((CI,)),
               "wp": wfn((C, CI)), "bp": wfn((CI,)),
               "ww": wfn((CI, C)), "bw": wfn((C,))},
        "MB_RB1": [conv_wb(), conv_wb()],
        "MB_Down": conv_wb(),
        "MB_RB2": [conv_wb(), conv_wb(), conv_wb(), conv_wb()],
        # ConvTranspose2d(k=6, s=2, p=2) parameterized directly as its four
        # 3x3 stride-phase sub-convolutions (weights are synthetic).
        "MB_Up": ([wfn((3, 3, C, C)) for _ in range(4)], wfn((C,))),
        "MB_RB3": [conv_wb(), conv_wb()],
        "MB_1x1": (wfn((C, C)), wfn((C,))),
        "tail": [conv_wb(), conv_wb(), conv_wb(), conv_wb()],
        "last": conv_wb(),
    }
    return prepare_params(nat)


if __name__ == "__main__":
    key = jax.random.PRNGKey(0)
    kx, kp = jax.random.split(key)
    x = jax.random.normal(kx, (N, C, H, W), jnp.float32)
    params = init_params(kp)

    out = jax.jit(nl_res_group_forward)(x, params)
    out = jax.block_until_ready(out)
    assert out.shape == (N, C, H, W) and out.dtype == jnp.float32
    assert bool(jnp.all(jnp.isfinite(out)))
    print("KERNEL_OK")
</pallas_src>

<mosaic_0001>
module attributes {stable_mosaic.version = 11 : i64} {
  func.func @_kernel_A(%arg0: i32, %arg1: memref<1x16x128xf32, #tpu.memory_space<vmem>>, %arg2: memref<6x3x144x128xbf16, #tpu.memory_space<vmem>>, %arg3: memref<6x1x128xf32, #tpu.memory_space<vmem>>, %arg4: memref<1x16x128xf32, #tpu.memory_space<vmem>>, %arg5: memref<1x16x128xf32, #tpu.memory_space<vmem>>, %arg6: memref<18x144xf32, #tpu.memory_space<vmem>>) attributes {dimension_semantics = [#tpu.dimension_semantics<parallel>], iteration_bounds = array<i64: 2>, scalar_prefetch = 0 : i64, scratch_operands = 1 : i64, tpu.core_type = #tpu.core_type<tc>, window_params = [{transform_indices = @transform_0, window_bounds = array<i64: 1, 16, 128>}, {pipeline_mode = #tpu.pipeline_mode<synchronous>, transform_indices = @transform_1, window_bounds = array<i64: 6, 3, 144, 128>}, {pipeline_mode = #tpu.pipeline_mode<synchronous>, transform_indices = @transform_2, window_bounds = array<i64: 6, 1, 128>}, {transform_indices = @transform_3, window_bounds = array<i64: 1, 16, 128>}, {transform_indices = @transform_4, window_bounds = array<i64: 1, 16, 128>}]} {
    %cst = arith.constant 0.000000e+00 : f32
    %0 = vector.broadcast %cst : f32 to vector<18x144xf32>
    %c0 = arith.constant 0 : index
    %c0_0 = arith.constant 0 : index
    %1 = vector.load %arg6[%c0, %c0_0] : memref<18x144xf32, #tpu.memory_space<vmem>>, vector<18x144xf32>
    tpu.vector_store %arg6[%c0, %c0_0], %0 {strides = array<i32>} : memref<18x144xf32, #tpu.memory_space<vmem>>, vector<18x144xf32>,
    %c0_1 = arith.constant 0 : index
    %c0_2 = arith.constant 0 : index
    %c0_3 = arith.constant 0 : index
    %2 = vector.load %arg1[%c0_1, %c0_2, %c0_3] : memref<1x16x128xf32, #tpu.memory_space<vmem>>, vector<1x16x128xf32>
    %3 = vector.shape_cast %2 : vector<1x16x128xf32> to vector<16x128xf32>
    %c1 = arith.constant 1 : index
    %c0_4 = arith.constant 0 : index
    %4 = vector.load %arg6[%c1, %c0_4] : memref<18x144xf32, #tpu.memory_space<vmem>>, vector<16x128xf32>
    tpu.vector_store %arg6[%c1, %c0_4], %3 {strides = array<i32>} : memref<18x144xf32, #tpu.memory_space<vmem>>, vector<16x128xf32>,
    %c0_5 = arith.constant 0 : index
    %c0_6 = arith.constant 0 : index
    %5 = vector.load %arg6[%c0_5, %c0_6] : memref<18x144xf32, #tpu.memory_space<vmem>>, vector<16x144xf32>
    %6 = arith.truncf %5 : vector<16x144xf32> to vector<16x144xbf16>
    %c0_7 = arith.constant 0 : index
    %c0_8 = arith.constant 0 : index
    %c0_9 = arith.constant 0 : index
    %c0_10 = arith.constant 0 : index
    %7 = vector.load %arg2[%c0_7, %c0_8, %c0_9, %c0_10] : memref<6x3x144x128xbf16, #tpu.memory_space<vmem>>, vector<1x1x144x128xbf16>
    %8 = vector.shape_cast %7 : vector<1x1x144x128xbf16> to vector<144x128xbf16>
    %cst_11 = arith.constant dense<0.000000e+00> : vector<16x128xf32>
    %9 = tpu.matmul %6, %8, %cst_11 {dimension_numbers = #tpu.dot_dimension_numbers<[1], [0], [0], [1], [0, 0, 1, 1], [], []>} : vector<16x144xbf16>, vector<144x128xbf16>, vector<16x128xf32> -> vector<16x128xf32>
    %c1_12 = arith.constant 1 : index
    %c0_13 = arith.constant 0 : index
    %10 = vector.load %arg6[%c1_12, %c0_13] : memref<18x144xf32, #tpu.memory_space<vmem>>, vector<16x144xf32>
    %11 = arith.truncf %10 : vector<16x144xf32> to vector<16x144xbf16>
    %c0_14 = arith.constant 0 : index
    %c1_15 = arith.constant 1 : index
    %c0_16 = arith.constant 0 : index
    %c0_17 = arith.constant 0 : index
    %12 = vector.load %arg2[%c0_14, %c1_15, %c0_16, %c0_17] : memref<6x3x144x128xbf16, #tpu.memory_space<vmem>>, vector<1x1x144x128xbf16>
    %13 = vector.shape_cast %12 : vector<1x1x144x128xbf16> to vector<144x128xbf16>
    %cst_18 = arith.constant dense<0.000000e+00> : vector<16x128xf32>
    %14 = tpu.matmul %11, %13, %cst_18 {dimension_numbers = #tpu.dot_dimension_numbers<[1], [0], [0], [1], [0, 0, 1, 1], [], []>} : vector<16x144xbf16>, vector<144x128xbf16>, vector<16x128xf32> -> vector<16x128xf32>
    %15 = arith.addf %9, %14 : vector<16x128xf32>
    %c2 = arith.constant 2 : index
    %c0_19 = arith.constant 0 : index
    %16 = vector.load %arg6[%c2, %c0_19] : memref<18x144xf32, #tpu.memory_space<vmem>>, vector<16x144xf32>
    %17 = arith.truncf %16 : vector<16x144xf32> to vector<16x144xbf16>
    %c0_20 = arith.constant 0 : index
    %c2_21 = arith.constant 2 : index
    %c0_22 = arith.constant 0 : index
    %c0_23 = arith.constant 0 : index
    %18 = vector.load %arg2[%c0_20, %c2_21, %c0_22, %c0_23] : memref<6x3x144x128xbf16, #tpu.memory_space<vmem>>, vector<1x1x144x128xbf16>
    %19 = vector.shape_cast %18 : vector<1x1x144x128xbf16> to vector<144x128xbf16>
    %cst_24 = arith.constant dense<0.000000e+00> : vector<16x128xf32>
    %20 = tpu.matmul %17, %19, %cst_24 {dimension_numbers = #tpu.dot_dimension_numbers<[1], [0], [0], [1], [0, 0, 1, 1], [], []>} : vector<16x144xbf16>, vector<144x128xbf16>, vector<16x128xf32> -> vector<16x128xf32>
    %21 = arith.addf %15, %20 : vector<16x128xf32>
    %c0_25 = arith.constant 0 : index
    %c0_26 = arith.constant 0 : index
    %c0_27 = arith.constant 0 : index
    %22 = vector.load %arg3[%c0_25, %c0_26, %c0_27] : memref<6x1x128xf32, #tpu.memory_space<vmem>>, vector<1x1x128xf32>
    %23 = vector.shape_cast %22 : vector<1x1x128xf32> to vector<1x128xf32>
    %24 = vector.broadcast %23 : vector<1x128xf32> to vector<16x128xf32>
    %25 = arith.addf %21, %24 : vector<16x128xf32>
    %cst_28 = arith.constant 0.000000e+00 : f32
    %26 = vector.broadcast %cst_28 : f32 to vector<16x128xf32>
    %27 = arith.maximumf %25, %26 : vector<16x128xf32>
    %c1_29 = arith.constant 1 : index
    %c0_30 = arith.constant 0 : index
    %28 = vector.load %arg6[%c1_29, %c0_30] : memref<18x144xf32, #tpu.memory_space<vmem>>, vector<16x128xf32>
    tpu.vector_store %arg6[%c1_29, %c0_30], %27 {strides = array<i32>} : memref<18x144xf32, #tpu.memory_space<vmem>>, vector<16x128xf32>,
    %c0_31 = arith.constant 0 : index
    %c0_32 = arith.constant 0 : index
    %29 = vector.load %arg6[%c0_31, %c0_32] : memref<18x144xf32, #tpu.memory_space<vmem>>, vector<16x144xf32>
    %30 = arith.truncf %29 : vector<16x144xf32> to vector<16x144xbf16>
    %c1_33 = arith.constant 1 : index
    %c0_34 = arith.constant 0 : index
    %c0_35 = arith.constant 0 : index
    %c0_36 = arith.constant 0 : index
    %31 = vector.load %arg2[%c1_33, %c0_34, %c0_35, %c0_36] : memref<6x3x144x128xbf16, #tpu.memory_space<vmem>>, vector<1x1x144x128xbf16>
    %32 = vector.shape_cast %31 : vector<1x1x144x128xbf16> to vector<144x128xbf16>
    %cst_37 = arith.constant dense<0.000000e+00> : vector<16x128xf32>
    %33 = tpu.matmul %30, %32, %cst_37 {dimension_numbers = #tpu.dot_dimension_numbers<[1], [0], [0], [1], [0, 0, 1, 1], [], []>} : vector<16x144xbf16>, vector<144x128xbf16>, vector<16x128xf32> -> vector<16x128xf32>
    %c1_38 = arith.constant 1 : index
    %c0_39 = arith.constant 0 : index
    %34 = vector.load %arg6[%c1_38, %c0_39] : memref<18x144xf32, #tpu.memory_space<vmem>>, vector<16x144xf32>
    %35 = arith.truncf %34 : vector<16x144xf32> to vector<16x144xbf16>
    %c1_40 = arith.constant 1 : index
    %c1_41 = arith.constant 1 : index
    %c0_42 = arith.constant 0 : index
    %c0_43 = arith.constant 0 : index
    %36 = vector.load %arg2[%c1_40, %c1_41, %c0_42, %c0_43] : memref<6x3x144x128xbf16, #tpu.memory_space<vmem>>, vector<1x1x144x128xbf16>
    %37 = vector.shape_cast %36 : vector<1x1x144x128xbf16> to vector<144x128xbf16>
    %cst_44 = arith.constant dense<0.000000e+00> : vector<16x128xf32>
    %38 = tpu.matmul %35, %37, %cst_44 {dimension_numbers = #tpu.dot_dimension_numbers<[1], [0], [0], [1], [0, 0, 1, 1], [], []>} : vector<16x144xbf16>, vector<144x128xbf16>, vector<16x128xf32> -> vector<16x128xf32>
    %39 = arith.addf %33, %38 : vector<16x128xf32>
    %c2_45 = arith.constant 2 : index
    %c0_46 = arith.constant 0 : index
    %40 = vector.load %arg6[%c2_45, %c0_46] : memref<18x144xf32, #tpu.memory_space<vmem>>, vector<16x144xf32>
    %41 = arith.truncf %40 : vector<16x144xf32> to vector<16x144xbf16>
    %c1_47 = arith.constant 1 : index
    %c2_48 = arith.constant 2 : index
    %c0_49 = arith.constant 0 : index
    %c0_50 = arith.constant 0 : index
    %42 = vector.load %arg2[%c1_47, %c2_48, %c0_49, %c0_50] : memref<6x3x144x128xbf16, #tpu.memory_space<vmem>>, vector<1x1x144x128xbf16>
    %43 = vector.shape_cast %42 : vector<1x1x144x128xbf16> to vector<144x128xbf16>
    %cst_51 = arith.constant dense<0.000000e+00> : vector<16x128xf32>
    %44 = tpu.matmul %41, %43, %cst_51 {dimension_numbers = #tpu.dot_dimension_numbers<[1], [0], [0], [1], [0, 0, 1, 1], [], []>} : vector<16x144xbf16>, vector<144x128xbf16>, vector<16x128xf32> -> vector<16x128xf32>
    %45 = arith.addf %39, %44 : vector<16x128xf32>
    %c1_52 = arith.constant 1 : index
    %c0_53 = arith.constant 0 : index
    %c0_54 = arith.constant 0 : index
    %46 = vector.load %arg3[%c1_52, %c0_53, %c0_54] : memref<6x1x128xf32, #tpu.memory_space<vmem>>, vector<1x1x128xf32>
    %47 = vector.shape_cast %46 : vector<1x1x128xf32> to vector<1x128xf32>
    %48 = vector.broadcast %47 : vector<1x128xf32> to vector<16x128xf32>
    %49 = arith.addf %45, %48 : vector<16x128xf32>
    %50 = arith.addf %49, %3 : vector<16x128xf32>
    %c0_55 = arith.constant 0 : index
    %c0_56 = arith.constant 0 : index
    %c0_57 = arith.constant 0 : index
    %51 = vector.load %arg4[%c0_55, %c0_56, %c0_57] : memref<1x16x128xf32, #tpu.memory_space<vmem>>, vector<1x16x128xf32>
    %52 = vector.shape_cast %51 : vector<1x16x128xf32> to vector<16x128xf32>
    %53 = vector.shape_cast %50 : vector<16x128xf32> to vector<1x16x128xf32>
    tpu.vector_store %arg4[%c0_55, %c0_56, %c0_57], %53 {strides = array<i32>} : memref<1x16x128xf32, #tpu.memory_space<vmem>>, vector<1x16x128xf32>,
    %c1_58 = arith.constant 1 : index
    %c0_59 = arith.constant 0 : index
    %54 = vector.load %arg6[%c1_58, %c0_59] : memref<18x144xf32, #tpu.memory_space<vmem>>, vector<16x128xf32>
    tpu.vector_store %arg6[%c1_58, %c0_59], %50 {strides = array<i32>} : memref<18x144xf32, #tpu.memory_space<vmem>>, vector<16x128xf32>,
    %c0_60 = arith.constant 0 : index
    %c0_61 = arith.constant 0 : index
    %55 = vector.load %arg6[%c0_60, %c0_61] : memref<18x144xf32, #tpu.memory_space<vmem>>, vector<16x144xf32>
    %56 = arith.truncf %55 : vector<16x144xf32> to vector<16x144xbf16>
    %c2_62 = arith.constant 2 : index
    %c0_63 = arith.constant 0 : index
    %c0_64 = arith.constant 0 : index
    %c0_65 = arith.constant 0 : index
    %57 = vector.load %arg2[%c2_62, %c0_63, %c0_64, %c0_65] : memref<6x3x144x128xbf16, #tpu.memory_space<vmem>>, vector<1x1x144x128xbf16>
    %58 = vector.shape_cast %57 : vector<1x1x144x128xbf16> to vector<144x128xbf16>
    %cst_66 = arith.constant dense<0.000000e+00> : vector<16x128xf32>
    %59 = tpu.matmul %56, %58, %cst_66 {dimension_numbers = #tpu.dot_dimension_numbers<[1], [0], [0], [1], [0, 0, 1, 1], [], []>} : vector<16x144xbf16>, vector<144x128xbf16>, vector<16x128xf32> -> vector<16x128xf32>
    %c1_67 = arith.constant 1 : index
    %c0_68 = arith.constant 0 : index
    %60 = vector.load %arg6[%c1_67, %c0_68] : memref<18x144xf32, #tpu.memory_space<vmem>>, vector<16x144xf32>
    %61 = arith.truncf %60 : vector<16x144xf32> to vector<16x144xbf16>
    %c2_69 = arith.constant 2 : index
    %c1_70 = arith.constant 1 : index
    %c0_71 = arith.constant 0 : index
    %c0_72 = arith.constant 0 : index
    %62 = vector.load %arg2[%c2_69, %c1_70, %c0_71, %c0_72] : memref<6x3x144x128xbf16, #tpu.memory_space<vmem>>, vector<1x1x144x128xbf16>
    %63 = vector.shape_cast %62 : vector<1x1x144x128xbf16> to vector<144x128xbf16>
    %cst_73 = arith.constant dense<0.000000e+00> : vector<16x128xf32>
    %64 = tpu.matmul %61, %63, %cst_73 {dimension_numbers = #tpu.dot_dimension_numbers<[1], [0], [0], [1], [0, 0, 1, 1], [], []>} : vector<16x144xbf16>, vector<144x128xbf16>, vector<16x128xf32> -> vector<16x128xf32>
    %65 = arith.addf %59, %64 : vector<16x128xf32>
    %c2_74 = arith.constant 2 : index
    %c0_75 = arith.constant 0 : index
    %66 = vector.load %arg6[%c2_74, %c0_75] : memref<18x144xf32, #tpu.memory_space<vmem>>, vector<16x144xf32>
    %67 = arith.truncf %66 : vector<16x144xf32> to vector<16x144xbf16>
    %c2_76 = arith.constant 2 : index
    %c2_77 = arith.constant 2 : index
    %c0_78 = arith.constant 0 : index
    %c0_79 = arith.constant 0 : index
    %68 = vector.load %arg2[%c2_76, %c2_77, %c0_78, %c0_79] : memref<6x3x144x128xbf16, #tpu.memory_space<vmem>>, vector<1x1x144x128xbf16>
    %69 = vector.shape_cast %68 : vector<1x1x144x128xbf16> to vector<144x128xbf16>
    %cst_80 = arith.constant dense<0.000000e+00> : vector<16x128xf32>
    %70 = tpu.matmul %67, %69, %cst_80 {dimension_numbers = #tpu.dot_dimension_numbers<[1], [0], [0], [1], [0, 0, 1, 1], [], []>} : vector<16x144xbf16>, vector<144x128xbf16>, vector<16x128xf32> -> vector<16x128xf32>
    %71 = arith.addf %65, %70 : vector<16x128xf32>
    %c2_81 = arith.constant 2 : index
    %c0_82 = arith.constant 0 : index
    %c0_83 = arith.constant 0 : index
    %72 = vector.load %arg3[%c2_81, %c0_82, %c0_83] : memref<6x1x128xf32, #tpu.memory_space<vmem>>, vector<1x1x128xf32>
    %73 = vector.shape_cast %72 : vector<1x1x128xf32> to vector<1x128xf32>
    %74 = vector.broadcast %73 : vector<1x128xf32> to vector<16x128xf32>
    %75 = arith.addf %71, %74 : vector<16x128xf32>
    %cst_84 = arith.constant 0.000000e+00 : f32
    %76 = vector.broadcast %cst_84 : f32 to vector<16x128xf32>
    %77 = arith.maximumf %75, %76 : vector<16x128xf32>
    %c1_85 = arith.constant 1 : index
    %c0_86 = arith.constant 0 : index
    %78 = vector.load %arg6[%c1_85, %c0_86] : memref<18x144xf32, #tpu.memory_space<vmem>>, vector<16x128xf32>
    tpu.vector_store %arg6[%c1_85, %c0_86], %77 {strides = array<i32>} : memref<18x144xf32, #tpu.memory_space<vmem>>, vector<16x128xf32>,
    %c0_87 = arith.constant 0 : index
    %c0_88 = arith.constant 0 : index
    %79 = vector.load %arg6[%c0_87, %c0_88] : memref<18x144xf32, #tpu.memory_space<vmem>>, vector<16x144xf32>
    %80 = arith.truncf %79 : vector<16x144xf32> to vector<16x144xbf16>
    %c3 = arith.constant 3 : index
    %c0_89 = arith.constant 0 : index
    %c0_90 = arith.constant 0 : index
    %c0_91 = arith.constant 0 : index
    %81 = vector.load %arg2[%c3, %c0_89, %c0_90, %c0_91] : memref<6x3x144x128xbf16, #tpu.memory_space<vmem>>, vector<1x1x144x128xbf16>
    %82 = vector.shape_cast %81 : vector<1x1x144x128xbf16> to vector<144x128xbf16>
    %cst_92 = arith.constant dense<0.000000e+00> : vector<16x128xf32>
    %83 = tpu.matmul %80, %82, %cst_92 {dimension_numbers = #tpu.dot_dimension_numbers<[1], [0], [0], [1], [0, 0, 1, 1], [], []>} : vector<16x144xbf16>, vector<144x128xbf16>, vector<16x128xf32> -> vector<16x128xf32>
    %c1_93 = arith.constant 1 : index
    %c0_94 = arith.constant 0 : index
    %84 = vector.load %arg6[%c1_93, %c0_94] : memref<18x144xf32, #tpu.memory_space<vmem>>, vector<16x144xf32>
    %85 = arith.truncf %84 : vector<16x144xf32> to vector<16x144xbf16>
    %c3_95 = arith.constant 3 : index
    %c1_96 = arith.constant 1 : index
    %c0_97 = arith.constant 0 : index
    %c0_98 = arith.constant 0 : index
    %86 = vector.load %arg2[%c3_95, %c1_96, %c0_97, %c0_98] : memref<6x3x144x128xbf16, #tpu.memory_space<vmem>>, vector<1x1x144x128xbf16>
    %87 = vector.shape_cast %86 : vector<1x1x144x128xbf16> to vector<144x128xbf16>
    %cst_99 = arith.constant dense<0.000000e+00> : vector<16x128xf32>
    %88 = tpu.matmul %85, %87, %cst_99 {dimension_numbers = #tpu.dot_dimension_numbers<[1], [0], [0], [1], [0, 0, 1, 1], [], []>} : vector<16x144xbf16>, vector<144x128xbf16>, vector<16x128xf32> -> vector<16x128xf32>
    %89 = arith.addf %83, %88 : vector<16x128xf32>
    %c2_100 = arith.constant 2 : index
    %c0_101 = arith.constant 0 : index
    %90 = vector.load %arg6[%c2_100, %c0_101] : memref<18x144xf32, #tpu.memory_space<vmem>>, vector<16x144xf32>
    %91 = arith.truncf %90 : vector<16x144xf32> to vector<16x144xbf16>
    %c3_102 = arith.constant 3 : index
    %c2_103 = arith.constant 2 : index
    %c0_104 = arith.constant 0 : index
    %c0_105 = arith.constant 0 : index
    %92 = vector.load %arg2[%c3_102, %c2_103, %c0_104, %c0_105] : memref<6x3x144x128xbf16, #tpu.memory_space<vmem>>, vector<1x1x144x128xbf16>
    %93 = vector.shape_cast %92 : vector<1x1x144x128xbf16> to vector<144x128xbf16>
    %cst_106 = arith.constant dense<0.000000e+00> : vector<16x128xf32>
    %94 = tpu.matmul %91, %93, %cst_106 {dimension_numbers = #tpu.dot_dimension_numbers<[1], [0], [0], [1], [0, 0, 1, 1], [], []>} : vector<16x144xbf16>, vector<144x128xbf16>, vector<16x128xf32> -> vector<16x128xf32>
    %95 = arith.addf %89, %94 : vector<16x128xf32>
    %c3_107 = arith.constant 3 : index
    %c0_108 = arith.constant 0 : index
    %c0_109 = arith.constant 0 : index
    %96 = vector.load %arg3[%c3_107, %c0_108, %c0_109] : memref<6x1x128xf32, #tpu.memory_space<vmem>>, vector<1x1x128xf32>
    %97 = vector.shape_cast %96 : vector<1x1x128xf32> to vector<1x128xf32>
    %98 = vector.broadcast %97 : vector<1x128xf32> to vector<16x128xf32>
    %99 = arith.addf %95, %98 : vector<16x128xf32>
    %100 = arith.addf %99, %50 : vector<16x128xf32>
    %c1_110 = arith.constant 1 : index
    %c0_111 = arith.constant 0 : index
    %101 = vector.load %arg6[%c1_110, %c0_111] : memref<18x144xf32, #tpu.memory_space<vmem>>, vector<16x128xf32>
    tpu.vector_store %arg6[%c1_110, %c0_111], %100 {strides = array<i32>} : memref<18x144xf32, #tpu.memory_space<vmem>>, vector<16x128xf32>,
    %c0_112 = arith.constant 0 : index
    %c0_113 = arith.constant 0 : index
    %102 = vector.load %arg6[%c0_112, %c0_113] : memref<18x144xf32, #tpu.memory_space<vmem>>, vector<16x144xf32>
    %103 = arith.truncf %102 : vector<16x144xf32> to vector<16x144xbf16>
    %c4 = arith.constant 4 : index
    %c0_114 = arith.constant 0 : index
    %c0_115 = arith.constant 0 : index
    %c0_116 = arith.constant 0 : index
    %104 = vector.load %arg2[%c4, %c0_114, %c0_115, %c0_116] : memref<6x3x144x128xbf16, #tpu.memory_space<vmem>>, vector<1x1x144x128xbf16>
    %105 = vector.shape_cast %104 : vector<1x1x144x128xbf16> to vector<144x128xbf16>
    %cst_117 = arith.constant dense<0.000000e+00> : vector<16x128xf32>
    %106 = tpu.matmul %103, %105, %cst_117 {dimension_numbers = #tpu.dot_dimension_numbers<[1], [0], [0], [1], [0, 0, 1, 1], [], []>} : vector<16x144xbf16>, vector<144x128xbf16>, vector<16x128xf32> -> vector<16x128xf32>
    %c1_118 = arith.constant 1 : index
    %c0_119 = arith.constant 0 : index
    %107 = vector.load %arg6[%c1_118, %c0_119] : memref<18x144xf32, #tpu.memory_space<vmem>>, vector<16x144xf32>
    %108 = arith.truncf %107 : vector<16x144xf32> to vector<16x144xbf16>
    %c4_120 = arith.constant 4 : index
    %c1_121 = arith.constant 1 : index
    %c0_122 = arith.constant 0 : index
    %c0_123 = arith.constant 0 : index
    %109 = vector.load %arg2[%c4_120, %c1_121, %c0_122, %c0_123] : memref<6x3x144x128xbf16, #tpu.memory_space<vmem>>, vector<1x1x144x128xbf16>
    %110 = vector.shape_cast %109 : vector<1x1x144x128xbf16> to vector<144x128xbf16>
    %cst_124 = arith.constant dense<0.000000e+00> : vector<16x128xf32>
    %111 = tpu.matmul %108, %110, %cst_124 {dimension_numbers = #tpu.dot_dimension_numbers<[1], [0], [0], [1], [0, 0, 1, 1], [], []>} : vector<16x144xbf16>, vector<144x128xbf16>, vector<16x128xf32> -> vector<16x128xf32>
    %112 = arith.addf %106, %111 : vector<16x128xf32>
    %c2_125 = arith.constant 2 : index
    %c0_126 = arith.constant 0 : index
    %113 = vector.load %arg6[%c2_125, %c0_126] : memref<18x144xf32, #tpu.memory_space<vmem>>, vector<16x144xf32>
    %114 = arith.truncf %113 : vector<16x144xf32> to vector<16x144xbf16>
    %c4_127 = arith.constant 4 : index
    %c2_128 = arith.constant 2 : index
    %c0_129 = arith.constant 0 : index
    %c0_130 = arith.constant 0 : index
    %115 = vector.load %arg2[%c4_127, %c2_128, %c0_129, %c0_130] : memref<6x3x144x128xbf16, #tpu.memory_space<vmem>>, vector<1x1x144x128xbf16>
    %116 = vector.shape_cast %115 : vector<1x1x144x128xbf16> to vector<144x128xbf16>
    %cst_131 = arith.constant dense<0.000000e+00> : vector<16x128xf32>
    %117 = tpu.matmul %114, %116, %cst_131 {dimension_numbers = #tpu.dot_dimension_numbers<[1], [0], [0], [1], [0, 0, 1, 1], [], []>} : vector<16x144xbf16>, vector<144x128xbf16>, vector<16x128xf32> -> vector<16x128xf32>
    %118 = arith.addf %112, %117 : vector<16x128xf32>
    %c4_132 = arith.constant 4 : index
    %c0_133 = arith.constant 0 : index
    %c0_134 = arith.constant 0 : index
    %119 = vector.load %arg3[%c4_132, %c0_133, %c0_134] : memref<6x1x128xf32, #tpu.memory_space<vmem>>, vector<1x1x128xf32>
    %120 = vector.shape_cast %119 : vector<1x1x128xf32> to vector<1x128xf32>
    %121 = vector.broadcast %120 : vector<1x128xf32> to vector<16x128xf32>
    %122 = arith.addf %118, %121 : vector<16x128xf32>
    %cst_135 = arith.constant 0.000000e+00 : f32
    %123 = vector.broadcast %cst_135 : f32 to vector<16x128xf32>
    %124 = arith.maximumf %122, %123 : vector<16x128xf32>
    %c1_136 = arith.constant 1 : index
    %c0_137 = arith.constant 0 : index
    %125 = vector.load %arg6[%c1_136, %c0_137] : memref<18x144xf32, #tpu.memory_space<vmem>>, vector<16x128xf32>
    tpu.vector_store %arg6[%c1_136, %c0_137], %124 {strides = array<i32>} : memref<18x144xf32, #tpu.memory_space<vmem>>, vector<16x128xf32>,
    %c0_138 = arith.constant 0 : index
    %c0_139 = arith.constant 0 : index
    %126 = vector.load %arg6[%c0_138, %c0_139] : memref<18x144xf32, #tpu.memory_space<vmem>>, vector<16x144xf32>
    %127 = arith.truncf %126 : vector<16x144xf32> to vector<16x144xbf16>
    %c5 = arith.constant 5 : index
    %c0_140 = arith.constant 0 : index
    %c0_141 = arith.constant 0 : index
    %c0_142 = arith.constant 0 : index
    %128 = vector.load %arg2[%c5, %c0_140, %c0_141, %c0_142] : memref<6x3x144x128xbf16, #tpu.memory_space<vmem>>, vector<1x1x144x128xbf16>
    %129 = vector.shape_cast %128 : vector<1x1x144x128xbf16> to vector<144x128xbf16>
    %cst_143 = arith.constant dense<0.000000e+00> : vector<16x128xf32>
    %130 = tpu.matmul %127, %129, %cst_143 {dimension_numbers = #tpu.dot_dimension_numbers<[1], [0], [0], [1], [0, 0, 1, 1], [], []>} : vector<16x144xbf16>, vector<144x128xbf16>, vector<16x128xf32> -> vector<16x128xf32>
    %c1_144 = arith.constant 1 : index
    %c0_145 = arith.constant 0 : index
    %131 = vector.load %arg6[%c1_144, %c0_145] : memref<18x144xf32, #tpu.memory_space<vmem>>, vector<16x144xf32>
    %132 = arith.truncf %131 : vector<16x144xf32> to vector<16x144xbf16>
    %c5_146 = arith.constant 5 : index
    %c1_147 = arith.constant 1 : index
    %c0_148 = arith.constant 0 : index
    %c0_149 = arith.constant 0 : index
    %133 = vector.load %arg2[%c5_146, %c1_147, %c0_148, %c0_149] : memref<6x3x144x128xbf16, #tpu.memory_space<vmem>>, vector<1x1x144x128xbf16>
    %134 = vector.shape_cast %133 : vector<1x1x144x128xbf16> to vector<144x128xbf16>
    %cst_150 = arith.constant dense<0.000000e+00> : vector<16x128xf32>
    %135 = tpu.matmul %132, %134, %cst_150 {dimension_numbers = #tpu.dot_dimension_numbers<[1], [0], [0], [1], [0, 0, 1, 1], [], []>} : vector<16x144xbf16>, vector<144x128xbf16>, vector<16x128xf32> -> vector<16x128xf32>
    %136 = arith.addf %130, %135 : vector<16x128xf32>
    %c2_151 = arith.constant 2 : index
    %c0_152 = arith.constant 0 : index
    %137 = vector.load %arg6[%c2_151, %c0_152] : memref<18x144xf32, #tpu.memory_space<vmem>>, vector<16x144xf32>
    %138 = arith.truncf %137 : vector<16x144xf32> to vector<16x144xbf16>
    %c5_153 = arith.constant 5 : index
    %c2_154 = arith.constant 2 : index
    %c0_155 = arith.constant 0 : index
    %c0_156 = arith.constant 0 : index
    %139 = vector.load %arg2[%c5_153, %c2_154, %c0_155, %c0_156] : memref<6x3x144x128xbf16, #tpu.memory_space<vmem>>, vector<1x1x144x128xbf16>
    %140 = vector.shape_cast %139 : vector<1x1x144x128xbf16> to vector<144x128xbf16>
    %cst_157 = arith.constant dense<0.000000e+00> : vector<16x128xf32>
    %141 = tpu.matmul %138, %140, %cst_157 {dimension_numbers = #tpu.dot_dimension_numbers<[1], [0], [0], [1], [0, 0, 1, 1], [], []>} : vector<16x144xbf16>, vector<144x128xbf16>, vector<16x128xf32> -> vector<16x128xf32>
    %142 = arith.addf %136, %141 : vector<16x128xf32>
    %c5_158 = arith.constant 5 : index
    %c0_159 = arith.constant 0 : index
    %c0_160 = arith.constant 0 : index
    %143 = vector.load %arg3[%c5_158, %c0_159, %c0_160] : memref<6x1x128xf32, #tpu.memory_space<vmem>>, vector<1x1x128xf32>
    %144 = vector.shape_cast %143 : vector<1x1x128xf32> to vector<1x128xf32>
    %145 = vector.broadcast %144 : vector<1x128xf32> to vector<16x128xf32>
    %146 = arith.addf %142, %145 : vector<16x128xf32>
    %147 = arith.addf %146, %100 : vector<16x128xf32>
    %c0_161 = arith.constant 0 : index
    %c0_162 = arith.constant 0 : index
    %c0_163 = arith.constant 0 : index
    %148 = vector.load %arg5[%c0_161, %c0_162, %c0_163] : memref<1x16x128xf32, #tpu.memory_space<vmem>>, vector<1x16x128xf32>
    %149 = vector.shape_cast %148 : vector<1x16x128xf32> to vector<16x128xf32>
    %150 = vector.shape_cast %147 : vector<16x128xf32> to vector<1x16x128xf32>
    tpu.vector_store %arg5[%c0_161, %c0_162, %c0_163], %150 {strides = array<i32>} : memref<1x16x128xf32, #tpu.memory_space<vmem>>, vector<1x16x128xf32>,
    return
  }
  func.func @transform_0(%arg0: i32) -> (i32, i32, i32) {
    %c0_i32 = arith.constant 0 : i32
    %c0_i32_0 = arith.constant 0 : i32
    %c0_i32_1 = arith.constant 0 : i32
    return %arg0, %c0_i32, %c0_i32_0 : i32, i32, i32
  }
  func.func @transform_1(%arg0: i32) -> (i32, i32, i32, i32) {
    %c0_i32 = arith.constant 0 : i32
    %c0_i32_0 = arith.constant 0 : i32
    %c0_i32_1 = arith.constant 0 : i32
    %c0_i32_2 = arith.constant 0 : i32
    %c0_i32_3 = arith.constant 0 : i32
    return %c0_i32, %c0_i32_0, %c0_i32_1, %c0_i32_2 : i32, i32, i32, i32
  }
  func.func @transform_2(%arg0: i32) -> (i32, i32, i32) {
    %c0_i32 = arith.constant 0 : i32
    %c0_i32_0 = arith.constant 0 : i32
    %c0_i32_1 = arith.constant 0 : i32
    %c0_i32_2 = arith.constant 0 : i32
    return %c0_i32, %c0_i32_0, %c0_i32_1 : i32, i32, i32
  }
  func.func @transform_3(%arg0: i32) -> (i32, i32, i32) {
    %c0_i32 = arith.constant 0 : i32
    %c0_i32_0 = arith.constant 0 : i32
    %c0_i32_1 = arith.constant 0 : i32
    return %arg0, %c0_i32, %c0_i32_0 : i32, i32, i32
  }
  func.func @transform_4(%arg0: i32) -> (i32, i32, i32) {
    %c0_i32 = arith.constant 0 : i32
    %c0_i32_0 = arith.constant 0 : i32
    %c0_i32_1 = arith.constant 0 : i32
    return %arg0, %c0_i32, %c0_i32_0 : i32, i32, i32
  }
}

module attributes {stable_mosaic.version = 11 : i64} {
  func.func @_kernel_NL(%arg0: i32, %arg1: memref<1x256x8xf32, #tpu.memory_space<vmem>>, %arg2: memref<8x4xbf16, #tpu.memory_space<vmem>>, %arg3: memref<1x4xf32, #tpu.memory_space<vmem>>, %arg4: memref<8x4xbf16, #tpu.memory_space<vmem>>, %arg5: memref<1x4xf32, #tpu.memory_space<vmem>>, %arg6: memref<8x4xbf16, #tpu.memory_space<vmem>>, %arg7: memref<1x4xf32, #tpu.memory_space<vmem>>, %arg8: memref<4x8xbf16, #tpu.memory_space<vmem>>, %arg9: memref<1x8xf32, #tpu.memory_space<vmem>>, %arg10: memref<1x256x8xf32, #tpu.memory_space<vmem>>) attributes {dimension_semantics = [#tpu.dimension_semantics<parallel>], iteration_bounds = array<i64: 2>, scalar_prefetch = 0 : i64, scratch_operands = 0 : i64, tpu.core_type = #tpu.core_type<tc>, window_params = [{transform_indices = @transform_0, window_bounds = array<i64: 1, 256, 8>}, {pipeline_mode = #tpu.pipeline_mode<synchronous>, transform_indices = @transform_1, window_bounds = array<i64: 8, 4>}, {pipeline_mode = #tpu.pipeline_mode<synchronous>, transform_indices = @transform_2, window_bounds = array<i64: 1, 4>}, {pipeline_mode = #tpu.pipeline_mode<synchronous>, transform_indices = @transform_3, window_bounds = array<i64: 8, 4>}, {pipeline_mode = #tpu.pipeline_mode<synchronous>, transform_indices = @transform_4, window_bounds = array<i64: 1, 4>}, {pipeline_mode = #tpu.pipeline_mode<synchronous>, transform_indices = @transform_5, window_bounds = array<i64: 8, 4>}, {pipeline_mode = #tpu.pipeline_mode<synchronous>, transform_indices = @transform_6, window_bounds = array<i64: 1, 4>}, {pipeline_mode = #tpu.pipeline_mode<synchronous>, transform_indices = @transform_7, window_bounds = array<i64: 4, 8>}, {pipeline_mode = #tpu.pipeline_mode<synchronous>, transform_indices = @transform_8, window_bounds = array<i64: 1, 8>}, {transform_indices = @transform_9, window_bounds = array<i64: 1, 256, 8>}]} {
    %c0 = arith.constant 0 : index
    %c0_0 = arith.constant 0 : index
    %c0_1 = arith.constant 0 : index
    %0 = vector.load %arg1[%c0, %c0_0, %c0_1] : memref<1x256x8xf32, #tpu.memory_space<vmem>>, vector<1x256x8xf32>
    %1 = vector.shape_cast %0 : vector<1x256x8xf32> to vector<256x8xf32>
    %2 = arith.truncf %1 : vector<256x8xf32> to vector<256x8xbf16>
    %c0_2 = arith.constant 0 : index
    %c0_3 = arith.constant 0 : index
    %3 = vector.load %arg2[%c0_2, %c0_3] : memref<8x4xbf16, #tpu.memory_space<vmem>>, vector<8x4xbf16>
    %cst = arith.constant dense<0.000000e+00> : vector<256x4xf32>
    %4 = tpu.matmul %2, %3, %cst {dimension_numbers = #tpu.dot_dimension_numbers<[1], [0], [0], [1], [0, 0, 1, 1], [], []>} : vector<256x8xbf16>, vector<8x4xbf16>, vector<256x4xf32> -> vector<256x4xf32>
    %c0_4 = arith.constant 0 : index
    %c0_5 = arith.constant 0 : index
    %5 = vector.load %arg3[%c0_4, %c0_5] : memref<1x4xf32, #tpu.memory_space<vmem>>, vector<1x4xf32>
    %6 = vector.broadcast %5 : vector<1x4xf32> to vector<256x4xf32>
    %7 = arith.addf %4, %6 : vector<256x4xf32>
    %c0_6 = arith.constant 0 : index
    %c0_7 = arith.constant 0 : index
    %8 = vector.load %arg4[%c0_6, %c0_7] : memref<8x4xbf16, #tpu.memory_space<vmem>>, vector<8x4xbf16>
    %cst_8 = arith.constant dense<0.000000e+00> : vector<256x4xf32>
    %9 = tpu.matmul %2, %8, %cst_8 {dimension_numbers = #tpu.dot_dimension_numbers<[1], [0], [0], [1], [0, 0, 1, 1], [], []>} : vector<256x8xbf16>, vector<8x4xbf16>, vector<256x4xf32> -> vector<256x4xf32>
    %c0_9 = arith.constant 0 : index
    %c0_10 = arith.constant 0 : index
    %10 = vector.load %arg5[%c0_9, %c0_10] : memref<1x4xf32, #tpu.memory_space<vmem>>, vector<1x4xf32>
    %11 = vector.broadcast %10 : vector<1x4xf32> to vector<256x4xf32>
    %12 = arith.addf %9, %11 : vector<256x4xf32>
    %c0_11 = arith.constant 0 : index
    %c0_12 = arith.constant 0 : index
    %13 = vector.load %arg6[%c0_11, %c0_12] : memref<8x4xbf16, #tpu.memory_space<vmem>>, vector<8x4xbf16>
    %cst_13 = arith.constant dense<0.000000e+00> : vector<256x4xf32>
    %14 = tpu.matmul %2, %13, %cst_13 {dimension_numbers = #tpu.dot_dimension_numbers<[1], [0], [0], [1], [0, 0, 1, 1], [], []>} : vector<256x8xbf16>, vector<8x4xbf16>, vector<256x4xf32> -> vector<256x4xf32>
    %c0_14 = arith.constant 0 : index
    %c0_15 = arith.constant 0 : index
    %15 = vector.load %arg7[%c0_14, %c0_15] : memref<1x4xf32, #tpu.memory_space<vmem>>, vector<1x4xf32>
    %16 = vector.broadcast %15 : vector<1x4xf32> to vector<256x4xf32>
    %17 = arith.addf %14, %16 : vector<256x4xf32>
    %18 = arith.truncf %12 : vector<256x4xf32> to vector<256x4xbf16>
    %19 = arith.truncf %17 : vector<256x4xf32> to vector<256x4xbf16>
    %cst_16 = arith.constant dense<0.000000e+00> : vector<256x256xf32>
    %20 = tpu.matmul %18, %19, %cst_16 {dimension_numbers = #tpu.dot_dimension_numbers<[1], [1], [0], [0], [0, 0, 1, 0], [], []>} : vector<256x4xbf16>, vector<256x4xbf16>, vector<256x256xf32> -> vector<256x256xf32>
    %cst_17 = arith.constant dense<0xFF800000> : vector<256xf32>
    %21 = vector.multi_reduction <maximumf>, %20, %cst_17 [1] : vector<256x256xf32> to vector<256xf32>
    %22 = vector.shape_cast %21 : vector<256xf32> to vector<256x1xf32>
    %23 = vector.broadcast %22 : vector<256x1xf32> to vector<256x256xf32>
    %24 = arith.subf %20, %23 : vector<256x256xf32>
    %25 = math.exp %24 : vector<256x256xf32>
    %cst_18 = arith.constant dense<0.000000e+00> : vector<256xf32>
    %26 = vector.multi_reduction <add>, %25, %cst_18 [1] : vector<256x256xf32> to vector<256xf32>
    %27 = vector.shape_cast %26 : vector<256xf32> to vector<256x1xf32>
    %28 = tpu.reciprocal %27 {approx = true} : vector<256x1xf32> -> vector<256x1xf32>
    %29 = vector.broadcast %28 : vector<256x1xf32> to vector<256x256xf32>
    %30 = arith.mulf %25, %29 : vector<256x256xf32>
    %31 = arith.truncf %30 : vector<256x256xf32> to vector<256x256xbf16>
    %32 = arith.truncf %7 : vector<256x4xf32> to vector<256x4xbf16>
    %cst_19 = arith.constant dense<0.000000e+00> : vector<256x4xf32>
    %33 = tpu.matmul %31, %32, %cst_19 {dimension_numbers = #tpu.dot_dimension_numbers<[1], [0], [0], [1], [0, 0, 1, 1], [], []>} : vector<256x256xbf16>, vector<256x4xbf16>, vector<256x4xf32> -> vector<256x4xf32>
    %34 = arith.truncf %33 : vector<256x4xf32> to vector<256x4xbf16>
    %c0_20 = arith.constant 0 : index
    %c0_21 = arith.constant 0 : index
    %35 = vector.load %arg8[%c0_20, %c0_21] : memref<4x8xbf16, #tpu.memory_space<vmem>>, vector<4x8xbf16>
    %cst_22 = arith.constant dense<0.000000e+00> : vector<256x8xf32>
    %36 = tpu.matmul %34, %35, %cst_22 {dimension_numbers = #tpu.dot_dimension_numbers<[1], [0], [0], [1], [0, 0, 1, 1], [], []>} : vector<256x4xbf16>, vector<4x8xbf16>, vector<256x8xf32> -> vector<256x8xf32>
    %c0_23 = arith.constant 0 : index
    %c0_24 = arith.constant 0 : index
    %37 = vector.load %arg9[%c0_23, %c0_24] : memref<1x8xf32, #tpu.memory_space<vmem>>, vector<1x8xf32>
    %38 = vector.broadcast %37 : vector<1x8xf32> to vector<256x8xf32>
    %39 = arith.addf %36, %38 : vector<256x8xf32>
    %40 = arith.addf %39, %1 : vector<256x8xf32>
    %c0_25 = arith.constant 0 : index
    %c0_26 = arith.constant 0 : index
    %c0_27 = arith.constant 0 : index
    %41 = vector.load %arg10[%c0_25, %c0_26, %c0_27] : memref<1x256x8xf32, #tpu.memory_space<vmem>>, vector<1x256x8xf32>
    %42 = vector.shape_cast %41 : vector<1x256x8xf32> to vector<256x8xf32>
    %43 = vector.shape_cast %40 : vector<256x8xf32> to vector<1x256x8xf32>
    tpu.vector_store %arg10[%c0_25, %c0_26, %c0_27], %43 {strides = array<i32>} : memref<1x256x8xf32, #tpu.memory_space<vmem>>, vector<1x256x8xf32>,
    return
  }
  func.func @transform_0(%arg0: i32) -> (i32, i32, i32) {
    %c0_i32 = arith.constant 0 : i32
    %c0_i32_0 = arith.constant 0 : i32
    %c0_i32_1 = arith.constant 0 : i32
    return %arg0, %c0_i32, %c0_i32_0 : i32, i32, i32
  }
  func.func @transform_1(%arg0: i32) -> (i32, i32) {
    %c0_i32 = arith.constant 0 : i32
    %c0_i32_0 = arith.constant 0 : i32
    %c0_i32_1 = arith.constant 0 : i32
    return %c0_i32, %c0_i32_0 : i32, i32
  }
  func.func @transform_2(%arg0: i32) -> (i32, i32) {
    %c0_i32 = arith.constant 0 : i32
    %c0_i32_0 = arith.constant 0 : i32
    %c0_i32_1 = arith.constant 0 : i32
    return %c0_i32, %c0_i32_0 : i32, i32
  }
  func.func @transform_3(%arg0: i32) -> (i32, i32) {
    %c0_i32 = arith.constant 0 : i32
    %c0_i32_0 = arith.constant 0 : i32
    %c0_i32_1 = arith.constant 0 : i32
    return %c0_i32, %c0_i32_0 : i32, i32
  }
  func.func @transform_4(%arg0: i32) -> (i32, i32) {
    %c0_i32 = arith.constant 0 : i32
    %c0_i32_0 = arith.constant 0 : i32
    %c0_i32_1 = arith.constant 0 : i32
    return %c0_i32, %c0_i32_0 : i32, i32
  }
  func.func @transform_5(%arg0: i32) -> (i32, i32) {
    %c0_i32 = arith.constant 0 : i32
    %c0_i32_0 = arith.constant 0 : i32
    %c0_i32_1 = arith.constant 0 : i32
    return %c0_i32, %c0_i32_0 : i32, i32
  }
  func.func @transform_6(%arg0: i32) -> (i32, i32) {
    %c0_i32 = arith.constant 0 : i32
    %c0_i32_0 = arith.constant 0 : i32
    %c0_i32_1 = arith.constant 0 : i32
    return %c0_i32, %c0_i32_0 : i32, i32
  }
  func.func @transform_7(%arg0: i32) -> (i32, i32) {
    %c0_i32 = arith.constant 0 : i32
    %c0_i32_0 = arith.constant 0 : i32
    %c0_i32_1 = arith.constant 0 : i32
    return %c0_i32, %c0_i32_0 : i32, i32
  }
  func.func @transform_8(%arg0: i32) -> (i32, i32) {
    %c0_i32 = arith.constant 0 : i32
    %c0_i32_0 = arith.constant 0 : i32
    %c0_i32_1 = arith.constant 0 : i32
    return %c0_i32, %c0_i32_0 : i32, i32
  }
  func.func @transform_9(%arg0: i32) -> (i32, i32, i32) {
    %c0_i32 = arith.constant 0 : i32
    %c0_i32_0 = arith.constant 0 : i32
    %c0_i32_1 = arith.constant 0 : i32
    return %arg0, %c0_i32, %c0_i32_0 : i32, i32, i32
  }
}

module attributes {stable_mosaic.version = 11 : i64} {
  func.func @_kernel_BC(%arg0: i32, %arg1: memref<1x16x128xf32, #tpu.memory_space<vmem>>, %arg2: memref<1x16x128xf32, #tpu.memory_space<vmem>>, %arg3: memref<1x16x128xf32, #tpu.memory_space<vmem>>, %arg4: memref<9x3x144x128xbf16, #tpu.memory_space<vmem>>, %arg5: memref<9x1x128xf32, #tpu.memory_space<vmem>>, %arg6: memref<3x144x64xbf16, #tpu.memory_space<vmem>>, %arg7: memref<1x64xf32, #tpu.memory_space<vmem>>, %arg8: memref<4x3x80x64xbf16, #tpu.memory_space<vmem>>, %arg9: memref<4x1x64xf32, #tpu.memory_space<vmem>>, %arg10: memref<2x3x80x128xbf16, #tpu.memory_space<vmem>>, %arg11: memref<1x128xf32, #tpu.memory_space<vmem>>, %arg12: memref<128x128xbf16, #tpu.memory_space<vmem>>, %arg13: memref<1x128xf32, #tpu.memory_space<vmem>>, %arg14: memref<1x16x128xf32, #tpu.memory_space<vmem>>, %arg15: memref<18x144xf32, #tpu.memory_space<vmem>>, %arg16: memref<10x80xf32, #tpu.memory_space<vmem>>, %arg17: memref<9x144xf32, #tpu.memory_space<vmem>>, %arg18: memref<8x144xf32, #tpu.memory_space<vmem>>, %arg19: memref<16x128xf32, #tpu.memory_space<vmem>>) attributes {dimension_semantics = [#tpu.dimension_semantics<parallel>], iteration_bounds = array<i64: 2>, scalar_prefetch = 0 : i64, scratch_operands = 5 : i64, tpu.core_type = #tpu.core_type<tc>, window_params = [{transform_indices = @transform_0, window_bounds = array<i64: 1, 16, 128>}, {transform_indices = @transform_1, window_bounds = array<i64: 1, 16, 128>}, {transform_indices = @transform_2, window_bounds = array<i64: 1, 16, 128>}, {pipeline_mode = #tpu.pipeline_mode<synchronous>, transform_indices = @transform_3, window_bounds = array<i64: 9, 3, 144, 128>}, {pipeline_mode = #tpu.pipeline_mode<synchronous>, transform_indices = @transform_4, window_bounds = array<i64: 9, 1, 128>}, {pipeline_mode = #tpu.pipeline_mode<synchronous>, transform_indices = @transform_5, window_bounds = array<i64: 3, 144, 64>}, {pipeline_mode = #tpu.pipeline_mode<synchronous>, transform_indices = @transform_6, window_bounds = array<i64: 1, 64>}, {pipeline_mode = #tpu.pipeline_mode<synchronous>, transform_indices = @transform_7, window_bounds = array<i64: 4, 3, 80, 64>}, {pipeline_mode = #tpu.pipeline_mode<synchronous>, transform_indices = @transform_8, window_bounds = array<i64: 4, 1, 64>}, {pipeline_mode = #tpu.pipeline_mode<synchronous>, transform_indices = @transform_9, window_bounds = array<i64: 2, 3, 80, 128>}, {pipeline_mode = #tpu.pipeline_mode<synchronous>, transform_indices = @transform_10, window_bounds = array<i64: 1, 128>}, {pipeline_mode = #tpu.pipeline_mode<synchronous>, transform_indices = @transform_11, window_bounds = array<i64: 128, 128>}, {pipeline_mode = #tpu.pipeline_mode<synchronous>, transform_indices = @transform_12, window_bounds = array<i64: 1, 128>}, {transform_indices = @transform_13, window_bounds = array<i64: 1, 16, 128>}]} {
    %cst = arith.constant 0.000000e+00 : f32
    %0 = vector.broadcast %cst : f32 to vector<18x144xf32>
    %c0 = arith.constant 0 : index
    %c0_0 = arith.constant 0 : index
    %1 = vector.load %arg15[%c0, %c0_0] : memref<18x144xf32, #tpu.memory_space<vmem>>, vector<18x144xf32>
    tpu.vector_store %arg15[%c0, %c0_0], %0 {strides = array<i32>} : memref<18x144xf32, #tpu.memory_space<vmem>>, vector<18x144xf32>,
    %cst_1 = arith.constant 0.000000e+00 : f32
    %2 = vector.broadcast %cst_1 : f32 to vector<10x80xf32>
    %c0_2 = arith.constant 0 : index
    %c0_3 = arith.constant 0 : index
    %3 = vector.load %arg16[%c0_2, %c0_3] : memref<10x80xf32, #tpu.memory_space<vmem>>, vector<10x80xf32>
    tpu.vector_store %arg16[%c0_2, %c0_3], %2 {strides = array<i32>} : memref<10x80xf32, #tpu.memory_space<vmem>>, vector<10x80xf32>,
    %cst_4 = arith.constant 0.000000e+00 : f32
    %4 = vector.broadcast %cst_4 : f32 to vector<9x144xf32>
    %c0_5 = arith.constant 0 : index
    %c0_6 = arith.constant 0 : index
    %5 = vector.load %arg17[%c0_5, %c0_6] : memref<9x144xf32, #tpu.memory_space<vmem>>, vector<9x144xf32>
    tpu.vector_store %arg17[%c0_5, %c0_6], %4 {strides = array<i32>} : memref<9x144xf32, #tpu.memory_space<vmem>>, vector<9x144xf32>,
    %cst_7 = arith.constant 0.000000e+00 : f32
    %6 = vector.broadcast %cst_7 : f32 to vector<8x144xf32>
    %c0_8 = arith.constant 0 : index
    %c0_9 = arith.constant 0 : index
    %7 = vector.load %arg18[%c0_8, %c0_9] : memref<8x144xf32, #tpu.memory_space<vmem>>, vector<8x144xf32>
    tpu.vector_store %arg18[%c0_8, %c0_9], %6 {strides = array<i32>} : memref<8x144xf32, #tpu.memory_space<vmem>>, vector<8x144xf32>,
    %c0_10 = arith.constant 0 : index
    %c0_11 = arith.constant 0 : index
    %c0_12 = arith.constant 0 : index
    %8 = vector.load %arg1[%c0_10, %c0_11, %c0_12] : memref<1x16x128xf32, #tpu.memory_space<vmem>>, vector<1x16x128xf32>
    %9 = vector.shape_cast %8 : vector<1x16x128xf32> to vector<16x128xf32>
    %c1 = arith.constant 1 : index
    %c0_13 = arith.constant 0 : index
    %10 = vector.load %arg15[%c1, %c0_13] : memref<18x144xf32, #tpu.memory_space<vmem>>, vector<16x128xf32>
    tpu.vector_store %arg15[%c1, %c0_13], %9 {strides = array<i32>} : memref<18x144xf32, #tpu.memory_space<vmem>>, vector<16x128xf32>,
    %c0_14 = arith.constant 0 : index
    %c0_15 = arith.constant 0 : index
    %11 = vector.load %arg15[%c0_14, %c0_15] : memref<18x144xf32, #tpu.memory_space<vmem>>, vector<16x144xf32>
    %12 = arith.truncf %11 : vector<16x144xf32> to vector<16x144xbf16>
    %c0_16 = arith.constant 0 : index
    %c0_17 = arith.constant 0 : index
    %c0_18 = arith.constant 0 : index
    %c0_19 = arith.constant 0 : index
    %13 = vector.load %arg4[%c0_16, %c0_17, %c0_18, %c0_19] : memref<9x3x144x128xbf16, #tpu.memory_space<vmem>>, vector<1x1x144x128xbf16>
    %14 = vector.shape_cast %13 : vector<1x1x144x128xbf16> to vector<144x128xbf16>
    %cst_20 = arith.constant dense<0.000000e+00> : vector<16x128xf32>
    %15 = tpu.matmul %12, %14, %cst_20 {dimension_numbers = #tpu.dot_dimension_numbers<[1], [0], [0], [1], [0, 0, 1, 1], [], []>} : vector<16x144xbf16>, vector<144x128xbf16>, vector<16x128xf32> -> vector<16x128xf32>
    %c1_21 = arith.constant 1 : index
    %c0_22 = arith.constant 0 : index
    %16 = vector.load %arg15[%c1_21, %c0_22] : memref<18x144xf32, #tpu.memory_space<vmem>>, vector<16x144xf32>
    %17 = arith.truncf %16 : vector<16x144xf32> to vector<16x144xbf16>
    %c0_23 = arith.constant 0 : index
    %c1_24 = arith.constant 1 : index
    %c0_25 = arith.constant 0 : index
    %c0_26 = arith.constant 0 : index
    %18 = vector.load %arg4[%c0_23, %c1_24, %c0_25, %c0_26] : memref<9x3x144x128xbf16, #tpu.memory_space<vmem>>, vector<1x1x144x128xbf16>
    %19 = vector.shape_cast %18 : vector<1x1x144x128xbf16> to vector<144x128xbf16>
    %cst_27 = arith.constant dense<0.000000e+00> : vector<16x128xf32>
    %20 = tpu.matmul %17, %19, %cst_27 {dimension_numbers = #tpu.dot_dimension_numbers<[1], [0], [0], [1], [0, 0, 1, 1], [], []>} : vector<16x144xbf16>, vector<144x128xbf16>, vector<16x128xf32> -> vector<16x128xf32>
    %21 = arith.addf %15, %20 : vector<16x128xf32>
    %c2 = arith.constant 2 : index
    %c0_28 = arith.constant 0 : index
    %22 = vector.load %arg15[%c2, %c0_28] : memref<18x144xf32, #tpu.memory_space<vmem>>, vector<16x144xf32>
    %23 = arith.truncf %22 : vector<16x144xf32> to vector<16x144xbf16>
    %c0_29 = arith.constant 0 : index
    %c2_30 = arith.constant 2 : index
    %c0_31 = arith.constant 0 : index
    %c0_32 = arith.constant 0 : index
    %24 = vector.load %arg4[%c0_29, %c2_30, %c0_31, %c0_32] : memref<9x3x144x128xbf16, #tpu.memory_space<vmem>>, vector<1x1x144x128xbf16>
    %25 = vector.shape_cast %24 : vector<1x1x144x128xbf16> to vector<144x128xbf16>
    %cst_33 = arith.constant dense<0.000000e+00> : vector<16x128xf32>
    %26 = tpu.matmul %23, %25, %cst_33 {dimension_numbers = #tpu.dot_dimension_numbers<[1], [0], [0], [1], [0, 0, 1, 1], [], []>} : vector<16x144xbf16>, vector<144x128xbf16>, vector<16x128xf32> -> vector<16x128xf32>
    %27 = arith.addf %21, %26 : vector<16x128xf32>
    %c0_34 = arith.constant 0 : index
    %c0_35 = arith.constant 0 : index
    %c0_36 = arith.constant 0 : index
    %28 = vector.load %arg5[%c0_34, %c0_35, %c0_36] : memref<9x1x128xf32, #tpu.memory_space<vmem>>, vector<1x1x128xf32>
    %29 = vector.shape_cast %28 : vector<1x1x128xf32> to vector<1x128xf32>
    %30 = vector.broadcast %29 : vector<1x128xf32> to vector<16x128xf32>
    %31 = arith.addf %27, %30 : vector<16x128xf32>
    %cst_37 = arith.constant 0.000000e+00 : f32
    %32 = vector.broadcast %cst_37 : f32 to vector<16x128xf32>
    %33 = arith.maximumf %31, %32 : vector<16x128xf32>
    %c1_38 = arith.constant 1 : index
    %c0_39 = arith.constant 0 : index
    %34 = vector.load %arg15[%c1_38, %c0_39] : memref<18x144xf32, #tpu.memory_space<vmem>>, vector<16x128xf32>
    tpu.vector_store %arg15[%c1_38, %c0_39], %33 {strides = array<i32>} : memref<18x144xf32, #tpu.memory_space<vmem>>, vector<16x128xf32>,
    %c0_40 = arith.constant 0 : index
    %c0_41 = arith.constant 0 : index
    %35 = vector.load %arg15[%c0_40, %c0_41] : memref<18x144xf32, #tpu.memory_space<vmem>>, vector<16x144xf32>
    %36 = arith.truncf %35 : vector<16x144xf32> to vector<16x144xbf16>
    %c1_42 = arith.constant 1 : index
    %c0_43 = arith.constant 0 : index
    %c0_44 = arith.constant 0 : index
    %c0_45 = arith.constant 0 : index
    %37 = vector.load %arg4[%c1_42, %c0_43, %c0_44, %c0_45] : memref<9x3x144x128xbf16, #tpu.memory_space<vmem>>, vector<1x1x144x128xbf16>
    %38 = vector.shape_cast %37 : vector<1x1x144x128xbf16> to vector<144x128xbf16>
    %cst_46 = arith.constant dense<0.000000e+00> : vector<16x128xf32>
    %39 = tpu.matmul %36, %38, %cst_46 {dimension_numbers = #tpu.dot_dimension_numbers<[1], [0], [0], [1], [0, 0, 1, 1], [], []>} : vector<16x144xbf16>, vector<144x128xbf16>, vector<16x128xf32> -> vector<16x128xf32>
    %c1_47 = arith.constant 1 : index
    %c0_48 = arith.constant 0 : index
    %40 = vector.load %arg15[%c1_47, %c0_48] : memref<18x144xf32, #tpu.memory_space<vmem>>, vector<16x144xf32>
    %41 = arith.truncf %40 : vector<16x144xf32> to vector<16x144xbf16>
    %c1_49 = arith.constant 1 : index
    %c1_50 = arith.constant 1 : index
    %c0_51 = arith.constant 0 : index
    %c0_52 = arith.constant 0 : index
    %42 = vector.load %arg4[%c1_49, %c1_50, %c0_51, %c0_52] : memref<9x3x144x128xbf16, #tpu.memory_space<vmem>>, vector<1x1x144x128xbf16>
    %43 = vector.shape_cast %42 : vector<1x1x144x128xbf16> to vector<144x128xbf16>
    %cst_53 = arith.constant dense<0.000000e+00> : vector<16x128xf32>
    %44 = tpu.matmul %41, %43, %cst_53 {dimension_numbers = #tpu.dot_dimension_numbers<[1], [0], [0], [1], [0, 0, 1, 1], [], []>} : vector<16x144xbf16>, vector<144x128xbf16>, vector<16x128xf32> -> vector<16x128xf32>
    %45 = arith.addf %39, %44 : vector<16x128xf32>
    %c2_54 = arith.constant 2 : index
    %c0_55 = arith.constant 0 : index
    %46 = vector.load %arg15[%c2_54, %c0_55] : memref<18x144xf32, #tpu.memory_space<vmem>>, vector<16x144xf32>
    %47 = arith.truncf %46 : vector<16x144xf32> to vector<16x144xbf16>
    %c1_56 = arith.constant 1 : index
    %c2_57 = arith.constant 2 : index
    %c0_58 = arith.constant 0 : index
    %c0_59 = arith.constant 0 : index
    %48 = vector.load %arg4[%c1_56, %c2_57, %c0_58, %c0_59] : memref<9x3x144x128xbf16, #tpu.memory_space<vmem>>, vector<1x1x144x128xbf16>
    %49 = vector.shape_cast %48 : vector<1x1x144x128xbf16> to vector<144x128xbf16>
    %cst_60 = arith.constant dense<0.000000e+00> : vector<16x128xf32>
    %50 = tpu.matmul %47, %49, %cst_60 {dimension_numbers = #tpu.dot_dimension_numbers<[1], [0], [0], [1], [0, 0, 1, 1], [], []>} : vector<16x144xbf16>, vector<144x128xbf16>, vector<16x128xf32> -> vector<16x128xf32>
    %51 = arith.addf %45, %50 : vector<16x128xf32>
    %c1_61 = arith.constant 1 : index
    %c0_62 = arith.constant 0 : index
    %c0_63 = arith.constant 0 : index
    %52 = vector.load %arg5[%c1_61, %c0_62, %c0_63] : memref<9x1x128xf32, #tpu.memory_space<vmem>>, vector<1x1x128xf32>
    %53 = vector.shape_cast %52 : vector<1x1x128xf32> to vector<1x128xf32>
    %54 = vector.broadcast %53 : vector<1x128xf32> to vector<16x128xf32>
    %55 = arith.addf %51, %54 : vector<16x128xf32>
    %56 = arith.addf %55, %9 : vector<16x128xf32>
    %57 = vector.extract_strided_slice %56 {offsets = [0, 0], sizes = [1, 128], strides = [1, 1]} : vector<16x128xf32> to vector<1x128xf32>
    %c0_64 = arith.constant 0 : index
    %c0_65 = arith.constant 0 : index
    %58 = vector.load %arg18[%c0_64, %c0_65] : memref<8x144xf32, #tpu.memory_space<vmem>>, vector<1x128xf32>
    tpu.vector_store %arg18[%c0_64, %c0_65], %57 {strides = array<i32>} : memref<8x144xf32, #tpu.memory_space<vmem>>, vector<1x128xf32>,
    %59 = vector.extract_strided_slice %56 {offsets = [1, 0], sizes = [1, 128], strides = [1, 1]} : vector<16x128xf32> to vector<1x128xf32>
    %c1_66 = arith.constant 1 : index
    %c0_67 = arith.constant 0 : index
    %60 = vector.load %arg17[%c1_66, %c0_67] : memref<9x144xf32, #tpu.memory_space<vmem>>, vector<1x128xf32>
    tpu.vector_store %arg17[%c1_66, %c0_67], %59 {strides = array<i32>} : memref<9x144xf32, #tpu.memory_space<vmem>>, vector<1x128xf32>,
    %61 = vector.extract_strided_slice %56 {offsets = [2, 0], sizes = [1, 128], strides = [1, 1]} : vector<16x128xf32> to vector<1x128xf32>
    %c1_68 = arith.constant 1 : index
    %c0_69 = arith.constant 0 : index
    %62 = vector.load %arg18[%c1_68, %c0_69] : memref<8x144xf32, #tpu.memory_space<vmem>>, vector<1x128xf32>
    tpu.vector_store %arg18[%c1_68, %c0_69], %61 {strides = array<i32>} : memref<8x144xf32, #tpu.memory_space<vmem>>, vector<1x128xf32>,
    %63 = vector.extract_strided_slice %56 {offsets = [3, 0], sizes = [1, 128], strides = [1, 1]} : vector<16x128xf32> to vector<1x128xf32>
    %c2_70 = arith.constant 2 : index
    %c0_71 = arith.constant 0 : index
    %64 = vector.load %arg17[%c2_70, %c0_71] : memref<9x144xf32, #tpu.memory_space<vmem>>, vector<1x128xf32>
    tpu.vector_store %arg17[%c2_70, %c0_71], %63 {strides = array<i32>} : memref<9x144xf32, #tpu.memory_space<vmem>>, vector<1x128xf32>,
    %65 = vector.extract_strided_slice %56 {offsets = [4, 0], sizes = [1, 128], strides = [1, 1]} : vector<16x128xf32> to vector<1x128xf32>
    %c2_72 = arith.constant 2 : index
    %c0_73 = arith.constant 0 : index
    %66 = vector.load %arg18[%c2_72, %c0_73] : memref<8x144xf32, #tpu.memory_space<vmem>>, vector<1x128xf32>
    tpu.vector_store %arg18[%c2_72, %c0_73], %65 {strides = array<i32>} : memref<8x144xf32, #tpu.memory_space<vmem>>, vector<1x128xf32>,
    %67 = vector.extract_strided_slice %56 {offsets = [5, 0], sizes = [1, 128], strides = [1, 1]} : vector<16x128xf32> to vector<1x128xf32>
    %c3 = arith.constant 3 : index
    %c0_74 = arith.constant 0 : index
    %68 = vector.load %arg17[%c3, %c0_74] : memref<9x144xf32, #tpu.memory_space<vmem>>, vector<1x128xf32>
    tpu.vector_store %arg17[%c3, %c0_74], %67 {strides = array<i32>} : memref<9x144xf32, #tpu.memory_space<vmem>>, vector<1x128xf32>,
    %69 = vector.extract_strided_slice %56 {offsets = [6, 0], sizes = [1, 128], strides = [1, 1]} : vector<16x128xf32> to vector<1x128xf32>
    %c3_75 = arith.constant 3 : index
    %c0_76 = arith.constant 0 : index
    %70 = vector.load %arg18[%c3_75, %c0_76] : memref<8x144xf32, #tpu.memory_space<vmem>>, vector<1x128xf32>
    tpu.vector_store %arg18[%c3_75, %c0_76], %69 {strides = array<i32>} : memref<8x144xf32, #tpu.memory_space<vmem>>, vector<1x128xf32>,
    %71 = vector.extract_strided_slice %56 {offsets = [7, 0], sizes = [1, 128], strides = [1, 1]} : vector<16x128xf32> to vector<1x128xf32>
    %c4 = arith.constant 4 : index
    %c0_77 = arith.constant 0 : index
    %72 = vector.load %arg17[%c4, %c0_77] : memref<9x144xf32, #tpu.memory_space<vmem>>, vector<1x128xf32>
    tpu.vector_store %arg17[%c4, %c0_77], %71 {strides = array<i32>} : memref<9x144xf32, #tpu.memory_space<vmem>>, vector<1x128xf32>,
    %73 = vector.extract_strided_slice %56 {offsets = [8, 0], sizes = [1, 128], strides = [1, 1]} : vector<16x128xf32> to vector<1x128xf32>
    %c4_78 = arith.constant 4 : index
    %c0_79 = arith.constant 0 : index
    %74 = vector.load %arg18[%c4_78, %c0_79] : memref<8x144xf32, #tpu.memory_space<vmem>>, vector<1x128xf32>
    tpu.vector_store %arg18[%c4_78, %c0_79], %73 {strides = array<i32>} : memref<8x144xf32, #tpu.memory_space<vmem>>, vector<1x128xf32>,
    %75 = vector.extract_strided_slice %56 {offsets = [9, 0], sizes = [1, 128], strides = [1, 1]} : vector<16x128xf32> to vector<1x128xf32>
    %c5 = arith.constant 5 : index
    %c0_80 = arith.constant 0 : index
    %76 = vector.load %arg17[%c5, %c0_80] : memref<9x144xf32, #tpu.memory_space<vmem>>, vector<1x128xf32>
    tpu.vector_store %arg17[%c5, %c0_80], %75 {strides = array<i32>} : memref<9x144xf32, #tpu.memory_space<vmem>>, vector<1x128xf32>,
    %77 = vector.extract_strided_slice %56 {offsets = [10, 0], sizes = [1, 128], strides = [1, 1]} : vector<16x128xf32> to vector<1x128xf32>
    %c5_81 = arith.constant 5 : index
    %c0_82 = arith.constant 0 : index
    %78 = vector.load %arg18[%c5_81, %c0_82] : memref<8x144xf32, #tpu.memory_space<vmem>>, vector<1x128xf32>
    tpu.vector_store %arg18[%c5_81, %c0_82], %77 {strides = array<i32>} : memref<8x144xf32, #tpu.memory_space<vmem>>, vector<1x128xf32>,
    %79 = vector.extract_strided_slice %56 {offsets = [11, 0], sizes = [1, 128], strides = [1, 1]} : vector<16x128xf32> to vector<1x128xf32>
    %c6 = arith.constant 6 : index
    %c0_83 = arith.constant 0 : index
    %80 = vector.load %arg17[%c6, %c0_83] : memref<9x144xf32, #tpu.memory_space<vmem>>, vector<1x128xf32>
    tpu.vector_store %arg17[%c6, %c0_83], %79 {strides = array<i32>} : memref<9x144xf32, #tpu.memory_space<vmem>>, vector<1x128xf32>,
    %81 = vector.extract_strided_slice %56 {offsets = [12, 0], sizes = [1, 128], strides = [1, 1]} : vector<16x128xf32> to vector<1x128xf32>
    %c6_84 = arith.constant 6 : index
    %c0_85 = arith.constant 0 : index
    %82 = vector.load %arg18[%c6_84, %c0_85] : memref<8x144xf32, #tpu.memory_space<vmem>>, vector<1x128xf32>
    tpu.vector_store %arg18[%c6_84, %c0_85], %81 {strides = array<i32>} : memref<8x144xf32, #tpu.memory_space<vmem>>, vector<1x128xf32>,
    %83 = vector.extract_strided_slice %56 {offsets = [13, 0], sizes = [1, 128], strides = [1, 1]} : vector<16x128xf32> to vector<1x128xf32>
    %c7 = arith.constant 7 : index
    %c0_86 = arith.constant 0 : index
    %84 = vector.load %arg17[%c7, %c0_86] : memref<9x144xf32, #tpu.memory_space<vmem>>, vector<1x128xf32>
    tpu.vector_store %arg17[%c7, %c0_86], %83 {strides = array<i32>} : memref<9x144xf32, #tpu.memory_space<vmem>>, vector<1x128xf32>,
    %85 = vector.extract_strided_slice %56 {offsets = [14, 0], sizes = [1, 128], strides = [1, 1]} : vector<16x128xf32> to vector<1x128xf32>
    %c7_87 = arith.constant 7 : index
    %c0_88 = arith.constant 0 : index
    %86 = vector.load %arg18[%c7_87, %c0_88] : memref<8x144xf32, #tpu.memory_space<vmem>>, vector<1x128xf32>
    tpu.vector_store %arg18[%c7_87, %c0_88], %85 {strides = array<i32>} : memref<8x144xf32, #tpu.memory_space<vmem>>, vector<1x128xf32>,
    %87 = vector.extract_strided_slice %56 {offsets = [15, 0], sizes = [1, 128], strides = [1, 1]} : vector<16x128xf32> to vector<1x128xf32>
    %c8 = arith.constant 8 : index
    %c0_89 = arith.constant 0 : index
    %88 = vector.load %arg17[%c8, %c0_89] : memref<9x144xf32, #tpu.memory_space<vmem>>, vector<1x128xf32>
    tpu.vector_store %arg17[%c8, %c0_89], %87 {strides = array<i32>} : memref<9x144xf32, #tpu.memory_space<vmem>>, vector<1x128xf32>,
    %c0_90 = arith.constant 0 : index
    %c0_91 = arith.constant 0 : index
    %89 = vector.load %arg17[%c0_90, %c0_91] : memref<9x144xf32, #tpu.memory_space<vmem>>, vector<8x144xf32>
    %c0_92 = arith.constant 0 : index
    %c0_93 = arith.constant 0 : index
    %90 = vector.load %arg18[%c0_92, %c0_93] : memref<8x144xf32, #tpu.memory_space<vmem>>, vector<8x144xf32>
    %c1_94 = arith.constant 1 : index
    %c0_95 = arith.constant 0 : index
    %91 = vector.load %arg17[%c1_94, %c0_95] : memref<9x144xf32, #tpu.memory_space<vmem>>, vector<8x144xf32>
    %92 = arith.truncf %89 : vector<8x144xf32> to vector<8x144xbf16>
    %c0_96 = arith.constant 0 : index
    %c0_97 = arith.constant 0 : index
    %c0_98 = arith.constant 0 : index
    %93 = vector.load %arg6[%c0_96, %c0_97, %c0_98] : memref<3x144x64xbf16, #tpu.memory_space<vmem>>, vector<1x144x64xbf16>
    %94 = vector.shape_cast %93 : vector<1x144x64xbf16> to vector<144x64xbf16>
    %cst_99 = arith.constant dense<0.000000e+00> : vector<8x64xf32>
    %95 = tpu.matmul %92, %94, %cst_99 {dimension_numbers = #tpu.dot_dimension_numbers<[1], [0], [0], [1], [0, 0, 1, 1], [], []>} : vector<8x144xbf16>, vector<144x64xbf16>, vector<8x64xf32> -> vector<8x64xf32>
    %96 = arith.truncf %90 : vector<8x144xf32> to vector<8x144xbf16>
    %c1_100 = arith.constant 1 : index
    %c0_101 = arith.constant 0 : index
    %c0_102 = arith.constant 0 : index
    %97 = vector.load %arg6[%c1_100, %c0_101, %c0_102] : memref<3x144x64xbf16, #tpu.memory_space<vmem>>, vector<1x144x64xbf16>
    %98 = vector.shape_cast %97 : vector<1x144x64xbf16> to vector<144x64xbf16>
    %cst_103 = arith.constant dense<0.000000e+00> : vector<8x64xf32>
    %99 = tpu.matmul %96, %98, %cst_103 {dimension_numbers = #tpu.dot_dimension_numbers<[1], [0], [0], [1], [0, 0, 1, 1], [], []>} : vector<8x144xbf16>, vector<144x64xbf16>, vector<8x64xf32> -> vector<8x64xf32>
    %100 = arith.addf %95, %99 : vector<8x64xf32>
    %101 = arith.truncf %91 : vector<8x144xf32> to vector<8x144xbf16>
    %c2_104 = arith.constant 2 : index
    %c0_105 = arith.constant 0 : index
    %c0_106 = arith.constant 0 : index
    %102 = vector.load %arg6[%c2_104, %c0_105, %c0_106] : memref<3x144x64xbf16, #tpu.memory_space<vmem>>, vector<1x144x64xbf16>
    %103 = vector.shape_cast %102 : vector<1x144x64xbf16> to vector<144x64xbf16>
    %cst_107 = arith.constant dense<0.000000e+00> : vector<8x64xf32>
    %104 = tpu.matmul %101, %103, %cst_107 {dimension_numbers = #tpu.dot_dimension_numbers<[1], [0], [0], [1], [0, 0, 1, 1], [], []>} : vector<8x144xbf16>, vector<144x64xbf16>, vector<8x64xf32> -> vector<8x64xf32>
    %105 = arith.addf %100, %104 : vector<8x64xf32>
    %c0_108 = arith.constant 0 : index
    %c0_109 = arith.constant 0 : index
    %106 = vector.load %arg7[%c0_108, %c0_109] : memref<1x64xf32, #tpu.memory_space<vmem>>, vector<1x64xf32>
    %107 = vector.broadcast %106 : vector<1x64xf32> to vector<8x64xf32>
    %108 = arith.addf %105, %107 : vector<8x64xf32>
    %c1_110 = arith.constant 1 : index
    %c0_111 = arith.constant 0 : index
    %109 = vector.load %arg16[%c1_110, %c0_111] : memref<10x80xf32, #tpu.memory_space<vmem>>, vector<8x64xf32>
    tpu.vector_store %arg16[%c1_110, %c0_111], %108 {strides = array<i32>} : memref<10x80xf32, #tpu.memory_space<vmem>>, vector<8x64xf32>,
    %c0_112 = arith.constant 0 : index
    %c0_113 = arith.constant 0 : index
    %110 = vector.load %arg16[%c0_112, %c0_113] : memref<10x80xf32, #tpu.memory_space<vmem>>, vector<8x80xf32>
    %111 = arith.truncf %110 : vector<8x80xf32> to vector<8x80xbf16>
    %c0_114 = arith.constant 0 : index
    %c0_115 = arith.constant 0 : index
    %c0_116 = arith.constant 0 : index
    %c0_117 = arith.constant 0 : index
    %112 = vector.load %arg8[%c0_114, %c0_115, %c0_116, %c0_117] : memref<4x3x80x64xbf16, #tpu.memory_space<vmem>>, vector<1x1x80x64xbf16>
    %113 = vector.shape_cast %112 : vector<1x1x80x64xbf16> to vector<80x64xbf16>
    %cst_118 = arith.constant dense<0.000000e+00> : vector<8x64xf32>
    %114 = tpu.matmul %111, %113, %cst_118 {dimension_numbers = #tpu.dot_dimension_numbers<[1], [0], [0], [1], [0, 0, 1, 1], [], []>} : vector<8x80xbf16>, vector<80x64xbf16>, vector<8x64xf32> -> vector<8x64xf32>
    %c1_119 = arith.constant 1 : index
    %c0_120 = arith.constant 0 : index
    %115 = vector.load %arg16[%c1_119, %c0_120] : memref<10x80xf32, #tpu.memory_space<vmem>>, vector<8x80xf32>
    %116 = arith.truncf %115 : vector<8x80xf32> to vector<8x80xbf16>
    %c0_121 = arith.constant 0 : index
    %c1_122 = arith.constant 1 : index
    %c0_123 = arith.constant 0 : index
    %c0_124 = arith.constant 0 : index
    %117 = vector.load %arg8[%c0_121, %c1_122, %c0_123, %c0_124] : memref<4x3x80x64xbf16, #tpu.memory_space<vmem>>, vector<1x1x80x64xbf16>
    %118 = vector.shape_cast %117 : vector<1x1x80x64xbf16> to vector<80x64xbf16>
    %cst_125 = arith.constant dense<0.000000e+00> : vector<8x64xf32>
    %119 = tpu.matmul %116, %118, %cst_125 {dimension_numbers = #tpu.dot_dimension_numbers<[1], [0], [0], [1], [0, 0, 1, 1], [], []>} : vector<8x80xbf16>, vector<80x64xbf16>, vector<8x64xf32> -> vector<8x64xf32>
    %120 = arith.addf %114, %119 : vector<8x64xf32>
    %c2_126 = arith.constant 2 : index
    %c0_127 = arith.constant 0 : index
    %121 = vector.load %arg16[%c2_126, %c0_127] : memref<10x80xf32, #tpu.memory_space<vmem>>, vector<8x80xf32>
    %122 = arith.truncf %121 : vector<8x80xf32> to vector<8x80xbf16>
    %c0_128 = arith.constant 0 : index
    %c2_129 = arith.constant 2 : index
    %c0_130 = arith.constant 0 : index
    %c0_131 = arith.constant 0 : index
    %123 = vector.load %arg8[%c0_128, %c2_129, %c0_130, %c0_131] : memref<4x3x80x64xbf16, #tpu.memory_space<vmem>>, vector<1x1x80x64xbf16>
    %124 = vector.shape_cast %123 : vector<1x1x80x64xbf16> to vector<80x64xbf16>
    %cst_132 = arith.constant dense<0.000000e+00> : vector<8x64xf32>
    %125 = tpu.matmul %122, %124, %cst_132 {dimension_numbers = #tpu.dot_dimension_numbers<[1], [0], [0], [1], [0, 0, 1, 1], [], []>} : vector<8x80xbf16>, vector<80x64xbf16>, vector<8x64xf32> -> vector<8x64xf32>
    %126 = arith.addf %120, %125 : vector<8x64xf32>
    %c0_133 = arith.constant 0 : index
    %c0_134 = arith.constant 0 : index
    %c0_135 = arith.constant 0 : index
    %127 = vector.load %arg9[%c0_133, %c0_134, %c0_135] : memref<4x1x64xf32, #tpu.memory_space<vmem>>, vector<1x1x64xf32>
    %128 = vector.shape_cast %127 : vector<1x1x64xf32> to vector<1x64xf32>
    %129 = vector.broadcast %128 : vector<1x64xf32> to vector<8x64xf32>
    %130 = arith.addf %126, %129 : vector<8x64xf32>
    %cst_136 = arith.constant 0.000000e+00 : f32
    %131 = vector.broadcast %cst_136 : f32 to vector<8x64xf32>
    %132 = arith.maximumf %130, %131 : vector<8x64xf32>
    %c1_137 = arith.constant 1 : index
    %c0_138 = arith.constant 0 : index
    %133 = vector.load %arg16[%c1_137, %c0_138] : memref<10x80xf32, #tpu.memory_space<vmem>>, vector<8x64xf32>
    tpu.vector_store %arg16[%c1_137, %c0_138], %132 {strides = array<i32>} : memref<10x80xf32, #tpu.memory_space<vmem>>, vector<8x64xf32>,
    %c0_139 = arith.constant 0 : index
    %c0_140 = arith.constant 0 : index
    %134 = vector.load %arg16[%c0_139, %c0_140] : memref<10x80xf32, #tpu.memory_space<vmem>>, vector<8x80xf32>
    %135 = arith.truncf %134 : vector<8x80xf32> to vector<8x80xbf16>
    %c1_141 = arith.constant 1 : index
    %c0_142 = arith.constant 0 : index
    %c0_143 = arith.constant 0 : index
    %c0_144 = arith.constant 0 : index
    %136 = vector.load %arg8[%c1_141, %c0_142, %c0_143, %c0_144] : memref<4x3x80x64xbf16, #tpu.memory_space<vmem>>, vector<1x1x80x64xbf16>
    %137 = vector.shape_cast %136 : vector<1x1x80x64xbf16> to vector<80x64xbf16>
    %cst_145 = arith.constant dense<0.000000e+00> : vector<8x64xf32>
    %138 = tpu.matmul %135, %137, %cst_145 {dimension_numbers = #tpu.dot_dimension_numbers<[1], [0], [0], [1], [0, 0, 1, 1], [], []>} : vector<8x80xbf16>, vector<80x64xbf16>, vector<8x64xf32> -> vector<8x64xf32>
    %c1_146 = arith.constant 1 : index
    %c0_147 = arith.constant 0 : index
    %139 = vector.load %arg16[%c1_146, %c0_147] : memref<10x80xf32, #tpu.memory_space<vmem>>, vector<8x80xf32>
    %140 = arith.truncf %139 : vector<8x80xf32> to vector<8x80xbf16>
    %c1_148 = arith.constant 1 : index
    %c1_149 = arith.constant 1 : index
    %c0_150 = arith.constant 0 : index
    %c0_151 = arith.constant 0 : index
    %141 = vector.load %arg8[%c1_148, %c1_149, %c0_150, %c0_151] : memref<4x3x80x64xbf16, #tpu.memory_space<vmem>>, vector<1x1x80x64xbf16>
    %142 = vector.shape_cast %141 : vector<1x1x80x64xbf16> to vector<80x64xbf16>
    %cst_152 = arith.constant dense<0.000000e+00> : vector<8x64xf32>
    %143 = tpu.matmul %140, %142, %cst_152 {dimension_numbers = #tpu.dot_dimension_numbers<[1], [0], [0], [1], [0, 0, 1, 1], [], []>} : vector<8x80xbf16>, vector<80x64xbf16>, vector<8x64xf32> -> vector<8x64xf32>
    %144 = arith.addf %138, %143 : vector<8x64xf32>
    %c2_153 = arith.constant 2 : index
    %c0_154 = arith.constant 0 : index
    %145 = vector.load %arg16[%c2_153, %c0_154] : memref<10x80xf32, #tpu.memory_space<vmem>>, vector<8x80xf32>
    %146 = arith.truncf %145 : vector<8x80xf32> to vector<8x80xbf16>
    %c1_155 = arith.constant 1 : index
    %c2_156 = arith.constant 2 : index
    %c0_157 = arith.constant 0 : index
    %c0_158 = arith.constant 0 : index
    %147 = vector.load %arg8[%c1_155, %c2_156, %c0_157, %c0_158] : memref<4x3x80x64xbf16, #tpu.memory_space<vmem>>, vector<1x1x80x64xbf16>
    %148 = vector.shape_cast %147 : vector<1x1x80x64xbf16> to vector<80x64xbf16>
    %cst_159 = arith.constant dense<0.000000e+00> : vector<8x64xf32>
    %149 = tpu.matmul %146, %148, %cst_159 {dimension_numbers = #tpu.dot_dimension_numbers<[1], [0], [0], [1], [0, 0, 1, 1], [], []>} : vector<8x80xbf16>, vector<80x64xbf16>, vector<8x64xf32> -> vector<8x64xf32>
    %150 = arith.addf %144, %149 : vector<8x64xf32>
    %c1_160 = arith.constant 1 : index
    %c0_161 = arith.constant 0 : index
    %c0_162 = arith.constant 0 : index
    %151 = vector.load %arg9[%c1_160, %c0_161, %c0_162] : memref<4x1x64xf32, #tpu.memory_space<vmem>>, vector<1x1x64xf32>
    %152 = vector.shape_cast %151 : vector<1x1x64xf32> to vector<1x64xf32>
    %153 = vector.broadcast %152 : vector<1x64xf32> to vector<8x64xf32>
    %154 = arith.addf %150, %153 : vector<8x64xf32>
    %155 = arith.addf %154, %108 : vector<8x64xf32>
    %c1_163 = arith.constant 1 : index
    %c0_164 = arith.constant 0 : index
    %156 = vector.load %arg16[%c1_163, %c0_164] : memref<10x80xf32, #tpu.memory_space<vmem>>, vector<8x64xf32>
    tpu.vector_store %arg16[%c1_163, %c0_164], %155 {strides = array<i32>} : memref<10x80xf32, #tpu.memory_space<vmem>>, vector<8x64xf32>,
    %c0_165 = arith.constant 0 : index
    %c0_166 = arith.constant 0 : index
    %157 = vector.load %arg16[%c0_165, %c0_166] : memref<10x80xf32, #tpu.memory_space<vmem>>, vector<8x80xf32>
    %158 = arith.truncf %157 : vector<8x80xf32> to vector<8x80xbf16>
    %c2_167 = arith.constant 2 : index
    %c0_168 = arith.constant 0 : index
    %c0_169 = arith.constant 0 : index
    %c0_170 = arith.constant 0 : index
    %159 = vector.load %arg8[%c2_167, %c0_168, %c0_169, %c0_170] : memref<4x3x80x64xbf16, #tpu.memory_space<vmem>>, vector<1x1x80x64xbf16>
    %160 = vector.shape_cast %159 : vector<1x1x80x64xbf16> to vector<80x64xbf16>
    %cst_171 = arith.constant dense<0.000000e+00> : vector<8x64xf32>
    %161 = tpu.matmul %158, %160, %cst_171 {dimension_numbers = #tpu.dot_dimension_numbers<[1], [0], [0], [1], [0, 0, 1, 1], [], []>} : vector<8x80xbf16>, vector<80x64xbf16>, vector<8x64xf32> -> vector<8x64xf32>
    %c1_172 = arith.constant 1 : index
    %c0_173 = arith.constant 0 : index
    %162 = vector.load %arg16[%c1_172, %c0_173] : memref<10x80xf32, #tpu.memory_space<vmem>>, vector<8x80xf32>
    %163 = arith.truncf %162 : vector<8x80xf32> to vector<8x80xbf16>
    %c2_174 = arith.constant 2 : index
    %c1_175 = arith.constant 1 : index
    %c0_176 = arith.constant 0 : index
    %c0_177 = arith.constant 0 : index
    %164 = vector.load %arg8[%c2_174, %c1_175, %c0_176, %c0_177] : memref<4x3x80x64xbf16, #tpu.memory_space<vmem>>, vector<1x1x80x64xbf16>
    %165 = vector.shape_cast %164 : vector<1x1x80x64xbf16> to vector<80x64xbf16>
    %cst_178 = arith.constant dense<0.000000e+00> : vector<8x64xf32>
    %166 = tpu.matmul %163, %165, %cst_178 {dimension_numbers = #tpu.dot_dimension_numbers<[1], [0], [0], [1], [0, 0, 1, 1], [], []>} : vector<8x80xbf16>, vector<80x64xbf16>, vector<8x64xf32> -> vector<8x64xf32>
    %167 = arith.addf %161, %166 : vector<8x64xf32>
    %c2_179 = arith.constant 2 : index
    %c0_180 = arith.constant 0 : index
    %168 = vector.load %arg16[%c2_179, %c0_180] : memref<10x80xf32, #tpu.memory_space<vmem>>, vector<8x80xf32>
    %169 = arith.truncf %168 : vector<8x80xf32> to vector<8x80xbf16>
    %c2_181 = arith.constant 2 : index
    %c2_182 = arith.constant 2 : index
    %c0_183 = arith.constant 0 : index
    %c0_184 = arith.constant 0 : index
    %170 = vector.load %arg8[%c2_181, %c2_182, %c0_183, %c0_184] : memref<4x3x80x64xbf16, #tpu.memory_space<vmem>>, vector<1x1x80x64xbf16>
    %171 = vector.shape_cast %170 : vector<1x1x80x64xbf16> to vector<80x64xbf16>
    %cst_185 = arith.constant dense<0.000000e+00> : vector<8x64xf32>
    %172 = tpu.matmul %169, %171, %cst_185 {dimension_numbers = #tpu.dot_dimension_numbers<[1], [0], [0], [1], [0, 0, 1, 1], [], []>} : vector<8x80xbf16>, vector<80x64xbf16>, vector<8x64xf32> -> vector<8x64xf32>
    %173 = arith.addf %167, %172 : vector<8x64xf32>
    %c2_186 = arith.constant 2 : index
    %c0_187 = arith.constant 0 : index
    %c0_188 = arith.constant 0 : index
    %174 = vector.load %arg9[%c2_186, %c0_187, %c0_188] : memref<4x1x64xf32, #tpu.memory_space<vmem>>, vector<1x1x64xf32>
    %175 = vector.shape_cast %174 : vector<1x1x64xf32> to vector<1x64xf32>
    %176 = vector.broadcast %175 : vector<1x64xf32> to vector<8x64xf32>
    %177 = arith.addf %173, %176 : vector<8x64xf32>
    %cst_189 = arith.constant 0.000000e+00 : f32
    %178 = vector.broadcast %cst_189 : f32 to vector<8x64xf32>
    %179 = arith.maximumf %177, %178 : vector<8x64xf32>
    %c1_190 = arith.constant 1 : index
    %c0_191 = arith.constant 0 : index
    %180 = vector.load %arg16[%c1_190, %c0_191] : memref<10x80xf32, #tpu.memory_space<vmem>>, vector<8x64xf32>
    tpu.vector_store %arg16[%c1_190, %c0_191], %179 {strides = array<i32>} : memref<10x80xf32, #tpu.memory_space<vmem>>, vector<8x64xf32>,
    %c0_192 = arith.constant 0 : index
    %c0_193 = arith.constant 0 : index
    %181 = vector.load %arg16[%c0_192, %c0_193] : memref<10x80xf32, #tpu.memory_space<vmem>>, vector<8x80xf32>
    %182 = arith.truncf %181 : vector<8x80xf32> to vector<8x80xbf16>
    %c3_194 = arith.constant 3 : index
    %c0_195 = arith.constant 0 : index
    %c0_196 = arith.constant 0 : index
    %c0_197 = arith.constant 0 : index
    %183 = vector.load %arg8[%c3_194, %c0_195, %c0_196, %c0_197] : memref<4x3x80x64xbf16, #tpu.memory_space<vmem>>, vector<1x1x80x64xbf16>
    %184 = vector.shape_cast %183 : vector<1x1x80x64xbf16> to vector<80x64xbf16>
    %cst_198 = arith.constant dense<0.000000e+00> : vector<8x64xf32>
    %185 = tpu.matmul %182, %184, %cst_198 {dimension_numbers = #tpu.dot_dimension_numbers<[1], [0], [0], [1], [0, 0, 1, 1], [], []>} : vector<8x80xbf16>, vector<80x64xbf16>, vector<8x64xf32> -> vector<8x64xf32>
    %c1_199 = arith.constant 1 : index
    %c0_200 = arith.constant 0 : index
    %186 = vector.load %arg16[%c1_199, %c0_200] : memref<10x80xf32, #tpu.memory_space<vmem>>, vector<8x80xf32>
    %187 = arith.truncf %186 : vector<8x80xf32> to vector<8x80xbf16>
    %c3_201 = arith.constant 3 : index
    %c1_202 = arith.constant 1 : index
    %c0_203 = arith.constant 0 : index
    %c0_204 = arith.constant 0 : index
    %188 = vector.load %arg8[%c3_201, %c1_202, %c0_203, %c0_204] : memref<4x3x80x64xbf16, #tpu.memory_space<vmem>>, vector<1x1x80x64xbf16>
    %189 = vector.shape_cast %188 : vector<1x1x80x64xbf16> to vector<80x64xbf16>
    %cst_205 = arith.constant dense<0.000000e+00> : vector<8x64xf32>
    %190 = tpu.matmul %187, %189, %cst_205 {dimension_numbers = #tpu.dot_dimension_numbers<[1], [0], [0], [1], [0, 0, 1, 1], [], []>} : vector<8x80xbf16>, vector<80x64xbf16>, vector<8x64xf32> -> vector<8x64xf32>
    %191 = arith.addf %185, %190 : vector<8x64xf32>
    %c2_206 = arith.constant 2 : index
    %c0_207 = arith.constant 0 : index
    %192 = vector.load %arg16[%c2_206, %c0_207] : memref<10x80xf32, #tpu.memory_space<vmem>>, vector<8x80xf32>
    %193 = arith.truncf %192 : vector<8x80xf32> to vector<8x80xbf16>
    %c3_208 = arith.constant 3 : index
    %c2_209 = arith.constant 2 : index
    %c0_210 = arith.constant 0 : index
    %c0_211 = arith.constant 0 : index
    %194 = vector.load %arg8[%c3_208, %c2_209, %c0_210, %c0_211] : memref<4x3x80x64xbf16, #tpu.memory_space<vmem>>, vector<1x1x80x64xbf16>
    %195 = vector.shape_cast %194 : vector<1x1x80x64xbf16> to vector<80x64xbf16>
    %cst_212 = arith.constant dense<0.000000e+00> : vector<8x64xf32>
    %196 = tpu.matmul %193, %195, %cst_212 {dimension_numbers = #tpu.dot_dimension_numbers<[1], [0], [0], [1], [0, 0, 1, 1], [], []>} : vector<8x80xbf16>, vector<80x64xbf16>, vector<8x64xf32> -> vector<8x64xf32>
    %197 = arith.addf %191, %196 : vector<8x64xf32>
    %c3_213 = arith.constant 3 : index
    %c0_214 = arith.constant 0 : index
    %c0_215 = arith.constant 0 : index
    %198 = vector.load %arg9[%c3_213, %c0_214, %c0_215] : memref<4x1x64xf32, #tpu.memory_space<vmem>>, vector<1x1x64xf32>
    %199 = vector.shape_cast %198 : vector<1x1x64xf32> to vector<1x64xf32>
    %200 = vector.broadcast %199 : vector<1x64xf32> to vector<8x64xf32>
    %201 = arith.addf %197, %200 : vector<8x64xf32>
    %202 = arith.addf %201, %155 : vector<8x64xf32>
    %c1_216 = arith.constant 1 : index
    %c0_217 = arith.constant 0 : index
    %203 = vector.load %arg16[%c1_216, %c0_217] : memref<10x80xf32, #tpu.memory_space<vmem>>, vector<8x64xf32>
    tpu.vector_store %arg16[%c1_216, %c0_217], %202 {strides = array<i32>} : memref<10x80xf32, #tpu.memory_space<vmem>>, vector<8x64xf32>,
    %c2_218 = arith.constant 2 : index
    %c0_219 = arith.constant 0 : index
    %204 = vector.load %arg16[%c2_218, %c0_219] : memref<10x80xf32, #tpu.memory_space<vmem>>, vector<8x80xf32>
    %205 = arith.truncf %204 : vector<8x80xf32> to vector<8x80xbf16>
    %c0_220 = arith.constant 0 : index
    %c0_221 = arith.constant 0 : index
    %c0_222 = arith.constant 0 : index
    %c0_223 = arith.constant 0 : index
    %206 = vector.load %arg10[%c0_220, %c0_221, %c0_222, %c0_223] : memref<2x3x80x128xbf16, #tpu.memory_space<vmem>>, vector<1x1x80x128xbf16>
    %207 = vector.shape_cast %206 : vector<1x1x80x128xbf16> to vector<80x128xbf16>
    %cst_224 = arith.constant dense<0.000000e+00> : vector<8x128xf32>
    %208 = tpu.matmul %205, %207, %cst_224 {dimension_numbers = #tpu.dot_dimension_numbers<[1], [0], [0], [1], [0, 0, 1, 1], [], []>} : vector<8x80xbf16>, vector<80x128xbf16>, vector<8x128xf32> -> vector<8x128xf32>
    %c1_225 = arith.constant 1 : index
    %c0_226 = arith.constant 0 : index
    %c0_227 = arith.constant 0 : index
    %c0_228 = arith.constant 0 : index
    %209 = vector.load %arg10[%c1_225, %c0_226, %c0_227, %c0_228] : memref<2x3x80x128xbf16, #tpu.memory_space<vmem>>, vector<1x1x80x128xbf16>
    %210 = vector.shape_cast %209 : vector<1x1x80x128xbf16> to vector<80x128xbf16>
    %cst_229 = arith.constant dense<0.000000e+00> : vector<8x128xf32>
    %211 = tpu.matmul %205, %210, %cst_229 {dimension_numbers = #tpu.dot_dimension_numbers<[1], [0], [0], [1], [0, 0, 1, 1], [], []>} : vector<8x80xbf16>, vector<80x128xbf16>, vector<8x128xf32> -> vector<8x128xf32>
    %c1_230 = arith.constant 1 : index
    %c0_231 = arith.constant 0 : index
    %212 = vector.load %arg16[%c1_230, %c0_231] : memref<10x80xf32, #tpu.memory_space<vmem>>, vector<8x80xf32>
    %213 = arith.truncf %212 : vector<8x80xf32> to vector<8x80xbf16>
    %c0_232 = arith.constant 0 : index
    %c1_233 = arith.constant 1 : index
    %c0_234 = arith.constant 0 : index
    %c0_235 = arith.constant 0 : index
    %214 = vector.load %arg10[%c0_232, %c1_233, %c0_234, %c0_235] : memref<2x3x80x128xbf16, #tpu.memory_space<vmem>>, vector<1x1x80x128xbf16>
    %215 = vector.shape_cast %214 : vector<1x1x80x128xbf16> to vector<80x128xbf16>
    %cst_236 = arith.constant dense<0.000000e+00> : vector<8x128xf32>
    %216 = tpu.matmul %213, %215, %cst_236 {dimension_numbers = #tpu.dot_dimension_numbers<[1], [0], [0], [1], [0, 0, 1, 1], [], []>} : vector<8x80xbf16>, vector<80x128xbf16>, vector<8x128xf32> -> vector<8x128xf32>
    %c1_237 = arith.constant 1 : index
    %c1_238 = arith.constant 1 : index
    %c0_239 = arith.constant 0 : index
    %c0_240 = arith.constant 0 : index
    %217 = vector.load %arg10[%c1_237, %c1_238, %c0_239, %c0_240] : memref<2x3x80x128xbf16, #tpu.memory_space<vmem>>, vector<1x1x80x128xbf16>
    %218 = vector.shape_cast %217 : vector<1x1x80x128xbf16> to vector<80x128xbf16>
    %cst_241 = arith.constant dense<0.000000e+00> : vector<8x128xf32>
    %219 = tpu.matmul %213, %218, %cst_241 {dimension_numbers = #tpu.dot_dimension_numbers<[1], [0], [0], [1], [0, 0, 1, 1], [], []>} : vector<8x80xbf16>, vector<80x128xbf16>, vector<8x128xf32> -> vector<8x128xf32>
    %220 = arith.addf %208, %216 : vector<8x128xf32>
    %221 = arith.addf %211, %219 : vector<8x128xf32>
    %c0_242 = arith.constant 0 : index
    %c0_243 = arith.constant 0 : index
    %222 = vector.load %arg16[%c0_242, %c0_243] : memref<10x80xf32, #tpu.memory_space<vmem>>, vector<8x80xf32>
    %223 = arith.truncf %222 : vector<8x80xf32> to vector<8x80xbf16>
    %c0_244 = arith.constant 0 : index
    %c2_245 = arith.constant 2 : index
    %c0_246 = arith.constant 0 : index
    %c0_247 = arith.constant 0 : index
    %224 = vector.load %arg10[%c0_244, %c2_245, %c0_246, %c0_247] : memref<2x3x80x128xbf16, #tpu.memory_space<vmem>>, vector<1x1x80x128xbf16>
    %225 = vector.shape_cast %224 : vector<1x1x80x128xbf16> to vector<80x128xbf16>
    %cst_248 = arith.constant dense<0.000000e+00> : vector<8x128xf32>
    %226 = tpu.matmul %223, %225, %cst_248 {dimension_numbers = #tpu.dot_dimension_numbers<[1], [0], [0], [1], [0, 0, 1, 1], [], []>} : vector<8x80xbf16>, vector<80x128xbf16>, vector<8x128xf32> -> vector<8x128xf32>
    %c1_249 = arith.constant 1 : index
    %c2_250 = arith.constant 2 : index
    %c0_251 = arith.constant 0 : index
    %c0_252 = arith.constant 0 : index
    %227 = vector.load %arg10[%c1_249, %c2_250, %c0_251, %c0_252] : memref<2x3x80x128xbf16, #tpu.memory_space<vmem>>, vector<1x1x80x128xbf16>
    %228 = vector.shape_cast %227 : vector<1x1x80x128xbf16> to vector<80x128xbf16>
    %cst_253 = arith.constant dense<0.000000e+00> : vector<8x128xf32>
    %229 = tpu.matmul %223, %228, %cst_253 {dimension_numbers = #tpu.dot_dimension_numbers<[1], [0], [0], [1], [0, 0, 1, 1], [], []>} : vector<8x80xbf16>, vector<80x128xbf16>, vector<8x128xf32> -> vector<8x128xf32>
    %230 = arith.addf %220, %226 : vector<8x128xf32>
    %231 = arith.addf %221, %229 : vector<8x128xf32>
    %c0_254 = arith.constant 0 : index
    %c0_255 = arith.constant 0 : index
    %232 = vector.load %arg11[%c0_254, %c0_255] : memref<1x128xf32, #tpu.memory_space<vmem>>, vector<1x128xf32>
    %233 = vector.broadcast %232 : vector<1x128xf32> to vector<8x128xf32>
    %234 = arith.addf %230, %233 : vector<8x128xf32>
    %c0_256 = arith.constant 0 : index
    %c0_257 = arith.constant 0 : index
    %235 = vector.load %arg11[%c0_256, %c0_257] : memref<1x128xf32, #tpu.memory_space<vmem>>, vector<1x128xf32>
    %236 = vector.broadcast %235 : vector<1x128xf32> to vector<8x128xf32>
    %237 = arith.addf %231, %236 : vector<8x128xf32>
    %238 = vector.extract_strided_slice %234 {offsets = [0, 0], sizes = [1, 128], strides = [1, 1]} : vector<8x128xf32> to vector<1x128xf32>
    %c0_258 = arith.constant 0 : index
    %c0_259 = arith.constant 0 : index
    %239 = vector.load %arg19[%c0_258, %c0_259] : memref<16x128xf32, #tpu.memory_space<vmem>>, vector<1x128xf32>
    tpu.vector_store %arg19[%c0_258, %c0_259], %238 {strides = array<i32>} : memref<16x128xf32, #tpu.memory_space<vmem>>, vector<1x128xf32>,
    %240 = vector.extract_strided_slice %237 {offsets = [0, 0], sizes = [1, 128], strides = [1, 1]} : vector<8x128xf32> to vector<1x128xf32>
    %c1_260 = arith.constant 1 : index
    %c0_261 = arith.constant 0 : index
    %241 = vector.load %arg19[%c1_260, %c0_261] : memref<16x128xf32, #tpu.memory_space<vmem>>, vector<1x128xf32>
    tpu.vector_store %arg19[%c1_260, %c0_261], %240 {strides = array<i32>} : memref<16x128xf32, #tpu.memory_space<vmem>>, vector<1x128xf32>,
    %242 = vector.extract_strided_slice %234 {offsets = [1, 0], sizes = [1, 128], strides = [1, 1]} : vector<8x128xf32> to vector<1x128xf32>
    %c2_262 = arith.constant 2 : index
    %c0_263 = arith.constant 0 : index
    %243 = vector.load %arg19[%c2_262, %c0_263] : memref<16x128xf32, #tpu.memory_space<vmem>>, vector<1x128xf32>
    tpu.vector_store %arg19[%c2_262, %c0_263], %242 {strides = array<i32>} : memref<16x128xf32, #tpu.memory_space<vmem>>, vector<1x128xf32>,
    %244 = vector.extract_strided_slice %237 {offsets = [1, 0], sizes = [1, 128], strides = [1, 1]} : vector<8x128xf32> to vector<1x128xf32>
    %c3_264 = arith.constant 3 : index
    %c0_265 = arith.constant 0 : index
    %245 = vector.load %arg19[%c3_264, %c0_265] : memref<16x128xf32, #tpu.memory_space<vmem>>, vector<1x128xf32>
    tpu.vector_store %arg19[%c3_264, %c0_265], %244 {strides = array<i32>} : memref<16x128xf32, #tpu.memory_space<vmem>>, vector<1x128xf32>,
    %246 = vector.extract_strided_slice %234 {offsets = [2, 0], sizes = [1, 128], strides = [1, 1]} : vector<8x128xf32> to vector<1x128xf32>
    %c4_266 = arith.constant 4 : index
    %c0_267 = arith.constant 0 : index
    %247 = vector.load %arg19[%c4_266, %c0_267] : memref<16x128xf32, #tpu.memory_space<vmem>>, vector<1x128xf32>
    tpu.vector_store %arg19[%c4_266, %c0_267], %246 {strides = array<i32>} : memref<16x128xf32, #tpu.memory_space<vmem>>, vector<1x128xf32>,
    %248 = vector.extract_strided_slice %237 {offsets = [2, 0], sizes = [1, 128], strides = [1, 1]} : vector<8x128xf32> to vector<1x128xf32>
    %c5_268 = arith.constant 5 : index
    %c0_269 = arith.constant 0 : index
    %249 = vector.load %arg19[%c5_268, %c0_269] : memref<16x128xf32, #tpu.memory_space<vmem>>, vector<1x128xf32>
    tpu.vector_store %arg19[%c5_268, %c0_269], %248 {strides = array<i32>} : memref<16x128xf32, #tpu.memory_space<vmem>>, vector<1x128xf32>,
    %250 = vector.extract_strided_slice %234 {offsets = [3, 0], sizes = [1, 128], strides = [1, 1]} : vector<8x128xf32> to vector<1x128xf32>
    %c6_270 = arith.constant 6 : index
    %c0_271 = arith.constant 0 : index
    %251 = vector.load %arg19[%c6_270, %c0_271] : memref<16x128xf32, #tpu.memory_space<vmem>>, vector<1x128xf32>
    tpu.vector_store %arg19[%c6_270, %c0_271], %250 {strides = array<i32>} : memref<16x128xf32, #tpu.memory_space<vmem>>, vector<1x128xf32>,
    %252 = vector.extract_strided_slice %237 {offsets = [3, 0], sizes = [1, 128], strides = [1, 1]} : vector<8x128xf32> to vector<1x128xf32>
    %c7_272 = arith.constant 7 : index
    %c0_273 = arith.constant 0 : index
    %253 = vector.load %arg19[%c7_272, %c0_273] : memref<16x128xf32, #tpu.memory_space<vmem>>, vector<1x128xf32>
    tpu.vector_store %arg19[%c7_272, %c0_273], %252 {strides = array<i32>} : memref<16x128xf32, #tpu.memory_space<vmem>>, vector<1x128xf32>,
    %254 = vector.extract_strided_slice %234 {offsets = [4, 0], sizes = [1, 128], strides = [1, 1]} : vector<8x128xf32> to vector<1x128xf32>
    %c8_274 = arith.constant 8 : index
    %c0_275 = arith.constant 0 : index
    %255 = vector.load %arg19[%c8_274, %c0_275] : memref<16x128xf32, #tpu.memory_space<vmem>>, vector<1x128xf32>
    tpu.vector_store %arg19[%c8_274, %c0_275], %254 {strides = array<i32>} : memref<16x128xf32, #tpu.memory_space<vmem>>, vector<1x128xf32>,
    %256 = vector.extract_strided_slice %237 {offsets = [4, 0], sizes = [1, 128], strides = [1, 1]} : vector<8x128xf32> to vector<1x128xf32>
    %c9 = arith.constant 9 : index
    %c0_276 = arith.constant 0 : index
    %257 = vector.load %arg19[%c9, %c0_276] : memref<16x128xf32, #tpu.memory_space<vmem>>, vector<1x128xf32>
    tpu.vector_store %arg19[%c9, %c0_276], %256 {strides = array<i32>} : memref<16x128xf32, #tpu.memory_space<vmem>>, vector<1x128xf32>,
    %258 = vector.extract_strided_slice %234 {offsets = [5, 0], sizes = [1, 128], strides = [1, 1]} : vector<8x128xf32> to vector<1x128xf32>
    %c10 = arith.constant 10 : index
    %c0_277 = arith.constant 0 : index
    %259 = vector.load %arg19[%c10, %c0_277] : memref<16x128xf32, #tpu.memory_space<vmem>>, vector<1x128xf32>
    tpu.vector_store %arg19[%c10, %c0_277], %258 {strides = array<i32>} : memref<16x128xf32, #tpu.memory_space<vmem>>, vector<1x128xf32>,
    %260 = vector.extract_strided_slice %237 {offsets = [5, 0], sizes = [1, 128], strides = [1, 1]} : vector<8x128xf32> to vector<1x128xf32>
    %c11 = arith.constant 11 : index
    %c0_278 = arith.constant 0 : index
    %261 = vector.load %arg19[%c11, %c0_278] : memref<16x128xf32, #tpu.memory_space<vmem>>, vector<1x128xf32>
    tpu.vector_store %arg19[%c11, %c0_278], %260 {strides = array<i32>} : memref<16x128xf32, #tpu.memory_space<vmem>>, vector<1x128xf32>,
    %262 = vector.extract_strided_slice %234 {offsets = [6, 0], sizes = [1, 128], strides = [1, 1]} : vector<8x128xf32> to vector<1x128xf32>
    %c12 = arith.constant 12 : index
    %c0_279 = arith.constant 0 : index
    %263 = vector.load %arg19[%c12, %c0_279] : memref<16x128xf32, #tpu.memory_space<vmem>>, vector<1x128xf32>
    tpu.vector_store %arg19[%c12, %c0_279], %262 {strides = array<i32>} : memref<16x128xf32, #tpu.memory_space<vmem>>, vector<1x128xf32>,
    %264 = vector.extract_strided_slice %237 {offsets = [6, 0], sizes = [1, 128], strides = [1, 1]} : vector<8x128xf32> to vector<1x128xf32>
    %c13 = arith.constant 13 : index
    %c0_280 = arith.constant 0 : index
    %265 = vector.load %arg19[%c13, %c0_280] : memref<16x128xf32, #tpu.memory_space<vmem>>, vector<1x128xf32>
    tpu.vector_store %arg19[%c13, %c0_280], %264 {strides = array<i32>} : memref<16x128xf32, #tpu.memory_space<vmem>>, vector<1x128xf32>,
    %266 = vector.extract_strided_slice %234 {offsets = [7, 0], sizes = [1, 128], strides = [1, 1]} : vector<8x128xf32> to vector<1x128xf32>
    %c14 = arith.constant 14 : index
    %c0_281 = arith.constant 0 : index
    %267 = vector.load %arg19[%c14, %c0_281] : memref<16x128xf32, #tpu.memory_space<vmem>>, vector<1x128xf32>
    tpu.vector_store %arg19[%c14, %c0_281], %266 {strides = array<i32>} : memref<16x128xf32, #tpu.memory_space<vmem>>, vector<1x128xf32>,
    %268 = vector.extract_strided_slice %237 {offsets = [7, 0], sizes = [1, 128], strides = [1, 1]} : vector<8x128xf32> to vector<1x128xf32>
    %c15 = arith.constant 15 : index
    %c0_282 = arith.constant 0 : index
    %269 = vector.load %arg19[%c15, %c0_282] : memref<16x128xf32, #tpu.memory_space<vmem>>, vector<1x128xf32>
    tpu.vector_store %arg19[%c15, %c0_282], %268 {strides = array<i32>} : memref<16x128xf32, #tpu.memory_space<vmem>>, vector<1x128xf32>,
    %c0_283 = arith.constant 0 : index
    %c0_284 = arith.constant 0 : index
    %270 = vector.load %arg19[%c0_283, %c0_284] : memref<16x128xf32, #tpu.memory_space<vmem>>, vector<16x128xf32>
    %271 = arith.addf %56, %270 : vector<16x128xf32>
    %c1_285 = arith.constant 1 : index
    %c0_286 = arith.constant 0 : index
    %272 = vector.load %arg15[%c1_285, %c0_286] : memref<18x144xf32, #tpu.memory_space<vmem>>, vector<16x128xf32>
    tpu.vector_store %arg15[%c1_285, %c0_286], %271 {strides = array<i32>} : memref<18x144xf32, #tpu.memory_space<vmem>>, vector<16x128xf32>,
    %c0_287 = arith.constant 0 : index
    %c0_288 = arith.constant 0 : index
    %273 = vector.load %arg15[%c0_287, %c0_288] : memref<18x144xf32, #tpu.memory_space<vmem>>, vector<16x144xf32>
    %274 = arith.truncf %273 : vector<16x144xf32> to vector<16x144xbf16>
    %c2_289 = arith.constant 2 : index
    %c0_290 = arith.constant 0 : index
    %c0_291 = arith.constant 0 : index
    %c0_292 = arith.constant 0 : index
    %275 = vector.load %arg4[%c2_289, %c0_290, %c0_291, %c0_292] : memref<9x3x144x128xbf16, #tpu.memory_space<vmem>>, vector<1x1x144x128xbf16>
    %276 = vector.shape_cast %275 : vector<1x1x144x128xbf16> to vector<144x128xbf16>
    %cst_293 = arith.constant dense<0.000000e+00> : vector<16x128xf32>
    %277 = tpu.matmul %274, %276, %cst_293 {dimension_numbers = #tpu.dot_dimension_numbers<[1], [0], [0], [1], [0, 0, 1, 1], [], []>} : vector<16x144xbf16>, vector<144x128xbf16>, vector<16x128xf32> -> vector<16x128xf32>
    %c1_294 = arith.constant 1 : index
    %c0_295 = arith.constant 0 : index
    %278 = vector.load %arg15[%c1_294, %c0_295] : memref<18x144xf32, #tpu.memory_space<vmem>>, vector<16x144xf32>
    %279 = arith.truncf %278 : vector<16x144xf32> to vector<16x144xbf16>
    %c2_296 = arith.constant 2 : index
    %c1_297 = arith.constant 1 : index
    %c0_298 = arith.constant 0 : index
    %c0_299 = arith.constant 0 : index
    %280 = vector.load %arg4[%c2_296, %c1_297, %c0_298, %c0_299] : memref<9x3x144x128xbf16, #tpu.memory_space<vmem>>, vector<1x1x144x128xbf16>
    %281 = vector.shape_cast %280 : vector<1x1x144x128xbf16> to vector<144x128xbf16>
    %cst_300 = arith.constant dense<0.000000e+00> : vector<16x128xf32>
    %282 = tpu.matmul %279, %281, %cst_300 {dimension_numbers = #tpu.dot_dimension_numbers<[1], [0], [0], [1], [0, 0, 1, 1], [], []>} : vector<16x144xbf16>, vector<144x128xbf16>, vector<16x128xf32> -> vector<16x128xf32>
    %283 = arith.addf %277, %282 : vector<16x128xf32>
    %c2_301 = arith.constant 2 : index
    %c0_302 = arith.constant 0 : index
    %284 = vector.load %arg15[%c2_301, %c0_302] : memref<18x144xf32, #tpu.memory_space<vmem>>, vector<16x144xf32>
    %285 = arith.truncf %284 : vector<16x144xf32> to vector<16x144xbf16>
    %c2_303 = arith.constant 2 : index
    %c2_304 = arith.constant 2 : index
    %c0_305 = arith.constant 0 : index
    %c0_306 = arith.constant 0 : index
    %286 = vector.load %arg4[%c2_303, %c2_304, %c0_305, %c0_306] : memref<9x3x144x128xbf16, #tpu.memory_space<vmem>>, vector<1x1x144x128xbf16>
    %287 = vector.shape_cast %286 : vector<1x1x144x128xbf16> to vector<144x128xbf16>
    %cst_307 = arith.constant dense<0.000000e+00> : vector<16x128xf32>
    %288 = tpu.matmul %285, %287, %cst_307 {dimension_numbers = #tpu.dot_dimension_numbers<[1], [0], [0], [1], [0, 0, 1, 1], [], []>} : vector<16x144xbf16>, vector<144x128xbf16>, vector<16x128xf32> -> vector<16x128xf32>
    %289 = arith.addf %283, %288 : vector<16x128xf32>
    %c2_308 = arith.constant 2 : index
    %c0_309 = arith.constant 0 : index
    %c0_310 = arith.constant 0 : index
    %290 = vector.load %arg5[%c2_308, %c0_309, %c0_310] : memref<9x1x128xf32, #tpu.memory_space<vmem>>, vector<1x1x128xf32>
    %291 = vector.shape_cast %290 : vector<1x1x128xf32> to vector<1x128xf32>
    %292 = vector.broadcast %291 : vector<1x128xf32> to vector<16x128xf32>
    %293 = arith.addf %289, %292 : vector<16x128xf32>
    %cst_311 = arith.constant 0.000000e+00 : f32
    %294 = vector.broadcast %cst_311 : f32 to vector<16x128xf32>
    %295 = arith.maximumf %293, %294 : vector<16x128xf32>
    %c1_312 = arith.constant 1 : index
    %c0_313 = arith.constant 0 : index
    %296 = vector.load %arg15[%c1_312, %c0_313] : memref<18x144xf32, #tpu.memory_space<vmem>>, vector<16x128xf32>
    tpu.vector_store %arg15[%c1_312, %c0_313], %295 {strides = array<i32>} : memref<18x144xf32, #tpu.memory_space<vmem>>, vector<16x128xf32>,
    %c0_314 = arith.constant 0 : index
    %c0_315 = arith.constant 0 : index
    %297 = vector.load %arg15[%c0_314, %c0_315] : memref<18x144xf32, #tpu.memory_space<vmem>>, vector<16x144xf32>
    %298 = arith.truncf %297 : vector<16x144xf32> to vector<16x144xbf16>
    %c3_316 = arith.constant 3 : index
    %c0_317 = arith.constant 0 : index
    %c0_318 = arith.constant 0 : index
    %c0_319 = arith.constant 0 : index
    %299 = vector.load %arg4[%c3_316, %c0_317, %c0_318, %c0_319] : memref<9x3x144x128xbf16, #tpu.memory_space<vmem>>, vector<1x1x144x128xbf16>
    %300 = vector.shape_cast %299 : vector<1x1x144x128xbf16> to vector<144x128xbf16>
    %cst_320 = arith.constant dense<0.000000e+00> : vector<16x128xf32>
    %301 = tpu.matmul %298, %300, %cst_320 {dimension_numbers = #tpu.dot_dimension_numbers<[1], [0], [0], [1], [0, 0, 1, 1], [], []>} : vector<16x144xbf16>, vector<144x128xbf16>, vector<16x128xf32> -> vector<16x128xf32>
    %c1_321 = arith.constant 1 : index
    %c0_322 = arith.constant 0 : index
    %302 = vector.load %arg15[%c1_321, %c0_322] : memref<18x144xf32, #tpu.memory_space<vmem>>, vector<16x144xf32>
    %303 = arith.truncf %302 : vector<16x144xf32> to vector<16x144xbf16>
    %c3_323 = arith.constant 3 : index
    %c1_324 = arith.constant 1 : index
    %c0_325 = arith.constant 0 : index
    %c0_326 = arith.constant 0 : index
    %304 = vector.load %arg4[%c3_323, %c1_324, %c0_325, %c0_326] : memref<9x3x144x128xbf16, #tpu.memory_space<vmem>>, vector<1x1x144x128xbf16>
    %305 = vector.shape_cast %304 : vector<1x1x144x128xbf16> to vector<144x128xbf16>
    %cst_327 = arith.constant dense<0.000000e+00> : vector<16x128xf32>
    %306 = tpu.matmul %303, %305, %cst_327 {dimension_numbers = #tpu.dot_dimension_numbers<[1], [0], [0], [1], [0, 0, 1, 1], [], []>} : vector<16x144xbf16>, vector<144x128xbf16>, vector<16x128xf32> -> vector<16x128xf32>
    %307 = arith.addf %301, %306 : vector<16x128xf32>
    %c2_328 = arith.constant 2 : index
    %c0_329 = arith.constant 0 : index
    %308 = vector.load %arg15[%c2_328, %c0_329] : memref<18x144xf32, #tpu.memory_space<vmem>>, vector<16x144xf32>
    %309 = arith.truncf %308 : vector<16x144xf32> to vector<16x144xbf16>
    %c3_330 = arith.constant 3 : index
    %c2_331 = arith.constant 2 : index
    %c0_332 = arith.constant 0 : index
    %c0_333 = arith.constant 0 : index
    %310 = vector.load %arg4[%c3_330, %c2_331, %c0_332, %c0_333] : memref<9x3x144x128xbf16, #tpu.memory_space<vmem>>, vector<1x1x144x128xbf16>
    %311 = vector.shape_cast %310 : vector<1x1x144x128xbf16> to vector<144x128xbf16>
    %cst_334 = arith.constant dense<0.000000e+00> : vector<16x128xf32>
    %312 = tpu.matmul %309, %311, %cst_334 {dimension_numbers = #tpu.dot_dimension_numbers<[1], [0], [0], [1], [0, 0, 1, 1], [], []>} : vector<16x144xbf16>, vector<144x128xbf16>, vector<16x128xf32> -> vector<16x128xf32>
    %313 = arith.addf %307, %312 : vector<16x128xf32>
    %c3_335 = arith.constant 3 : index
    %c0_336 = arith.constant 0 : index
    %c0_337 = arith.constant 0 : index
    %314 = vector.load %arg5[%c3_335, %c0_336, %c0_337] : memref<9x1x128xf32, #tpu.memory_space<vmem>>, vector<1x1x128xf32>
    %315 = vector.shape_cast %314 : vector<1x1x128xf32> to vector<1x128xf32>
    %316 = vector.broadcast %315 : vector<1x128xf32> to vector<16x128xf32>
    %317 = arith.addf %313, %316 : vector<16x128xf32>
    %318 = arith.addf %317, %271 : vector<16x128xf32>
    %319 = arith.truncf %318 : vector<16x128xf32> to vector<16x128xbf16>
    %c0_338 = arith.constant 0 : index
    %c0_339 = arith.constant 0 : index
    %320 = vector.load %arg12[%c0_338, %c0_339] : memref<128x128xbf16, #tpu.memory_space<vmem>>, vector<128x128xbf16>
    %cst_340 = arith.constant dense<0.000000e+00> : vector<16x128xf32>
    %321 = tpu.matmul %319, %320, %cst_340 {dimension_numbers = #tpu.dot_dimension_numbers<[1], [0], [0], [1], [0, 0, 1, 1], [], []>} : vector<16x128xbf16>, vector<128x128xbf16>, vector<16x128xf32> -> vector<16x128xf32>
    %c0_341 = arith.constant 0 : index
    %c0_342 = arith.constant 0 : index
    %322 = vector.load %arg13[%c0_341, %c0_342] : memref<1x128xf32, #tpu.memory_space<vmem>>, vector<1x128xf32>
    %323 = vector.broadcast %322 : vector<1x128xf32> to vector<16x128xf32>
    %324 = arith.addf %321, %323 : vector<16x128xf32>
    %325 = math.absf %324 : vector<16x128xf32>
    %cst_343 = arith.constant 0.000000e+00 : f32
    %326 = vector.broadcast %cst_343 : f32 to vector<16x128xf32>
    %327 = arith.subf %326, %325 : vector<16x128xf32>
    %328 = math.exp %327 : vector<16x128xf32>
    %cst_344 = arith.constant 1.000000e+00 : f32
    %329 = vector.broadcast %cst_344 : f32 to vector<16x128xf32>
    %330 = arith.addf %329, %328 : vector<16x128xf32>
    %331 = tpu.reciprocal %330 {approx = true} : vector<16x128xf32> -> vector<16x128xf32>
    %cst_345 = arith.constant 0.000000e+00 : f32
    %332 = vector.broadcast %cst_345 : f32 to vector<16x128xf32>
    %333 = arith.cmpf oge, %324, %332 : vector<16x128xf32>
    %334 = arith.mulf %328, %331 : vector<16x128xf32>
    %335 = arith.select %333, %331, %334 : vector<16x128xi1>, vector<16x128xf32>
    %c0_346 = arith.constant 0 : index
    %c0_347 = arith.constant 0 : index
    %c0_348 = arith.constant 0 : index
    %336 = vector.load %arg2[%c0_346, %c0_347, %c0_348] : memref<1x16x128xf32, #tpu.memory_space<vmem>>, vector<1x16x128xf32>
    %337 = vector.shape_cast %336 : vector<1x16x128xf32> to vector<16x128xf32>
    %338 = arith.mulf %337, %335 : vector<16x128xf32>
    %c0_349 = arith.constant 0 : index
    %c0_350 = arith.constant 0 : index
    %c0_351 = arith.constant 0 : index
    %339 = vector.load %arg3[%c0_349, %c0_350, %c0_351] : memref<1x16x128xf32, #tpu.memory_space<vmem>>, vector<1x16x128xf32>
    %340 = vector.shape_cast %339 : vector<1x16x128xf32> to vector<16x128xf32>
    %341 = arith.addf %338, %340 : vector<16x128xf32>
    %c1_352 = arith.constant 1 : index
    %c0_353 = arith.constant 0 : index
    %342 = vector.load %arg15[%c1_352, %c0_353] : memref<18x144xf32, #tpu.memory_space<vmem>>, vector<16x128xf32>
    tpu.vector_store %arg15[%c1_352, %c0_353], %341 {strides = array<i32>} : memref<18x144xf32, #tpu.memory_space<vmem>>, vector<16x128xf32>,
    %c0_354 = arith.constant 0 : index
    %c0_355 = arith.constant 0 : index
    %343 = vector.load %arg15[%c0_354, %c0_355] : memref<18x144xf32, #tpu.memory_space<vmem>>, vector<16x144xf32>
    %344 = arith.truncf %343 : vector<16x144xf32> to vector<16x144xbf16>
    %c4_356 = arith.constant 4 : index
    %c0_357 = arith.constant 0 : index
    %c0_358 = arith.constant 0 : index
    %c0_359 = arith.constant 0 : index
    %345 = vector.load %arg4[%c4_356, %c0_357, %c0_358, %c0_359] : memref<9x3x144x128xbf16, #tpu.memory_space<vmem>>, vector<1x1x144x128xbf16>
    %346 = vector.shape_cast %345 : vector<1x1x144x128xbf16> to vector<144x128xbf16>
    %cst_360 = arith.constant dense<0.000000e+00> : vector<16x128xf32>
    %347 = tpu.matmul %344, %346, %cst_360 {dimension_numbers = #tpu.dot_dimension_numbers<[1], [0], [0], [1], [0, 0, 1, 1], [], []>} : vector<16x144xbf16>, vector<144x128xbf16>, vector<16x128xf32> -> vector<16x128xf32>
    %c1_361 = arith.constant 1 : index
    %c0_362 = arith.constant 0 : index
    %348 = vector.load %arg15[%c1_361, %c0_362] : memref<18x144xf32, #tpu.memory_space<vmem>>, vector<16x144xf32>
    %349 = arith.truncf %348 : vector<16x144xf32> to vector<16x144xbf16>
    %c4_363 = arith.constant 4 : index
    %c1_364 = arith.constant 1 : index
    %c0_365 = arith.constant 0 : index
    %c0_366 = arith.constant 0 : index
    %350 = vector.load %arg4[%c4_363, %c1_364, %c0_365, %c0_366] : memref<9x3x144x128xbf16, #tpu.memory_space<vmem>>, vector<1x1x144x128xbf16>
    %351 = vector.shape_cast %350 : vector<1x1x144x128xbf16> to vector<144x128xbf16>
    %cst_367 = arith.constant dense<0.000000e+00> : vector<16x128xf32>
    %352 = tpu.matmul %349, %351, %cst_367 {dimension_numbers = #tpu.dot_dimension_numbers<[1], [0], [0], [1], [0, 0, 1, 1], [], []>} : vector<16x144xbf16>, vector<144x128xbf16>, vector<16x128xf32> -> vector<16x128xf32>
    %353 = arith.addf %347, %352 : vector<16x128xf32>
    %c2_368 = arith.constant 2 : index
    %c0_369 = arith.constant 0 : index
    %354 = vector.load %arg15[%c2_368, %c0_369] : memref<18x144xf32, #tpu.memory_space<vmem>>, vector<16x144xf32>
    %355 = arith.truncf %354 : vector<16x144xf32> to vector<16x144xbf16>
    %c4_370 = arith.constant 4 : index
    %c2_371 = arith.constant 2 : index
    %c0_372 = arith.constant 0 : index
    %c0_373 = arith.constant 0 : index
    %356 = vector.load %arg4[%c4_370, %c2_371, %c0_372, %c0_373] : memref<9x3x144x128xbf16, #tpu.memory_space<vmem>>, vector<1x1x144x128xbf16>
    %357 = vector.shape_cast %356 : vector<1x1x144x128xbf16> to vector<144x128xbf16>
    %cst_374 = arith.constant dense<0.000000e+00> : vector<16x128xf32>
    %358 = tpu.matmul %355, %357, %cst_374 {dimension_numbers = #tpu.dot_dimension_numbers<[1], [0], [0], [1], [0, 0, 1, 1], [], []>} : vector<16x144xbf16>, vector<144x128xbf16>, vector<16x128xf32> -> vector<16x128xf32>
    %359 = arith.addf %353, %358 : vector<16x128xf32>
    %c4_375 = arith.constant 4 : index
    %c0_376 = arith.constant 0 : index
    %c0_377 = arith.constant 0 : index
    %360 = vector.load %arg5[%c4_375, %c0_376, %c0_377] : memref<9x1x128xf32, #tpu.memory_space<vmem>>, vector<1x1x128xf32>
    %361 = vector.shape_cast %360 : vector<1x1x128xf32> to vector<1x128xf32>
    %362 = vector.broadcast %361 : vector<1x128xf32> to vector<16x128xf32>
    %363 = arith.addf %359, %362 : vector<16x128xf32>
    %cst_378 = arith.constant 0.000000e+00 : f32
    %364 = vector.broadcast %cst_378 : f32 to vector<16x128xf32>
    %365 = arith.maximumf %363, %364 : vector<16x128xf32>
    %c1_379 = arith.constant 1 : index
    %c0_380 = arith.constant 0 : index
    %366 = vector.load %arg15[%c1_379, %c0_380] : memref<18x144xf32, #tpu.memory_space<vmem>>, vector<16x128xf32>
    tpu.vector_store %arg15[%c1_379, %c0_380], %365 {strides = array<i32>} : memref<18x144xf32, #tpu.memory_space<vmem>>, vector<16x128xf32>,
    %c0_381 = arith.constant 0 : index
    %c0_382 = arith.constant 0 : index
    %367 = vector.load %arg15[%c0_381, %c0_382] : memref<18x144xf32, #tpu.memory_space<vmem>>, vector<16x144xf32>
    %368 = arith.truncf %367 : vector<16x144xf32> to vector<16x144xbf16>
    %c5_383 = arith.constant 5 : index
    %c0_384 = arith.constant 0 : index
    %c0_385 = arith.constant 0 : index
    %c0_386 = arith.constant 0 : index
    %369 = vector.load %arg4[%c5_383, %c0_384, %c0_385, %c0_386] : memref<9x3x144x128xbf16, #tpu.memory_space<vmem>>, vector<1x1x144x128xbf16>
    %370 = vector.shape_cast %369 : vector<1x1x144x128xbf16> to vector<144x128xbf16>
    %cst_387 = arith.constant dense<0.000000e+00> : vector<16x128xf32>
    %371 = tpu.matmul %368, %370, %cst_387 {dimension_numbers = #tpu.dot_dimension_numbers<[1], [0], [0], [1], [0, 0, 1, 1], [], []>} : vector<16x144xbf16>, vector<144x128xbf16>, vector<16x128xf32> -> vector<16x128xf32>
    %c1_388 = arith.constant 1 : index
    %c0_389 = arith.constant 0 : index
    %372 = vector.load %arg15[%c1_388, %c0_389] : memref<18x144xf32, #tpu.memory_space<vmem>>, vector<16x144xf32>
    %373 = arith.truncf %372 : vector<16x144xf32> to vector<16x144xbf16>
    %c5_390 = arith.constant 5 : index
    %c1_391 = arith.constant 1 : index
    %c0_392 = arith.constant 0 : index
    %c0_393 = arith.constant 0 : index
    %374 = vector.load %arg4[%c5_390, %c1_391, %c0_392, %c0_393] : memref<9x3x144x128xbf16, #tpu.memory_space<vmem>>, vector<1x1x144x128xbf16>
    %375 = vector.shape_cast %374 : vector<1x1x144x128xbf16> to vector<144x128xbf16>
    %cst_394 = arith.constant dense<0.000000e+00> : vector<16x128xf32>
    %376 = tpu.matmul %373, %375, %cst_394 {dimension_numbers = #tpu.dot_dimension_numbers<[1], [0], [0], [1], [0, 0, 1, 1], [], []>} : vector<16x144xbf16>, vector<144x128xbf16>, vector<16x128xf32> -> vector<16x128xf32>
    %377 = arith.addf %371, %376 : vector<16x128xf32>
    %c2_395 = arith.constant 2 : index
    %c0_396 = arith.constant 0 : index
    %378 = vector.load %arg15[%c2_395, %c0_396] : memref<18x144xf32, #tpu.memory_space<vmem>>, vector<16x144xf32>
    %379 = arith.truncf %378 : vector<16x144xf32> to vector<16x144xbf16>
    %c5_397 = arith.constant 5 : index
    %c2_398 = arith.constant 2 : index
    %c0_399 = arith.constant 0 : index
    %c0_400 = arith.constant 0 : index
    %380 = vector.load %arg4[%c5_397, %c2_398, %c0_399, %c0_400] : memref<9x3x144x128xbf16, #tpu.memory_space<vmem>>, vector<1x1x144x128xbf16>
    %381 = vector.shape_cast %380 : vector<1x1x144x128xbf16> to vector<144x128xbf16>
    %cst_401 = arith.constant dense<0.000000e+00> : vector<16x128xf32>
    %382 = tpu.matmul %379, %381, %cst_401 {dimension_numbers = #tpu.dot_dimension_numbers<[1], [0], [0], [1], [0, 0, 1, 1], [], []>} : vector<16x144xbf16>, vector<144x128xbf16>, vector<16x128xf32> -> vector<16x128xf32>
    %383 = arith.addf %377, %382 : vector<16x128xf32>
    %c5_402 = arith.constant 5 : index
    %c0_403 = arith.constant 0 : index
    %c0_404 = arith.constant 0 : index
    %384 = vector.load %arg5[%c5_402, %c0_403, %c0_404] : memref<9x1x128xf32, #tpu.memory_space<vmem>>, vector<1x1x128xf32>
    %385 = vector.shape_cast %384 : vector<1x1x128xf32> to vector<1x128xf32>
    %386 = vector.broadcast %385 : vector<1x128xf32> to vector<16x128xf32>
    %387 = arith.addf %383, %386 : vector<16x128xf32>
    %388 = arith.addf %387, %341 : vector<16x128xf32>
    %c1_405 = arith.constant 1 : index
    %c0_406 = arith.constant 0 : index
    %389 = vector.load %arg15[%c1_405, %c0_406] : memref<18x144xf32, #tpu.memory_space<vmem>>, vector<16x128xf32>
    tpu.vector_store %arg15[%c1_405, %c0_406], %388 {strides = array<i32>} : memref<18x144xf32, #tpu.memory_space<vmem>>, vector<16x128xf32>,
    %c0_407 = arith.constant 0 : index
    %c0_408 = arith.constant 0 : index
    %390 = vector.load %arg15[%c0_407, %c0_408] : memref<18x144xf32, #tpu.memory_space<vmem>>, vector<16x144xf32>
    %391 = arith.truncf %390 : vector<16x144xf32> to vector<16x144xbf16>
    %c6_409 = arith.constant 6 : index
    %c0_410 = arith.constant 0 : index
    %c0_411 = arith.constant 0 : index
    %c0_412 = arith.constant 0 : index
    %392 = vector.load %arg4[%c6_409, %c0_410, %c0_411, %c0_412] : memref<9x3x144x128xbf16, #tpu.memory_space<vmem>>, vector<1x1x144x128xbf16>
    %393 = vector.shape_cast %392 : vector<1x1x144x128xbf16> to vector<144x128xbf16>
    %cst_413 = arith.constant dense<0.000000e+00> : vector<16x128xf32>
    %394 = tpu.matmul %391, %393, %cst_413 {dimension_numbers = #tpu.dot_dimension_numbers<[1], [0], [0], [1], [0, 0, 1, 1], [], []>} : vector<16x144xbf16>, vector<144x128xbf16>, vector<16x128xf32> -> vector<16x128xf32>
    %c1_414 = arith.constant 1 : index
    %c0_415 = arith.constant 0 : index
    %395 = vector.load %arg15[%c1_414, %c0_415] : memref<18x144xf32, #tpu.memory_space<vmem>>, vector<16x144xf32>
    %396 = arith.truncf %395 : vector<16x144xf32> to vector<16x144xbf16>
    %c6_416 = arith.constant 6 : index
    %c1_417 = arith.constant 1 : index
    %c0_418 = arith.constant 0 : index
    %c0_419 = arith.constant 0 : index
    %397 = vector.load %arg4[%c6_416, %c1_417, %c0_418, %c0_419] : memref<9x3x144x128xbf16, #tpu.memory_space<vmem>>, vector<1x1x144x128xbf16>
    %398 = vector.shape_cast %397 : vector<1x1x144x128xbf16> to vector<144x128xbf16>
    %cst_420 = arith.constant dense<0.000000e+00> : vector<16x128xf32>
    %399 = tpu.matmul %396, %398, %cst_420 {dimension_numbers = #tpu.dot_dimension_numbers<[1], [0], [0], [1], [0, 0, 1, 1], [], []>} : vector<16x144xbf16>, vector<144x128xbf16>, vector<16x128xf32> -> vector<16x128xf32>
    %400 = arith.addf %394, %399 : vector<16x128xf32>
    %c2_421 = arith.constant 2 : index
    %c0_422 = arith.constant 0 : index
    %401 = vector.load %arg15[%c2_421, %c0_422] : memref<18x144xf32, #tpu.memory_space<vmem>>, vector<16x144xf32>
    %402 = arith.truncf %401 : vector<16x144xf32> to vector<16x144xbf16>
    %c6_423 = arith.constant 6 : index
    %c2_424 = arith.constant 2 : index
    %c0_425 = arith.constant 0 : index
    %c0_426 = arith.constant 0 : index
    %403 = vector.load %arg4[%c6_423, %c2_424, %c0_425, %c0_426] : memref<9x3x144x128xbf16, #tpu.memory_space<vmem>>, vector<1x1x144x128xbf16>
    %404 = vector.shape_cast %403 : vector<1x1x144x128xbf16> to vector<144x128xbf16>
    %cst_427 = arith.constant dense<0.000000e+00> : vector<16x128xf32>
    %405 = tpu.matmul %402, %404, %cst_427 {dimension_numbers = #tpu.dot_dimension_numbers<[1], [0], [0], [1], [0, 0, 1, 1], [], []>} : vector<16x144xbf16>, vector<144x128xbf16>, vector<16x128xf32> -> vector<16x128xf32>
    %406 = arith.addf %400, %405 : vector<16x128xf32>
    %c6_428 = arith.constant 6 : index
    %c0_429 = arith.constant 0 : index
    %c0_430 = arith.constant 0 : index
    %407 = vector.load %arg5[%c6_428, %c0_429, %c0_430] : memref<9x1x128xf32, #tpu.memory_space<vmem>>, vector<1x1x128xf32>
    %408 = vector.shape_cast %407 : vector<1x1x128xf32> to vector<1x128xf32>
    %409 = vector.broadcast %408 : vector<1x128xf32> to vector<16x128xf32>
    %410 = arith.addf %406, %409 : vector<16x128xf32>
    %cst_431 = arith.constant 0.000000e+00 : f32
    %411 = vector.broadcast %cst_431 : f32 to vector<16x128xf32>
    %412 = arith.maximumf %410, %411 : vector<16x128xf32>
    %c1_432 = arith.constant 1 : index
    %c0_433 = arith.constant 0 : index
    %413 = vector.load %arg15[%c1_432, %c0_433] : memref<18x144xf32, #tpu.memory_space<vmem>>, vector<16x128xf32>
    tpu.vector_store %arg15[%c1_432, %c0_433], %412 {strides = array<i32>} : memref<18x144xf32, #tpu.memory_space<vmem>>, vector<16x128xf32>,
    %c0_434 = arith.constant 0 : index
    %c0_435 = arith.constant 0 : index
    %414 = vector.load %arg15[%c0_434, %c0_435] : memref<18x144xf32, #tpu.memory_space<vmem>>, vector<16x144xf32>
    %415 = arith.truncf %414 : vector<16x144xf32> to vector<16x144xbf16>
    %c7_436 = arith.constant 7 : index
    %c0_437 = arith.constant 0 : index
    %c0_438 = arith.constant 0 : index
    %c0_439 = arith.constant 0 : index
    %416 = vector.load %arg4[%c7_436, %c0_437, %c0_438, %c0_439] : memref<9x3x144x128xbf16, #tpu.memory_space<vmem>>, vector<1x1x144x128xbf16>
    %417 = vector.shape_cast %416 : vector<1x1x144x128xbf16> to vector<144x128xbf16>
    %cst_440 = arith.constant dense<0.000000e+00> : vector<16x128xf32>
    %418 = tpu.matmul %415, %417, %cst_440 {dimension_numbers = #tpu.dot_dimension_numbers<[1], [0], [0], [1], [0, 0, 1, 1], [], []>} : vector<16x144xbf16>, vector<144x128xbf16>, vector<16x128xf32> -> vector<16x128xf32>
    %c1_441 = arith.constant 1 : index
    %c0_442 = arith.constant 0 : index
    %419 = vector.load %arg15[%c1_441, %c0_442] : memref<18x144xf32, #tpu.memory_space<vmem>>, vector<16x144xf32>
    %420 = arith.truncf %419 : vector<16x144xf32> to vector<16x144xbf16>
    %c7_443 = arith.constant 7 : index
    %c1_444 = arith.constant 1 : index
    %c0_445 = arith.constant 0 : index
    %c0_446 = arith.constant 0 : index
    %421 = vector.load %arg4[%c7_443, %c1_444, %c0_445, %c0_446] : memref<9x3x144x128xbf16, #tpu.memory_space<vmem>>, vector<1x1x144x128xbf16>
    %422 = vector.shape_cast %421 : vector<1x1x144x128xbf16> to vector<144x128xbf16>
    %cst_447 = arith.constant dense<0.000000e+00> : vector<16x128xf32>
    %423 = tpu.matmul %420, %422, %cst_447 {dimension_numbers = #tpu.dot_dimension_numbers<[1], [0], [0], [1], [0, 0, 1, 1], [], []>} : vector<16x144xbf16>, vector<144x128xbf16>, vector<16x128xf32> -> vector<16x128xf32>
    %424 = arith.addf %418, %423 : vector<16x128xf32>
    %c2_448 = arith.constant 2 : index
    %c0_449 = arith.constant 0 : index
    %425 = vector.load %arg15[%c2_448, %c0_449] : memref<18x144xf32, #tpu.memory_space<vmem>>, vector<16x144xf32>
    %426 = arith.truncf %425 : vector<16x144xf32> to vector<16x144xbf16>
    %c7_450 = arith.constant 7 : index
    %c2_451 = arith.constant 2 : index
    %c0_452 = arith.constant 0 : index
    %c0_453 = arith.constant 0 : index
    %427 = vector.load %arg4[%c7_450, %c2_451, %c0_452, %c0_453] : memref<9x3x144x128xbf16, #tpu.memory_space<vmem>>, vector<1x1x144x128xbf16>
    %428 = vector.shape_cast %427 : vector<1x1x144x128xbf16> to vector<144x128xbf16>
    %cst_454 = arith.constant dense<0.000000e+00> : vector<16x128xf32>
    %429 = tpu.matmul %426, %428, %cst_454 {dimension_numbers = #tpu.dot_dimension_numbers<[1], [0], [0], [1], [0, 0, 1, 1], [], []>} : vector<16x144xbf16>, vector<144x128xbf16>, vector<16x128xf32> -> vector<16x128xf32>
    %430 = arith.addf %424, %429 : vector<16x128xf32>
    %c7_455 = arith.constant 7 : index
    %c0_456 = arith.constant 0 : index
    %c0_457 = arith.constant 0 : index
    %431 = vector.load %arg5[%c7_455, %c0_456, %c0_457] : memref<9x1x128xf32, #tpu.memory_space<vmem>>, vector<1x1x128xf32>
    %432 = vector.shape_cast %431 : vector<1x1x128xf32> to vector<1x128xf32>
    %433 = vector.broadcast %432 : vector<1x128xf32> to vector<16x128xf32>
    %434 = arith.addf %430, %433 : vector<16x128xf32>
    %435 = arith.addf %434, %388 : vector<16x128xf32>
    %c1_458 = arith.constant 1 : index
    %c0_459 = arith.constant 0 : index
    %436 = vector.load %arg15[%c1_458, %c0_459] : memref<18x144xf32, #tpu.memory_space<vmem>>, vector<16x128xf32>
    tpu.vector_store %arg15[%c1_458, %c0_459], %435 {strides = array<i32>} : memref<18x144xf32, #tpu.memory_space<vmem>>, vector<16x128xf32>,
    %c0_460 = arith.constant 0 : index
    %c0_461 = arith.constant 0 : index
    %437 = vector.load %arg15[%c0_460, %c0_461] : memref<18x144xf32, #tpu.memory_space<vmem>>, vector<16x144xf32>
    %438 = arith.truncf %437 : vector<16x144xf32> to vector<16x144xbf16>
    %c8_462 = arith.constant 8 : index
    %c0_463 = arith.constant 0 : index
    %c0_464 = arith.constant 0 : index
    %c0_465 = arith.constant 0 : index
    %439 = vector.load %arg4[%c8_462, %c0_463, %c0_464, %c0_465] : memref<9x3x144x128xbf16, #tpu.memory_space<vmem>>, vector<1x1x144x128xbf16>
    %440 = vector.shape_cast %439 : vector<1x1x144x128xbf16> to vector<144x128xbf16>
    %cst_466 = arith.constant dense<0.000000e+00> : vector<16x128xf32>
    %441 = tpu.matmul %438, %440, %cst_466 {dimension_numbers = #tpu.dot_dimension_numbers<[1], [0], [0], [1], [0, 0, 1, 1], [], []>} : vector<16x144xbf16>, vector<144x128xbf16>, vector<16x128xf32> -> vector<16x128xf32>
    %c1_467 = arith.constant 1 : index
    %c0_468 = arith.constant 0 : index
    %442 = vector.load %arg15[%c1_467, %c0_468] : memref<18x144xf32, #tpu.memory_space<vmem>>, vector<16x144xf32>
    %443 = arith.truncf %442 : vector<16x144xf32> to vector<16x144xbf16>
    %c8_469 = arith.constant 8 : index
    %c1_470 = arith.constant 1 : index
    %c0_471 = arith.constant 0 : index
    %c0_472 = arith.constant 0 : index
    %444 = vector.load %arg4[%c8_469, %c1_470, %c0_471, %c0_472] : memref<9x3x144x128xbf16, #tpu.memory_space<vmem>>, vector<1x1x144x128xbf16>
    %445 = vector.shape_cast %444 : vector<1x1x144x128xbf16> to vector<144x128xbf16>
    %cst_473 = arith.constant dense<0.000000e+00> : vector<16x128xf32>
    %446 = tpu.matmul %443, %445, %cst_473 {dimension_numbers = #tpu.dot_dimension_numbers<[1], [0], [0], [1], [0, 0, 1, 1], [], []>} : vector<16x144xbf16>, vector<144x128xbf16>, vector<16x128xf32> -> vector<16x128xf32>
    %447 = arith.addf %441, %446 : vector<16x128xf32>
    %c2_474 = arith.constant 2 : index
    %c0_475 = arith.constant 0 : index
    %448 = vector.load %arg15[%c2_474, %c0_475] : memref<18x144xf32, #tpu.memory_space<vmem>>, vector<16x144xf32>
    %449 = arith.truncf %448 : vector<16x144xf32> to vector<16x144xbf16>
    %c8_476 = arith.constant 8 : index
    %c2_477 = arith.constant 2 : index
    %c0_478 = arith.constant 0 : index
    %c0_479 = arith.constant 0 : index
    %450 = vector.load %arg4[%c8_476, %c2_477, %c0_478, %c0_479] : memref<9x3x144x128xbf16, #tpu.memory_space<vmem>>, vector<1x1x144x128xbf16>
    %451 = vector.shape_cast %450 : vector<1x1x144x128xbf16> to vector<144x128xbf16>
    %cst_480 = arith.constant dense<0.000000e+00> : vector<16x128xf32>
    %452 = tpu.matmul %449, %451, %cst_480 {dimension_numbers = #tpu.dot_dimension_numbers<[1], [0], [0], [1], [0, 0, 1, 1], [], []>} : vector<16x144xbf16>, vector<144x128xbf16>, vector<16x128xf32> -> vector<16x128xf32>
    %453 = arith.addf %447, %452 : vector<16x128xf32>
    %c8_481 = arith.constant 8 : index
    %c0_482 = arith.constant 0 : index
    %c0_483 = arith.constant 0 : index
    %454 = vector.load %arg5[%c8_481, %c0_482, %c0_483] : memref<9x1x128xf32, #tpu.memory_space<vmem>>, vector<1x1x128xf32>
    %455 = vector.shape_cast %454 : vector<1x1x128xf32> to vector<1x128xf32>
    %456 = vector.broadcast %455 : vector<1x128xf32> to vector<16x128xf32>
    %457 = arith.addf %453, %456 : vector<16x128xf32>
    %c0_484 = arith.constant 0 : index
    %c0_485 = arith.constant 0 : index
    %c0_486 = arith.constant 0 : index
    %458 = vector.load %arg14[%c0_484, %c0_485, %c0_486] : memref<1x16x128xf32, #tpu.memory_space<vmem>>, vector<1x16x128xf32>
    %459 = vector.shape_cast %458 : vector<1x16x128xf32> to vector<16x128xf32>
    %460 = vector.shape_cast %457 : vector<16x128xf32> to vector<1x16x128xf32>
    tpu.vector_store %arg14[%c0_484, %c0_485, %c0_486], %460 {strides = array<i32>} : memref<1x16x128xf32, #tpu.memory_space<vmem>>, vector<1x16x128xf32>,
    return
  }
  func.func @transform_0(%arg0: i32) -> (i32, i32, i32) {
    %c0_i32 = arith.constant 0 : i32
    %c0_i32_0 = arith.constant 0 : i32
    %c0_i32_1 = arith.constant 0 : i32
    return %arg0, %c0_i32, %c0_i32_0 : i32, i32, i32
  }
  func.func @transform_1(%arg0: i32) -> (i32, i32, i32) {
    %c0_i32 = arith.constant 0 : i32
    %c0_i32_0 = arith.constant 0 : i32
    %c0_i32_1 = arith.constant 0 : i32
    return %arg0, %c0_i32, %c0_i32_0 : i32, i32, i32
  }
  func.func @transform_2(%arg0: i32) -> (i32, i32, i32) {
    %c0_i32 = arith.constant 0 : i32
    %c0_i32_0 = arith.constant 0 : i32
    %c0_i32_1 = arith.constant 0 : i32
    return %arg0, %c0_i32, %c0_i32_0 : i32, i32, i32
  }
  func.func @transform_3(%arg0: i32) -> (i32, i32, i32, i32) {
    %c0_i32 = arith.constant 0 : i32
    %c0_i32_0 = arith.constant 0 : i32
    %c0_i32_1 = arith.constant 0 : i32
    %c0_i32_2 = arith.constant 0 : i32
    %c0_i32_3 = arith.constant 0 : i32
    return %c0_i32, %c0_i32_0, %c0_i32_1, %c0_i32_2 : i32, i32, i32, i32
  }
  func.func @transform_4(%arg0: i32) -> (i32, i32, i32) {
    %c0_i32 = arith.constant 0 : i32
    %c0_i32_0 = arith.constant 0 : i32
    %c0_i32_1 = arith.constant 0 : i32
    %c0_i32_2 = arith.constant 0 : i32
    return %c0_i32, %c0_i32_0, %c0_i32_1 : i32, i32, i32
  }
  func.func @transform_5(%arg0: i32) -> (i32, i32, i32) {
    %c0_i32 = arith.constant 0 : i32
    %c0_i32_0 = arith.constant 0 : i32
    %c0_i32_1 = arith.constant 0 : i32
    %c0_i32_2 = arith.constant 0 : i32
    return %c0_i32, %c0_i32_0, %c0_i32_1 : i32, i32, i32
  }
  func.func @transform_6(%arg0: i32) -> (i32, i32) {
    %c0_i32 = arith.constant 0 : i32
    %c0_i32_0 = arith.constant 0 : i32
    %c0_i32_1 = arith.constant 0 : i32
    return %c0_i32, %c0_i32_0 : i32, i32
  }
  func.func @transform_7(%arg0: i32) -> (i32, i32, i32, i32) {
    %c0_i32 = arith.constant 0 : i32
    %c0_i32_0 = arith.constant 0 : i32
    %c0_i32_1 = arith.constant 0 : i32
    %c0_i32_2 = arith.constant 0 : i32
    %c0_i32_3 = arith.constant 0 : i32
    return %c0_i32, %c0_i32_0, %c0_i32_1, %c0_i32_2 : i32, i32, i32, i32
  }
  func.func @transform_8(%arg0: i32) -> (i32, i32, i32) {
    %c0_i32 = arith.constant 0 : i32
    %c0_i32_0 = arith.constant 0 : i32
    %c0_i32_1 = arith.constant 0 : i32
    %c0_i32_2 = arith.constant 0 : i32
    return %c0_i32, %c0_i32_0, %c0_i32_1 : i32, i32, i32
  }
  func.func @transform_9(%arg0: i32) -> (i32, i32, i32, i32) {
    %c0_i32 = arith.constant 0 : i32
    %c0_i32_0 = arith.constant 0 : i32
    %c0_i32_1 = arith.constant 0 : i32
    %c0_i32_2 = arith.constant 0 : i32
    %c0_i32_3 = arith.constant 0 : i32
    return %c0_i32, %c0_i32_0, %c0_i32_1, %c0_i32_2 : i32, i32, i32, i32
  }
  func.func @transform_10(%arg0: i32) -> (i32, i32) {
    %c0_i32 = arith.constant 0 : i32
    %c0_i32_0 = arith.constant 0 : i32
    %c0_i32_1 = arith.constant 0 : i32
    return %c0_i32, %c0_i32_0 : i32, i32
  }
  func.func @transform_11(%arg0: i32) -> (i32, i32) {
    %c0_i32 = arith.constant 0 : i32
    %c0_i32_0 = arith.constant 0 : i32
    %c0_i32_1 = arith.constant 0 : i32
    return %c0_i32, %c0_i32_0 : i32, i32
  }
  func.func @transform_12(%arg0: i32) -> (i32, i32) {
    %c0_i32 = arith.constant 0 : i32
    %c0_i32_0 = arith.constant 0 : i32
    %c0_i32_1 = arith.constant 0 : i32
    return %c0_i32, %c0_i32_0 : i32, i32
  }
  func.func @transform_13(%arg0: i32) -> (i32, i32, i32) {
    %c0_i32 = arith.constant 0 : i32
    %c0_i32_0 = arith.constant 0 : i32
    %c0_i32_1 = arith.constant 0 : i32
    return %arg0, %c0_i32, %c0_i32_0 : i32, i32, i32
  }
}

</mosaic_0001>

<bundles_post_ra>
// kernel: nl_res_group_forward.4
= control target key start
LH: loop header
LB: loop body
LE: loop exit
PB: predicated region body
PF: predicated region fallthrough
CT: control target
= control target key end

     0   :  { %s2422_s30 = smov 0   ;;  %s3564_s0 = inlined_call_operand.vmem [shape: f32[2,256,8], index: 0, kind: input, shape index: {}]   ;;  %s3565_s1 = inlined_call_operand.vmem [shape: bf16[8,4], index: 1, kind: input, shape index: {}]   ;;  %s3566_s2 = inlined_call_operand.vmem [shape: f32[1,4], index: 2, kind: input, shape index: {}]   ;;  %s3567_s3 = inlined_call_operand.vmem [shape: bf16[8,4], index: 3, kind: input, shape index: {}]   ;;  %s3568_s4 = inlined_call_operand.vmem [shape: f32[1,4], index: 4, kind: input, shape index: {}]   ;;  %s3569_s5 = inlined_call_operand.vmem [shape: bf16[8,4], index: 5, kind: input, shape index: {}]   ;;  %s3570_s6 = inlined_call_operand.vmem [shape: f32[1,4], index: 6, kind: input, shape index: {}]   ;;  %s3571_s7 = inlined_call_operand.vmem [shape: bf16[4,8], index: 7, kind: input, shape index: {}]   ;;  %s3572_s8 = inlined_call_operand.vmem [shape: f32[1,8], index: 8, kind: input, shape index: {}]   ;;  %s3573_s9 = inlined_call_operand.vmem [shape: f32[2,256,8], index: 9, kind: output, shape index: {}]  }
   0x1 LB: > { %s2017_s10 = sadd.s32 4294967295, %s2370_s30   ;;  %p2021_p0 = scmp.ge.s32.totalorder %s2370_s30, 1  ;;  %s2370_s30 = sphi %s2422_s30, %s19_s30  }
   0x2   : > { %p287_p1 = scmp.lt.s32.totalorder %s2370_s30, 3 }
   0x4   : > { %p288_p2 = pnand %p2021_p0, %p287_p1 }
   0x5   : > { %p323_p3 = scmp.lt.s32.totalorder (!%p288_p2), %s2017_s10, 1 }
   0x6   : > { %291 = sbr.rel (%p288_p2) target bundleno = 1585 (0x631), region = 56 }
   0xb   : > { %vm436_vm0 = vcmask 1043456   ;;  %v626_v0 = vld [vmem:[%s3569_s5] sm:$0xf]  ;;  %s3575_s10 = smov (!%p323_p3, %s2017_s10), 1  ;;  %vm387_vm1 = vcmask 64512   ;;  %vm755_vm2 = vcmask 31744  }
   0xc   : > { %v632_v1 = vsel %vm436_vm0, %v626_v0, 0  ;;  %s2124_s13 = sshll.u32 %s3575_s10, 8  ;;  %v382_v8 = vld [vmem:[%s3565_s1] sm:$0xf]  ;;  %vm1805_vm3 = vcmask 1041408  }
   0xd   : > { %641 = vmatpush.bf16.msra.mxu2 %v632_v1  ;;  %s2442_s16 = scalar_lea.vmem %s3564_s0, %s2124_s13  ;;  %v438_v9 = vsel %vm436_vm0, %v382_v8, 0  ;;  %v2519_v32 = vld [vmem:[%s3570_s6] ss:$0 sm:$0xff]  ;;  %s3368_s15 = scalar_lea.vmem %s3573_s9, %s2124_s13 }
   0xe   : > { %v334_v2 = vld [vmem:[%s2442_s16] sm:$0xff]  ;;  %v335_v3 = vld [vmem:[%s2442_s16 + $0x8] sm:$0xff]  ;;  %v336_v5 = vld [vmem:[%s2442_s16 + $0x10] sm:$0xff]  ;;  %447 = vmatpush.bf16.msra.mxu0 %v438_v9  ;;  %2126 = vmatpush.bf16.msra.mxu1 %v438_v9 }
   0xf   : > { %v2446_v4 = vpack.c.bf16 %v335_v3, %v334_v2  ;;  %v337_v6 = vld [vmem:[%s2442_s16 + $0x18] sm:$0xff]  ;;  %v338_v10 = vld [vmem:[%s2442_s16 + $0x20] sm:$0xff]  ;;  %v339_v11 = vld [vmem:[%s2442_s16 + $0x28] sm:$0xff] }
  0x10   : > { %v2452_v7 = vpack.c.bf16 %v337_v6, %v336_v5  ;;  %v2462_v12 = vpack.c.bf16 %v339_v11, %v338_v10  ;;  %v340_v13 = vld [vmem:[%s2442_s16 + $0x30] sm:$0xff]  ;;  %v341_v14 = vld [vmem:[%s2442_s16 + $0x38] sm:$0xff]  ;;  %v342_v16 = vld [vmem:[%s2442_s16 + $0x40] sm:$0xff] }
  0x11   : > { %2058 = vmatmul.msk.bf16.vlgmr.msra.gmra.mxu2 %vm387_vm1, %v2446_v4  ;;  %2026 = vmatmul.msk.bf16.vlgmr.msra.gmra.mxu0 %vm387_vm1, %v2446_v4  ;;  %v2470_v15 = vpack.c.bf16 %v341_v14, %v340_v13  ;;  %v343_v17 = vld [vmem:[%s2442_s16 + $0x48] sm:$0xff]  ;;  %v344_v19 = vld [vmem:[%s2442_s16 + $0x50] sm:$0xff]  ;;  %v345_v20 = vld [vmem:[%s2442_s16 + $0x58] sm:$0xff] }
  0x12   : > { %v2478_v18 = vpack.c.bf16 %v343_v17, %v342_v16  ;;  %v2486_v21 = vpack.c.bf16 %v345_v20, %v344_v19  ;;  %v346_v22 = vld [vmem:[%s2442_s16 + $0x60] sm:$0xff]  ;;  %v347_v23 = vld [vmem:[%s2442_s16 + $0x68] sm:$0xff]  ;;  %v348_v25 = vld [vmem:[%s2442_s16 + $0x70] sm:$0xff] }
  0x13   : > { %v2494_v24 = vpack.c.bf16 %v347_v23, %v346_v22  ;;  %v349_v26 = vld [vmem:[%s2442_s16 + $0x78] sm:$0xff]  ;;  %v350_v28 = vld [vmem:[%s2442_s16 + $0x80] sm:$0xff]  ;;  %v351_v29 = vld [vmem:[%s2442_s16 + $0x88] sm:$0xff] }
  0x14   : > { %v2502_v27 = vpack.c.bf16 %v349_v26, %v348_v25  ;;  %v2510_v30 = vpack.c.bf16 %v351_v29, %v350_v28  ;;  %v352_v33 = vld [vmem:[%s2442_s16 + $0x90] sm:$0xff]  ;;  %v353_v34 = vld [vmem:[%s2442_s16 + $0x98] sm:$0xff]  ;;  %v354_v41 = vld [vmem:[%s2442_s16 + $0xa0] sm:$0xff] }
  0x15   : > { %v2529_v38 = vpack.c.bf16 %v353_v34, %v352_v33  ;;  %v355_v42 = vld [vmem:[%s2442_s16 + $0xa8] sm:$0xff]  ;;  %v356_v51 = vld [vmem:[%s2442_s16 + $0xb0] sm:$0xff]  ;;  %v357_v52 = vld [vmem:[%s2442_s16 + $0xb8] sm:$0xff] }
  0x16   : > { %v2547_v47 = vpack.c.bf16 %v355_v42, %v354_v41  ;;  %v2567_v57 = vpack.c.bf16 %v357_v52, %v356_v51  ;;  %v358_v61 = vld [vmem:[%s2442_s16 + $0xc0] sm:$0xff]  ;;  %v359_v62 = vld [vmem:[%s2442_s16 + $0xc8] sm:$0xff]  ;;  %v360_v9 = vld [vmem:[%s2442_s16 + $0xd0] sm:$0xff] }
  0x17   : > { %v2587_v3 = vpack.c.bf16 %v359_v62, %v358_v61  ;;  %v361_v10 = vld [vmem:[%s2442_s16 + $0xd8] sm:$0xff]  ;;  %v364_v16 = vld [vmem:[%s2442_s16 + $0xf0] sm:$0xff]  ;;  %v362_v23 = vld [vmem:[%s2442_s16 + $0xe0] sm:$0xff] }
  0x18   : > { %v2601_v14 = vpack.c.bf16 %v361_v10, %v360_v9  ;;  %v365_v17 = vld [vmem:[%s2442_s16 + $0xf8] sm:$0xff]  ;;  %v363_v25 = vld [vmem:[%s2442_s16 + $0xe8] sm:$0xff] }
  0x19   : > { %v2607_v19 = vpack.c.bf16 %v365_v17, %v364_v16  ;;  %v2617_v29 = vpack.c.bf16 %v363_v25, %v362_v23 }
  0x1b   : > { %2041 = vmatmul.msk.bf16.vlgmr.msra.gmra.mxu1 %vm387_vm1, %v2607_v19 }
  0x21   : > { %2059 = vmatmul.msk.bf16.gmra.mxu2 %vm387_vm1, %v2452_v7  ;;  %2027 = vmatmul.msk.bf16.gmra.mxu0 %vm387_vm1, %v2452_v7 }
  0x31   : > { %2060 = vmatmul.msk.bf16.gmra.mxu2 %vm387_vm1, %v2462_v12  ;;  %2028 = vmatmul.msk.bf16.gmra.mxu0 %vm387_vm1, %v2462_v12 }
  0x41   : > { %2061 = vmatmul.msk.bf16.gmra.mxu2 %vm387_vm1, %v2470_v15  ;;  %2029 = vmatmul.msk.bf16.gmra.mxu0 %vm387_vm1, %v2470_v15 }
  0x51   : > { %2062 = vmatmul.msk.bf16.gmra.mxu2 %vm387_vm1, %v2478_v18  ;;  %2030 = vmatmul.msk.bf16.gmra.mxu0 %vm387_vm1, %v2478_v18 }
  0x61   : > { %2063 = vmatmul.msk.bf16.gmra.mxu2 %vm387_vm1, %v2486_v21  ;;  %2031 = vmatmul.msk.bf16.gmra.mxu0 %vm387_vm1, %v2486_v21 }
  0x71   : > { %2064 = vmatmul.msk.bf16.gmra.mxu2 %vm387_vm1, %v2494_v24  ;;  %2032 = vmatmul.msk.bf16.gmra.mxu0 %vm387_vm1, %v2494_v24 }
  0x81   : > { %2065 = vmatmul.msk.bf16.gmra.mxu2 %vm387_vm1, %v2502_v27  ;;  %2033 = vmatmul.msk.bf16.gmra.mxu0 %vm387_vm1, %v2502_v27 }
  0x8e   : > { %v2539_v43 = vpop.f32.mrf.mxu0 }
  0x91   : > { %2066 = vmatmul.msk.bf16.gmra.mxu2 %vm387_vm1, %v2510_v30  ;;  %2034 = vmatmul.msk.bf16.gmra.mxu0 %vm387_vm1, %v2510_v30 }
  0x94   : > { %v643_v31 = vpop.f32.mrf.mxu2 }
  0x95   : > { %v2524_v36 = vadd.f32 %v2519_v32, %v643_v31 }
  0x96   : > { %v2555_v49 = vpop.f32.mrf.mxu0 }
  0x9c   : > { %v645_v35 = vpop.f32.mrf.mxu2 }
  0x9d   : > { %v2527_v37 = vadd.f32 %v2519_v32, %v645_v35 }
  0x9e   : > { %v2559_v53 = vpop.f32.mrf.mxu0 }
  0x9f   : > { %v739_v39 = vpack.c.bf16 %v2527_v37, %v2524_v36 }
  0xa1   : > { %2067 = vmatmul.msk.bf16.gmra.mxu2 %vm387_vm1, %v2529_v38  ;;  %2035 = vmatmul.msk.bf16.gmra.mxu0 %vm387_vm1, %v2529_v38 }
  0xa4   : > { %v648_v40 = vpop.f32.mrf.mxu2 }
  0xa5   : > { %v2542_v45 = vadd.f32 %v2519_v32, %v648_v40 }
  0xa6   : > { %v2575_v59 = vpop.f32.mrf.mxu0 }
  0xac   : > { %v650_v44 = vpop.f32.mrf.mxu2 }
  0xad   : > { %v2545_v46 = vadd.f32 %v2519_v32, %v650_v44 }
  0xae   : > { %v2579_v63 = vpop.f32.mrf.mxu0 }
  0xaf   : > { %v740_v48 = vpack.c.bf16 %v2545_v46, %v2542_v45 }
  0xb1   : > { %2068 = vmatmul.msk.bf16.gmra.mxu2 %vm387_vm1, %v2547_v47  ;;  %2036 = vmatmul.msk.bf16.gmra.mxu0 %vm387_vm1, %v2547_v47 }
  0xb4   : > { %v653_v50 = vpop.f32.mrf.mxu2 }
  0xb5   : > { %v2562_v55 = vadd.f32 %v2519_v32, %v653_v50  ;;  %v529_v50 = vld [vmem:[%s3567_s3] sm:$0xf] }
  0xb6   : > { %v2595_v6 = vpop.f32.mrf.mxu0 }
  0xbc   : > { %v655_v54 = vpop.f32.mrf.mxu2 }
  0xbd   : > { %v2565_v56 = vadd.f32 %v2519_v32, %v655_v54  ;;  %v535_v54 = vsel %vm436_vm0, %v529_v50, 0 }
  0xbe   : > { %v2599_v11 = vpop.f32.mrf.mxu0  ;;  %544 = vmatpush.bf16.msrb.mxu1 %v535_v54 }
  0xbf   : > { %v741_v58 = vpack.c.bf16 %v2565_v56, %v2562_v55 }
  0xc1   : > { %2069 = vmatmul.msk.bf16.gmra.mxu2 %vm387_vm1, %v2567_v57  ;;  %2037 = vmatmul.msk.bf16.gmra.mxu0 %vm387_vm1, %v2567_v57 }
  0xc2   : > { %2042 = vmatmul.msk.bf16.vlgmr.msrb.gmra.mxu1 %vm387_vm1, %v2446_v4 }
  0xc4   : > { %v658_v60 = vpop.f32.mrf.mxu2 }
  0xc5   : > { %v2582_v1 = vadd.f32 %v2519_v32, %v658_v60 }
  0xc6   : > { %v2613_v20 = vpop.f32.mrf.mxu0 }
  0xcc   : > { %v660_v0 = vpop.f32.mrf.mxu2 }
  0xcd   : > { %v2585_v2 = vadd.f32 %v2519_v32, %v660_v0 }
  0xce   : > { %v469_v26 = vpop.f32.mrf.mxu0 }
  0xcf   : > { %v742_v5 = vpack.c.bf16 %v2585_v2, %v2582_v1 }
  0xd1   : > { %2070 = vmatmul.msk.bf16.gmra.mxu2 %vm387_vm1, %v2587_v3  ;;  %2038 = vmatmul.msk.bf16.gmra.mxu0 %vm387_vm1, %v2587_v3 }
  0xd2   : > { %2043 = vmatmul.msk.bf16.gmra.mxu1 %vm387_vm1, %v2452_v7 }
  0xd4   : > { %v663_v8 = vpop.f32.mrf.mxu2 }
  0xd6   : > { %v471_v31 = vpop.f32.mrf.mxu0 }
  0xdc   : > { %v665_v13 = vpop.f32.mrf.mxu2 }
  0xdd   : > { %v666_v4 = vadd.f32 %v2519_v32, %v665_v13 }
  0xde   : > { %v474_v34 = vpop.f32.mrf.mxu0 }
  0xe1   : > { %2071 = vmatmul.msk.bf16.gmra.mxu2 %vm387_vm1, %v2601_v14  ;;  %2039 = vmatmul.msk.bf16.gmra.mxu0 %vm387_vm1, %v2601_v14 }
  0xe2   : > { %2044 = vmatmul.msk.bf16.gmra.mxu1 %vm387_vm1, %v2462_v12  ;;  %v811_v12 = vsel %vm755_vm2, %v741_v58, 0 }
  0xe4   : > { %v668_v22 = vpop.f32.mrf.mxu2 }
  0xe6   : > { %v476_v40 = vpop.f32.mrf.mxu0 }
  0xec   : > { %v670_v28 = vpop.f32.mrf.mxu2 }
  0xed   : > { %v671_v17 = vadd.f32 %v2519_v32, %v670_v28  ;;  %v2654_v28 = vld [vmem:[%s3566_s2] ss:$0 sm:$0xff] }
  0xee   : > { %v479_v42 = vpop.f32.mrf.mxu0  ;;  %v460_v1 = vadd.f32 %v2654_v28, %v2579_v63  ;;  %v462_v2 = vadd.f32 %v2654_v28, %v2595_v6  ;;  %v450_v63 = vadd.f32 %v2654_v28, %v2539_v43  ;;  %v452_v55 = vadd.f32 %v2654_v28, %v2555_v49 }
  0xef   : > { %v805_v49 = vsel %vm755_vm2, %v739_v39, 0 }
  0xf0   : > { %v1542_v56 = vpack.c.bf16 %v452_v55, %v450_v63 }
  0xf1   : > { %2072 = vmatmul.msk.bf16.gmra.mxu2 %vm387_vm1, %v2617_v29  ;;  %2040 = vmatmul.msk.bf16.gmra.mxu0 %vm387_vm1, %v2617_v29 }
  0xf2   : > { %2045 = vmatmul.msk.bf16.gmra.mxu1 %vm387_vm1, %v2470_v15 }
  0xf4   : > { %v673_v33 = vpop.f32.mrf.mxu2 }
  0xf5   : > { %v674_v9 = vadd.f32 %v2519_v32, %v673_v33 }
  0xf6   : > { %v481_v0 = vpop.f32.mrf.mxu0 }
  0xf7   : > { %v482_v7 = vadd.f32 %v2654_v28, %v481_v0  ;;  %v467_v0 = vadd.f32 %v2654_v28, %v2613_v20  ;;  %v457_v20 = vadd.f32 %v2654_v28, %v2575_v59 }
  0xfc   : > { %v675_v35 = vpop.f32.mrf.mxu2 }
  0xfd   : > { %v676_v61 = vadd.f32 %v2519_v32, %v675_v35  ;;  %v669_v35 = vadd.f32 %v2519_v32, %v668_v22 }
  0xfe   : > { %v484_v25 = vpop.f32.mrf.mxu0 }
  0xff   : > { %v745_v16 = vpack.c.bf16 %v676_v61, %v674_v9  ;;  %v485_v22 = vadd.f32 %v2654_v28, %v484_v25  ;;  %v480_v61 = vadd.f32 %v2654_v28, %v479_v42  ;;  %v470_v25 = vadd.f32 %v2654_v28, %v469_v26 }
 0x100   : > { %v814_v42 = vsel %vm755_vm2, %v742_v5, 0  ;;  %v1544_v5 = vpack.c.bf16 %v462_v2, %v460_v1 }
 0x101   : > { %2073 = vmatmul.msk.bf16.gmra.mxu2 %vm387_vm1, %v2607_v19  ;;  %v823_v23 = vsel %vm755_vm2, %v745_v16, 0  ;;  %v1548_v9 = vpack.c.bf16 %v482_v7, %v480_v61  ;;  %v475_v16 = vadd.f32 %v2654_v28, %v474_v34 }
 0x102   : > { %2046 = vmatmul.msk.bf16.gmra.mxu1 %vm387_vm1, %v2478_v18 }
 0x104   : > { %v678_v41 = vpop.f32.mrf.mxu2 }
 0x105   : > { %v679_v51 = vadd.f32 %v2519_v32, %v678_v41 }
 0x106   : > { %v486_v33 = vpop.f32.mrf.mxu0 }
 0x10c   : > { %v680_v44 = vpop.f32.mrf.mxu2 }
 0x10d   : > { %v681_v52 = vadd.f32 %v2519_v32, %v680_v44  ;;  %v744_v44 = vpack.c.bf16 %v671_v17, %v669_v35  ;;  %v472_v35 = vadd.f32 %v2654_v28, %v471_v31 }
 0x10f   : > { %v746_v60 = vpack.c.bf16 %v681_v52, %v679_v51  ;;  %v820_v50 = vsel %vm755_vm2, %v744_v44, 0  ;;  %v664_v51 = vadd.f32 %v2519_v32, %v663_v8  ;;  %v487_v52 = vadd.f32 %v2654_v28, %v486_v33 }
 0x110   : > { %v477_v8 = vadd.f32 %v2654_v28, %v476_v40  ;;  %v1546_v34 = vpack.c.bf16 %v472_v35, %v470_v25  ;;  %v465_v40 = vadd.f32 %v2654_v28, %v2599_v11  ;;  %v455_v11 = vadd.f32 %v2654_v28, %v2559_v53 }
 0x111   : > { %v826_v62 = vsel %vm755_vm2, %v746_v60, 0  ;;  %v743_v13 = vpack.c.bf16 %v666_v4, %v664_v51  ;;  %v1549_v60 = vpack.c.bf16 %v487_v52, %v485_v22  ;;  %v2698_v4 = vpop.f32.mrf.mxu0  ;;  %v808_v53 = vsel %vm755_vm2, %v740_v48, 0  ;;  %v524_v52 = vpop.f32.mrf.mxu1 }
 0x112   : > { %852 = vmatpush.bf16.xpose.msra.mxu3 %v826_v62  ;;  %v1545_v31 = vpack.c.bf16 %v467_v0, %v465_v40  ;;  %v1543_v6 = vpack.c.bf16 %v457_v20, %v455_v11  ;;  %2047 = vmatmul.msk.bf16.gmra.mxu1 %vm387_vm1, %v2486_v21  ;;  %v2750_v0 = vld [vmem:[%s3568_s4] ss:$0 sm:$0xff] }
 0x113   : > { %1558 = vmatpush.bf16.msra.mxu1 %v1549_v60  ;;  %v817_v62 = vsel %vm755_vm2, %v743_v13, 0 }
 0x114   : > { %v2640_v10 = vpop.f32.mrf.mxu2 }
 0x117   : > { %1559 = vmatpush.bf16.msra.mxu1 %v1548_v9 }
 0x119   : > { %v2710_v43 = vpop.f32.mrf.mxu0  ;;  %v526_v21 = vpop.f32.mrf.mxu1 }
 0x11a   : > { %853 = vmatpush.bf16.xpose.msra.mxu3 %v823_v23  ;;  %v1547_v23 = vpack.c.bf16 %v477_v8, %v475_v16  ;;  %v525_v16 = vadd.f32 %v2654_v28, %v524_v52  ;;  %v527_v25 = vadd.f32 %v2654_v28, %v526_v21 }
 0x11c   : > { %v2645_v41 = vpop.f32.mrf.mxu2  ;;  %1560 = vmatpush.bf16.msra.mxu1 %v1547_v23 }
 0x120   : > { %1561 = vmatpush.bf16.msra.mxu1 %v1546_v34 }
 0x121   : > { %v2718_v45 = vpop.f32.mrf.mxu0 }
 0x122   : > { %854 = vmatpush.bf16.xpose.msra.mxu3 %v820_v50  ;;  %2048 = vmatmul.msk.bf16.gmra.mxu1 %vm387_vm1, %v2494_v24 }
 0x124   : > { %v2659_v54 = vpop.f32.mrf.mxu2  ;;  %1562 = vmatpush.bf16.msra.mxu1 %v1545_v31 }
 0x128   : > { %1563 = vmatpush.bf16.msra.mxu1 %v1544_v5 }
 0x129   : > { %v2722_v46 = vpop.f32.mrf.mxu0 }
 0x12a   : > { %855 = vmatpush.bf16.xpose.msra.mxu3 %v817_v62 }
 0x12c   : > { %v2666_v17 = vpop.f32.mrf.mxu2  ;;  %1564 = vmatpush.bf16.msra.mxu1 %v1543_v6 }
 0x130   : > { %1565 = vmatpush.bf16.msra.mxu1 %v1542_v56 }
 0x131   : > { %v2724_v50 = vpop.f32.mrf.mxu0 }
 0x132   : > { %856 = vmatpush.bf16.xpose.msra.mxu3 %v814_v42  ;;  %2049 = vmatmul.msk.bf16.gmra.mxu1 %vm387_vm1, %v2502_v27  ;;  %v1557_v27 = vpack.c.bf16 %v527_v25, %v525_v16 }
 0x134   : > { %v2680_v26 = vpop.f32.mrf.mxu2  ;;  %1647 = vmatpush.bf16.msrb.mxu2 %v1557_v27 }
 0x139   : > { %v2728_v37 = vpop.f32.mrf.mxu0 }
 0x13a   : > { %857 = vmatpush.bf16.xpose.msra.mxu3 %v811_v12 }
 0x13c   : > { %v2694_v44 = vpop.f32.mrf.mxu2 }
 0x13f   : > { %v546_v24 = vpop.f32.mrf.mxu1 }
 0x140   : > { %v547_v2 = vadd.f32 %v2750_v0, %v546_v24 }
 0x141   : > { %v2730_v33 = vpop.f32.mrf.mxu0 }
 0x142   : > { %858 = vmatpush.bf16.xpose.msra.mxu3 %v808_v53  ;;  %2050 = vmatmul.msk.bf16.gmra.mxu1 %vm387_vm1, %v2510_v30  ;;  %v505_v27 = vadd.f32 %v2654_v28, %v2730_v33 }
 0x144   : > { %v2708_v58 = vpop.f32.mrf.mxu2 }
 0x147   : > { %v548_v31 = vpop.f32.mrf.mxu1 }
 0x148   : > { %v549_v12 = vadd.f32 %v2750_v0, %v548_v31 }
 0x149   : > { %v2734_v18 = vpop.f32.mrf.mxu0 }
 0x14a   : > { %859 = vmatpush.bf16.xpose.msra.mxu3 %v805_v49  ;;  %v2756_v11 = vpack.c.bf16 %v549_v12, %v547_v2 }
 0x14c   : > { %v2716_v59 = vpop.f32.mrf.mxu2 }
 0x14f   : > { %v551_v6 = vpop.f32.mrf.mxu1 }
 0x151   : > { %v509_v13 = vpop.f32.mrf.mxu0  ;;  %2074 = vmatmul.msk.bf16.vlgmr.msra.gmra.mxu3 %vm755_vm2, %v2756_v11 }
 0x152   : > { %2051 = vmatmul.msk.bf16.gmra.mxu1 %vm387_vm1, %v2529_v38 }
 0x154   : > { %v703_v15 = vpop.f32.mrf.mxu2 }
 0x155   : > { %v704_v49 = vadd.f32 %v2519_v32, %v703_v15  ;;  %v699_v15 = vadd.f32 %v2519_v32, %v2708_v58 }
 0x159   : > { %v511_v61 = vpop.f32.mrf.mxu0 }
 0x15a   : > { %v512_v25 = vadd.f32 %v2654_v28, %v511_v61 }
 0x15c   : > { %v705_v48 = vpop.f32.mrf.mxu2 }
 0x15d   : > { %v706_v53 = vadd.f32 %v2519_v32, %v705_v48  ;;  %v701_v48 = vadd.f32 %v2519_v32, %v2716_v59  ;;  %v510_v59 = vadd.f32 %v2654_v28, %v509_v13  ;;  %v507_v13 = vadd.f32 %v2654_v28, %v2734_v18 }
 0x15e   : > { %v689_v18 = vadd.f32 %v2519_v32, %v2659_v54  ;;  %v686_v54 = vadd.f32 %v2519_v32, %v2645_v41 }
 0x15f   : > { %v750_v24 = vpack.c.bf16 %v701_v48, %v699_v15 }
 0x161   : > { %v514_v8 = vpop.f32.mrf.mxu0  ;;  %v838_v58 = vsel %vm755_vm2, %v750_v24, 0 }
 0x162   : > { %2052 = vmatmul.msk.bf16.gmra.mxu1 %vm387_vm1, %v2547_v47  ;;  %v502_v47 = vadd.f32 %v2654_v28, %v2728_v37  ;;  %v490_v37 = vadd.f32 %v2654_v28, %v2698_v4 }
 0x164   : > { %v708_v36 = vpop.f32.mrf.mxu2 }
 0x165   : > { %v709_v20 = vadd.f32 %v2519_v32, %v708_v36  ;;  %v552_v36 = vadd.f32 %v2750_v0, %v551_v6 }
 0x169   : > { %v516_v1 = vpop.f32.mrf.mxu0 }
 0x16a   : > { %v517_v16 = vadd.f32 %v2654_v28, %v516_v1  ;;  %v495_v1 = vadd.f32 %v2654_v28, %v2718_v45 }
 0x16c   : > { %v710_v39 = vpop.f32.mrf.mxu2 }
 0x16d   : > { %v711_v5 = vadd.f32 %v2519_v32, %v710_v39  ;;  %v751_v39 = vpack.c.bf16 %v706_v53, %v704_v49 }
 0x16f   : > { %v752_v63 = vpack.c.bf16 %v711_v5, %v709_v20  ;;  %v684_v20 = vadd.f32 %v2519_v32, %v2640_v10 }
 0x171   : > { %v519_v55 = vpop.f32.mrf.mxu0  ;;  %v844_v56 = vsel %vm755_vm2, %v752_v63, 0 }
 0x172   : > { %2053 = vmatmul.msk.bf16.gmra.mxu1 %vm387_vm1, %v2567_v57 }
 0x174   : > { %v713_v51 = vpop.f32.mrf.mxu2 }
 0x175   : > { %v714_v34 = vadd.f32 %v2519_v32, %v713_v51  ;;  %v553_v51 = vpop.f32.mrf.mxu1 }
 0x176   : > { %v554_v52 = vadd.f32 %v2750_v0, %v553_v51 }
 0x178   : > { %v2773_v38 = vpack.c.bf16 %v554_v52, %v552_v36 }
 0x17a   : > { %2075 = vmatmul.msk.bf16.gmra.mxu3 %vm755_vm2, %v2773_v38 }
 0x17c   : > { %v715_v22 = vpop.f32.mrf.mxu2 }
 0x17d   : > { %v716_v35 = vadd.f32 %v2519_v32, %v715_v22  ;;  %v521_v22 = vpop.f32.mrf.mxu0 }
 0x17e   : > { %v522_v21 = vadd.f32 %v2654_v28, %v521_v22 }
 0x17f   : > { %v753_v40 = vpack.c.bf16 %v716_v35, %v714_v34  ;;  %v696_v35 = vadd.f32 %v2519_v32, %v2694_v44  ;;  %v1553_v34 = vpack.c.bf16 %v507_v13, %v505_v27  ;;  %v556_v44 = vpop.f32.mrf.mxu1 }
 0x180   : > { %v557_v5 = vadd.f32 %v2750_v0, %v556_v44 }
 0x181   : > { %v847_v30 = vsel %vm755_vm2, %v753_v40, 0  ;;  %v500_v40 = vadd.f32 %v2654_v28, %v2724_v50  ;;  %v497_v50 = vadd.f32 %v2654_v28, %v2722_v46 }
 0x182   : > { %2054 = vmatmul.msk.bf16.gmra.mxu1 %vm387_vm1, %v2587_v3 }
 0x183   : > { %v1552_v33 = vpack.c.bf16 %v502_v47, %v500_v40  ;;  %v1551_v12 = vpack.c.bf16 %v497_v50, %v495_v1 }
 0x184   : > { %v718_v60 = vpop.f32.mrf.mxu2 }
 0x185   : > { %v719_v62 = vadd.f32 %v2519_v32, %v718_v60  ;;  %v520_v60 = vadd.f32 %v2654_v28, %v519_v55 }
 0x18c   : > { %v720_v7 = vpop.f32.mrf.mxu2 }
 0x18d   : > { %v721_v9 = vadd.f32 %v2519_v32, %v720_v7  ;;  %v841_v7 = vsel %vm755_vm2, %v751_v39, 0 }
 0x18f   : > { %v754_v23 = vpack.c.bf16 %v721_v9, %v719_v62  ;;  %v1556_v62 = vpack.c.bf16 %v522_v21, %v520_v60  ;;  %v515_v9 = vadd.f32 %v2654_v28, %v514_v8  ;;  %v694_v8 = vadd.f32 %v2519_v32, %v2680_v26 }
 0x190   : > { %v691_v26 = vadd.f32 %v2519_v32, %v2666_v17  ;;  %v492_v17 = vadd.f32 %v2654_v28, %v2710_v43  ;;  %v747_v43 = vpack.c.bf16 %v686_v54, %v684_v20 }
 0x191   : > { %v850_v42 = vsel %vm755_vm2, %v754_v23, 0  ;;  %1648 = vmatpush.bf16.msrb.mxu2 %v1556_v62  ;;  %v1555_v23 = vpack.c.bf16 %v517_v16, %v515_v9  ;;  %v749_v61 = vpack.c.bf16 %v696_v35, %v694_v8 }
 0x192   : > { %941 = vmatpush.bf16.xpose.msrb.mxu0 %v850_v42  ;;  %v1554_v42 = vpack.c.bf16 %v512_v25, %v510_v59  ;;  %v748_v2 = vpack.c.bf16 %v691_v26, %v689_v18  ;;  %v1550_v46 = vpack.c.bf16 %v492_v17, %v490_v37  ;;  %v829_v41 = vsel %vm755_vm2, %v747_v43, 0  ;;  %2055 = vmatmul.msk.bf16.gmra.mxu1 %vm387_vm1, %v2601_v14 }
 0x193   : > { %v835_v31 = vsel %vm755_vm2, %v749_v61, 0 }
 0x194   : > { %v832_v45 = vsel %vm755_vm2, %v748_v2, 0 }
 0x195   : > { %1649 = vmatpush.bf16.msrb.mxu2 %v1555_v23 }
 0x199   : > { %1650 = vmatpush.bf16.msrb.mxu2 %v1554_v42 }
 0x19a   : > { %942 = vmatpush.bf16.xpose.msrb.mxu0 %v847_v30  ;;  %v558_v30 = vpop.f32.mrf.mxu1 }
 0x19b   : > { %v559_v4 = vadd.f32 %v2750_v0, %v558_v30 }
 0x19d   : > { %1651 = vmatpush.bf16.msrb.mxu2 %v1553_v34  ;;  %v725_v28 = vpack.c.bf16 %v559_v4, %v557_v5 }
 0x19f   : > { %2076 = vmatmul.msk.bf16.gmra.mxu3 %vm755_vm2, %v725_v28 }
 0x1a1   : > { %1652 = vmatpush.bf16.msrb.mxu2 %v1552_v33 }
 0x1a2   : > { %943 = vmatpush.bf16.xpose.msrb.mxu0 %v844_v56  ;;  %v561_v63 = vpop.f32.mrf.mxu1  ;;  %2056 = vmatmul.msk.bf16.gmra.mxu1 %vm387_vm1, %v2617_v29 }
 0x1a3   : > { %v562_v6 = vadd.f32 %v2750_v0, %v561_v63 }
 0x1a5   : > { %1653 = vmatpush.bf16.msrb.mxu2 %v1551_v12 }
 0x1a9   : > { %1654 = vmatpush.bf16.msrb.mxu2 %v1550_v46 }
 0x1aa   : > { %944 = vmatpush.bf16.xpose.msrb.mxu0 %v841_v7  ;;  %v563_v57 = vpop.f32.mrf.mxu1 }
 0x1ab   : > { %v564_v32 = vadd.f32 %v2750_v0, %v563_v57 }
 0x1ad   : > { %v726_v10 = vpack.c.bf16 %v564_v32, %v562_v6 }
 0x1af   : > { %2077 = vmatmul.msk.bf16.gmra.mxu3 %vm755_vm2, %v726_v10 }
 0x1b2   : > { %945 = vmatpush.bf16.xpose.msrb.mxu0 %v838_v58  ;;  %v566_v55 = vpop.f32.mrf.mxu1  ;;  %2057 = vmatmul.msk.bf16.gmra.mxu1 %vm387_vm1, %v2607_v19 }
 0x1b3   : > { %v567_v53 = vadd.f32 %v2750_v0, %v566_v55 }
 0x1ba   : > { %946 = vmatpush.bf16.xpose.msrb.mxu0 %v835_v31  ;;  %v568_v56 = vpop.f32.mrf.mxu1 }
 0x1c2   : > { %947 = vmatpush.bf16.xpose.msrb.mxu0 %v832_v45  ;;  %v571_v3 = vpop.f32.mrf.mxu1 }
 0x1c3   : > { %v572_v14 = vadd.f32 %v2750_v0, %v571_v3 }
 0x1ca   : > { %948 = vmatpush.bf16.xpose.msrb.mxu0 %v829_v41  ;;  %v573_v39 = vpop.f32.mrf.mxu1 }
 0x1cb   : > { %v574_v51 = vadd.f32 %v2750_v0, %v573_v39 }
 0x1cd   : > { %v728_v22 = vpack.c.bf16 %v574_v51, %v572_v14 }
 0x1d1   : > { %2090 = vmatmul.msk.bf16.vlgmr.msrb.gmra.mxu0 %vm755_vm2, %v2756_v11  ;;  %v569_v11 = vadd.f32 %v2750_v0, %v568_v56 }
 0x1d2   : > { %v576_v36 = vpop.f32.mrf.mxu1 }
 0x1d3   : > { %v727_v49 = vpack.c.bf16 %v569_v11, %v567_v53  ;;  %v577_v52 = vadd.f32 %v2750_v0, %v576_v36 }
 0x1d4   : > { %v2851_v21 = vpop.f32.mrf.mxu3 }
 0x1d5   : > { %2078 = vmatmul.msk.bf16.gmra.mxu3 %vm755_vm2, %v727_v49 }
 0x1da   : > { %v578_v29 = vpop.f32.mrf.mxu1 }
 0x1db   : > { %v579_v60 = vadd.f32 %v2750_v0, %v578_v29 }
 0x1dc   : > { %v2853_v48 = vpop.f32.mrf.mxu3 }
 0x1dd   : > { %v729_v19 = vpack.c.bf16 %v579_v60, %v577_v52 }
 0x1e1   : > { %2091 = vmatmul.msk.bf16.gmra.mxu0 %vm755_vm2, %v2773_v38 }
 0x1e2   : > { %v581_v38 = vpop.f32.mrf.mxu1 }
 0x1e3   : > { %v582_v9 = vadd.f32 %v2750_v0, %v581_v38 }
 0x1e5   : > { %2079 = vmatmul.msk.bf16.gmra.mxu3 %vm755_vm2, %v728_v22 }
 0x1ea   : > { %v583_v24 = vpop.f32.mrf.mxu1 }
 0x1eb   : > { %v584_v59 = vadd.f32 %v2750_v0, %v583_v24 }
 0x1ed   : > { %v730_v25 = vpack.c.bf16 %v584_v59, %v582_v9 }
 0x1f1   : > { %2092 = vmatmul.msk.bf16.gmra.mxu0 %vm755_vm2, %v725_v28 }
 0x1f2   : > { %v586_v42 = vpop.f32.mrf.mxu1 }
 0x1f3   : > { %v587_v13 = vadd.f32 %v2750_v0, %v586_v42 }
 0x1f5   : > { %2080 = vmatmul.msk.bf16.gmra.mxu3 %vm755_vm2, %v729_v19 }
 0x1fa   : > { %v588_v34 = vpop.f32.mrf.mxu1 }
 0x1fb   : > { %v589_v40 = vadd.f32 %v2750_v0, %v588_v34 }
 0x1fd   : > { %v2859_v15 = vpop.f32.mrf.mxu3  ;;  %v731_v47 = vpack.c.bf16 %v589_v40, %v587_v13 }
 0x201   : > { %2093 = vmatmul.msk.bf16.gmra.mxu0 %vm755_vm2, %v726_v10 }
 0x202   : > { %v591_v33 = vpop.f32.mrf.mxu1 }
 0x203   : > { %v592_v1 = vadd.f32 %v2750_v0, %v591_v33 }
 0x205   : > { %v2867_v35 = vpop.f32.mrf.mxu3  ;;  %2081 = vmatmul.msk.bf16.gmra.mxu3 %vm755_vm2, %v730_v25 }
 0x20a   : > { %v593_v2 = vpop.f32.mrf.mxu1 }
 0x20b   : > { %v594_v12 = vadd.f32 %v2750_v0, %v593_v2 }
 0x20d   : > { %v732_v5 = vpack.c.bf16 %v594_v12, %v592_v1 }
 0x211   : > { %2094 = vmatmul.msk.bf16.gmra.mxu0 %vm755_vm2, %v727_v49 }
 0x212   : > { %v596_v41 = vpop.f32.mrf.mxu1 }
 0x213   : > { %v597_v6 = vadd.f32 %v2750_v0, %v596_v41 }
 0x215   : > { %2082 = vmatmul.msk.bf16.gmra.mxu3 %vm755_vm2, %v731_v47 }
 0x21a   : > { %v598_v63 = vpop.f32.mrf.mxu1 }
 0x21b   : > { %v599_v57 = vadd.f32 %v2750_v0, %v598_v63 }
 0x21d   : > { %v733_v32 = vpack.c.bf16 %v599_v57, %v597_v6 }
 0x221   : > { %2095 = vmatmul.msk.bf16.gmra.mxu0 %vm755_vm2, %v728_v22 }
 0x222   : > { %v2875_v27 = vpop.f32.mrf.mxu3  ;;  %v601_v10 = vpop.f32.mrf.mxu1 }
 0x223   : > { %v602_v49 = vadd.f32 %v2750_v0, %v601_v10 }
 0x225   : > { %2083 = vmatmul.msk.bf16.gmra.mxu3 %vm755_vm2, %v732_v5 }
 0x22a   : > { %v2885_v26 = vpop.f32.mrf.mxu3  ;;  %v603_v53 = vpop.f32.mrf.mxu1 }
 0x22b   : > { %v604_v3 = vadd.f32 %v2750_v0, %v603_v53 }
 0x22d   : > { %v734_v51 = vpack.c.bf16 %v604_v3, %v602_v49 }
 0x231   : > { %2096 = vmatmul.msk.bf16.gmra.mxu0 %vm755_vm2, %v729_v19 }
 0x232   : > { %v2897_v17 = vpop.f32.mrf.mxu3 }
 0x235   : > { %2084 = vmatmul.msk.bf16.gmra.mxu3 %vm755_vm2, %v733_v32 }
 0x23a   : > { %v2905_v30 = vpop.f32.mrf.mxu3 }
 0x241   : > { %2097 = vmatmul.msk.bf16.gmra.mxu0 %vm755_vm2, %v730_v25 }
 0x245   : > { %2085 = vmatmul.msk.bf16.gmra.mxu3 %vm755_vm2, %v734_v51 }
 0x24e   : > { %v2855_v7 = vpop.f32.mrf.mxu0 }
 0x24f   : > { %v1030_v62 = vmax.f32 %v2851_v21, %v2855_v7 }
 0x251   : > { %1031 = vmax.xlane.f32.xlu0 %v1030_v62  ;;  %2098 = vmatmul.msk.bf16.gmra.mxu0 %vm755_vm2, %v731_v47 }
 0x256   : > { %v2862_v16 = vpop.f32.mrf.mxu0 }
 0x257   : > { %v1033_v23 = vmax.f32 %v2853_v48, %v2862_v16 }
 0x258   : > { %v2911_v20 = vpop.f32.mrf.mxu3 }
 0x259   : > { %1034 = vmax.xlane.f32.xlu0 %v1033_v23 }
 0x25e   : > { %v2871_v58 = vpop.f32.mrf.mxu0 }
 0x25f   : > { %v1036_v8 = vmax.f32 %v2859_v15, %v2871_v58 }
 0x260   : > { %v2921_v55 = vpop.f32.mrf.mxu3 }
 0x261   : > { %1037 = vmax.xlane.f32.xlu1 %v1036_v8  ;;  %2099 = vmatmul.msk.bf16.gmra.mxu0 %vm755_vm2, %v732_v5 }
 0x266   : > { %v2878_v61 = vpop.f32.mrf.mxu0 }
 0x267   : > { %v1039_v44 = vmax.f32 %v2867_v35, %v2878_v61 }
 0x268   : > { %v2933_v19 = vpop.f32.mrf.mxu3 }
 0x269   : > { %1040 = vmax.xlane.f32.xlu1 %v1039_v44 }
 0x26e   : > { %v2887_v31 = vpop.f32.mrf.mxu0 }
 0x26f   : > { %v1042_v18 = vmax.f32 %v2875_v27, %v2887_v31 }
 0x270   : > { %v2947_v8 = vpop.f32.mrf.mxu3 }
 0x271   : > { %1043 = vmax.xlane.f32.xlu2 %v1042_v18  ;;  %2100 = vmatmul.msk.bf16.gmra.mxu0 %vm755_vm2, %v733_v32 }
 0x276   : > { %v2892_v50 = vpop.f32.mrf.mxu0 }
 0x277   : > { %v1045_v37 = vmax.f32 %v2885_v26, %v2892_v50 }
 0x278   : > { %v2967_v5 = vpop.f32.mrf.mxu3 }
 0x279   : > { %1046 = vmax.xlane.f32.xlu2 %v1045_v37 }
 0x27e   : > { %v2901_v54 = vpop.f32.mrf.mxu0 }
 0x27f   : > { %v1048_v45 = vmax.f32 %v2897_v17, %v2901_v54 }
 0x281   : > { %1049 = vmax.xlane.f32.xlu0 %v1048_v45  ;;  %2101 = vmatmul.msk.bf16.gmra.mxu0 %vm755_vm2, %v734_v51  ;;  %v606_v45 = vpop.f32.mrf.mxu1 }
 0x282   : > { %v607_v32 = vadd.f32 %v2750_v0, %v606_v45 }
 0x286   : > { %v2907_v46 = vpop.f32.mrf.mxu0 }
 0x287   : > { %v1051_v4 = vmax.f32 %v2905_v30, %v2907_v46 }
 0x289   : > { %1052 = vmax.xlane.f32.xlu1 %v1051_v4 }
 0x28e   : > { %v2913_v28 = vpop.f32.mrf.mxu0 }
 0x28f   : > { %v1054_v43 = vmax.f32 %v2911_v20, %v2913_v28 }
 0x291   : > { %1055 = vmax.xlane.f32.xlu1 %v1054_v43 }
 0x296   : > { %v2923_v11 = vpop.f32.mrf.mxu0 }
 0x297   : > { %v1057_v40 = vmax.f32 %v2921_v55, %v2923_v11 }
 0x29e   : > { %v2935_v38 = vpop.f32.mrf.mxu0 }
 0x29f   : > { %v1060_v12 = vmax.f32 %v2933_v19, %v2935_v38 }
 0x2a6   : > { %v2951_v34 = vpop.f32.mrf.mxu0 }
 0x2a7   : > { %v1063_v53 = vmax.f32 %v2947_v8, %v2951_v34 }
 0x2c4   : > { %v1032_v56 = vpop.xlane.xlu0 %1031 }
 0x2c5   : > { %v1126_v39 = vsub.f32 %v2851_v21, %v1032_v56  ;;  %v1127_v14 = vsub.f32 %v2855_v7, %v1032_v56  ;;  %v608_v56 = vpop.f32.mrf.mxu1 }
 0x2c7   : > { %v1190_v22 = vmul.f32 1.442695, %v1126_v39  ;;  %v1192_v36 = vmul.f32 1.442695, %v1127_v14 }
 0x2c9   : > { %2140 = vpow2.f32 %v1190_v22 }
 0x2ca   : > { %2142 = vpow2.f32 %v1192_v36 }
 0x2cc   : > { %v1035_v29 = vpop.xlane.xlu0 %1034 }
 0x2cd   : > { %v1128_v52 = vsub.f32 %v2853_v48, %v1035_v29  ;;  %v1129_v60 = vsub.f32 %v2862_v16, %v1035_v29 }
 0x2cf   : > { %v2937_v21 = vpop.eup %2140  ;;  %v1194_v7 = vmul.f32 1.442695, %v1128_v52  ;;  %v1196_v62 = vmul.f32 1.442695, %v1129_v60 }
 0x2d0   : > { %v2939_v9 = vpop.eup %2142 }
 0x2d1   : > { %2144 = vpow2.f32 %v1194_v7  ;;  %v1318_v24 = vadd.f32 %v2939_v9, %v2937_v21 }
 0x2d2   : > { %2146 = vpow2.f32 %v1196_v62 }
 0x2d3   : > { %1319 = vadd.xlane.f32.xlu2 %v1318_v24 }
 0x2d4   : > { %v1038_v23 = vpop.xlane.xlu1 %1037 }
 0x2d5   : > { %v1130_v48 = vsub.f32 %v2859_v15, %v1038_v23  ;;  %v1131_v16 = vsub.f32 %v2871_v58, %v1038_v23 }
 0x2d7   : > { %v2945_v59 = vpop.eup %2144  ;;  %v1198_v25 = vmul.f32 1.442695, %v1130_v48  ;;  %v1200_v42 = vmul.f32 1.442695, %v1131_v16 }
 0x2d8   : > { %v2949_v13 = vpop.eup %2146 }
 0x2d9   : > { %2148 = vpow2.f32 %v1198_v25  ;;  %v1321_v44 = vadd.f32 %v2949_v13, %v2945_v59 }
 0x2da   : > { %2150 = vpow2.f32 %v1200_v42 }
 0x2db   : > { %1322 = vadd.xlane.f32.xlu0 %v1321_v44  ;;  %1058 = vmax.xlane.f32.xlu2 %v1057_v40 }
 0x2dc   : > { %v1041_v15 = vpop.xlane.xlu1 %1040 }
 0x2dd   : > { %v1132_v58 = vsub.f32 %v2867_v35, %v1041_v15  ;;  %v1133_v47 = vsub.f32 %v2878_v61, %v1041_v15  ;;  %v2969_v35 = vpop.f32.mrf.mxu0 }
 0x2de   : > { %v1066_v7 = vmax.f32 %v2967_v5, %v2969_v35 }
 0x2df   : > { %v2959_v33 = vpop.eup %2148  ;;  %v1202_v18 = vmul.f32 1.442695, %v1132_v58  ;;  %v1204_v1 = vmul.f32 1.442695, %v1133_v47 }
 0x2e0   : > { %v2961_v2 = vpop.eup %2150 }
 0x2e1   : > { %2152 = vpow2.f32 %v1202_v18  ;;  %v1324_v37 = vadd.f32 %v2961_v2, %v2959_v33 }
 0x2e2   : > { %2154 = vpow2.f32 %v1204_v1 }
 0x2e3   : > { %1325 = vadd.xlane.f32.xlu0 %v1324_v37  ;;  %1061 = vmax.xlane.f32.xlu2 %v1060_v12 }
 0x2e4   : > { %v1044_v61 = vpop.xlane.xlu2 %1043 }
 0x2e5   : > { %v1134_v4 = vsub.f32 %v2875_v27, %v1044_v61  ;;  %v1135_v43 = vsub.f32 %v2887_v31, %v1044_v61  ;;  %v609_v27 = vadd.f32 %v2750_v0, %v608_v56  ;;  %v2983_v31 = vpop.f32.mrf.mxu3  ;;  %v2985_v3 = vpop.f32.mrf.mxu0 }
 0x2e6   : > { %v1069_v58 = vmax.f32 %v2983_v31, %v2985_v3 }
 0x2e7   : > { %v2973_v41 = vpop.eup %2152  ;;  %v1206_v63 = vmul.f32 1.442695, %v1134_v4  ;;  %v1208_v6 = vmul.f32 1.442695, %v1135_v43  ;;  %v735_v39 = vpack.c.bf16 %v609_v27, %v607_v32 }
 0x2e8   : > { %v2975_v57 = vpop.eup %2154 }
 0x2e9   : > { %2156 = vpow2.f32 %v1206_v63  ;;  %v1327_v10 = vadd.f32 %v2975_v57, %v2973_v41  ;;  %2086 = vmatmul.msk.bf16.gmra.mxu3 %vm755_vm2, %v735_v39  ;;  %2102 = vmatmul.msk.bf16.gmra.mxu0 %vm755_vm2, %v735_v39 }
 0x2ea   : > { %2158 = vpow2.f32 %v1208_v6 }
 0x2eb   : > { %1328 = vadd.xlane.f32.xlu1 %v1327_v10  ;;  %1064 = vmax.xlane.f32.xlu0 %v1063_v53 }
 0x2ec   : > { %v1047_v49 = vpop.xlane.xlu2 %1046 }
 0x2ed   : > { %v1136_v14 = vsub.f32 %v2885_v26, %v1047_v49  ;;  %v1137_v51 = vsub.f32 %v2892_v50, %v1047_v49  ;;  %v611_v26 = vpop.f32.mrf.mxu1  ;;  %v2999_v50 = vpop.f32.mrf.mxu3 }
 0x2ee   : > { %v3001_v24 = vpop.f32.mrf.mxu0  ;;  %v612_v40 = vadd.f32 %v2750_v0, %v611_v26 }
 0x2ef   : > { %v2991_v22 = vpop.eup %2156  ;;  %v1210_v36 = vmul.f32 1.442695, %v1136_v14  ;;  %v1212_v29 = vmul.f32 1.442695, %v1137_v51  ;;  %v1072_v63 = vmax.f32 %v2999_v50, %v3001_v24 }
 0x2f0   : > { %v2993_v52 = vpop.eup %2158 }
 0x2f1   : > { %2160 = vpow2.f32 %v1210_v36  ;;  %v1330_v60 = vadd.f32 %v2993_v52, %v2991_v22 }
 0x2f2   : > { %2162 = vpow2.f32 %v1212_v29 }
 0x2f3   : > { %1331 = vadd.xlane.f32.xlu1 %v1330_v60  ;;  %1067 = vmax.xlane.f32.xlu0 %v1066_v7 }
 0x2f4   : > { %v1050_v62 = vpop.xlane.xlu0 %1049 }
 0x2f5   : > { %v1138_v23 = vsub.f32 %v2897_v17, %v1050_v62  ;;  %v1139_v48 = vsub.f32 %v2901_v54, %v1050_v62  ;;  %v613_v47 = vpop.f32.mrf.mxu1  ;;  %v3017_v12 = vpop.f32.mrf.mxu3 }
 0x2f6   : > { %v614_v17 = vadd.f32 %v2750_v0, %v613_v47  ;;  %v3019_v45 = vpop.f32.mrf.mxu0 }
 0x2f7   : > { %v3005_v16 = vpop.eup %2160  ;;  %v1214_v25 = vmul.f32 1.442695, %v1138_v23  ;;  %v1216_v42 = vmul.f32 1.442695, %v1139_v48  ;;  %v1075_v39 = vmax.f32 %v3017_v12, %v3019_v45 }
 0x2f8   : > { %v3007_v44 = vpop.eup %2162  ;;  %v736_v18 = vpack.c.bf16 %v614_v17, %v612_v40 }
 0x2f9   : > { %2164 = vpow2.f32 %v1214_v25  ;;  %v1333_v15 = vadd.f32 %v3007_v44, %v3005_v16 }
 0x2fa   : > { %2166 = vpow2.f32 %v1216_v42  ;;  %2087 = vmatmul.msk.bf16.gmra.mxu3 %vm755_vm2, %v736_v18  ;;  %2103 = vmatmul.msk.bf16.gmra.mxu0 %vm755_vm2, %v736_v18 }
 0x2fb   : > { %1334 = vadd.xlane.f32.xlu2 %v1333_v15  ;;  %1070 = vmax.xlane.f32.xlu1 %v1069_v58 }
 0x2fc   : > { %v1053_v54 = vpop.xlane.xlu1 %1052 }
 0x2fd   : > { %v1140_v1 = vsub.f32 %v2905_v30, %v1053_v54  ;;  %v1141_v37 = vsub.f32 %v2907_v46, %v1053_v54  ;;  %v616_v46 = vpop.f32.mrf.mxu1  ;;  %v3039_v51 = vpop.f32.mrf.mxu3 }
 0x2fe   : > { %v3041_v36 = vpop.f32.mrf.mxu0  ;;  %v617_v29 = vadd.f32 %v2750_v0, %v616_v46 }
 0x2ff   : > { %v3023_v61 = vpop.eup %2164  ;;  %v1218_v4 = vmul.f32 1.442695, %v1140_v1  ;;  %v1220_v43 = vmul.f32 1.442695, %v1141_v37  ;;  %v1078_v62 = vmax.f32 %v3039_v51, %v3041_v36 }
 0x300   : > { %v3027_v6 = vpop.eup %2166 }
 0x301   : > { %2168 = vpow2.f32 %v1218_v4  ;;  %v1336_v30 = vadd.f32 %v3027_v6, %v3023_v61 }
 0x302   : > { %2170 = vpow2.f32 %v1220_v43 }
 0x303   : > { %1337 = vadd.xlane.f32.xlu2 %v1336_v30  ;;  %1073 = vmax.xlane.f32.xlu1 %v1072_v63 }
 0x304   : > { %v1056_v32 = vpop.xlane.xlu1 %1055 }
 0x305   : > { %v1142_v10 = vsub.f32 %v2911_v20, %v1056_v32  ;;  %v1143_v53 = vsub.f32 %v2913_v28, %v1056_v32  ;;  %v618_v28 = vpop.f32.mrf.mxu1  ;;  %v3057_v25 = vpop.f32.mrf.mxu3 }
 0x306   : > { %v619_v60 = vadd.f32 %v2750_v0, %v618_v28  ;;  %v3059_v42 = vpop.f32.mrf.mxu0 }
 0x307   : > { %v3033_v56 = vpop.eup %2168  ;;  %v1222_v27 = vmul.f32 1.442695, %v1142_v10  ;;  %v1224_v49 = vmul.f32 1.442695, %v1143_v53  ;;  %v1081_v40 = vmax.f32 %v3057_v25, %v3059_v42 }
 0x308   : > { %v3037_v14 = vpop.eup %2170  ;;  %v737_v7 = vpack.c.bf16 %v619_v60, %v617_v29 }
 0x309   : > { %2172 = vpow2.f32 %v1222_v27  ;;  %v1339_v20 = vadd.f32 %v3037_v14, %v3033_v56 }
 0x30a   : > { %2174 = vpow2.f32 %v1224_v49  ;;  %2088 = vmatmul.msk.bf16.gmra.mxu3 %vm755_vm2, %v737_v7  ;;  %2104 = vmatmul.msk.bf16.gmra.mxu0 %vm755_vm2, %v737_v7 }
 0x30b   : > { %1340 = vadd.xlane.f32.xlu0 %v1339_v20  ;;  %1076 = vmax.xlane.f32.xlu2 %v1075_v39 }
 0x30d   : > { %v3063_v15 = vpop.f32.mrf.mxu3  ;;  %v621_v17 = vpop.f32.mrf.mxu1 }
 0x30e   : > { %v3065_v58 = vpop.f32.mrf.mxu0  ;;  %v622_v1 = vadd.f32 %v2750_v0, %v621_v17 }
 0x30f   : > { %v3049_v26 = vpop.eup %2172  ;;  %v1084_v47 = vmax.f32 %v3063_v15, %v3065_v58 }
 0x310   : > { %v3053_v23 = vpop.eup %2174 }
 0x311   : > { %v1342_v48 = vadd.f32 %v3053_v23, %v3049_v26 }
 0x313   : > { %1343 = vadd.xlane.f32.xlu0 %v1342_v48  ;;  %1079 = vmax.xlane.f32.xlu2 %v1078_v62 }
 0x315   : > { %v623_v54 = vpop.f32.mrf.mxu1 }
 0x316   : > { %v624_v37 = vadd.f32 %v2750_v0, %v623_v54  ;;  %v3075_v0 = vpop.f32.mrf.mxu3  ;;  %v3077_v49 = vpop.f32.mrf.mxu0 }
 0x318   : > { %v738_v4 = vpack.c.bf16 %v624_v37, %v622_v1 }
 0x31a   : > { %2089 = vmatmul.msk.bf16.gmra.mxu3 %vm755_vm2, %v738_v4  ;;  %2105 = vmatmul.msk.bf16.gmra.mxu0 %vm755_vm2, %v738_v4 }
 0x31b   : > { %1082 = vmax.xlane.f32.xlu0 %v1081_v40 }
 0x323   : > { %1085 = vmax.xlane.f32.xlu0 %v1084_v47 }
 0x346   : > { %v1320_v18 = vpop.xlane.xlu2 %1319 }
 0x347   : > { %2176 = vrcp.f32 %v1320_v18  ;;  %v3095_v18 = vpop.f32.mrf.mxu0 }
 0x34d   : > { %v2177_v53 = vpop.eup %2176 }
 0x34e   : > { %v1323_v43 = vpop.xlane.xlu0 %1322  ;;  %v1059_v63 = vpop.xlane.xlu2 %1058  ;;  %v1446_v39 = vmul.f32 %v2177_v53, %v2937_v21  ;;  %v1447_v29 = vmul.f32 %v2177_v53, %v2939_v9 }
 0x34f   : > { %2178 = vrcp.f32 %v1323_v43  ;;  %v1144_v30 = vsub.f32 %v2921_v55, %v1059_v63  ;;  %v1145_v46 = vsub.f32 %v2923_v11, %v1059_v63 }
 0x351   : > { %v1226_v32 = vmul.f32 1.442695, %v1144_v30  ;;  %v1228_v10 = vmul.f32 1.442695, %v1145_v46 }
 0x353   : > { %2180 = vpow2.f32 %v1226_v32 }
 0x354   : > { %2182 = vpow2.f32 %v1228_v10 }
 0x355   : > { %v2179_v27 = vpop.eup %2178 }
 0x356   : > { %v1448_v20 = vmul.f32 %v2179_v27, %v2945_v59  ;;  %v1449_v55 = vmul.f32 %v2179_v27, %v2949_v13  ;;  %v1326_v28 = vpop.xlane.xlu0 %1325  ;;  %v1062_v11 = vpop.xlane.xlu2 %1061 }
 0x357   : > { %v1146_v60 = vsub.f32 %v2933_v19, %v1062_v11  ;;  %v1147_v7 = vsub.f32 %v2935_v38, %v1062_v11  ;;  %v3093_v13 = vpop.f32.mrf.mxu3 }
 0x358   : > { %v1510_v62 = vpack.c.bf16 %v1448_v20, %v1446_v39  ;;  %v1511_v48 = vpack.c.bf16 %v1449_v55, %v1447_v29 }
 0x359   : > { %v3085_v40 = vpop.eup %2180  ;;  %v1230_v47 = vmul.f32 1.442695, %v1146_v60  ;;  %v1232_v17 = vmul.f32 1.442695, %v1147_v7 }
 0x35a   : > { %v3087_v54 = vpop.eup %2182  ;;  %1566 = vmatmul.bf16.vlgmr.msra.gmra.mxu1 %v1510_v62  ;;  %1655 = vmatmul.bf16.vlgmr.msrb.gmra.mxu2 %v1511_v48  ;;  %v3113_v62 = vpop.f32.mrf.mxu0 }
 0x35b   : > { %2184 = vpow2.f32 %v1230_v47  ;;  %v1345_v21 = vadd.f32 %v3087_v54, %v3085_v40 }
 0x35c   : > { %2186 = vpow2.f32 %v1232_v17 }
 0x35d   : > { %2188 = vrcp.f32 %v1326_v28  ;;  %1346 = vadd.xlane.f32.xlu1 %v1345_v21 }
 0x35e   : > { %v1329_v19 = vpop.xlane.xlu1 %1328  ;;  %v1065_v9 = vpop.xlane.xlu0 %1064 }
 0x35f   : > { %2190 = vrcp.f32 %v1329_v19  ;;  %v1148_v38 = vsub.f32 %v2947_v8, %v1065_v9  ;;  %v1149_v59 = vsub.f32 %v2951_v34, %v1065_v9  ;;  %v3111_v7 = vpop.f32.mrf.mxu3 }
 0x361   : > { %v3097_v1 = vpop.eup %2184  ;;  %v1234_v37 = vmul.f32 1.442695, %v1148_v38  ;;  %v1236_v4 = vmul.f32 1.442695, %v1149_v59  ;;  %v1090_v59 = vmax.f32 %v3093_v13, %v3095_v18 }
 0x362   : > { %v3099_v43 = vpop.eup %2186 }
 0x363   : > { %v2189_v63 = vpop.eup %2188  ;;  %2192 = vpow2.f32 %v1234_v37  ;;  %v1348_v30 = vadd.f32 %v3099_v43, %v3097_v1 }
 0x364   : > { %2194 = vpow2.f32 %v1236_v4  ;;  %v1450_v32 = vmul.f32 %v2189_v63, %v2959_v33  ;;  %v1451_v53 = vmul.f32 %v2189_v63, %v2961_v2  ;;  %v3133_v4 = vpop.f32.mrf.mxu0 }
 0x365   : > { %v2191_v46 = vpop.eup %2190  ;;  %1349 = vadd.xlane.f32.xlu1 %v1348_v30 }
 0x366   : > { %v1332_v8 = vpop.xlane.xlu1 %1331  ;;  %v1068_v34 = vpop.xlane.xlu0 %1067  ;;  %v1452_v10 = vmul.f32 %v2191_v46, %v2973_v41  ;;  %v1453_v27 = vmul.f32 %v2191_v46, %v2975_v57 }
 0x367   : > { %v1150_v39 = vsub.f32 %v2967_v5, %v1068_v34  ;;  %v1151_v29 = vsub.f32 %v2969_v35, %v1068_v34  ;;  %v1087_v5 = vmax.f32 %v3075_v0, %v3077_v49  ;;  %v3131_v37 = vpop.f32.mrf.mxu3 }
 0x368   : > { %v1512_v20 = vpack.c.bf16 %v1452_v10, %v1450_v32  ;;  %v1513_v55 = vpack.c.bf16 %v1453_v27, %v1451_v53 }
 0x369   : > { %v3109_v28 = vpop.eup %2192  ;;  %v1238_v11 = vmul.f32 1.442695, %v1150_v39  ;;  %v1240_v60 = vmul.f32 1.442695, %v1151_v29 }
 0x36a   : > { %v3115_v33 = vpop.eup %2194  ;;  %1571 = vmatmul.bf16.gmra.mxu1 %v1512_v20  ;;  %1660 = vmatmul.bf16.gmra.mxu2 %v1513_v55 }
 0x36b   : > { %2196 = vpow2.f32 %v1238_v11  ;;  %v1351_v2 = vadd.f32 %v3115_v33, %v3109_v28 }
 0x36c   : > { %2198 = vpow2.f32 %v1240_v60 }
 0x36d   : > { %2200 = vrcp.f32 %v1332_v8  ;;  %1352 = vadd.xlane.f32.xlu2 %v1351_v2  ;;  %1088 = vmax.xlane.f32.xlu1 %v1087_v5 }
 0x36e   : > { %v1335_v35 = vpop.xlane.xlu2 %1334  ;;  %v1071_v41 = vpop.xlane.xlu1 %1070 }
 0x36f   : > { %2202 = vrcp.f32 %v1335_v35  ;;  %v1152_v57 = vsub.f32 %v2983_v31, %v1071_v41  ;;  %v1153_v48 = vsub.f32 %v2985_v3, %v1071_v41 }
 0x371   : > { %v3123_v47 = vpop.eup %2196  ;;  %v1242_v17 = vmul.f32 1.442695, %v1152_v57  ;;  %v1244_v21 = vmul.f32 1.442695, %v1153_v48 }
 0x372   : > { %v3125_v19 = vpop.eup %2198 }
 0x373   : > { %v2201_v9 = vpop.eup %2200  ;;  %2204 = vpow2.f32 %v1242_v17  ;;  %v1354_v38 = vadd.f32 %v3125_v19, %v3123_v47  ;;  %v1096_v17 = vmax.f32 %v3131_v37, %v3133_v4 }
 0x374   : > { %2206 = vpow2.f32 %v1244_v21  ;;  %v1454_v30 = vmul.f32 %v2201_v9, %v2991_v22  ;;  %v1455_v8 = vmul.f32 %v2201_v9, %v2993_v52  ;;  %v1093_v52 = vmax.f32 %v3111_v7, %v3113_v62 }
 0x375   : > { %v2203_v31 = vpop.eup %2202  ;;  %1355 = vadd.xlane.f32.xlu2 %v1354_v38  ;;  %1091 = vmax.xlane.f32.xlu1 %v1090_v59 }
 0x376   : > { %v1338_v3 = vpop.xlane.xlu2 %1337  ;;  %v1074_v63 = vpop.xlane.xlu1 %1073  ;;  %v1456_v46 = vmul.f32 %v2203_v31, %v3005_v16  ;;  %v1457_v34 = vmul.f32 %v2203_v31, %v3007_v44 }
 0x377   : > { %v1154_v32 = vsub.f32 %v2999_v50, %v1074_v63  ;;  %v1155_v10 = vsub.f32 %v3001_v24, %v1074_v63  ;;  %v3149_v50 = vpop.f32.mrf.mxu3  ;;  %v3151_v24 = vpop.f32.mrf.mxu0 }
 0x378   : > { %v1514_v53 = vpack.c.bf16 %v1456_v46, %v1454_v30  ;;  %v1515_v27 = vpack.c.bf16 %v1457_v34, %v1455_v8 }
 0x379   : > { %v3141_v39 = vpop.eup %2204  ;;  %v1246_v29 = vmul.f32 1.442695, %v1154_v32  ;;  %v1248_v20 = vmul.f32 1.442695, %v1155_v10 }
 0x37a   : > { %v3143_v55 = vpop.eup %2206  ;;  %1576 = vmatmul.bf16.gmra.mxu1 %v1514_v53  ;;  %1665 = vmatmul.bf16.gmra.mxu2 %v1515_v27 }
 0x37b   : > { %2208 = vpow2.f32 %v1246_v29  ;;  %v1357_v22 = vadd.f32 %v3143_v55, %v3141_v39 }
 0x37c   : > { %2210 = vpow2.f32 %v1248_v20 }
 0x37d   : > { %2212 = vrcp.f32 %v1338_v3  ;;  %1358 = vadd.xlane.f32.xlu0 %v1357_v22  ;;  %1094 = vmax.xlane.f32.xlu2 %v1093_v52 }
 0x37e   : > { %v1341_v16 = vpop.xlane.xlu0 %1340  ;;  %v1077_v44 = vpop.xlane.xlu2 %1076 }
 0x37f   : > { %2214 = vrcp.f32 %v1341_v16  ;;  %v1156_v11 = vsub.f32 %v3017_v12, %v1077_v44  ;;  %v1157_v60 = vsub.f32 %v3019_v45, %v1077_v44  ;;  %v3163_v12 = vpop.f32.mrf.mxu3  ;;  %v3165_v45 = vpop.f32.mrf.mxu0 }
 0x380   : > { %v1102_v16 = vmax.f32 %v3163_v12, %v3165_v45 }
 0x381   : > { %v3155_v2 = vpop.eup %2208  ;;  %v1250_v5 = vmul.f32 1.442695, %v1156_v11  ;;  %v1252_v35 = vmul.f32 1.442695, %v1157_v60 }
 0x382   : > { %v3157_v41 = vpop.eup %2210 }
 0x383   : > { %v2213_v57 = vpop.eup %2212  ;;  %2216 = vpow2.f32 %v1250_v5  ;;  %v1360_v48 = vadd.f32 %v3157_v41, %v3155_v2 }
 0x384   : > { %2218 = vpow2.f32 %v1252_v35  ;;  %v1458_v59 = vmul.f32 %v2213_v57, %v3023_v61  ;;  %v1459_v3 = vmul.f32 %v2213_v57, %v3027_v6  ;;  %v1099_v6 = vmax.f32 %v3149_v50, %v3151_v24 }
 0x385   : > { %v2215_v21 = vpop.eup %2214  ;;  %1361 = vadd.xlane.f32.xlu0 %v1360_v48  ;;  %1097 = vmax.xlane.f32.xlu2 %v1096_v17 }
 0x386   : > { %v3167_v9 = vpop.xlane.xlu0 %1343  ;;  %v1080_v38 = vpop.xlane.xlu2 %1079  ;;  %v1460_v31 = vmul.f32 %v2215_v21, %v3033_v56  ;;  %v1461_v63 = vmul.f32 %v2215_v21, %v3037_v14 }
 0x387   : > { %v1158_v30 = vsub.f32 %v3039_v51, %v1080_v38  ;;  %v1159_v46 = vsub.f32 %v3041_v36, %v1080_v38  ;;  %v3185_v36 = vpop.f32.mrf.mxu3  ;;  %v3187_v29 = vpop.f32.mrf.mxu0 }
 0x388   : > { %v1516_v8 = vpack.c.bf16 %v1460_v31, %v1458_v59  ;;  %v1517_v34 = vpack.c.bf16 %v1461_v63, %v1459_v3  ;;  %v1105_v48 = vmax.f32 %v3185_v36, %v3187_v29 }
 0x389   : > { %v3175_v32 = vpop.eup %2216  ;;  %v1254_v10 = vmul.f32 1.442695, %v1158_v30  ;;  %v1256_v53 = vmul.f32 1.442695, %v1159_v46 }
 0x38a   : > { %v3177_v27 = vpop.eup %2218  ;;  %1581 = vmatmul.bf16.gmra.mxu1 %v1516_v8  ;;  %1670 = vmatmul.bf16.gmra.mxu2 %v1517_v34 }
 0x38b   : > { %2220 = vpow2.f32 %v1254_v10  ;;  %v1363_v61 = vadd.f32 %v3177_v27, %v3175_v32 }
 0x38c   : > { %2222 = vpow2.f32 %v1256_v53  ;;  %v1752_v53 = vld [vmem:[%s3571_s7] sm:$0x3] }
 0x38d   : > { %1364 = vadd.xlane.f32.xlu1 %v1363_v61  ;;  %1100 = vmax.xlane.f32.xlu0 %v1099_v6  ;;  %v1807_v61 = vsel %vm1805_vm3, %v1752_v53, 0 }
 0x38e   : > { %v1083_v56 = vpop.xlane.xlu0 %1082  ;;  %1816 = vmatpush.bf16.msra.mxu0 %v1807_v61  ;;  %2127 = vmatpush.bf16.msrb.mxu3 %v1807_v61 }
 0x38f   : > { %v1160_v14 = vsub.f32 %v3057_v25, %v1083_v56  ;;  %v1161_v51 = vsub.f32 %v3059_v42, %v1083_v56  ;;  %v3205_v21 = vpop.f32.mrf.mxu3  ;;  %v3207_v38 = vpop.f32.mrf.mxu0 }
 0x391   : > { %v3189_v20 = vpop.eup %2220  ;;  %v1258_v22 = vmul.f32 1.442695, %v1160_v14  ;;  %v1260_v52 = vmul.f32 1.442695, %v1161_v51 }
 0x392   : > { %v3193_v44 = vpop.eup %2222 }
 0x393   : > { %2224 = vpow2.f32 %v1258_v22  ;;  %v1366_v11 = vadd.f32 %v3193_v44, %v3189_v20 }
 0x394   : > { %2226 = vpow2.f32 %v1260_v52 }
 0x395   : > { %1367 = vadd.xlane.f32.xlu1 %v1366_v11  ;;  %1103 = vmax.xlane.f32.xlu0 %v1102_v16 }
 0x396   : > { %v1086_v25 = vpop.xlane.xlu0 %1085 }
 0x397   : > { %v1162_v42 = vsub.f32 %v3063_v15, %v1086_v25  ;;  %v1163_v60 = vsub.f32 %v3065_v58, %v1086_v25  ;;  %v1108_v58 = vmax.f32 %v3205_v21, %v3207_v38  ;;  %v3219_v63 = vpop.f32.mrf.mxu3  ;;  %v3221_v30 = vpop.f32.mrf.mxu0 }
 0x398   : > { %v1111_v46 = vmax.f32 %v3219_v63, %v3221_v30 }
 0x399   : > { %v3199_v5 = vpop.eup %2224  ;;  %v1262_v35 = vmul.f32 1.442695, %v1162_v42  ;;  %v1264_v57 = vmul.f32 1.442695, %v1163_v60 }
 0x39a   : > { %v3203_v17 = vpop.eup %2226 }
 0x39b   : > { %2228 = vpow2.f32 %v1262_v35  ;;  %v1369_v59 = vadd.f32 %v3203_v17, %v3199_v5 }
 0x39c   : > { %2230 = vpow2.f32 %v1264_v57 }
 0x39d   : > { %1370 = vadd.xlane.f32.xlu2 %v1369_v59  ;;  %1106 = vmax.xlane.f32.xlu1 %v1105_v48  ;;  %2232 = vrcp.f32 %v3167_v9 }
 0x39f   : > { %v3225_v8 = vpop.f32.mrf.mxu3  ;;  %v3227_v34 = vpop.f32.mrf.mxu0 }
 0x3a0   : > { %v1114_v10 = vmax.f32 %v3225_v8, %v3227_v34 }
 0x3a1   : > { %v3211_v15 = vpop.eup %2228 }
 0x3a2   : > { %v3215_v31 = vpop.eup %2230 }
 0x3a3   : > { %v1372_v3 = vadd.f32 %v3215_v31, %v3211_v15  ;;  %v2233_v56 = vpop.eup %2232 }
 0x3a4   : > { %v1462_v52 = vmul.f32 %v2233_v56, %v3049_v26  ;;  %v1463_v11 = vmul.f32 %v2233_v56, %v3053_v23 }
 0x3a5   : > { %1373 = vadd.xlane.f32.xlu2 %v1372_v3  ;;  %1109 = vmax.xlane.f32.xlu1 %v1108_v58 }
 0x3ad   : > { %1112 = vmax.xlane.f32.xlu2 %v1111_v46 }
 0x3b5   : > { %1115 = vmax.xlane.f32.xlu2 %v1114_v10 }
 0x3d0   : > { %v1347_v6 = vpop.xlane.xlu1 %1346 }
 0x3d1   : > { %2234 = vrcp.f32 %v1347_v6 }
 0x3d7   : > { %v2235_v14 = vpop.eup %2234  ;;  %v1567_v51 = vpop.f32.mrf.mxu1 }
 0x3d8   : > { %v1350_v22 = vpop.xlane.xlu1 %1349  ;;  %v1464_v16 = vmul.f32 %v2235_v14, %v3085_v40  ;;  %v1465_v25 = vmul.f32 %v2235_v14, %v3087_v54 }
 0x3d9   : > { %2236 = vrcp.f32 %v1350_v22 }
 0x3da   : > { %v1518_v42 = vpack.c.bf16 %v1464_v16, %v1462_v52  ;;  %v1519_v60 = vpack.c.bf16 %v1465_v25, %v1463_v11 }
 0x3dc   : > { %1586 = vmatmul.bf16.gmra.mxu1 %v1518_v42  ;;  %1675 = vmatmul.bf16.gmra.mxu2 %v1519_v60 }
 0x3dd   : > { %v1656_v35 = vpop.f32.mrf.mxu2 }
 0x3de   : > { %v1657_v54 = vadd.f32 %v1656_v35, %v1567_v51 }
 0x3df   : > { %v1569_v9 = vpop.f32.mrf.mxu1  ;;  %v2237_v3 = vpop.eup %2236 }
 0x3e0   : > { %v1353_v57 = vpop.xlane.xlu2 %1352  ;;  %v1089_v48 = vpop.xlane.xlu1 %1088  ;;  %v1466_v61 = vmul.f32 %v2237_v3, %v3097_v1 }
 0x3e1   : > { %2238 = vrcp.f32 %v1353_v57  ;;  %v1164_v59 = vsub.f32 %v3075_v0, %v1089_v48  ;;  %v1165_v26 = vsub.f32 %v3077_v49, %v1089_v48  ;;  %v1467_v0 = vmul.f32 %v2237_v3, %v3099_v43 }
 0x3e3   : > { %v1266_v58 = vmul.f32 1.442695, %v1164_v59  ;;  %v1268_v40 = vmul.f32 1.442695, %v1165_v26 }
 0x3e5   : > { %2240 = vpow2.f32 %v1266_v58  ;;  %v1658_v23 = vpop.f32.mrf.mxu2 }
 0x3e6   : > { %2242 = vpow2.f32 %v1268_v40  ;;  %v1659_v46 = vadd.f32 %v1658_v23, %v1569_v9  ;;  %v3260_v40 = vpop.f32.mrf.mxu3 }
 0x3e7   : > { %v2239_v10 = vpop.eup %2238  ;;  %v1572_v53 = vpop.f32.mrf.mxu1 }
 0x3e8   : > { %v1736_v6 = vpack.c.bf16 %v1659_v46, %v1657_v54  ;;  %v1356_v56 = vpop.xlane.xlu2 %1355  ;;  %v1092_v14 = vpop.xlane.xlu1 %1091  ;;  %v1468_v22 = vmul.f32 %v2239_v10, %v3109_v28  ;;  %v1469_v49 = vmul.f32 %v2239_v10, %v3115_v33 }
 0x3e9   : > { %v1166_v52 = vsub.f32 %v3093_v13, %v1092_v14  ;;  %v1167_v16 = vsub.f32 %v3095_v18, %v1092_v14  ;;  %2244 = vrcp.f32 %v1356_v56  ;;  %v3264_v54 = vpop.f32.mrf.mxu0 }
 0x3ea   : > { %2106 = vmatmul.msk.bf16.vlgmr.msra.gmra.mxu0 %vm755_vm2, %v1736_v6  ;;  %v1520_v51 = vpack.c.bf16 %v1468_v22, %v1466_v61  ;;  %v1521_v11 = vpack.c.bf16 %v1469_v49, %v1467_v0 }
 0x3eb   : > { %v3248_v25 = vpop.eup %2240  ;;  %v1270_v1 = vmul.f32 1.442695, %v1166_v52  ;;  %v1272_v42 = vmul.f32 1.442695, %v1167_v16 }
 0x3ec   : > { %v3250_v60 = vpop.eup %2242  ;;  %1591 = vmatmul.bf16.gmra.mxu1 %v1520_v51  ;;  %1680 = vmatmul.bf16.gmra.mxu2 %v1521_v11 }
 0x3ed   : > { %2246 = vpow2.f32 %v1270_v1  ;;  %v1375_v43 = vadd.f32 %v3250_v60, %v3248_v25  ;;  %v1661_v13 = vpop.f32.mrf.mxu2 }
 0x3ee   : > { %2248 = vpow2.f32 %v1272_v42  ;;  %v1662_v46 = vadd.f32 %v1661_v13, %v1572_v53 }
 0x3ef   : > { %1376 = vadd.xlane.f32.xlu0 %v1375_v43  ;;  %v1574_v18 = vpop.f32.mrf.mxu1  ;;  %v2245_v57 = vpop.eup %2244 }
 0x3f0   : > { %v1359_v28 = vpop.xlane.xlu0 %1358  ;;  %v1095_v33 = vpop.xlane.xlu2 %1094  ;;  %v1470_v61 = vmul.f32 %v2245_v57, %v3123_v47  ;;  %v1471_v0 = vmul.f32 %v2245_v57, %v3125_v19 }
 0x3f1   : > { %2250 = vrcp.f32 %v1359_v28  ;;  %v1168_v35 = vsub.f32 %v3111_v7, %v1095_v33  ;;  %v1169_v9 = vsub.f32 %v3113_v62, %v1095_v33 }
 0x3f3   : > { %v3256_v48 = vpop.eup %2246  ;;  %v1274_v59 = vmul.f32 1.442695, %v1168_v35  ;;  %v1276_v26 = vmul.f32 1.442695, %v1169_v9 }
 0x3f4   : > { %v3258_v58 = vpop.eup %2248 }
 0x3f5   : > { %2252 = vpow2.f32 %v1274_v59  ;;  %v1378_v3 = vadd.f32 %v3258_v58, %v3256_v48  ;;  %v1663_v23 = vpop.f32.mrf.mxu2 }
 0x3f6   : > { %2254 = vpow2.f32 %v1276_v26  ;;  %v1664_v7 = vadd.f32 %v1663_v23, %v1574_v18 }
 0x3f7   : > { %v2251_v62 = vpop.eup %2250  ;;  %1379 = vadd.xlane.f32.xlu0 %v1378_v3  ;;  %v1577_v10 = vpop.f32.mrf.mxu1 }
 0x3f8   : > { %v1737_v6 = vpack.c.bf16 %v1664_v7, %v1662_v46  ;;  %v1362_v56 = vpop.xlane.xlu0 %1361  ;;  %v1098_v14 = vpop.xlane.xlu2 %1097  ;;  %v1472_v22 = vmul.f32 %v2251_v62, %v3141_v39  ;;  %v1473_v49 = vmul.f32 %v2251_v62, %v3143_v55 }
 0x3f9   : > { %v1170_v52 = vsub.f32 %v3131_v37, %v1098_v14  ;;  %v1171_v53 = vsub.f32 %v3133_v4, %v1098_v14  ;;  %2256 = vrcp.f32 %v1362_v56  ;;  %v1117_v37 = vmax.f32 %v3260_v40, %v3264_v54  ;;  %v3281_v39 = vpop.f32.mrf.mxu3  ;;  %v3283_v55 = vpop.f32.mrf.mxu0 }
 0x3fa   : > { %2107 = vmatmul.msk.bf16.gmra.mxu0 %vm755_vm2, %v1737_v6  ;;  %v1522_v16 = vpack.c.bf16 %v1472_v22, %v1470_v61  ;;  %v1523_v51 = vpack.c.bf16 %v1473_v49, %v1471_v0  ;;  %v1120_v23 = vmax.f32 %v3281_v39, %v3283_v55 }
 0x3fb   : > { %v3273_v11 = vpop.eup %2252  ;;  %v1278_v47 = vmul.f32 1.442695, %v1170_v52  ;;  %v1280_v1 = vmul.f32 1.442695, %v1171_v53 }
 0x3fc   : > { %v3275_v42 = vpop.eup %2254  ;;  %1596 = vmatmul.bf16.gmra.mxu1 %v1522_v16  ;;  %1685 = vmatmul.bf16.gmra.mxu2 %v1523_v51 }
 0x3fd   : > { %2258 = vpow2.f32 %v1278_v47  ;;  %v1381_v19 = vadd.f32 %v3275_v42, %v3273_v11  ;;  %v1666_v4 = vpop.f32.mrf.mxu2 }
 0x3fe   : > { %2260 = vpow2.f32 %v1280_v1  ;;  %v1667_v7 = vadd.f32 %v1666_v4, %v1577_v10 }
 0x3ff   : > { %1382 = vadd.xlane.f32.xlu1 %v1381_v19  ;;  %1118 = vmax.xlane.f32.xlu0 %v1117_v37  ;;  %v1579_v33 = vpop.f32.mrf.mxu1  ;;  %v2257_v35 = vpop.eup %2256 }
 0x400   : > { %v1365_v43 = vpop.xlane.xlu1 %1364  ;;  %v1101_v13 = vpop.xlane.xlu0 %1100  ;;  %v1474_v62 = vmul.f32 %v2257_v35, %v3155_v2  ;;  %v1475_v22 = vmul.f32 %v2257_v35, %v3157_v41 }
 0x401   : > { %2262 = vrcp.f32 %v1365_v43  ;;  %v1172_v18 = vsub.f32 %v3149_v50, %v1101_v13  ;;  %v1173_v28 = vsub.f32 %v3151_v24, %v1101_v13  ;;  %v3301_v52 = vpop.f32.mrf.mxu3  ;;  %v3303_v53 = vpop.f32.mrf.mxu0 }
 0x403   : > { %v3287_v9 = vpop.eup %2258  ;;  %v1282_v57 = vmul.f32 1.442695, %v1172_v18  ;;  %v1284_v59 = vmul.f32 1.442695, %v1173_v28 }
 0x404   : > { %v3289_v26 = vpop.eup %2260 }
 0x405   : > { %2264 = vpow2.f32 %v1282_v57  ;;  %v1384_v3 = vadd.f32 %v3289_v26, %v3287_v9  ;;  %v1668_v46 = vpop.f32.mrf.mxu2 }
 0x406   : > { %2266 = vpow2.f32 %v1284_v59  ;;  %v1669_v50 = vadd.f32 %v1668_v46, %v1579_v33 }
 0x407   : > { %v2263_v24 = vpop.eup %2262  ;;  %1385 = vadd.xlane.f32.xlu1 %v1384_v3  ;;  %1121 = vmax.xlane.f32.xlu0 %v1120_v23  ;;  %v1582_v1 = vpop.f32.mrf.mxu1 }
 0x408   : > { %v1738_v61 = vpack.c.bf16 %v1669_v50, %v1667_v7  ;;  %v1368_v6 = vpop.xlane.xlu1 %1367  ;;  %v1104_v56 = vpop.xlane.xlu0 %1103  ;;  %v1476_v14 = vmul.f32 %v2263_v24, %v3175_v32  ;;  %v1477_v0 = vmul.f32 %v2263_v24, %v3177_v27 }
 0x409   : > { %v1174_v49 = vsub.f32 %v3163_v12, %v1104_v56  ;;  %v1175_v10 = vsub.f32 %v3165_v45, %v1104_v56  ;;  %2268 = vrcp.f32 %v1368_v6  ;;  %v1123_v45 = vmax.f32 %v3301_v52, %v3303_v53 }
 0x40a   : > { %2108 = vmatmul.msk.bf16.vlgmr.msrb.gmra.mxu3 %vm755_vm2, %v1738_v61  ;;  %v1524_v2 = vpack.c.bf16 %v1476_v14, %v1474_v62  ;;  %v1525_v16 = vpack.c.bf16 %v1477_v0, %v1475_v22 }
 0x40b   : > { %v3306_v51 = vpop.eup %2264  ;;  %v1286_v47 = vmul.f32 1.442695, %v1174_v49  ;;  %v1288_v32 = vmul.f32 1.442695, %v1175_v10 }
 0x40c   : > { %v3308_v41 = vpop.eup %2266  ;;  %1601 = vmatmul.bf16.gmra.mxu1 %v1524_v2  ;;  %1690 = vmatmul.bf16.gmra.mxu2 %v1525_v16 }
 0x40d   : > { %2270 = vpow2.f32 %v1286_v47  ;;  %v1387_v12 = vadd.f32 %v3308_v41, %v3306_v51  ;;  %v1671_v27 = vpop.f32.mrf.mxu2 }
 0x40e   : > { %2272 = vpow2.f32 %v1288_v32  ;;  %v1672_v23 = vadd.f32 %v1671_v27, %v1582_v1 }
 0x40f   : > { %1388 = vadd.xlane.f32.xlu2 %v1387_v12  ;;  %1124 = vmax.xlane.f32.xlu1 %v1123_v45  ;;  %v2269_v13 = vpop.eup %2268  ;;  %v1584_v57 = vpop.f32.mrf.mxu1 }
 0x410   : > { %v1371_v19 = vpop.xlane.xlu2 %1370  ;;  %v1107_v37 = vpop.xlane.xlu1 %1106  ;;  %v1479_v61 = vmul.f32 %v2269_v13, %v3193_v44 }
 0x411   : > { %2274 = vrcp.f32 %v1371_v19  ;;  %v1176_v4 = vsub.f32 %v3185_v36, %v1107_v37  ;;  %v1177_v43 = vsub.f32 %v3187_v29, %v1107_v37  ;;  %v1478_v36 = vmul.f32 %v2269_v13, %v3189_v20 }
 0x413   : > { %v3316_v18 = vpop.eup %2270  ;;  %v1290_v28 = vmul.f32 1.442695, %v1176_v4  ;;  %v1292_v33 = vmul.f32 1.442695, %v1177_v43 }
 0x414   : > { %v3318_v35 = vpop.eup %2272 }
 0x415   : > { %2276 = vpow2.f32 %v1290_v28  ;;  %v1390_v59 = vadd.f32 %v3318_v35, %v3316_v18  ;;  %v1673_v3 = vpop.f32.mrf.mxu2 }
 0x416   : > { %2278 = vpow2.f32 %v1292_v33  ;;  %v1674_v46 = vadd.f32 %v1673_v3, %v1584_v57 }
 0x417   : > { %v2275_v7 = vpop.eup %2274  ;;  %1391 = vadd.xlane.f32.xlu2 %v1390_v59  ;;  %v3360_v59 = vld [vmem:[%s3572_s8] ss:$0 sm:$0xff] }
 0x418   : > { %v1739_v29 = vpack.c.bf16 %v1674_v46, %v1672_v23  ;;  %v1374_v50 = vpop.xlane.xlu2 %1373  ;;  %v1110_v24 = vpop.xlane.xlu1 %1109  ;;  %v1480_v62 = vmul.f32 %v2275_v7, %v3199_v5  ;;  %v1481_v6 = vmul.f32 %v2275_v7, %v3203_v17 }
 0x419   : > { %v1178_v56 = vsub.f32 %v3205_v21, %v1110_v24  ;;  %v1179_v14 = vsub.f32 %v3207_v38, %v1110_v24 }
 0x41a   : > { %2109 = vmatmul.msk.bf16.gmra.mxu3 %vm755_vm2, %v1739_v29  ;;  %v1526_v22 = vpack.c.bf16 %v1480_v62, %v1478_v36  ;;  %v1527_v0 = vpack.c.bf16 %v1481_v6, %v1479_v61 }
 0x41b   : > { %v3329_v49 = vpop.eup %2276  ;;  %v1294_v20 = vmul.f32 1.442695, %v1178_v56  ;;  %v1296_v10 = vmul.f32 1.442695, %v1179_v14  ;;  %v2332_v56 = vld [vmem:[%s2442_s16] sm:$0xff] }
 0x41c   : > { %v3331_v2 = vpop.eup %2278  ;;  %1606 = vmatmul.bf16.gmra.mxu1 %v1526_v22  ;;  %1695 = vmatmul.bf16.gmra.mxu2 %v1527_v0 }
 0x41d   : > { %2280 = vpow2.f32 %v1294_v20  ;;  %v1393_v44 = vadd.f32 %v3331_v2, %v3329_v49 }
 0x41e   : > { %2282 = vpow2.f32 %v1296_v10 }
 0x41f   : > { %1394 = vadd.xlane.f32.xlu0 %v1393_v44 }
 0x420   : > { %v1113_v5 = vpop.xlane.xlu2 %1112 }
 0x421   : > { %v1180_v17 = vsub.f32 %v3219_v63, %v1113_v5  ;;  %v1181_v21 = vsub.f32 %v3221_v30, %v1113_v5 }
 0x423   : > { %v3337_v38 = vpop.eup %2280  ;;  %v1298_v16 = vmul.f32 1.442695, %v1180_v17  ;;  %v1300_v47 = vmul.f32 1.442695, %v1181_v21  ;;  %v2333_v21 = vld [vmem:[%s2442_s16 + $0x8] sm:$0xff] }
 0x424   : > { %v3339_v32 = vpop.eup %2282 }
 0x425   : > { %2284 = vpow2.f32 %v1298_v16  ;;  %v1396_v1 = vadd.f32 %v3339_v32, %v3337_v38 }
 0x426   : > { %2286 = vpow2.f32 %v1300_v47 }
 0x427   : > { %1397 = vadd.xlane.f32.xlu1 %v1396_v1 }
 0x428   : > { %v1116_v12 = vpop.xlane.xlu2 %1115 }
 0x429   : > { %v1182_v45 = vsub.f32 %v3225_v8, %v1116_v12  ;;  %v1183_v27 = vsub.f32 %v3227_v34, %v1116_v12 }
 0x42b   : > { %v3345_v63 = vpop.eup %2284  ;;  %v1302_v30 = vmul.f32 1.442695, %v1182_v45  ;;  %v1304_v19 = vmul.f32 1.442695, %v1183_v27 }
 0x42c   : > { %v3347_v37 = vpop.eup %2286 }
 0x42d   : > { %2288 = vpow2.f32 %v1302_v30  ;;  %v1399_v4 = vadd.f32 %v3347_v37, %v3345_v63 }
 0x42e   : > { %2290 = vpow2.f32 %v1304_v19 }
 0x42f   : > { %1400 = vadd.xlane.f32.xlu2 %v1399_v4  ;;  %2292 = vrcp.f32 %v1374_v50 }
 0x433   : > { %v3351_v43 = vpop.eup %2288 }
 0x434   : > { %v3353_v13 = vpop.eup %2290 }
 0x435   : > { %v1402_v8 = vadd.f32 %v3353_v13, %v3351_v43  ;;  %v2293_v3 = vpop.eup %2292 }
 0x436   : > { %v1482_v62 = vmul.f32 %v2293_v3, %v3211_v15  ;;  %v1483_v61 = vmul.f32 %v2293_v3, %v3215_v31  ;;  %v2334_v3 = vld [vmem:[%s2442_s16 + $0x10] sm:$0xff] }
 0x437   : > { %1403 = vadd.xlane.f32.xlu0 %v1402_v8 }
 0x459   : > { %v1587_v34 = vpop.f32.mrf.mxu1 }
 0x45f   : > { %v1676_v28 = vpop.f32.mrf.mxu2 }
 0x460   : > { %v1677_v7 = vadd.f32 %v1676_v28, %v1587_v34 }
 0x461   : > { %v1589_v33 = vpop.f32.mrf.mxu1 }
 0x462   : > { %v1377_v57 = vpop.xlane.xlu0 %1376 }
 0x463   : > { %2294 = vrcp.f32 %v1377_v57 }
 0x467   : > { %v1678_v23 = vpop.f32.mrf.mxu2  ;;  %v1818_v46 = vpop.f32.mrf.mxu0 }
 0x468   : > { %v1679_v36 = vadd.f32 %v1678_v23, %v1589_v33  ;;  %v1819_v29 = vadd.f32 %v3360_v59, %v1818_v46 }
 0x469   : > { %v2295_v24 = vpop.eup %2294  ;;  %v1592_v50 = vpop.f32.mrf.mxu1 }
 0x46a   : > { %v1740_v6 = vpack.c.bf16 %v1679_v36, %v1677_v7  ;;  %v1898_v14 = vadd.f32 %v2332_v56, %v1819_v29  ;;  %v1380_v22 = vpop.xlane.xlu0 %1379  ;;  %v1484_v0 = vmul.f32 %v2295_v24, %v3248_v25  ;;  %v1485_v20 = vmul.f32 %v2295_v24, %v3250_v60 }
 0x46b   : > { %2296 = vrcp.f32 %v1380_v22  ;;  %v2335_v22 = vld [vmem:[%s2442_s16 + $0x18] sm:$0xff] }
 0x46c   : > { %1930 = vst.msk [vmem:[%s3368_s15] sm:$0xff] %vm387_vm1, %v1898_v14  ;;  %2110 = vmatmul.msk.bf16.gmra.mxu3 %vm755_vm2, %v1740_v6  ;;  %v1528_v10 = vpack.c.bf16 %v1484_v0, %v1482_v62  ;;  %v1529_v44 = vpack.c.bf16 %v1485_v20, %v1483_v61 }
 0x46e   : > { %1611 = vmatmul.bf16.gmra.mxu1 %v1528_v10  ;;  %1700 = vmatmul.bf16.gmra.mxu2 %v1529_v44 }
 0x46f   : > { %v1681_v15 = vpop.f32.mrf.mxu2  ;;  %v1820_v31 = vpop.f32.mrf.mxu0 }
 0x470   : > { %v1821_v5 = vadd.f32 %v3360_v59, %v1820_v31  ;;  %v1682_v4 = vadd.f32 %v1681_v15, %v1592_v50 }
 0x471   : > { %v1594_v17 = vpop.f32.mrf.mxu1  ;;  %v2297_v27 = vpop.eup %2296 }
 0x472   : > { %v1899_v16 = vadd.f32 %v2333_v21, %v1821_v5  ;;  %v1383_v25 = vpop.xlane.xlu1 %1382  ;;  %v1119_v47 = vpop.xlane.xlu0 %1118 }
 0x473   : > { %2298 = vrcp.f32 %v1383_v25  ;;  %v1184_v60 = vsub.f32 %v3260_v40, %v1119_v47  ;;  %v1185_v1 = vsub.f32 %v3264_v54, %v1119_v47  ;;  %v1486_v40 = vmul.f32 %v2297_v27, %v3256_v48 }
 0x474   : > { %1931 = vst.msk [vmem:[%s3368_s15 + $0x8] sm:$0xff] %vm387_vm1, %v1899_v16  ;;  %v1487_v54 = vmul.f32 %v2297_v27, %v3258_v58 }
 0x475   : > { %v1306_v12 = vmul.f32 1.442695, %v1184_v60  ;;  %v1308_v45 = vmul.f32 1.442695, %v1185_v1 }
 0x477   : > { %2300 = vpow2.f32 %v1306_v12  ;;  %v1683_v30 = vpop.f32.mrf.mxu2  ;;  %v1823_v19 = vpop.f32.mrf.mxu0 }
 0x478   : > { %2302 = vpow2.f32 %v1308_v45  ;;  %v1684_v8 = vadd.f32 %v1683_v30, %v1594_v17  ;;  %v1824_v34 = vadd.f32 %v3360_v59, %v1823_v19 }
 0x479   : > { %v2299_v28 = vpop.eup %2298  ;;  %v1597_v33 = vpop.f32.mrf.mxu1 }
 0x47a   : > { %v1741_v57 = vpack.c.bf16 %v1684_v8, %v1682_v4  ;;  %v1900_v23 = vadd.f32 %v2334_v3, %v1824_v34  ;;  %v1386_v46 = vpop.xlane.xlu1 %1385  ;;  %v1122_v7 = vpop.xlane.xlu0 %1121  ;;  %v1488_v36 = vmul.f32 %v2299_v28, %v3273_v11  ;;  %v1489_v29 = vmul.f32 %v2299_v28, %v3275_v42 }
 0x47b   : > { %v1186_v24 = vsub.f32 %v3281_v39, %v1122_v7  ;;  %v1187_v50 = vsub.f32 %v3283_v55, %v1122_v7  ;;  %2304 = vrcp.f32 %v1386_v46 }
 0x47c   : > { %1932 = vst.msk [vmem:[%s3368_s15 + $0x10] sm:$0xff] %vm387_vm1, %v1900_v23  ;;  %2111 = vmatmul.msk.bf16.gmra.mxu3 %vm755_vm2, %v1741_v57  ;;  %v1530_v48 = vpack.c.bf16 %v1488_v36, %v1486_v40  ;;  %v1531_v62 = vpack.c.bf16 %v1489_v29, %v1487_v54 }
 0x47d   : > { %v3395_v58 = vpop.eup %2300  ;;  %v1310_v61 = vmul.f32 1.442695, %v1186_v24  ;;  %v1312_v6 = vmul.f32 1.442695, %v1187_v50  ;;  %v2337_v24 = vld [vmem:[%s2442_s16 + $0x28] sm:$0xff] }
 0x47e   : > { %v3397_v56 = vpop.eup %2302  ;;  %1616 = vmatmul.bf16.gmra.mxu1 %v1530_v48  ;;  %1705 = vmatmul.bf16.gmra.mxu2 %v1531_v62 }
 0x47f   : > { %2306 = vpow2.f32 %v1310_v61  ;;  %v1405_v11 = vadd.f32 %v3397_v56, %v3395_v58  ;;  %v1686_v42 = vpop.f32.mrf.mxu2  ;;  %v1825_v39 = vpop.f32.mrf.mxu0 }
 0x480   : > { %2308 = vpow2.f32 %v1312_v6  ;;  %v1826_v55 = vadd.f32 %v3360_v59, %v1825_v39  ;;  %v1687_v60 = vadd.f32 %v1686_v42, %v1597_v33 }
 0x481   : > { %1406 = vadd.xlane.f32.xlu1 %v1405_v11  ;;  %v1599_v14 = vpop.f32.mrf.mxu1  ;;  %v2305_v31 = vpop.eup %2304 }
 0x482   : > { %v1901_v0 = vadd.f32 %v2335_v22, %v1826_v55  ;;  %v1389_v20 = vpop.xlane.xlu2 %1388  ;;  %v1125_v10 = vpop.xlane.xlu1 %1124  ;;  %v1490_v12 = vmul.f32 %v2305_v31, %v3287_v9  ;;  %v1491_v30 = vmul.f32 %v2305_v31, %v3289_v26 }
 0x483   : > { %2310 = vrcp.f32 %v1389_v20  ;;  %v1188_v44 = vsub.f32 %v3301_v52, %v1125_v10  ;;  %v1189_v15 = vsub.f32 %v3303_v53, %v1125_v10 }
 0x484   : > { %1933 = vst.msk [vmem:[%s3368_s15 + $0x18] sm:$0xff] %vm387_vm1, %v1901_v0 }
 0x485   : > { %v3407_v5 = vpop.eup %2306  ;;  %v1314_v17 = vmul.f32 1.442695, %v1188_v44  ;;  %v1316_v21 = vmul.f32 1.442695, %v1189_v15 }
 0x486   : > { %v3409_v16 = vpop.eup %2308 }
 0x487   : > { %2312 = vpow2.f32 %v1314_v17  ;;  %v1408_v25 = vadd.f32 %v3409_v16, %v3407_v5  ;;  %v1688_v47 = vpop.f32.mrf.mxu2 }
 0x488   : > { %2314 = vpow2.f32 %v1316_v21  ;;  %v1689_v1 = vadd.f32 %v1688_v47, %v1599_v14  ;;  %v2339_v47 = vld [vmem:[%s2442_s16 + $0x38] sm:$0xff] }
 0x489   : > { %v2311_v52 = vpop.eup %2310  ;;  %1409 = vadd.xlane.f32.xlu2 %v1408_v25  ;;  %v1602_v53 = vpop.f32.mrf.mxu1 }
 0x48a   : > { %v1742_v45 = vpack.c.bf16 %v1689_v1, %v1687_v60  ;;  %v1492_v27 = vmul.f32 %v2311_v52, %v3306_v51  ;;  %v1493_v19 = vmul.f32 %v2311_v52, %v3308_v41  ;;  %v1392_v28 = vpop.xlane.xlu2 %1391  ;;  %v2336_v41 = vld [vmem:[%s2442_s16 + $0x20] sm:$0xff] }
 0x48b   : > { %2316 = vrcp.f32 %v1392_v28 }
 0x48c   : > { %2112 = vmatmul.msk.bf16.gmra.mxu3 %vm755_vm2, %v1742_v45  ;;  %v1532_v4 = vpack.c.bf16 %v1492_v27, %v1490_v12  ;;  %v1533_v8 = vpack.c.bf16 %v1493_v19, %v1491_v30 }
 0x48d   : > { %v3418_v34 = vpop.eup %2312  ;;  %v1828_v33 = vpop.f32.mrf.mxu3 }
 0x48e   : > { %v3420_v40 = vpop.eup %2314  ;;  %1621 = vmatmul.bf16.gmra.mxu1 %v1532_v4  ;;  %1710 = vmatmul.bf16.gmra.mxu2 %v1533_v8  ;;  %v1829_v9 = vadd.f32 %v3360_v59, %v1828_v33 }
 0x48f   : > { %v1411_v26 = vadd.f32 %v3420_v40, %v3418_v34  ;;  %v1691_v51 = vpop.f32.mrf.mxu2 }
 0x490   : > { %v1902_v54 = vadd.f32 %v2336_v41, %v1829_v9  ;;  %v1692_v29 = vadd.f32 %v1691_v51, %v1602_v53 }
 0x491   : > { %1412 = vadd.xlane.f32.xlu0 %v1411_v26  ;;  %v1604_v3 = vpop.f32.mrf.mxu1  ;;  %v2317_v46 = vpop.eup %2316 }
 0x492   : > { %1934 = vst.msk [vmem:[%s3368_s15 + $0x20] sm:$0xff] %vm387_vm1, %v1902_v54  ;;  %v1395_v57 = vpop.xlane.xlu0 %1394  ;;  %v1494_v61 = vmul.f32 %v2317_v46, %v3316_v18  ;;  %v1495_v42 = vmul.f32 %v2317_v46, %v3318_v35 }
 0x493   : > { %2318 = vrcp.f32 %v1395_v57 }
 0x495   : > { %v1830_v23 = vpop.f32.mrf.mxu3 }
 0x496   : > { %v1831_v7 = vadd.f32 %v3360_v59, %v1830_v23  ;;  %v2341_v23 = vld [vmem:[%s2442_s16 + $0x48] sm:$0xff] }
 0x497   : > { %v1693_v36 = vpop.f32.mrf.mxu2 }
 0x498   : > { %v1903_v50 = vadd.f32 %v2337_v24, %v1831_v7  ;;  %v1694_v48 = vadd.f32 %v1693_v36, %v1604_v3 }
 0x499   : > { %v2319_v62 = vpop.eup %2318  ;;  %v1607_v55 = vpop.f32.mrf.mxu1 }
 0x49a   : > { %1935 = vst.msk [vmem:[%s3368_s15 + $0x28] sm:$0xff] %vm387_vm1, %v1903_v50  ;;  %v1743_v6 = vpack.c.bf16 %v1694_v48, %v1692_v29  ;;  %v1496_v11 = vmul.f32 %v2319_v62, %v3329_v49  ;;  %v1497_v39 = vmul.f32 %v2319_v62, %v3331_v2  ;;  %v1398_v0 = vpop.xlane.xlu1 %1397  ;;  %v2338_v49 = vld [vmem:[%s2442_s16 + $0x30] sm:$0xff] }
 0x49b   : > { %2320 = vrcp.f32 %v1398_v0 }
 0x49c   : > { %2113 = vmatmul.msk.bf16.gmra.mxu3 %vm755_vm2, %v1743_v6  ;;  %v1534_v14 = vpack.c.bf16 %v1496_v11, %v1494_v61  ;;  %v1535_v22 = vpack.c.bf16 %v1497_v39, %v1495_v42 }
 0x49d   : > { %v1833_v20 = vpop.f32.mrf.mxu3 }
 0x49e   : > { %1626 = vmatmul.bf16.gmra.mxu1 %v1534_v14  ;;  %1715 = vmatmul.bf16.gmra.mxu2 %v1535_v22  ;;  %v1834_v18 = vadd.f32 %v3360_v59, %v1833_v20  ;;  %v2342_v14 = vld [vmem:[%s2442_s16 + $0x50] sm:$0xff] }
 0x49f   : > { %v1696_v10 = vpop.f32.mrf.mxu2 }
 0x4a0   : > { %v1904_v44 = vadd.f32 %v2338_v49, %v1834_v18  ;;  %v1697_v25 = vadd.f32 %v1696_v10, %v1607_v55  ;;  %v2343_v49 = vld [vmem:[%s2442_s16 + $0x58] sm:$0xff] }
 0x4a1   : > { %v2321_v15 = vpop.eup %2320  ;;  %v1609_v17 = vpop.f32.mrf.mxu1 }
 0x4a2   : > { %1936 = vst.msk [vmem:[%s3368_s15 + $0x30] sm:$0xff] %vm387_vm1, %v1904_v44  ;;  %v1401_v35 = vpop.xlane.xlu2 %1400  ;;  %v1498_v53 = vmul.f32 %v2321_v15, %v3337_v38  ;;  %v1499_v27 = vmul.f32 %v2321_v15, %v3339_v32 }
 0x4a3   : > { %2322 = vrcp.f32 %v1401_v35 }
 0x4a5   : > { %v1835_v2 = vpop.f32.mrf.mxu3 }
 0x4a6   : > { %v1836_v31 = vadd.f32 %v3360_v59, %v1835_v2 }
 0x4a7   : > { %v1698_v21 = vpop.f32.mrf.mxu2 }
 0x4a8   : > { %v1905_v60 = vadd.f32 %v2339_v47, %v1836_v31  ;;  %v1699_v1 = vadd.f32 %v1698_v21, %v1609_v17 }
 0x4a9   : > { %v2323_v52 = vpop.eup %2322 }
 0x4aa   : > { %1937 = vst.msk [vmem:[%s3368_s15 + $0x38] sm:$0xff] %vm387_vm1, %v1905_v60  ;;  %v1744_v12 = vpack.c.bf16 %v1699_v1, %v1697_v25  ;;  %v1500_v45 = vmul.f32 %v2323_v52, %v3345_v63  ;;  %v1501_v30 = vmul.f32 %v2323_v52, %v3347_v37  ;;  %v1404_v28 = vpop.xlane.xlu0 %1403  ;;  %v2340_v63 = vld [vmem:[%s2442_s16 + $0x40] sm:$0xff] }
 0x4ab   : > { %2324 = vrcp.f32 %v1404_v28 }
 0x4ac   : > { %2114 = vmatmul.msk.bf16.gmra.mxu3 %vm755_vm2, %v1744_v12  ;;  %v1536_v19 = vpack.c.bf16 %v1500_v45, %v1498_v53  ;;  %v1537_v4 = vpack.c.bf16 %v1501_v30, %v1499_v27  ;;  %v2344_v12 = vld [vmem:[%s2442_s16 + $0x60] sm:$0xff] }
 0x4ae   : > { %1631 = vmatmul.bf16.gmra.mxu1 %v1536_v19  ;;  %1720 = vmatmul.bf16.gmra.mxu2 %v1537_v4  ;;  %v2345_v19 = vld [vmem:[%s2442_s16 + $0x68] sm:$0xff] }
 0x4b1   : > { %v2325_v41 = vpop.eup %2324 }
 0x4b2   : > { %v1502_v24 = vmul.f32 %v2325_v41, %v3351_v43  ;;  %v1503_v62 = vmul.f32 %v2325_v41, %v3353_v13 }
 0x4eb   : > { %v1612_v8 = vpop.f32.mrf.mxu1 }
 0x4ef   : > { %v1838_v38 = vpop.f32.mrf.mxu3 }
 0x4f0   : > { %v1839_v33 = vadd.f32 %v3360_v59, %v1838_v38 }
 0x4f1   : > { %v1701_v9 = vpop.f32.mrf.mxu2 }
 0x4f2   : > { %v1906_v26 = vadd.f32 %v2340_v63, %v1839_v33  ;;  %v1702_v3 = vadd.f32 %v1701_v9, %v1612_v8 }
 0x4f3   : > { %v1614_v32 = vpop.f32.mrf.mxu1 }
 0x4f4   : > { %1938 = vst.msk [vmem:[%s3368_s15 + $0x40] sm:$0xff] %vm387_vm1, %v1906_v26  ;;  %v1407_v37 = vpop.xlane.xlu1 %1406  ;;  %v2346_v26 = vld [vmem:[%s2442_s16 + $0x70] sm:$0xff] }
 0x4f5   : > { %2326 = vrcp.f32 %v1407_v37 }
 0x4f7   : > { %v1840_v51 = vpop.f32.mrf.mxu3 }
 0x4f8   : > { %v1841_v54 = vadd.f32 %v3360_v59, %v1840_v51 }
 0x4f9   : > { %v1703_v57 = vpop.f32.mrf.mxu2 }
 0x4fa   : > { %v1907_v46 = vadd.f32 %v2341_v23, %v1841_v54  ;;  %v1704_v7 = vadd.f32 %v1703_v57, %v1614_v32 }
 0x4fb   : > { %v2327_v36 = vpop.eup %2326  ;;  %v1617_v29 = vpop.f32.mrf.mxu1 }
 0x4fc   : > { %1939 = vst.msk [vmem:[%s3368_s15 + $0x48] sm:$0xff] %vm387_vm1, %v1907_v46  ;;  %v1745_v50 = vpack.c.bf16 %v1704_v7, %v1702_v3  ;;  %v1504_v48 = vmul.f32 %v2327_v36, %v3395_v58  ;;  %v1505_v61 = vmul.f32 %v2327_v36, %v3397_v56  ;;  %v1410_v42 = vpop.xlane.xlu2 %1409  ;;  %v2347_v3 = vld [vmem:[%s2442_s16 + $0x78] sm:$0xff] }
 0x4fd   : > { %2328 = vrcp.f32 %v1410_v42 }
 0x4fe   : > { %2115 = vmatmul.msk.bf16.gmra.mxu3 %vm755_vm2, %v1745_v50  ;;  %v1538_v6 = vpack.c.bf16 %v1504_v48, %v1502_v24  ;;  %v1539_v11 = vpack.c.bf16 %v1505_v61, %v1503_v62  ;;  %v2348_v48 = vld [vmem:[%s2442_s16 + $0x80] sm:$0xff] }
 0x4ff   : > { %v1843_v39 = vpop.f32.mrf.mxu3 }
 0x500   : > { %1636 = vmatmul.bf16.gmra.mxu1 %v1538_v6  ;;  %1725 = vmatmul.bf16.gmra.mxu2 %v1539_v11  ;;  %v1844_v43 = vadd.f32 %v3360_v59, %v1843_v39 }
 0x501   : > { %v1706_v55 = vpop.f32.mrf.mxu2 }
 0x502   : > { %v1908_v58 = vadd.f32 %v2342_v14, %v1844_v43  ;;  %v1707_v10 = vadd.f32 %v1706_v55, %v1617_v29  ;;  %v2349_v43 = vld [vmem:[%s2442_s16 + $0x88] sm:$0xff] }
 0x503   : > { %v1619_v22 = vpop.f32.mrf.mxu1  ;;  %v2329_v0 = vpop.eup %2328 }
 0x504   : > { %1940 = vst.msk [vmem:[%s3368_s15 + $0x50] sm:$0xff] %vm387_vm1, %v1908_v58  ;;  %v1413_v13 = vpop.xlane.xlu0 %1412  ;;  %v1506_v31 = vmul.f32 %v2329_v0, %v3407_v5  ;;  %v1507_v25 = vmul.f32 %v2329_v0, %v3409_v16 }
 0x505   : > { %2330 = vrcp.f32 %v1413_v13 }
 0x507   : > { %v1845_v56 = vpop.f32.mrf.mxu3 }
 0x508   : > { %v1846_v20 = vadd.f32 %v3360_v59, %v1845_v56 }
 0x509   : > { %v1708_v18 = vpop.f32.mrf.mxu2 }
 0x50a   : > { %v1909_v44 = vadd.f32 %v2343_v49, %v1846_v20  ;;  %v1709_v35 = vadd.f32 %v1708_v18, %v1619_v22  ;;  %v2350_v20 = vld [vmem:[%s2442_s16 + $0x90] sm:$0xff] }
 0x50b   : > { %v2331_v2 = vpop.eup %2330  ;;  %v1622_v15 = vpop.f32.mrf.mxu1 }
 0x50c   : > { %1941 = vst.msk [vmem:[%s3368_s15 + $0x58] sm:$0xff] %vm387_vm1, %v1909_v44  ;;  %v1746_v17 = vpack.c.bf16 %v1709_v35, %v1707_v10  ;;  %v1508_v21 = vmul.f32 %v2331_v2, %v3418_v34  ;;  %v1509_v47 = vmul.f32 %v2331_v2, %v3420_v40 }
 0x50e   : > { %2116 = vmatmul.msk.bf16.gmra.mxu3 %vm755_vm2, %v1746_v17  ;;  %v1540_v60 = vpack.c.bf16 %v1508_v21, %v1506_v31  ;;  %v1541_v1 = vpack.c.bf16 %v1509_v47, %v1507_v25 }
 0x50f   : > { %v1848_v52 = vpop.f32.mrf.mxu3 }
 0x510   : > { %1641 = vmatmul.bf16.gmra.mxu1 %v1540_v60  ;;  %1730 = vmatmul.bf16.gmra.mxu2 %v1541_v1  ;;  %v1849_v5 = vadd.f32 %v3360_v59, %v1848_v52  ;;  %v2352_v52 = vld [vmem:[%s2442_s16 + $0xa0] sm:$0xff] }
 0x511   : > { %v1711_v53 = vpop.f32.mrf.mxu2 }
 0x512   : > { %v1910_v45 = vadd.f32 %v2344_v12, %v1849_v5  ;;  %v1712_v30 = vadd.f32 %v1711_v53, %v1622_v15  ;;  %v2351_v15 = vld [vmem:[%s2442_s16 + $0x98] sm:$0xff] }
 0x513   : > { %v1624_v27 = vpop.f32.mrf.mxu1 }
 0x514   : > { %1942 = vst.msk [vmem:[%s3368_s15 + $0x60] sm:$0xff] %vm387_vm1, %v1910_v45 }
 0x517   : > { %v1850_v16 = vpop.f32.mrf.mxu3 }
 0x518   : > { %v1851_v34 = vadd.f32 %v3360_v59, %v1850_v16 }
 0x519   : > { %v1713_v40 = vpop.f32.mrf.mxu2 }
 0x51a   : > { %v1911_v4 = vadd.f32 %v2345_v19, %v1851_v34  ;;  %v1714_v8 = vadd.f32 %v1713_v40, %v1624_v27  ;;  %v2353_v34 = vld [vmem:[%s2442_s16 + $0xa8] sm:$0xff] }
 0x51b   : > { %v1627_v28 = vpop.f32.mrf.mxu1 }
 0x51c   : > { %1943 = vst.msk [vmem:[%s3368_s15 + $0x68] sm:$0xff] %vm387_vm1, %v1911_v4  ;;  %v1747_v38 = vpack.c.bf16 %v1714_v8, %v1712_v30 }
 0x51e   : > { %2117 = vmatmul.msk.bf16.gmra.mxu3 %vm755_vm2, %v1747_v38 }
 0x51f   : > { %v1853_v33 = vpop.f32.mrf.mxu3 }
 0x520   : > { %v1854_v9 = vadd.f32 %v3360_v59, %v1853_v33 }
 0x521   : > { %v1716_v63 = vpop.f32.mrf.mxu2 }
 0x522   : > { %v1912_v32 = vadd.f32 %v2346_v26, %v1854_v9  ;;  %v1717_v57 = vadd.f32 %v1716_v63, %v1627_v28  ;;  %v2354_v28 = vld [vmem:[%s2442_s16 + $0xb0] sm:$0xff]  ;;  %v2355_v63 = vld [vmem:[%s2442_s16 + $0xb8] sm:$0xff] }
 0x523   : > { %v1629_v37 = vpop.f32.mrf.mxu1 }
 0x524   : > { %1944 = vst.msk [vmem:[%s3368_s15 + $0x70] sm:$0xff] %vm387_vm1, %v1912_v32 }
 0x527   : > { %v1855_v51 = vpop.f32.mrf.mxu3 }
 0x528   : > { %v1856_v41 = vadd.f32 %v3360_v59, %v1855_v51  ;;  %v2356_v51 = vld [vmem:[%s2442_s16 + $0xc0] sm:$0xff] }
 0x529   : > { %v1718_v54 = vpop.f32.mrf.mxu2 }
 0x52a   : > { %v1913_v23 = vadd.f32 %v2347_v3, %v1856_v41  ;;  %v1719_v46 = vadd.f32 %v1718_v54, %v1629_v37  ;;  %v2357_v3 = vld [vmem:[%s2442_s16 + $0xc8] sm:$0xff] }
 0x52b   : > { %v1632_v36 = vpop.f32.mrf.mxu1 }
 0x52c   : > { %1945 = vst.msk [vmem:[%s3368_s15 + $0x78] sm:$0xff] %vm387_vm1, %v1913_v23  ;;  %v1748_v7 = vpack.c.bf16 %v1719_v46, %v1717_v57 }
 0x52e   : > { %2118 = vmatmul.msk.bf16.gmra.mxu3 %vm755_vm2, %v1748_v7 }
 0x52f   : > { %v1858_v29 = vpop.f32.mrf.mxu3 }
 0x530   : > { %v1859_v24 = vadd.f32 %v3360_v59, %v1858_v29 }
 0x531   : > { %v1721_v50 = vpop.f32.mrf.mxu2 }
 0x532   : > { %v1914_v62 = vadd.f32 %v2348_v48, %v1859_v24  ;;  %v1722_v39 = vadd.f32 %v1721_v50, %v1632_v36  ;;  %v2358_v36 = vld [vmem:[%s2442_s16 + $0xd0] sm:$0xff]  ;;  %v2359_v48 = vld [vmem:[%s2442_s16 + $0xd8] sm:$0xff] }
 0x533   : > { %v1634_v11 = vpop.f32.mrf.mxu1 }
 0x534   : > { %1946 = vst.msk [vmem:[%s3368_s15 + $0x80] sm:$0xff] %vm387_vm1, %v1914_v62 }
 0x537   : > { %v1860_v61 = vpop.f32.mrf.mxu3 }
 0x538   : > { %v1861_v6 = vadd.f32 %v3360_v59, %v1860_v61 }
 0x539   : > { %v1723_v42 = vpop.f32.mrf.mxu2 }
 0x53a   : > { %v1915_v55 = vadd.f32 %v2349_v43, %v1861_v6  ;;  %v1724_v14 = vadd.f32 %v1723_v42, %v1634_v11  ;;  %v2360_v11 = vld [vmem:[%s2442_s16 + $0xe0] sm:$0xff] }
 0x53c   : > { %1947 = vst.msk [vmem:[%s3368_s15 + $0x88] sm:$0xff] %vm387_vm1, %v1915_v55  ;;  %v1749_v58 = vpack.c.bf16 %v1724_v14, %v1722_v39  ;;  %v2361_v55 = vld [vmem:[%s2442_s16 + $0xe8] sm:$0xff] }
 0x53e   : > { %2119 = vmatmul.msk.bf16.gmra.mxu3 %vm755_vm2, %v1749_v58 }
 0x57d   : > { %v1637_v22 = vpop.f32.mrf.mxu1 }
 0x581   : > { %v1863_v13 = vpop.f32.mrf.mxu3 }
 0x582   : > { %v1864_v56 = vadd.f32 %v3360_v59, %v1863_v13  ;;  %v2362_v13 = vld [vmem:[%s2442_s16 + $0xf0] sm:$0xff] }
 0x583   : > { %v1726_v0 = vpop.f32.mrf.mxu2 }
 0x584   : > { %v1916_v18 = vadd.f32 %v2350_v20, %v1864_v56  ;;  %v1727_v2 = vadd.f32 %v1726_v0, %v1637_v22 }
 0x585   : > { %v1639_v10 = vpop.f32.mrf.mxu1 }
 0x586   : > { %1948 = vst.msk [vmem:[%s3368_s15 + $0x90] sm:$0xff] %vm387_vm1, %v1916_v18  ;;  %v2363_v18 = vld [vmem:[%s2442_s16 + $0xf8] sm:$0xff] }
 0x589   : > { %v1865_v49 = vpop.f32.mrf.mxu3 }
 0x58a   : > { %v1866_v44 = vadd.f32 %v3360_v59, %v1865_v49 }
 0x58b   : > { %v1728_v35 = vpop.f32.mrf.mxu2 }
 0x58c   : > { %v1917_v31 = vadd.f32 %v2351_v15, %v1866_v44  ;;  %v1729_v17 = vadd.f32 %v1728_v35, %v1639_v10 }
 0x58d   : > { %v1642_v25 = vpop.f32.mrf.mxu1 }
 0x58e   : > { %1949 = vst.msk [vmem:[%s3368_s15 + $0x98] sm:$0xff] %vm387_vm1, %v1917_v31  ;;  %v1750_v21 = vpack.c.bf16 %v1729_v17, %v1727_v2 }
 0x590   : > { %2120 = vmatmul.msk.bf16.gmra.mxu3 %vm755_vm2, %v1750_v21 }
 0x591   : > { %v1868_v47 = vpop.f32.mrf.mxu3 }
 0x592   : > { %v1869_v60 = vadd.f32 %v3360_v59, %v1868_v47 }
 0x593   : > { %v1731_v1 = vpop.f32.mrf.mxu2 }
 0x594   : > { %v1918_v5 = vadd.f32 %v2352_v52, %v1869_v60  ;;  %v1732_v16 = vadd.f32 %v1731_v1, %v1642_v25 }
 0x595   : > { %v1644_v45 = vpop.f32.mrf.mxu1 }
 0x596   : > { %1950 = vst.msk [vmem:[%s3368_s15 + $0xa0] sm:$0xff] %vm387_vm1, %v1918_v5 }
 0x599   : > { %v1870_v53 = vpop.f32.mrf.mxu3 }
 0x59a   : > { %v1871_v12 = vadd.f32 %v3360_v59, %v1870_v53 }
 0x59b   : > { %v1733_v27 = vpop.f32.mrf.mxu2 }
 0x59c   : > { %v1919_v40 = vadd.f32 %v2353_v34, %v1871_v12  ;;  %v1734_v30 = vadd.f32 %v1733_v27, %v1644_v45 }
 0x59e   : > { %1951 = vst.msk [vmem:[%s3368_s15 + $0xa8] sm:$0xff] %vm387_vm1, %v1919_v40  ;;  %v1751_v19 = vpack.c.bf16 %v1734_v30, %v1732_v16 }
 0x5a0   : > { %2121 = vmatmul.msk.bf16.gmra.mxu3 %vm755_vm2, %v1751_v19 }
 0x5a1   : > { %v1873_v4 = vpop.f32.mrf.mxu3 }
 0x5a2   : > { %v1874_v8 = vadd.f32 %v3360_v59, %v1873_v4 }
 0x5a4   : > { %v1920_v38 = vadd.f32 %v2354_v28, %v1874_v8 }
 0x5a6   : > { %1952 = vst.msk [vmem:[%s3368_s15 + $0xb0] sm:$0xff] %vm387_vm1, %v1920_v38 }
 0x5a9   : > { %v1875_v33 = vpop.f32.mrf.mxu3 }
 0x5aa   : > { %v1876_v9 = vadd.f32 %v3360_v59, %v1875_v33 }
 0x5ac   : > { %v1921_v26 = vadd.f32 %v2355_v63, %v1876_v9 }
 0x5ae   : > { %1953 = vst.msk [vmem:[%s3368_s15 + $0xb8] sm:$0xff] %vm387_vm1, %v1921_v26 }
 0x5b1   : > { %v1878_v32 = vpop.f32.mrf.mxu3 }
 0x5b2   : > { %v1879_v37 = vadd.f32 %v3360_v59, %v1878_v32 }
 0x5b4   : > { %v1922_v41 = vadd.f32 %v2356_v51, %v1879_v37 }
 0x5b6   : > { %1954 = vst.msk [vmem:[%s3368_s15 + $0xc0] sm:$0xff] %vm387_vm1, %v1922_v41 }
 0x5b9   : > { %v1880_v54 = vpop.f32.mrf.mxu3 }
 0x5ba   : > { %v1881_v57 = vadd.f32 %v3360_v59, %v1880_v54 }
 0x5bc   : > { %v1923_v23 = vadd.f32 %v2357_v3, %v1881_v57 }
 0x5be   : > { %1955 = vst.msk [vmem:[%s3368_s15 + $0xc8] sm:$0xff] %vm387_vm1, %v1923_v23 }
 0x5c1   : > { %v1883_v46 = vpop.f32.mrf.mxu3 }
 0x5c2   : > { %v1884_v7 = vadd.f32 %v3360_v59, %v1883_v46 }
 0x5c4   : > { %v1924_v29 = vadd.f32 %v2358_v36, %v1884_v7 }
 0x5c6   : > { %1956 = vst.msk [vmem:[%s3368_s15 + $0xd0] sm:$0xff] %vm387_vm1, %v1924_v29 }
 0x5c9   : > { %v1885_v24 = vpop.f32.mrf.mxu3 }
 0x5ca   : > { %v1886_v50 = vadd.f32 %v3360_v59, %v1885_v24 }
 0x5cc   : > { %v1925_v62 = vadd.f32 %v2359_v48, %v1886_v50 }
 0x5ce   : > { %1957 = vst.msk [vmem:[%s3368_s15 + $0xd8] sm:$0xff] %vm387_vm1, %v1925_v62 }
 0x613   : > { %v1888_v61 = vpop.f32.mrf.mxu3 }
 0x614   : > { %v1889_v6 = vadd.f32 %v3360_v59, %v1888_v61 }
 0x616   : > { %v1926_v42 = vadd.f32 %v2360_v11, %v1889_v6 }
 0x618   : > { %1958 = vst.msk [vmem:[%s3368_s15 + $0xe0] sm:$0xff] %vm387_vm1, %v1926_v42 }
 0x61b   : > { %v1890_v39 = vpop.f32.mrf.mxu3 }
 0x61c   : > { %v1891_v43 = vadd.f32 %v3360_v59, %v1890_v39 }
 0x61e   : > { %v1927_v14 = vadd.f32 %v2361_v55, %v1891_v43 }
 0x620   : > { %1959 = vst.msk [vmem:[%s3368_s15 + $0xe8] sm:$0xff] %vm387_vm1, %v1927_v14 }
 0x623   : > { %v1893_v58 = vpop.f32.mrf.mxu3 }
 0x624   : > { %v1894_v22 = vadd.f32 %v3360_v59, %v1893_v58 }
 0x626   : > { %v1928_v56 = vadd.f32 %v2362_v13, %v1894_v22 }
 0x628   : > { %1960 = vst.msk [vmem:[%s3368_s15 + $0xf0] sm:$0xff] %vm387_vm1, %v1928_v56 }
 0x62b   : > { %v1895_v0 = vpop.f32.mrf.mxu3 }
 0x62c   : > { %v1896_v20 = vadd.f32 %v3360_v59, %v1895_v0 }
 0x62e   : > { %v1929_v10 = vadd.f32 %v2363_v18, %v1896_v20 }
 0x630   : > { %1961 = vst.msk [vmem:[%s3368_s15 + $0xf8] sm:$0xff] %vm387_vm1, %v1929_v10 }
 0x631 PF: > { %s19_s30 = sadd.s32 1, %s2370_s30  }
 0x632   : > { %p16_p4 = scmp.ge.s32.totalorder %s19_s30, 4  }
 0x634   :  { %18 = sbr.rel (!%p16_p4) target bundleno = 1 (0x1), region = 86 }

// kernel: nl_res_group_forward.3
= control target key start
LH: loop header
LB: loop body
LE: loop exit
PB: predicated region body
PF: predicated region fallthrough
CT: control target
= control target key end

     0   :  { %10 = vsyncpa [#allocation4], 0  ;;  %s3646_s15 = smov 0   ;;  %s3801_s0 = inlined_call_operand.vmem [shape: f32[2,16,128], index: 0, kind: input, shape index: {}]   ;;  %s3802_s1 = inlined_call_operand.hbm [shape: bf16[6,3,144,128], index: 1, kind: input, shape index: {}]   ;;  %s3803_s2 = inlined_call_operand.vmem [shape: f32[6,1,128], index: 2, kind: input, shape index: {}]   ;;  %s3804_s3 = inlined_call_operand.vmem [shape: f32[2,16,128], index: 3, kind: output, shape index: {0}]   ;;  %s3805_s4 = inlined_call_operand.vmem [shape: f32[2,16,128], index: 4, kind: output, shape index: {1}]  }
   0x1 LB: > { %s152_s18 = sshll.u32 %s3802_s1, 4  ;;  %s3655_s19 = sadd.s32 4294967295, %s3615_s15   ;;  %s3615_s15 = sphi %s3646_s15, %s16_s15   ;;  %s153_s18 = int_to_ptr.hbm [resolvable:$true] %s152_s18 }
   0x2   : > { %p2698_p0 = scmp.ge.s32.totalorder %s3615_s15, 1  ;;  %p141_p1 = scmp.lt.s32.totalorder %s3615_s15, 3 }
   0x3   : > { %p3555_p2 = scmp.eq.s32.totalorder %s3655_s19, 0  ;;  %s3617_s20 = smov [#allocation3]  }
   0x4   : > { %p142_p3 = pnand %p2698_p0, %p141_p1  ;;  %s154_s21 = sshll.u32 %s3617_s20, 4  ;;  %s155_s21 = int_to_ptr.vmem [resolvable:$true] %s154_s21 }
   0x5   : > { %s3618_s22 = smov 64   ;;  %s3619_s23 = smov 4  }
   0x6   : > { %p3551_p4 = pneg %p142_p3  ;;  %181 = sbr.rel (%p142_p3) target bundleno = 1099 (0x44b), region = 32 }
   0x8   : > { %p3552_p5 = pnand %p3555_p2, %p3551_p4 }
   0xa   : > { %3554 = dma.hbm_to_vmem [thread:$0]  (!%p3552_p5), %s153_s18, 20736, %s155_s21, [#allocation4], %s3618_s22, %s3618_s22, %s3619_s23  }
   0xb   : > { %3610 = dma.done.wait (%p3555_p2), [#allocation4], 20736  }
   0xc   : > { %3612 = vsyncadd (%p3555_p2), [#allocation4], 4294946560  ;;  %vm230_vm0 = vcmask 130048   ;;  %v3620_v0 = vmov 0.0   ;;  %vm235_vm1 = vcmask 123904   ;;  %p213_p6 = scmp.lt.s32.totalorder %s3655_s19, 1 }
   0xd   : > { %229 = vst [vmem:[#allocation2] sm:$0xff] %v3620_v0  ;;  %v3401_v1 = vld [vmem:[#allocation3 + $0x80] sm:$0xff]  ;;  %v3402_v2 = vld [vmem:[#allocation3 + $0x88] sm:$0xff]  ;;  %v3392_v3 = vld [vmem:[#allocation3 + $0x38] sm:$0xff]  ;;  %vm302_vm2 = vsmask.f32 7424 }
   0xe   : > { %231 = vst.msk [vmem:[#allocation2 + $0x8] sm:$0xff] %vm230_vm0, %v3620_v0  ;;  %v3410_v4 = vld [vmem:[#allocation3 + $0xc8] sm:$0xff]  ;;  %s3807_s19 = smov (!%p213_p6, %s3655_s19), 1  ;;  %385 = vmatpush.bf16.msra.mxu0 %v3401_v1  ;;  %406 = vmatpush.bf16.msra.mxu1 %v3402_v2  ;;  %v3400_v5 = vld [vmem:[#allocation3 + $0x78] sm:$0xff]  ;;  %v3391_v6 = vld [vmem:[#allocation3 + $0x30] sm:$0xff]  ;;  %vm241_vm3 = vcmask 1040384  }
   0xf   : > { %233 = vst.msk [vmem:[#allocation2 + $0x18] sm:$0xff] %vm230_vm0, %v3620_v0  ;;  %v3393_v7 = vld [vmem:[#allocation3 + $0x40] sm:$0xff]  ;;  %470 = vmatpush.bf16.msra.mxu2 %v3392_v3  ;;  %s3670_s24 = sshll.u32 %s3807_s19, 4  ;;  %v3399_v15 = vld [vmem:[#allocation3 + $0x70] sm:$0xff]  ;;  %v3390_v17 = vld [vmem:[#allocation3 + $0x28] sm:$0xff]  ;;  %vm529_vm4 = vcmask 1046528  }
  0x10   : > { %234 = vst [vmem:[#allocation2 + $0x20] sm:$0x3] %v3620_v0  ;;  %v3409_v8 = vld [vmem:[#allocation3 + $0xc0] sm:$0xff]  ;;  %491 = vmatpush.bf16.msra.mxu3 %v3393_v7  ;;  %v3408_v18 = vld [vmem:[#allocation3 + $0xb8] sm:$0xff]  ;;  %v3411_v21 = vld [vmem:[#allocation3 + $0xd0] sm:$0xff]  ;;  %s217_s27 = scalar_lea.vmem %s3801_s0, %s3670_s24  ;;  %s222_s8 = scalar_lea.vmem %s3804_s3, %s3670_s24 }
  0x11   : > { %236 = vst.msk [vmem:[#allocation2 + $0x28] sm:$0x3] %vm235_vm1, %v3620_v0  ;;  %v3398_v23 = vld [vmem:[#allocation3 + $0x68] sm:$0xff]  ;;  %v3389_v24 = vld [vmem:[#allocation3 + $0x20] sm:$0xff]  ;;  %v3407_v26 = vld [vmem:[#allocation3 + $0xb0] sm:$0xff]  ;;  %s227_s20 = scalar_lea.vmem %s3805_s4, %s3670_s24 }
  0x12   : > { %594 = vmatpush.bf16.msrb.mxu1 %v3410_v4  ;;  %386 = vmatpush.bf16.msra.mxu0 %v3400_v5  ;;  %v3678_v31 = vld [vmem:[%s217_s27] sm:$0xff]  ;;  %v3680_v32 = vld [vmem:[%s217_s27 + $0x8] sm:$0xff]  ;;  %v3397_v38 = vld [vmem:[#allocation3 + $0x60] sm:$0xff] }
  0x13   : > { %471 = vmatpush.bf16.msra.mxu2 %v3391_v6  ;;  %v242_v33 = vrot.slane %v3678_v31, 7  ;;  %v243_v34 = vrot.slane %v3680_v32, 7  ;;  %v3388_v39 = vld [vmem:[#allocation3 + $0x18] sm:$0xff]  ;;  %v3406_v40 = vld [vmem:[#allocation3 + $0xa8] sm:$0xff]  ;;  %v3387_v44 = vld [vmem:[#allocation3 + $0x10] sm:$0xff] }
  0x14   : > { %615 = vmatpush.bf16.msrb.mxu3 %v3411_v21  ;;  %v3396_v43 = vld [vmem:[#allocation3 + $0x58] sm:$0xff]  ;;  %v3405_v45 = vld [vmem:[#allocation3 + $0xa0] sm:$0xff]  ;;  %v3395_v50 = vld [vmem:[#allocation3 + $0x50] sm:$0xff] }
  0x15   : > { %v252_v9 = vld [vmem:[#allocation2 + $0x8] sm:$0xff]  ;;  %248 = vst [vmem:[#allocation2] sm:$0xfe] %v242_v33  ;;  %v244_v46 = vsel %vm241_vm3, %v242_v33, %v243_v34  ;;  %v3386_v54 = vld [vmem:[#allocation3 + $0x8] sm:$0xff]  ;;  %v3385_v0 = vld [vmem:[#allocation3] sm:$0xff] }
  0x16   : > { %v3664_v10 = vld [vmem:[#allocation2 + $0x18] sm:$0xff]  ;;  %v276_v12 = vld [vmem:[#allocation2 + $0x8] sm:$0xfe]  ;;  %595 = vmatpush.bf16.msrb.mxu1 %v3409_v8  ;;  %387 = vmatpush.bf16.msra.mxu0 %v3399_v15  ;;  %250 = vst [vmem:[#allocation2 + $0x20] sm:$0x1] %v243_v34  ;;  %v3403_v1 = vld [vmem:[#allocation3 + $0x90] sm:$0xff] }
  0x17   : > { %v3667_v11 = vpack.c.bf16 %v3664_v10, %v252_v9  ;;  %v280_v13 = vpack.c.bf16 %v3664_v10, %v276_v12  ;;  %v499_v28 = vld [vmem:[#allocation2 + $0x8] sm:$0xfc]  ;;  %472 = vmatpush.bf16.msra.mxu2 %v3390_v17  ;;  %v3394_v62 = vld [vmem:[#allocation3 + $0x48] sm:$0xff]  ;;  %v3419_v12 = vld [vmem:[#allocation3 + $0x110] sm:$0xff] }
  0x18   : > { %v278_v14 = vld [vmem:[#allocation2 + $0x28] sm:$0x1]  ;;  %v503_v36 = vpack.c.bf16 %v3664_v10, %v499_v28  ;;  %v3437_v15 = vld [vmem:[#allocation3 + $0x1a0] sm:$0xff] }
  0x19   : > { %v282_v16 = vpack.c.bf16 %v278_v14, %v278_v14  ;;  %v316_v19 = vshrl.u32 %v280_v13, 16  ;;  %v318_v20 = vshll.u32 %v280_v13, 16  ;;  %2782 = vmatmul.msk.bf16.vlgmr.msra.gmra.mxu3 %vm230_vm0, %v3667_v11  ;;  %v501_v29 = vld [vmem:[#allocation2 + $0x28] sm:$0x3]  ;;  %v3418_v13 = vld [vmem:[#allocation3 + $0x108] sm:$0xff]  ;;  %v3417_v14 = vld [vmem:[#allocation3 + $0x100] sm:$0xff] }
  0x1a   : > { %596 = vmatpush.bf16.msrb.mxu1 %v3408_v18  ;;  %v505_v37 = vpack.c.bf16 %v501_v29, %v501_v29  ;;  %388 = vmatpush.bf16.msra.mxu0 %v3398_v23  ;;  %v533_v41 = vrot.slane %v503_v36, 1  ;;  %v3404_v55 = vld [vmem:[#allocation3 + $0x98] sm:$0xff]  ;;  %v3425_v28 = vld [vmem:[#allocation3 + $0x140] sm:$0xff] }
  0x1b   : > { %v323_v22 = vshll.u32 %v282_v16, 16  ;;  %v320_v25 = vrot.slane %v318_v20, 1  ;;  %473 = vmatpush.bf16.msra.mxu2 %v3389_v24  ;;  %v3428_v16 = vld [vmem:[#allocation3 + $0x158] sm:$0xff]  ;;  %v3415_v20 = vld [vmem:[#allocation3 + $0xf0] sm:$0xff]  ;;  %v3426_v24 = vld [vmem:[#allocation3 + $0x148] sm:$0xff] }
  0x1c   : > { %v534_v42 = vrot.slane %v505_v37, 1  ;;  %v275_v48 = vld [vmem:[#allocation2] sm:$0xfe]  ;;  %v3416_v17 = vld [vmem:[#allocation3 + $0xf8] sm:$0xff]  ;;  %777 = vmatpush.bf16.msra.mxu3 %v3428_v16  ;;  %v3413_v29 = vld [vmem:[#allocation3 + $0xe0] sm:$0xff] }
  0x1d   : > { %v325_v27 = vrot.slane %v323_v22, 1  ;;  %v321_v30 = vor.u32 %v320_v25, %v316_v19  ;;  %v498_v49 = vld [vmem:[#allocation2] sm:$0xfc]  ;;  %v277_v51 = vld [vmem:[#allocation2 + $0x20] sm:$0x1]  ;;  %v279_v52 = vpack.c.bf16 %v244_v46, %v275_v48  ;;  %v3436_v18 = vld [vmem:[#allocation3 + $0x198] sm:$0xff] }
  0x1e   : > { %597 = vmatpush.bf16.msrb.mxu1 %v3407_v26  ;;  %389 = vmatpush.bf16.msra.mxu0 %v3397_v38  ;;  %v535_v47 = vsel %vm529_vm4, %v533_v41, %v534_v42  ;;  %v500_v53 = vld [vmem:[#allocation2 + $0x20] sm:$0x3]  ;;  %v281_v56 = vpack.c.bf16 %v277_v51, %v277_v51  ;;  %v502_v57 = vpack.c.bf16 %v244_v46, %v498_v49  ;;  %v3414_v25 = vld [vmem:[#allocation3 + $0xe8] sm:$0xff]  ;;  %v3420_v26 = vld [vmem:[#allocation3 + $0x118] sm:$0xff] }
  0x1f   : > { %v326_v35 = vsel %vm302_vm2, %v321_v30, %v325_v27  ;;  %474 = vmatpush.bf16.msra.mxu2 %v3388_v39  ;;  %v504_v58 = vpack.c.bf16 %v500_v53, %v500_v53  ;;  %v304_v59 = vshrl.u32 %v279_v52, 16  ;;  %v306_v60 = vshll.u32 %v279_v52, 16  ;;  %v251_v3 = vld [vmem:[#allocation2] sm:$0xff]  ;;  %v3434_v27 = vld [vmem:[#allocation3 + $0x188] sm:$0xff]  ;;  %v3433_v30 = vld [vmem:[#allocation3 + $0x180] sm:$0xff] }
  0x20   : > { %2745 = vmatmul.msk.bf16.vlgmr.msra.gmra.mxu1 %vm230_vm0, %v326_v35  ;;  %v311_v61 = vshll.u32 %v281_v56, 16  ;;  %v530_v4 = vrot.slane %v502_v57, 1  ;;  %v255_v8 = vpack.c.bf16 %v244_v46, %v251_v3  ;;  %v3427_v19 = vld [vmem:[#allocation3 + $0x150] sm:$0xff]  ;;  %v3424_v34 = vld [vmem:[#allocation3 + $0x138] sm:$0xff]  ;;  %v3422_v41 = vld [vmem:[#allocation3 + $0x128] sm:$0xff] }
  0x21   : > { %v308_v63 = vrot.slane %v306_v60, 1  ;;  %v531_v5 = vrot.slane %v504_v58, 1  ;;  %778 = vmatpush.bf16.msra.mxu3 %v3427_v19  ;;  %v3435_v22 = vld [vmem:[#allocation3 + $0x190] sm:$0xff]  ;;  %v3412_v35 = vld [vmem:[#allocation3 + $0xd8] sm:$0xff]  ;;  %v3421_v53 = vld [vmem:[#allocation3 + $0x120] sm:$0xff] }
  0x22   : > { %598 = vmatpush.bf16.msrb.mxu1 %v3406_v40  ;;  %390 = vmatpush.bf16.msra.mxu0 %v3396_v43  ;;  %v313_v2 = vrot.slane %v311_v61, 1  ;;  %v3432_v37 = vld [vmem:[#allocation3 + $0x178] sm:$0xff]  ;;  %v3423_v38 = vld [vmem:[#allocation3 + $0x130] sm:$0xff]  ;;  %v3438_v40 = vld [vmem:[#allocation3 + $0x1a8] sm:$0xff] }
  0x23   : > { %475 = vmatpush.bf16.msra.mxu2 %v3387_v44  ;;  %v309_v6 = vor.u32 %v308_v63, %v304_v59  ;;  %v532_v9 = vsel %vm529_vm4, %v530_v4, %v531_v5  ;;  %v3431_v39 = vld [vmem:[#allocation3 + $0x170] sm:$0xff]  ;;  %v3430_v43 = vld [vmem:[#allocation3 + $0x168] sm:$0xff]  ;;  %v891_v44 = vld [vmem:[#allocation2 + $0x8] sm:$0xfc] }
  0x24   : > { %v3569_v59 = vld [vmem:[%s3803_s2] ss:$0 sm:$0xff]  ;;  %v3429_v61 = vld [vmem:[#allocation3 + $0x160] sm:$0xff] }
  0x25   : > { %v314_v7 = vsel %vm302_vm2, %v309_v6, %v313_v2  ;;  %779 = vmatpush.bf16.msra.mxu3 %v3426_v24 }
  0x26   : > { %599 = vmatpush.bf16.msrb.mxu1 %v3405_v45  ;;  %391 = vmatpush.bf16.msra.mxu0 %v3395_v50  ;;  %v893_v45 = vld [vmem:[#allocation2 + $0x28] sm:$0x3] }
  0x27   : > { %476 = vmatpush.bf16.msra.mxu2 %v3386_v54  ;;  %v897_v48 = vpack.c.bf16 %v893_v45, %v893_v45 }
  0x29   : > { %2819 = vmatmul.msk.bf16.vlgmr.msrb.gmra.mxu3 %vm230_vm0, %v535_v47  ;;  %v895_v47 = vpack.c.bf16 %v3664_v10, %v891_v44  ;;  %v925_v52 = vrot.slane %v897_v48, 1 }
  0x2a   : > { %600 = vmatpush.bf16.msrb.mxu1 %v3404_v55  ;;  %392 = vmatpush.bf16.msra.mxu0 %v3394_v62 }
  0x2b   : > { %477 = vmatpush.bf16.msra.mxu2 %v3385_v0  ;;  %780 = vmatpush.bf16.msra.mxu3 %v3425_v28  ;;  %v924_v51 = vrot.slane %v895_v47, 1  ;;  %v669_v28 = vld [vmem:[#allocation2 + $0x8] sm:$0xfe] }
  0x2d   : > { %393 = vmatmul.bf16.vlgmr.msra.gmra.mxu0 %v314_v7  ;;  %v926_v57 = vsel %vm529_vm4, %v924_v51, %v925_v52  ;;  %v3444_v51 = vld [vmem:[#allocation3 + $0x1d8] sm:$0xff] }
  0x2e   : > { %601 = vmatpush.bf16.msrb.mxu1 %v3403_v1  ;;  %478 = vmatmul.bf16.vlgmr.msra.gmra.mxu2 %v255_v8  ;;  %v3456_v52 = vld [vmem:[#allocation3 + $0x238] sm:$0xff] }
  0x2f   : > { %862 = vmatpush.bf16.msrb.mxu2 %v3419_v12  ;;  %985 = vmatpush.bf16.msrb.mxu0 %v3437_v15 }
  0x30   : > { %781 = vmatpush.bf16.msra.mxu3 %v3424_v34 }
  0x31   : > { %602 = vmatmul.bf16.vlgmr.msrb.gmra.mxu1 %v532_v9 }
  0x32   : > { %883 = vmatpush.bf16.msra.mxu1 %v3420_v26 }
  0x33   : > { %863 = vmatpush.bf16.msrb.mxu2 %v3418_v13  ;;  %986 = vmatpush.bf16.msrb.mxu0 %v3436_v18 }
  0x34   : > { %782 = vmatpush.bf16.msra.mxu3 %v3423_v38  ;;  %v673_v38 = vpack.c.bf16 %v3664_v10, %v669_v28 }
  0x36   : > { %1006 = vmatpush.bf16.msrb.mxu1 %v3438_v40 }
  0x37   : > { %864 = vmatpush.bf16.msrb.mxu2 %v3417_v14  ;;  %987 = vmatpush.bf16.msrb.mxu0 %v3435_v22 }
  0x38   : > { %783 = vmatpush.bf16.msra.mxu3 %v3422_v41 }
  0x3b   : > { %865 = vmatpush.bf16.msrb.mxu2 %v3416_v17  ;;  %988 = vmatpush.bf16.msrb.mxu0 %v3434_v27 }
  0x3c   : > { %784 = vmatpush.bf16.msra.mxu3 %v3421_v53  ;;  %v3464_v53 = vld [vmem:[#allocation3 + $0x278] sm:$0xff] }
  0x3f   : > { %866 = vmatpush.bf16.msrb.mxu2 %v3415_v20  ;;  %989 = vmatpush.bf16.msrb.mxu0 %v3433_v30 }
  0x40   : > { %798 = vmatpush.bf16.msrb.mxu3 %v3429_v61  ;;  %v3462_v61 = vld [vmem:[#allocation3 + $0x268] sm:$0xff] }
  0x41   : > { %2893 = vmatmul.msk.bf16.vlgmr.msra.gmra.mxu1 %vm230_vm0, %v3667_v11 }
  0x43   : > { %867 = vmatpush.bf16.msrb.mxu2 %v3414_v25  ;;  %990 = vmatpush.bf16.msrb.mxu0 %v3432_v37 }
  0x47   : > { %868 = vmatpush.bf16.msrb.mxu2 %v3413_v29  ;;  %991 = vmatpush.bf16.msrb.mxu0 %v3431_v39  ;;  %v671_v39 = vld [vmem:[#allocation2 + $0x28] sm:$0x1] }
  0x48   : > { %v675_v41 = vpack.c.bf16 %v671_v39, %v671_v39  ;;  %v3447_v39 = vld [vmem:[#allocation3 + $0x1f0] sm:$0xff] }
  0x4a   : > { %v715_v45 = vshll.u32 %v675_v41, 16 }
  0x4b   : > { %869 = vmatpush.bf16.msrb.mxu2 %v3412_v35  ;;  %992 = vmatpush.bf16.msrb.mxu0 %v3430_v43  ;;  %v708_v43 = vshrl.u32 %v673_v38, 16 }
  0x4c   : > { %v717_v47 = vrot.slane %v715_v45, 1 }
  0x4f   : > { %1192 = vmatpush.bf16.msra.mxu2 %v3456_v52  ;;  %1277 = vmatpush.bf16.msra.mxu0 %v3447_v39 }
  0x51   : > { %2930 = vmatmul.msk.bf16.vlgmr.msrb.gmra.mxu1 %vm230_vm0, %v926_v57  ;;  %v3454_v57 = vld [vmem:[#allocation3 + $0x228] sm:$0xff] }
  0x9c   : > { %v493_v21 = vpop.f32.mrf.mxu3 }
  0x9d   : > { %v408_v23 = vpop.f32.mrf.mxu1 }
  0xa4   : > { %v495_v33 = vpop.f32.mrf.mxu3 }
  0xa5   : > { %v410_v36 = vpop.f32.mrf.mxu1 }
  0xaa   : > { %v394_v42 = vpop.f32.mrf.mxu0 }
  0xab   : > { %v409_v50 = vadd.f32 %v408_v23, %v394_v42  ;;  %v710_v42 = vshll.u32 %v673_v38, 16  ;;  %v3465_v38 = vld [vmem:[#allocation3 + $0x280] sm:$0xff] }
  0xac   : > { %v617_v46 = vpop.f32.mrf.mxu3 }
  0xad   : > { %v712_v44 = vrot.slane %v710_v42, 1 }
  0xae   : > { %v603_v49 = vpop.f32.mrf.mxu1 }
  0xaf   : > { %v618_v55 = vadd.f32 %v617_v46, %v603_v49  ;;  %v713_v46 = vor.u32 %v712_v44, %v708_v43  ;;  %v3446_v49 = vld [vmem:[#allocation3 + $0x1e8] sm:$0xff] }
  0xb0   : > { %1256 = vmatpush.bf16.msra.mxu1 %v3446_v49 }
  0xb1   : > { %v479_v54 = vpop.f32.mrf.mxu2  ;;  %v718_v48 = vsel %vm302_vm2, %v713_v46, %v717_v47 }
  0xb2   : > { %v480_v56 = vadd.f32 %v479_v54, %v409_v50  ;;  %v396_v60 = vpop.f32.mrf.mxu0  ;;  %v3445_v50 = vld [vmem:[#allocation3 + $0x1e0] sm:$0xff]  ;;  %v3455_v54 = vld [vmem:[#allocation3 + $0x230] sm:$0xff] }
  0xb3   : > { %v411_v0 = vadd.f32 %v410_v36, %v396_v60 }
  0xb4   : > { %v494_v58 = vadd.f32 %v493_v21, %v480_v56  ;;  %v619_v1 = vpop.f32.mrf.mxu3  ;;  %1257 = vmatpush.bf16.msra.mxu1 %v3445_v50  ;;  %v3463_v56 = vld [vmem:[#allocation3 + $0x270] sm:$0xff] }
  0xb6   : > { %v622_v62 = vadd.f32 %v618_v55, %v494_v58  ;;  %v605_v2 = vpop.f32.mrf.mxu1  ;;  %v3443_v55 = vld [vmem:[#allocation3 + $0x1d0] sm:$0xff]  ;;  %v3442_v58 = vld [vmem:[#allocation3 + $0x1c8] sm:$0xff] }
  0xb7   : > { %v620_v7 = vadd.f32 %v619_v1, %v605_v2 }
  0xb8   : > { %v628_v63 = vadd.f32 %v3569_v59, %v622_v62  ;;  %1258 = vmatpush.bf16.msra.mxu1 %v3444_v51 }
  0xb9   : > { %v481_v3 = vpop.f32.mrf.mxu2 }
  0xba   : > { %v630_v4 = vmax.f32 %v628_v63, 0.0  ;;  %v482_v5 = vadd.f32 %v481_v3, %v411_v0  ;;  %v1065_v63 = vld [vmem:[#allocation2 + $0x28] sm:$0x1]  ;;  %v3453_v0 = vld [vmem:[#allocation3 + $0x220] sm:$0xff] }
  0xbb   : > { %v1069_v1 = vpack.c.bf16 %v1065_v63, %v1065_v63  ;;  %v3441_v3 = vld [vmem:[#allocation3 + $0x1c0] sm:$0xff] }
  0xbc   : > { %v634_v6 = vrot.slane %v630_v4, 7  ;;  %v496_v8 = vadd.f32 %v495_v33, %v482_v5  ;;  %1259 = vmatpush.bf16.msra.mxu1 %v3443_v55  ;;  %v3461_v4 = vld [vmem:[#allocation3 + $0x260] sm:$0xff] }
  0xbe   : > { %640 = vst [vmem:[#allocation2] sm:$0xfe] %v634_v6  ;;  %v623_v9 = vadd.f32 %v620_v7, %v496_v8  ;;  %v885_v60 = vpop.f32.mrf.mxu1  ;;  %v1109_v7 = vshll.u32 %v1069_v1, 16 }
  0xc0   : > { %v629_v12 = vadd.f32 %v3569_v59, %v623_v9  ;;  %v1063_v59 = vld [vmem:[#allocation2 + $0x8] sm:$0xfe]  ;;  %1260 = vmatpush.bf16.msra.mxu1 %v3442_v58 }
  0xc1   : > { %v1067_v62 = vpack.c.bf16 %v3664_v10, %v1063_v59 }
  0xc2   : > { %v631_v13 = vmax.f32 %v629_v12, 0.0  ;;  %v1111_v12 = vrot.slane %v1109_v7, 1 }
  0xc3   : > { %v1104_v2 = vshll.u32 %v1067_v62, 16  ;;  %v1102_v5 = vshrl.u32 %v1067_v62, 16 }
  0xc4   : > { %v635_v14 = vrot.slane %v631_v13, 7  ;;  %1261 = vmatpush.bf16.msra.mxu1 %v3441_v3  ;;  %v3452_v13 = vld [vmem:[#allocation3 + $0x218] sm:$0xff] }
  0xc5   : > { %v643_v15 = vld [vmem:[#allocation2] sm:$0xff] }
  0xc6   : > { %v668_v16 = vld [vmem:[#allocation2] sm:$0xfe]  ;;  %v636_v17 = vsel %vm241_vm3, %v634_v6, %v635_v14  ;;  %642 = vst [vmem:[#allocation2 + $0x20] sm:$0x1] %v635_v14  ;;  %v1106_v6 = vrot.slane %v1104_v2, 1  ;;  %v3440_v14 = vld [vmem:[#allocation3 + $0x1b8] sm:$0xff] }
  0xc7   : > { %v647_v18 = vpack.c.bf16 %v636_v17, %v643_v15  ;;  %v672_v19 = vpack.c.bf16 %v636_v17, %v668_v16  ;;  %v890_v20 = vld [vmem:[#allocation2] sm:$0xfc]  ;;  %v3460_v16 = vld [vmem:[#allocation3 + $0x258] sm:$0xff] }
  0xc8   : > { %v894_v22 = vpack.c.bf16 %v636_v17, %v890_v20  ;;  %v1107_v9 = vor.u32 %v1106_v6, %v1102_v5  ;;  %1262 = vmatpush.bf16.msra.mxu1 %v3440_v14  ;;  %v887_v17 = vpop.f32.mrf.mxu1  ;;  %v3459_v20 = vld [vmem:[#allocation3 + $0x250] sm:$0xff] }
  0xc9   : > { %870 = vmatmul.bf16.vlgmr.msrb.gmra.mxu2 %v647_v18  ;;  %v698_v21 = vshll.u32 %v672_v19, 16  ;;  %v696_v33 = vshrl.u32 %v672_v19, 16  ;;  %v3451_v18 = vld [vmem:[#allocation3 + $0x210] sm:$0xff] }
  0xca   : > { %v921_v29 = vrot.slane %v894_v22, 1  ;;  %1379 = vmatpush.bf16.msrb.mxu2 %v3464_v53  ;;  %v1112_v15 = vsel %vm302_vm2, %v1107_v9, %v1111_v12  ;;  %v3439_v19 = vld [vmem:[#allocation3 + $0x1b0] sm:$0xff]  ;;  %v1285_v12 = vld [vmem:[#allocation2 + $0x8] sm:$0xfc] }
  0xcb   : > { %v700_v27 = vrot.slane %v698_v21, 1  ;;  %v3450_v21 = vld [vmem:[#allocation3 + $0x208] sm:$0xff]  ;;  %v1289_v14 = vpack.c.bf16 %v3664_v10, %v1285_v12 }
  0xcc   : > { %1263 = vmatpush.bf16.msra.mxu1 %v3439_v19  ;;  %v3473_v19 = vld [vmem:[#allocation3 + $0x2c0] sm:$0xff]  ;;  %v3490_v10 = vld [vmem:[#allocation3 + $0x348] sm:$0xff] }
  0xcd   : > { %v892_v23 = vld [vmem:[#allocation2 + $0x20] sm:$0x3]  ;;  %v701_v36 = vor.u32 %v700_v27, %v696_v33  ;;  %v3448_v33 = vld [vmem:[#allocation3 + $0x1f8] sm:$0xff] }
  0xce   : > { %v670_v24 = vld [vmem:[#allocation2 + $0x20] sm:$0x1]  ;;  %v896_v25 = vpack.c.bf16 %v892_v23, %v892_v23  ;;  %1380 = vmatpush.bf16.msrb.mxu2 %v3463_v56  ;;  %v3458_v23 = vld [vmem:[#allocation3 + $0x248] sm:$0xff] }
  0xcf   : > { %v674_v26 = vpack.c.bf16 %v670_v24, %v670_v24  ;;  %v3449_v24 = vld [vmem:[#allocation3 + $0x200] sm:$0xff] }
  0xd0   : > { %v922_v30 = vrot.slane %v896_v25, 1  ;;  %v3457_v25 = vld [vmem:[#allocation3 + $0x240] sm:$0xff] }
  0xd1   : > { %v703_v34 = vshll.u32 %v674_v26, 16  ;;  %v1008_v26 = vpop.f32.mrf.mxu1 }
  0xd2   : > { %v923_v35 = vsel %vm529_vm4, %v921_v29, %v922_v30  ;;  %1381 = vmatpush.bf16.msrb.mxu2 %v3462_v61 }
  0xd3   : > { %v705_v37 = vrot.slane %v703_v34, 1  ;;  %993 = vmatmul.bf16.vlgmr.msrb.gmra.mxu0 %v923_v35 }
  0xd5   : > { %v706_v40 = vsel %vm302_vm2, %v701_v36, %v705_v37  ;;  %v3570_v37 = vld [vmem:[%s3803_s2 + $0x1] ss:$0 sm:$0xff] }
  0xd6   : > { %785 = vmatmul.bf16.vlgmr.msra.gmra.mxu3 %v706_v40  ;;  %1382 = vmatpush.bf16.msrb.mxu2 %v3461_v4 }
  0xd7   : > { %1171 = vmatpush.bf16.msra.mxu3 %v3455_v54 }
  0xd9   : > { %2968 = vmatmul.msk.bf16.vlgmr.msra.gmra.mxu2 %vm230_vm0, %v1112_v15  ;;  %v1010_v42 = vpop.f32.mrf.mxu1 }
  0xda   : > { %1383 = vmatpush.bf16.msrb.mxu2 %v3460_v16  ;;  %v1318_v16 = vrot.slane %v1289_v14, 1 }
  0xdb   : > { %1172 = vmatpush.bf16.msra.mxu3 %v3454_v57 }
  0xde   : > { %1384 = vmatpush.bf16.msrb.mxu2 %v3459_v20  ;;  %v3472_v20 = vld [vmem:[#allocation3 + $0x2b8] sm:$0xff] }
  0xdf   : > { %1173 = vmatpush.bf16.msra.mxu3 %v3453_v0 }
  0xe2   : > { %1385 = vmatpush.bf16.msrb.mxu2 %v3458_v23  ;;  %v3491_v23 = vld [vmem:[#allocation3 + $0x350] sm:$0xff] }
  0xe3   : > { %1174 = vmatpush.bf16.msra.mxu3 %v3452_v13  ;;  %3005 = vmatmul.msk.bf16.vlgmr.msra.gmra.mxu0 %vm230_vm0, %v3667_v11  ;;  %v1287_v13 = vld [vmem:[#allocation2 + $0x28] sm:$0x3] }
  0xe4   : > { %v1291_v15 = vpack.c.bf16 %v1287_v13, %v1287_v13 }
  0xe6   : > { %2856 = vmatmul.msk.bf16.vlgmr.msrb.gmra.mxu3 %vm230_vm0, %v718_v48  ;;  %1386 = vmatpush.bf16.msrb.mxu2 %v3457_v25  ;;  %v3470_v25 = vld [vmem:[#allocation3 + $0x2a8] sm:$0xff] }
  0xe7   : > { %1175 = vmatpush.bf16.msra.mxu3 %v3451_v18 }
  0xeb   : > { %1176 = vmatpush.bf16.msra.mxu3 %v3450_v21  ;;  %v3471_v21 = vld [vmem:[#allocation3 + $0x2b0] sm:$0xff] }
  0xef   : > { %1177 = vmatpush.bf16.msra.mxu3 %v3449_v24  ;;  %v3482_v24 = vld [vmem:[#allocation3 + $0x308] sm:$0xff] }
  0xf0   : > { %1563 = vmatpush.bf16.msrb.mxu0 %v3482_v24 }
  0xf3   : > { %1178 = vmatpush.bf16.msra.mxu3 %v3448_v33 }
  0xf7   : > { %1400 = vmatpush.bf16.msrb.mxu3 %v3465_v38  ;;  %v3468_v38 = vld [vmem:[#allocation3 + $0x298] sm:$0xff] }
 0x14c   : > { %v871_v27 = vpop.f32.mrf.mxu2 }
 0x150   : > { %v994_v28 = vpop.f32.mrf.mxu0 }
 0x151   : > { %v1009_v35 = vadd.f32 %v1008_v26, %v994_v28  ;;  %v3481_v26 = vld [vmem:[#allocation3 + $0x300] sm:$0xff]  ;;  %v3734_v28 = vld [vmem:[#allocation2 + $0x18] sm:$0xff] }
 0x152   : > { %1564 = vmatpush.bf16.msrb.mxu0 %v3481_v26 }
 0x154   : > { %v873_v46 = vpop.f32.mrf.mxu2 }
 0x158   : > { %v996_v45 = vpop.f32.mrf.mxu0 }
 0x159   : > { %v786_v8 = vpop.f32.mrf.mxu3  ;;  %v1011_v49 = vadd.f32 %v1010_v42, %v996_v45 }
 0x15c   : > { %v1194_v39 = vpop.f32.mrf.mxu2 }
 0x161   : > { %v788_v22 = vpop.f32.mrf.mxu3 }
 0x169   : > { %v800_v29 = vpop.f32.mrf.mxu3 }
 0x16a   : > { %v801_v30 = vadd.f32 %v800_v29, %v786_v8  ;;  %v1455_v29 = vld [vmem:[#allocation2 + $0x8] sm:$0xfe] }
 0x16b   : > { %v1459_v33 = vpack.c.bf16 %v3734_v28, %v1455_v29 }
 0x16c   : > { %v872_v34 = vadd.f32 %v871_v27, %v801_v30  ;;  %v3469_v27 = vld [vmem:[#allocation3 + $0x2a0] sm:$0xff] }
 0x16d   : > { %v3489_v30 = vld [vmem:[#allocation3 + $0x340] sm:$0xff] }
 0x16e   : > { %v886_v36 = vadd.f32 %v885_v60, %v872_v34  ;;  %v1457_v34 = vld [vmem:[#allocation2 + $0x28] sm:$0x1] }
 0x170   : > { %v1013_v40 = vadd.f32 %v1009_v35, %v886_v36  ;;  %v3480_v35 = vld [vmem:[#allocation3 + $0x2f8] sm:$0xff]  ;;  %v1461_v36 = vpack.c.bf16 %v1457_v34, %v1457_v34 }
 0x171   : > { %v802_v41 = vpop.f32.mrf.mxu3  ;;  %1565 = vmatpush.bf16.msrb.mxu0 %v3480_v35 }
 0x172   : > { %v1020_v43 = vadd.f32 %v3570_v37, %v1013_v40  ;;  %v803_v44 = vadd.f32 %v802_v41, %v788_v22  ;;  %v3483_v22 = vld [vmem:[#allocation3 + $0x310] sm:$0xff]  ;;  %v3488_v40 = vld [vmem:[#allocation3 + $0x338] sm:$0xff]  ;;  %v1494_v41 = vshrl.u32 %v1459_v33, 16 }
 0x173   : > { %1584 = vmatpush.bf16.msrb.mxu1 %v3483_v22 }
 0x174   : > { %v3717_v47 = vadd.f32 %v1020_v43, %v3678_v31  ;;  %v874_v48 = vadd.f32 %v873_v46, %v803_v44  ;;  %v1501_v43 = vshll.u32 %v1461_v36, 16  ;;  %v3479_v46 = vld [vmem:[#allocation3 + $0x2f0] sm:$0xff] }
 0x175   : > { %1566 = vmatpush.bf16.msrb.mxu0 %v3479_v46 }
 0x176   : > { %1024 = vst [vmem:[%s222_s8] sm:$0xff] %v3717_v47  ;;  %v1028_v50 = vrot.slane %v3717_v47, 7  ;;  %v888_v51 = vadd.f32 %v887_v17, %v874_v48  ;;  %v1319_v17 = vrot.slane %v1291_v15, 1  ;;  %v1503_v45 = vrot.slane %v1501_v43, 1  ;;  %v3467_v48 = vld [vmem:[#allocation3 + $0x290] sm:$0xff] }
 0x178   : > { %1034 = vst [vmem:[#allocation2] sm:$0xfe] %v1028_v50  ;;  %v1014_v52 = vadd.f32 %v1011_v49, %v888_v51  ;;  %v1320_v18 = vsel %vm529_vm4, %v1318_v16, %v1319_v17 }
 0x17a   : > { %v1021_v53 = vadd.f32 %v3570_v37, %v1014_v52  ;;  %v1496_v37 = vshll.u32 %v1459_v33, 16  ;;  %v3478_v52 = vld [vmem:[#allocation3 + $0x2e8] sm:$0xff] }
 0x17b   : > { %1567 = vmatpush.bf16.msrb.mxu0 %v3478_v52  ;;  %v1679_v52 = vld [vmem:[#allocation2 + $0x28] sm:$0x3] }
 0x17c   : > { %v3724_v54 = vadd.f32 %v1021_v53, %v3680_v32  ;;  %v1498_v42 = vrot.slane %v1496_v37, 1  ;;  %v3466_v53 = vld [vmem:[#allocation3 + $0x288] sm:$0xff] }
 0x17e   : > { %1025 = vst [vmem:[%s222_s8 + $0x8] sm:$0xff] %v3724_v54  ;;  %v1029_v31 = vrot.slane %v3724_v54, 7  ;;  %v1499_v44 = vor.u32 %v1498_v42, %v1494_v41 }
 0x17f   : > { %v1037_v55 = vld [vmem:[#allocation2] sm:$0xff] }
 0x180   : > { %v1062_v56 = vld [vmem:[#allocation2] sm:$0xfe]  ;;  %v1030_v11 = vsel %vm241_vm3, %v1028_v50, %v1029_v31  ;;  %1036 = vst [vmem:[#allocation2 + $0x20] sm:$0x1] %v1029_v31  ;;  %v1504_v49 = vsel %vm302_vm2, %v1499_v44, %v1503_v45  ;;  %v3486_v31 = vld [vmem:[#allocation3 + $0x328] sm:$0xff] }
 0x181   : > { %v1041_v57 = vpack.c.bf16 %v1030_v11, %v1037_v55  ;;  %v1066_v58 = vpack.c.bf16 %v1030_v11, %v1062_v56  ;;  %v1284_v59 = vld [vmem:[#allocation2] sm:$0xfc]  ;;  %v3477_v55 = vld [vmem:[#allocation3 + $0x2e0] sm:$0xff]  ;;  %v1196_v56 = vpop.f32.mrf.mxu2 }
 0x182   : > { %v1288_v61 = vpack.c.bf16 %v1030_v11, %v1284_v59  ;;  %v3487_v50 = vld [vmem:[#allocation3 + $0x330] sm:$0xff]  ;;  %v3485_v11 = vld [vmem:[#allocation3 + $0x320] sm:$0xff]  ;;  %1568 = vmatpush.bf16.msrb.mxu0 %v3477_v55 }
 0x183   : > { %1264 = vmatmul.bf16.vlgmr.msra.gmra.mxu1 %v1041_v57  ;;  %v1092_v60 = vshll.u32 %v1066_v58, 16  ;;  %v1090_v4 = vshrl.u32 %v1066_v58, 16  ;;  %v3474_v57 = vld [vmem:[#allocation3 + $0x2c8] sm:$0xff]  ;;  %v3476_v58 = vld [vmem:[#allocation3 + $0x2d8] sm:$0xff] }
 0x184   : > { %v1315_v2 = vrot.slane %v1288_v61, 1  ;;  %1771 = vmatpush.bf16.msra.mxu1 %v3491_v23  ;;  %1669 = vmatpush.bf16.msra.mxu2 %v3474_v57  ;;  %v3484_v61 = vld [vmem:[#allocation3 + $0x318] sm:$0xff] }
 0x185   : > { %v1094_v1 = vrot.slane %v1092_v60, 1  ;;  %v3500_v57 = vld [vmem:[#allocation3 + $0x398] sm:$0xff] }
 0x186   : > { %1569 = vmatpush.bf16.msrb.mxu0 %v3476_v58  ;;  %v3499_v58 = vld [vmem:[#allocation3 + $0x390] sm:$0xff] }
 0x187   : > { %v1286_v62 = vld [vmem:[#allocation2 + $0x20] sm:$0x3]  ;;  %v1095_v7 = vor.u32 %v1094_v1, %v1090_v4  ;;  %v1430_v1 = vld [vmem:[#allocation2 + $0x8] sm:$0xff] }
 0x188   : > { %v1064_v63 = vld [vmem:[#allocation2 + $0x20] sm:$0x1]  ;;  %v1290_v0 = vpack.c.bf16 %v1286_v62, %v1286_v62  ;;  %1772 = vmatpush.bf16.msra.mxu1 %v3490_v10 }
 0x189   : > { %v1068_v32 = vpack.c.bf16 %v1064_v63, %v1064_v63  ;;  %v1279_v63 = vpop.f32.mrf.mxu0 }
 0x18a   : > { %v1316_v3 = vrot.slane %v1290_v0, 1 }
 0x18b   : > { %v1097_v5 = vshll.u32 %v1068_v32, 16  ;;  %v3475_v32 = vld [vmem:[#allocation3 + $0x2d0] sm:$0xff] }
 0x18c   : > { %v1317_v6 = vsel %vm529_vm4, %v1315_v2, %v1316_v3  ;;  %1773 = vmatpush.bf16.msra.mxu1 %v3489_v30  ;;  %v3740_v3 = vpack.c.bf16 %v3734_v28, %v1430_v1  ;;  %1570 = vmatpush.bf16.msrb.mxu0 %v3475_v32  ;;  %v3508_v32 = vld [vmem:[#allocation3 + $0x3d8] sm:$0xff] }
 0x18d   : > { %v1099_v8 = vrot.slane %v1097_v5, 1  ;;  %1387 = vmatmul.bf16.vlgmr.msrb.gmra.mxu2 %v1317_v6  ;;  %v3496_v1 = vld [vmem:[#allocation3 + $0x378] sm:$0xff] }
 0x18f   : > { %v1100_v9 = vsel %vm302_vm2, %v1095_v7, %v1099_v8  ;;  %v3571_v8 = vld [vmem:[%s3803_s2 + $0x2] ss:$0 sm:$0xff] }
 0x190   : > { %1179 = vmatmul.bf16.vlgmr.msra.gmra.mxu3 %v1100_v9  ;;  %1774 = vmatpush.bf16.msra.mxu1 %v3488_v40  ;;  %v3492_v9 = vld [vmem:[#allocation3 + $0x358] sm:$0xff] }
 0x191   : > { %1648 = vmatpush.bf16.msra.mxu3 %v3473_v19  ;;  %1792 = vmatpush.bf16.msra.mxu0 %v3492_v9  ;;  %v1281_v16 = vpop.f32.mrf.mxu0 }
 0x193   : > { %3080 = vmatmul.msk.bf16.vlgmr.msrb.gmra.mxu1 %vm230_vm0, %v1504_v49 }
 0x194   : > { %1775 = vmatpush.bf16.msra.mxu1 %v3487_v50 }
 0x195   : > { %1649 = vmatpush.bf16.msra.mxu3 %v3472_v20 }
 0x198   : > { %1776 = vmatpush.bf16.msra.mxu1 %v3486_v31  ;;  %v1683_v31 = vpack.c.bf16 %v1679_v52, %v1679_v52 }
 0x199   : > { %1650 = vmatpush.bf16.msra.mxu3 %v3471_v21 }
 0x19c   : > { %1777 = vmatpush.bf16.msra.mxu1 %v3485_v11 }
 0x19d   : > { %1651 = vmatpush.bf16.msra.mxu3 %v3470_v25  ;;  %3117 = vmatmul.msk.bf16.vlgmr.msra.gmra.mxu2 %vm230_vm0, %v3740_v3 }
 0x1a0   : > { %3042 = vmatmul.msk.bf16.vlgmr.msrb.gmra.mxu3 %vm230_vm0, %v1320_v18  ;;  %1778 = vmatpush.bf16.msra.mxu1 %v3484_v61  ;;  %v3518_v61 = vld [vmem:[#allocation3 + $0x428] sm:$0xff] }
 0x1a1   : > { %1652 = vmatpush.bf16.msra.mxu3 %v3469_v27 }
 0x1a5   : > { %1653 = vmatpush.bf16.msra.mxu3 %v3468_v38 }
 0x1a9   : > { %1654 = vmatpush.bf16.msra.mxu3 %v3467_v48 }
 0x1ad   : > { %1655 = vmatpush.bf16.msra.mxu3 %v3466_v53 }
 0x200   : > { %v1265_v62 = vpop.f32.mrf.mxu1 }
 0x208   : > { %v1267_v13 = vpop.f32.mrf.mxu1 }
 0x210   : > { %v1388_v2 = vpop.f32.mrf.mxu2 }
 0x213   : > { %v1180_v51 = vpop.f32.mrf.mxu3 }
 0x214   : > { %v1195_v60 = vadd.f32 %v1194_v39, %v1180_v51  ;;  %v1677_v51 = vld [vmem:[#allocation2 + $0x8] sm:$0xfc] }
 0x215   : > { %v1681_v53 = vpack.c.bf16 %v3734_v28, %v1677_v51 }
 0x216   : > { %v1266_v0 = vadd.f32 %v1265_v62, %v1195_v60  ;;  %v3510_v60 = vld [vmem:[#allocation3 + $0x3e8] sm:$0xff]  ;;  %v3509_v62 = vld [vmem:[#allocation3 + $0x3e0] sm:$0xff] }
 0x217   : > { %v1710_v55 = vrot.slane %v1681_v53, 1  ;;  %1976 = vmatpush.bf16.msrb.mxu3 %v3510_v60  ;;  %1955 = vmatpush.bf16.msrb.mxu2 %v3509_v62 }
 0x218   : > { %v1280_v5 = vadd.f32 %v1279_v63, %v1266_v0  ;;  %v1390_v18 = vpop.f32.mrf.mxu2  ;;  %v3497_v63 = vld [vmem:[#allocation3 + $0x380] sm:$0xff] }
 0x219   : > { %v3517_v0 = vld [vmem:[#allocation3 + $0x420] sm:$0xff] }
 0x21b   : > { %v1182_v59 = vpop.f32.mrf.mxu3  ;;  %1956 = vmatpush.bf16.msrb.mxu2 %v3508_v32 }
 0x21c   : > { %v1197_v6 = vadd.f32 %v1196_v56, %v1182_v59  ;;  %v1711_v56 = vrot.slane %v1683_v31, 1  ;;  %v3498_v59 = vld [vmem:[#allocation3 + $0x388] sm:$0xff] }
 0x21e   : > { %v1268_v14 = vadd.f32 %v1267_v13, %v1197_v6  ;;  %v1712_v11 = vsel %vm529_vm4, %v1710_v55, %v1711_v56  ;;  %v1849_v6 = vld [vmem:[#allocation2 + $0x28] sm:$0x1]  ;;  %v1586_v13 = vpop.f32.mrf.mxu1 }
 0x220   : > { %v1282_v20 = vadd.f32 %v1281_v16, %v1268_v14  ;;  %v3515_v14 = vld [vmem:[#allocation3 + $0x410] sm:$0xff] }
 0x223   : > { %v1402_v4 = vpop.f32.mrf.mxu3 }
 0x224   : > { %v1403_v7 = vadd.f32 %v1402_v4, %v1388_v2  ;;  %v1847_v2 = vld [vmem:[#allocation2 + $0x8] sm:$0xfe] }
 0x225   : > { %v3516_v4 = vld [vmem:[#allocation3 + $0x418] sm:$0xff] }
 0x226   : > { %v1407_v12 = vadd.f32 %v1403_v7, %v1280_v5  ;;  %v1851_v5 = vpack.c.bf16 %v3734_v28, %v1847_v2  ;;  %v3507_v7 = vld [vmem:[#allocation3 + $0x3d0] sm:$0xff] }
 0x227   : > { %1957 = vmatpush.bf16.msrb.mxu2 %v3507_v7 }
 0x228   : > { %v1414_v15 = vadd.f32 %v3571_v8, %v1407_v12  ;;  %v1888_v9 = vshll.u32 %v1851_v5, 16  ;;  %v3495_v12 = vld [vmem:[#allocation3 + $0x370] sm:$0xff] }
 0x22a   : > { %v1416_v17 = vmax.f32 %v1414_v15, 0.0  ;;  %v1886_v15 = vshrl.u32 %v1851_v5, 16  ;;  %v1890_v16 = vrot.slane %v1888_v9, 1 }
 0x22b   : > { %v1404_v19 = vpop.f32.mrf.mxu3 }
 0x22c   : > { %v1420_v21 = vrot.slane %v1416_v17, 7  ;;  %v1405_v22 = vadd.f32 %v1404_v19, %v1390_v18  ;;  %v1891_v18 = vor.u32 %v1890_v16, %v1886_v15 }
 0x22e   : > { %1426 = vst [vmem:[#allocation2] sm:$0xfe] %v1420_v21  ;;  %v1408_v23 = vadd.f32 %v1405_v22, %v1282_v20  ;;  %v3506_v20 = vld [vmem:[#allocation3 + $0x3c8] sm:$0xff] }
 0x22f   : > { %1958 = vmatpush.bf16.msrb.mxu2 %v3506_v20 }
 0x230   : > { %v1415_v24 = vadd.f32 %v3571_v8, %v1408_v23  ;;  %v1853_v8 = vpack.c.bf16 %v1849_v6, %v1849_v6  ;;  %v3514_v23 = vld [vmem:[#allocation3 + $0x408] sm:$0xff] }
 0x232   : > { %v1417_v25 = vmax.f32 %v1415_v24, 0.0  ;;  %v1893_v17 = vshll.u32 %v1853_v8, 16 }
 0x234   : > { %v1421_v10 = vrot.slane %v1417_v25, 7  ;;  %v1895_v19 = vrot.slane %v1893_v17, 1  ;;  %v3505_v25 = vld [vmem:[#allocation3 + $0x3c0] sm:$0xff] }
 0x235   : > { %v1429_v26 = vld [vmem:[#allocation2] sm:$0xff]  ;;  %1959 = vmatpush.bf16.msrb.mxu2 %v3505_v25 }
 0x236   : > { %v1454_v27 = vld [vmem:[#allocation2] sm:$0xfe]  ;;  %v1422_v29 = vsel %vm241_vm3, %v1420_v21, %v1421_v10  ;;  %1428 = vst [vmem:[#allocation2 + $0x20] sm:$0x1] %v1421_v10  ;;  %v3494_v21 = vld [vmem:[#allocation3 + $0x368] sm:$0xff]  ;;  %v1896_v22 = vsel %vm302_vm2, %v1891_v18, %v1895_v19  ;;  %v3493_v10 = vld [vmem:[#allocation3 + $0x360] sm:$0xff] }
 0x237   : > { %v1433_v30 = vpack.c.bf16 %v1422_v29, %v1429_v26  ;;  %v1458_v33 = vpack.c.bf16 %v1422_v29, %v1454_v27  ;;  %v1676_v34 = vld [vmem:[#allocation2] sm:$0xfc]  ;;  %v3513_v26 = vld [vmem:[#allocation3 + $0x400] sm:$0xff]  ;;  %v3504_v27 = vld [vmem:[#allocation3 + $0x3b8] sm:$0xff] }
 0x238   : > { %v1680_v36 = vpack.c.bf16 %v1422_v29, %v1676_v34  ;;  %v1588_v29 = vpop.f32.mrf.mxu1 }
 0x239   : > { %1656 = vmatmul.bf16.vlgmr.msra.gmra.mxu3 %v1433_v30  ;;  %v1484_v35 = vshll.u32 %v1458_v33, 16  ;;  %v1482_v44 = vshrl.u32 %v1458_v33, 16  ;;  %v3512_v30 = vld [vmem:[#allocation3 + $0x3f8] sm:$0xff]  ;;  %1960 = vmatpush.bf16.msrb.mxu2 %v3504_v27  ;;  %v3503_v33 = vld [vmem:[#allocation3 + $0x3b0] sm:$0xff] }
 0x23a   : > { %v1707_v42 = vrot.slane %v1680_v36, 1  ;;  %2163 = vmatpush.bf16.msra.mxu3 %v3518_v61  ;;  %v3511_v36 = vld [vmem:[#allocation3 + $0x3f0] sm:$0xff] }
 0x23b   : > { %v1486_v41 = vrot.slane %v1484_v35, 1  ;;  %v3527_v27 = vld [vmem:[#allocation3 + $0x470] sm:$0xff] }
 0x23d   : > { %v1678_v37 = vld [vmem:[#allocation2 + $0x20] sm:$0x3]  ;;  %v1487_v48 = vor.u32 %v1486_v41, %v1482_v44  ;;  %1961 = vmatpush.bf16.msrb.mxu2 %v3503_v33  ;;  %v3537_v33 = vld [vmem:[#allocation3 + $0x4c0] sm:$0xff] }
 0x23e   : > { %v1456_v38 = vld [vmem:[#allocation2 + $0x20] sm:$0x1]  ;;  %v1682_v39 = vpack.c.bf16 %v1678_v37, %v1678_v37  ;;  %2164 = vmatpush.bf16.msra.mxu3 %v3517_v0 }
 0x23f   : > { %v1460_v40 = vpack.c.bf16 %v1456_v38, %v1456_v38  ;;  %v1671_v38 = vpop.f32.mrf.mxu2 }
 0x240   : > { %v1708_v43 = vrot.slane %v1682_v39, 1 }
 0x241   : > { %v1489_v45 = vshll.u32 %v1460_v40, 16  ;;  %v3502_v40 = vld [vmem:[#allocation3 + $0x3a8] sm:$0xff] }
 0x242   : > { %v1709_v46 = vsel %vm529_vm4, %v1707_v42, %v1708_v43  ;;  %2165 = vmatpush.bf16.msra.mxu3 %v3516_v4  ;;  %1962 = vmatpush.bf16.msrb.mxu2 %v3502_v40  ;;  %v2239_v40 = vld [vmem:[#allocation2 + $0x8] sm:$0xfe] }
 0x243   : > { %v1491_v49 = vrot.slane %v1489_v45, 1  ;;  %1779 = vmatmul.bf16.vlgmr.msra.gmra.mxu1 %v1709_v46  ;;  %v3572_v46 = vld [vmem:[%s3803_s2 + $0x3] ss:$0 sm:$0xff] }
 0x245   : > { %v1492_v50 = vsel %vm302_vm2, %v1487_v48, %v1491_v49  ;;  %v3519_v48 = vld [vmem:[#allocation3 + $0x430] sm:$0xff]  ;;  %v3501_v49 = vld [vmem:[#allocation3 + $0x3a0] sm:$0xff] }
 0x246   : > { %1571 = vmatmul.bf16.vlgmr.msrb.gmra.mxu0 %v1492_v50  ;;  %2166 = vmatpush.bf16.msra.mxu3 %v3515_v14 }
 0x247   : > { %2040 = vmatpush.bf16.msrb.mxu0 %v3500_v57  ;;  %2184 = vmatpush.bf16.msra.mxu2 %v3519_v48  ;;  %v1673_v31 = vpop.f32.mrf.mxu2  ;;  %v3522_v48 = vld [vmem:[#allocation3 + $0x448] sm:$0xff] }
 0x248   : > { %2061 = vmatpush.bf16.msrb.mxu1 %v3501_v49 }
 0x249   : > { %3192 = vmatmul.msk.bf16.vlgmr.msrb.gmra.mxu3 %vm230_vm0, %v1896_v22  ;;  %v2071_v22 = vld [vmem:[#allocation2 + $0x28] sm:$0x3] }
 0x24a   : > { %2167 = vmatpush.bf16.msra.mxu3 %v3514_v23 }
 0x24b   : > { %2041 = vmatpush.bf16.msrb.mxu0 %v3499_v58 }
 0x24e   : > { %2168 = vmatpush.bf16.msra.mxu3 %v3513_v26 }
 0x24f   : > { %2042 = vmatpush.bf16.msrb.mxu0 %v3498_v59 }
 0x252   : > { %2169 = vmatpush.bf16.msra.mxu3 %v3512_v30  ;;  %v3525_v30 = vld [vmem:[#allocation3 + $0x460] sm:$0xff] }
 0x253   : > { %2043 = vmatpush.bf16.msrb.mxu0 %v3497_v63  ;;  %3229 = vmatmul.msk.bf16.vlgmr.msrb.gmra.mxu1 %vm230_vm0, %v3740_v3 }
 0x256   : > { %3154 = vmatmul.msk.bf16.vlgmr.msra.gmra.mxu0 %vm230_vm0, %v1712_v11  ;;  %2170 = vmatpush.bf16.msra.mxu3 %v3511_v36  ;;  %v3524_v36 = vld [vmem:[#allocation3 + $0x458] sm:$0xff] }
 0x257   : > { %2044 = vmatpush.bf16.msrb.mxu0 %v3496_v1 }
 0x25b   : > { %2045 = vmatpush.bf16.msrb.mxu0 %v3495_v12 }
 0x25f   : > { %2046 = vmatpush.bf16.msrb.mxu0 %v3494_v21  ;;  %v2069_v21 = vld [vmem:[#allocation2 + $0x8] sm:$0xfc] }
 0x260   : > { %v2073_v23 = vpack.c.bf16 %v3734_v28, %v2069_v21 }
 0x262   : > { %v2102_v25 = vrot.slane %v2073_v23, 1 }
 0x263   : > { %2047 = vmatpush.bf16.msrb.mxu0 %v3493_v10 }
 0x267   : > { %2368 = vmatpush.bf16.msra.mxu0 %v3537_v33 }
 0x2bc   : > { %v1657_v37 = vpop.f32.mrf.mxu3 }
 0x2c0   : > { %v1780_v41 = vpop.f32.mrf.mxu1 }
 0x2c3   : > { %v1572_v24 = vpop.f32.mrf.mxu0 }
 0x2c4   : > { %v1587_v35 = vadd.f32 %v1586_v13, %v1572_v24  ;;  %v1659_v51 = vpop.f32.mrf.mxu3  ;;  %v2075_v24 = vpack.c.bf16 %v2071_v22, %v2071_v22 }
 0x2c6   : > { %v1658_v39 = vadd.f32 %v1657_v37, %v1587_v35  ;;  %v2103_v10 = vrot.slane %v2075_v24, 1  ;;  %v3536_v35 = vld [vmem:[#allocation3 + $0x4b8] sm:$0xff] }
 0x2c7   : > { %2347 = vmatpush.bf16.msra.mxu1 %v3536_v35  ;;  %v3544_v37 = vld [vmem:[#allocation3 + $0x4f8] sm:$0xff] }
 0x2c8   : > { %v1672_v43 = vadd.f32 %v1671_v38, %v1658_v39  ;;  %v1782_v56 = vpop.f32.mrf.mxu1  ;;  %v2104_v26 = vsel %vm529_vm4, %v2102_v25, %v2103_v10  ;;  %v3535_v38 = vld [vmem:[#allocation3 + $0x4b0] sm:$0xff] }
 0x2c9   : > { %v3523_v39 = vld [vmem:[#allocation3 + $0x450] sm:$0xff] }
 0x2cb   : > { %v1574_v34 = vpop.f32.mrf.mxu0  ;;  %2348 = vmatpush.bf16.msra.mxu1 %v3535_v38 }
 0x2cc   : > { %v1589_v44 = vadd.f32 %v1588_v29, %v1574_v34  ;;  %v3526_v29 = vld [vmem:[#allocation3 + $0x468] sm:$0xff]  ;;  %v3545_v34 = vld [vmem:[#allocation3 + $0x500] sm:$0xff]  ;;  %v1978_v49 = vpop.f32.mrf.mxu3 }
 0x2ce   : > { %v1660_v52 = vadd.f32 %v1659_v51, %v1589_v44  ;;  %v3534_v44 = vld [vmem:[#allocation3 + $0x4a8] sm:$0xff] }
 0x2cf   : > { %2349 = vmatpush.bf16.msra.mxu1 %v3534_v44 }
 0x2d0   : > { %v1674_v57 = vadd.f32 %v1673_v31, %v1660_v52 }
 0x2d3   : > { %v1794_v42 = vpop.f32.mrf.mxu0 }
 0x2d4   : > { %v1795_v45 = vadd.f32 %v1794_v42, %v1780_v41  ;;  %v3543_v41 = vld [vmem:[#allocation3 + $0x4f0] sm:$0xff]  ;;  %v2243_v42 = vpack.c.bf16 %v3734_v28, %v2239_v40 }
 0x2d6   : > { %v1799_v50 = vadd.f32 %v1795_v45, %v1672_v43  ;;  %v2241_v43 = vld [vmem:[#allocation2 + $0x28] sm:$0x1]  ;;  %v2278_v51 = vshrl.u32 %v2243_v42, 16 }
 0x2d7   : > { %v2245_v45 = vpack.c.bf16 %v2241_v43, %v2241_v43 }
 0x2d8   : > { %v1806_v53 = vadd.f32 %v3572_v46, %v1799_v50  ;;  %v3542_v50 = vld [vmem:[#allocation3 + $0x4e8] sm:$0xff] }
 0x2da   : > { %v3760_v55 = vadd.f32 %v1806_v53, %v3717_v47  ;;  %v2285_v53 = vshll.u32 %v2245_v45, 16 }
 0x2db   : > { %v1796_v11 = vpop.f32.mrf.mxu0 }
 0x2dc   : > { %v1812_v58 = vrot.slane %v3760_v55, 7  ;;  %v1797_v59 = vadd.f32 %v1796_v11, %v1782_v56  ;;  %v2287_v56 = vrot.slane %v2285_v53, 1  ;;  %v3533_v11 = vld [vmem:[#allocation3 + $0x4a0] sm:$0xff] }
 0x2dd   : > { %2350 = vmatpush.bf16.msra.mxu1 %v3533_v11 }
 0x2de   : > { %1818 = vst [vmem:[#allocation2] sm:$0xfe] %v1812_v58  ;;  %v1800_v60 = vadd.f32 %v1797_v59, %v1674_v57  ;;  %v3521_v57 = vld [vmem:[#allocation3 + $0x440] sm:$0xff] }
 0x2df   : > { %v3541_v59 = vld [vmem:[#allocation3 + $0x4e0] sm:$0xff] }
 0x2e0   : > { %v1807_v61 = vadd.f32 %v3572_v46, %v1800_v60  ;;  %v2280_v46 = vshll.u32 %v2243_v42, 16 }
 0x2e2   : > { %v3766_v62 = vadd.f32 %v1807_v61, %v3724_v54  ;;  %v2282_v52 = vrot.slane %v2280_v46, 1  ;;  %v3532_v61 = vld [vmem:[#allocation3 + $0x498] sm:$0xff] }
 0x2e3   : > { %2351 = vmatpush.bf16.msra.mxu1 %v3532_v61 }
 0x2e4   : > { %v1813_v63 = vrot.slane %v3766_v62, 7  ;;  %v2283_v31 = vor.u32 %v2282_v52, %v2278_v51 }
 0x2e5   : > { %v1821_v0 = vld [vmem:[#allocation2] sm:$0xff] }
 0x2e6   : > { %v1846_v47 = vld [vmem:[#allocation2] sm:$0xfe]  ;;  %v1814_v32 = vsel %vm241_vm3, %v1812_v58, %v1813_v63  ;;  %1820 = vst [vmem:[#allocation2 + $0x20] sm:$0x1] %v1813_v63  ;;  %v2288_v58 = vsel %vm302_vm2, %v2283_v31, %v2287_v56  ;;  %v3520_v63 = vld [vmem:[#allocation3 + $0x438] sm:$0xff] }
 0x2e7   : > { %v1825_v1 = vpack.c.bf16 %v1814_v32, %v1821_v0  ;;  %v1850_v2 = vpack.c.bf16 %v1814_v32, %v1846_v47  ;;  %v2068_v4 = vld [vmem:[#allocation2] sm:$0xfc]  ;;  %v3540_v0 = vld [vmem:[#allocation3 + $0x4d8] sm:$0xff]  ;;  %v1980_v47 = vpop.f32.mrf.mxu3 }
 0x2e8   : > { %v2072_v6 = vpack.c.bf16 %v1814_v32, %v2068_v4  ;;  %v3531_v32 = vld [vmem:[#allocation3 + $0x490] sm:$0xff]  ;;  %v3530_v4 = vld [vmem:[#allocation3 + $0x488] sm:$0xff] }
 0x2e9   : > { %2048 = vmatmul.bf16.vlgmr.msrb.gmra.mxu0 %v1825_v1  ;;  %v1876_v5 = vshll.u32 %v1850_v2, 16  ;;  %v1874_v15 = vshrl.u32 %v1850_v2, 16  ;;  %v3539_v1 = vld [vmem:[#allocation3 + $0x4d0] sm:$0xff]  ;;  %v3528_v2 = vld [vmem:[#allocation3 + $0x478] sm:$0xff]  ;;  %2352 = vmatpush.bf16.msra.mxu1 %v3531_v32 }
 0x2ea   : > { %v2099_v54 = vrot.slane %v2072_v6, 1  ;;  %2555 = vmatpush.bf16.msrb.mxu0 %v3545_v34  ;;  %2453 = vmatpush.bf16.msrb.mxu3 %v3528_v2 }
 0x2eb   : > { %v1878_v13 = vrot.slane %v1876_v5, 1 }
 0x2ed   : > { %v2070_v7 = vld [vmem:[#allocation2 + $0x20] sm:$0x3]  ;;  %v1879_v18 = vor.u32 %v1878_v13, %v1874_v15  ;;  %2353 = vmatpush.bf16.msra.mxu1 %v3530_v4  ;;  %v3529_v13 = vld [vmem:[#allocation3 + $0x480] sm:$0xff] }
 0x2ee   : > { %v1848_v8 = vld [vmem:[#allocation2 + $0x20] sm:$0x1]  ;;  %v2074_v9 = vpack.c.bf16 %v2070_v7, %v2070_v7  ;;  %2556 = vmatpush.bf16.msrb.mxu0 %v3544_v37  ;;  %v3538_v7 = vld [vmem:[#allocation3 + $0x4c8] sm:$0xff] }
 0x2ef   : > { %v1852_v12 = vpack.c.bf16 %v1848_v8, %v1848_v8 }
 0x2f0   : > { %v2100_v14 = vrot.slane %v2074_v9, 1  ;;  %v2063_v9 = vpop.f32.mrf.mxu1 }
 0x2f1   : > { %v1881_v16 = vshll.u32 %v1852_v12, 16  ;;  %2354 = vmatpush.bf16.msra.mxu1 %v3529_v13 }
 0x2f2   : > { %v2101_v17 = vsel %vm529_vm4, %v2099_v54, %v2100_v14  ;;  %2557 = vmatpush.bf16.msrb.mxu0 %v3543_v41 }
 0x2f3   : > { %v1883_v19 = vrot.slane %v1881_v16, 1  ;;  %2171 = vmatmul.bf16.vlgmr.msra.gmra.mxu3 %v2101_v17 }
 0x2f5   : > { %v1884_v20 = vsel %vm302_vm2, %v1879_v18, %v1883_v19  ;;  %v3573_v18 = vld [vmem:[%s3803_s2 + $0x4] ss:$0 sm:$0xff]  ;;  %v3546_v19 = vld [vmem:[#allocation3 + $0x508] sm:$0xff] }
 0x2f6   : > { %1963 = vmatmul.bf16.vlgmr.msrb.gmra.mxu2 %v1884_v20  ;;  %2558 = vmatpush.bf16.msrb.mxu0 %v3542_v50 }
 0x2f7   : > { %2432 = vmatpush.bf16.msrb.mxu2 %v3527_v27  ;;  %2576 = vmatpush.bf16.msrb.mxu1 %v3546_v19 }
 0x2f8   : > { %v2065_v23 = vpop.f32.mrf.mxu1 }
 0x2f9   : > { %3304 = vmatmul.msk.bf16.vlgmr.msra.gmra.mxu0 %vm230_vm0, %v2288_v58  ;;  %v2461_v58 = vld [vmem:[#allocation2 + $0x8] sm:$0xfc] }
 0x2fa   : > { %2559 = vmatpush.bf16.msrb.mxu0 %v3541_v59  ;;  %v2463_v59 = vld [vmem:[#allocation2 + $0x28] sm:$0x3] }
 0x2fb   : > { %2433 = vmatpush.bf16.msrb.mxu2 %v3526_v29  ;;  %v2467_v61 = vpack.c.bf16 %v2463_v59, %v2463_v59 }
 0x2fe   : > { %2560 = vmatpush.bf16.msrb.mxu0 %v3540_v0  ;;  %v2495_v0 = vrot.slane %v2467_v61, 1 }
 0x2ff   : > { %2434 = vmatpush.bf16.msrb.mxu2 %v3525_v30 }
 0x302   : > { %2561 = vmatpush.bf16.msrb.mxu0 %v3539_v1 }
 0x303   : > { %2435 = vmatpush.bf16.msrb.mxu2 %v3524_v36  ;;  %3341 = vmatmul.msk.bf16.vlgmr.msrb.gmra.mxu3 %vm230_vm0, %v3740_v3 }
 0x306   : > { %3266 = vmatmul.msk.bf16.vlgmr.msra.gmra.mxu2 %vm230_vm0, %v2104_v26  ;;  %2562 = vmatpush.bf16.msrb.mxu0 %v3538_v7 }
 0x307   : > { %2436 = vmatpush.bf16.msrb.mxu2 %v3523_v39 }
 0x30b   : > { %2437 = vmatpush.bf16.msrb.mxu2 %v3522_v48 }
 0x30f   : > { %2438 = vmatpush.bf16.msrb.mxu2 %v3521_v57 }
 0x313   : > { %2439 = vmatpush.bf16.msrb.mxu2 %v3520_v63 }
 0x366   : > { %v2049_v8 = vpop.f32.mrf.mxu0 }
 0x36e   : > { %v2051_v21 = vpop.f32.mrf.mxu0 }
 0x376   : > { %v2172_v54 = vpop.f32.mrf.mxu3  ;;  %v2370_v32 = vpop.f32.mrf.mxu0 }
 0x379   : > { %v1964_v60 = vpop.f32.mrf.mxu2 }
 0x37a   : > { %v1979_v6 = vadd.f32 %v1978_v49, %v1964_v60  ;;  %v2465_v60 = vpack.c.bf16 %v3734_v28, %v2461_v58 }
 0x37c   : > { %v2050_v12 = vadd.f32 %v2049_v8, %v1979_v6  ;;  %v2494_v63 = vrot.slane %v2465_v60, 1 }
 0x37e   : > { %v2064_v15 = vadd.f32 %v2063_v9, %v2050_v12  ;;  %v2174_v25 = vpop.f32.mrf.mxu3  ;;  %v2372_v2 = vpop.f32.mrf.mxu0 }
 0x381   : > { %v1966_v5 = vpop.f32.mrf.mxu2 }
 0x382   : > { %v1981_v16 = vadd.f32 %v1980_v47, %v1966_v5  ;;  %v2496_v47 = vsel %vm529_vm4, %v2494_v63, %v2495_v0 }
 0x384   : > { %v2052_v22 = vadd.f32 %v2051_v21, %v1981_v16 }
 0x386   : > { %v2066_v26 = vadd.f32 %v2065_v23, %v2052_v22  ;;  %v2455_v7 = vpop.f32.mrf.mxu3 }
 0x389   : > { %v2186_v14 = vpop.f32.mrf.mxu2 }
 0x38a   : > { %v2187_v17 = vadd.f32 %v2186_v14, %v2172_v54  ;;  %v3574_v14 = vld [vmem:[%s3803_s2 + $0x5] ss:$0 sm:$0xff] }
 0x38c   : > { %v2191_v20 = vadd.f32 %v2187_v17, %v2064_v15 }
 0x38e   : > { %v2198_v3 = vadd.f32 %v3573_v18, %v2191_v20  ;;  %v2457_v19 = vpop.f32.mrf.mxu3 }
 0x390   : > { %v2200_v24 = vmax.f32 %v2198_v3, 0.0 }
 0x391   : > { %v2188_v10 = vpop.f32.mrf.mxu2 }
 0x392   : > { %v2204_v27 = vrot.slane %v2200_v24, 7  ;;  %v2189_v29 = vadd.f32 %v2188_v10, %v2174_v25 }
 0x394   : > { %2210 = vst [vmem:[#allocation2] sm:$0xfe] %v2204_v27  ;;  %v2192_v30 = vadd.f32 %v2189_v29, %v2066_v26 }
 0x396   : > { %v2199_v33 = vadd.f32 %v3573_v18, %v2192_v30 }
 0x398   : > { %v2201_v34 = vmax.f32 %v2199_v33, 0.0 }
 0x39a   : > { %v2205_v35 = vrot.slane %v2201_v34, 7 }
 0x39b   : > { %v2213_v36 = vld [vmem:[#allocation2] sm:$0xff] }
 0x39c   : > { %v2238_v37 = vld [vmem:[#allocation2] sm:$0xfe]  ;;  %v2206_v38 = vsel %vm241_vm3, %v2204_v27, %v2205_v35  ;;  %2212 = vst [vmem:[#allocation2 + $0x20] sm:$0x1] %v2205_v35 }
 0x39d   : > { %v2217_v39 = vpack.c.bf16 %v2206_v38, %v2213_v36  ;;  %v2242_v40 = vpack.c.bf16 %v2206_v38, %v2238_v37  ;;  %v2460_v41 = vld [vmem:[#allocation2] sm:$0xfc] }
 0x39e   : > { %v2464_v43 = vpack.c.bf16 %v2206_v38, %v2460_v41 }
 0x39f   : > { %2440 = vmatmul.bf16.vlgmr.msrb.gmra.mxu2 %v2217_v39  ;;  %v2268_v42 = vshll.u32 %v2242_v40, 16  ;;  %v2266_v52 = vshrl.u32 %v2242_v40, 16 }
 0x3a0   : > { %v2491_v50 = vrot.slane %v2464_v43, 1 }
 0x3a1   : > { %v2270_v49 = vrot.slane %v2268_v42, 1 }
 0x3a3   : > { %v2462_v44 = vld [vmem:[#allocation2 + $0x20] sm:$0x3]  ;;  %v2271_v56 = vor.u32 %v2270_v49, %v2266_v52 }
 0x3a4   : > { %v2240_v45 = vld [vmem:[#allocation2 + $0x20] sm:$0x1]  ;;  %v2466_v46 = vpack.c.bf16 %v2462_v44, %v2462_v44 }
 0x3a5   : > { %v2244_v48 = vpack.c.bf16 %v2240_v45, %v2240_v45 }
 0x3a6   : > { %v2492_v51 = vrot.slane %v2466_v46, 1 }
 0x3a7   : > { %v2273_v53 = vshll.u32 %v2244_v48, 16 }
 0x3a8   : > { %v2493_v31 = vsel %vm529_vm4, %v2491_v50, %v2492_v51 }
 0x3a9   : > { %v2275_v11 = vrot.slane %v2273_v53, 1  ;;  %2563 = vmatmul.bf16.vlgmr.msrb.gmra.mxu0 %v2493_v31 }
 0x3ab   : > { %v2276_v57 = vsel %vm302_vm2, %v2271_v56, %v2275_v11 }
 0x3ac   : > { %2355 = vmatmul.bf16.vlgmr.msra.gmra.mxu1 %v2276_v57 }
 0x3bc   : > { %3378 = vmatmul.msk.bf16.vlgmr.msrb.gmra.mxu1 %vm230_vm0, %v2496_v47 }
 0x422   : > { %v2441_v6 = vpop.f32.mrf.mxu2 }
 0x426   : > { %v2564_v9 = vpop.f32.mrf.mxu0 }
 0x429   : > { %v2356_v1 = vpop.f32.mrf.mxu1 }
 0x42a   : > { %v2371_v5 = vadd.f32 %v2370_v32, %v2356_v1  ;;  %v2443_v16 = vpop.f32.mrf.mxu2 }
 0x42c   : > { %v2442_v8 = vadd.f32 %v2441_v6, %v2371_v5 }
 0x42e   : > { %v2456_v13 = vadd.f32 %v2455_v7, %v2442_v8  ;;  %v2566_v21 = vpop.f32.mrf.mxu0 }
 0x431   : > { %v2358_v4 = vpop.f32.mrf.mxu1 }
 0x432   : > { %v2373_v28 = vadd.f32 %v2372_v2, %v2358_v4 }
 0x434   : > { %v2444_v17 = vadd.f32 %v2443_v16, %v2373_v28 }
 0x436   : > { %v2458_v3 = vadd.f32 %v2457_v19, %v2444_v17 }
 0x439   : > { %v2578_v12 = vpop.f32.mrf.mxu1 }
 0x43a   : > { %v2579_v54 = vadd.f32 %v2578_v12, %v2564_v9 }
 0x43c   : > { %v2583_v15 = vadd.f32 %v2579_v54, %v2456_v13 }
 0x43e   : > { %v2590_v18 = vadd.f32 %v3574_v14, %v2583_v15 }
 0x440   : > { %v2592_v20 = vadd.f32 %v2590_v18, %v3760_v55 }
 0x441   : > { %v2580_v22 = vpop.f32.mrf.mxu1 }
 0x442   : > { %2594 = vst [vmem:[%s227_s20] sm:$0xff] %v2592_v20  ;;  %v2581_v23 = vadd.f32 %v2580_v22, %v2566_v21 }
 0x444   : > { %v2584_v24 = vadd.f32 %v2581_v23, %v2458_v3 }
 0x446   : > { %v2591_v25 = vadd.f32 %v3574_v14, %v2584_v24 }
 0x448   : > { %v2593_v10 = vadd.f32 %v2591_v25, %v3766_v62 }
 0x44a   : > { %2595 = vst [vmem:[%s227_s20 + $0x8] sm:$0xff] %v2593_v10 }
 0x44b PF: > { %s16_s15 = sadd.s32 1, %s3615_s15  }
 0x44c   : > { %p13_p7 = scmp.ge.s32.totalorder %s16_s15, 4  }
 0x44e   :  { %15 = sbr.rel (!%p13_p7) target bundleno = 1 (0x1), region = 101 }
 0x453   :  { %2633 = vsyncpa [#allocation4], 1 }
 0x454   :  { %2635 = vsyncpa [#allocation4 + $0x1], 1 }

// kernel: nl_res_group_forward.5
= control target key start
LH: loop header
LB: loop body
LE: loop exit
PB: predicated region body
PF: predicated region fallthrough
CT: control target
= control target key end

     0   :  { %18 = vsyncpa [#allocation8], 0  ;;  %s8023_s25 = smov 0   ;;  %s8716_s0 = inlined_call_operand.vmem [shape: f32[2,16,128], index: 0, kind: input, shape index: {}]   ;;  %s8717_s1 = inlined_call_operand.vmem [shape: f32[2,16,128], index: 1, kind: input, shape index: {}]   ;;  %s8718_s2 = inlined_call_operand.vmem [shape: f32[2,16,128], index: 2, kind: input, shape index: {}]   ;;  %s8719_s3 = inlined_call_operand.hbm [shape: bf16[9,3,144,128], index: 3, kind: input, shape index: {}]   ;;  %s8720_s4 = inlined_call_operand.vmem [shape: f32[9,1,128], index: 4, kind: input, shape index: {}]   ;;  %s8721_s5 = inlined_call_operand.vmem [shape: bf16[3,144,64], index: 5, kind: input, shape index: {}]   ;;  %s8722_s6 = inlined_call_operand.vmem [shape: f32[1,64], index: 6, kind: input, shape index: {}]   ;;  %s8723_s7 = inlined_call_operand.vmem [shape: bf16[4,3,80,64], index: 7, kind: input, shape index: {}]   ;;  %s8724_s8 = inlined_call_operand.vmem [shape: f32[4,1,64], index: 8, kind: input, shape index: {}]   ;;  %s8725_s9 = inlined_call_operand.vmem [shape: bf16[2,3,80,128], index: 9, kind: input, shape index: {}]   ;;  %s8726_s10 = inlined_call_operand.vmem [shape: f32[1,128], index: 10, kind: input, shape index: {}]   ;;  %s8727_s11 = inlined_call_operand.vmem [shape: bf16[128,128], index: 11, kind: input, shape index: {}]   ;;  %s8728_s12 = inlined_call_operand.vmem [shape: f32[1,128], index: 12, kind: input, shape index: {}]   ;;  %s8729_s13 = inlined_call_operand.vmem [shape: f32[2,16,128], index: 13, kind: output, shape index: {}]  }
   0x1 LB: > { %s354_s28 = sshll.u32 %s8719_s3, 4  ;;  %s8032_s29 = sadd.s32 4294967295, %s7947_s25   ;;  %s7947_s25 = sphi %s8023_s25, %s24_s25   ;;  %s355_s28 = int_to_ptr.hbm [resolvable:$true] %s354_s28 }
   0x2   : > { %p5747_p0 = scmp.ge.s32.totalorder %s7947_s25, 1  ;;  %p343_p1 = scmp.lt.s32.totalorder %s7947_s25, 3 }
   0x3   : > { %p7869_p2 = scmp.eq.s32.totalorder %s8032_s29, 0  ;;  %s7949_s30 = smov [#allocation7]  }
   0x4   : > { %p344_p3 = pnand %p5747_p0, %p343_p1  ;;  %s356_s14 = sshll.u32 %s7949_s30, 4  ;;  %s357_s14 = int_to_ptr.vmem [resolvable:$true] %s356_s14 }
   0x5   : > { %s7950_s15 = smov 64   ;;  %s7951_s16 = smov 4  }
   0x6   : > { %p7865_p4 = pneg %p344_p3  ;;  %423 = sbr.rel (%p344_p3) target bundleno = 2748 (0xabc), region = 72 }
   0x8   : > { %p7866_p5 = pnand %p7869_p2, %p7865_p4 }
   0xa   : > { %7868 = dma.hbm_to_vmem [thread:$0]  (!%p7866_p5), %s355_s28, 31104, %s357_s14, [#allocation8], %s7950_s15, %s7950_s15, %s7951_s16  }
   0xb   : > { %7942 = dma.done.wait (%p7869_p2), [#allocation8], 31104  }
   0xc   : > { %7944 = vsyncadd (%p7869_p2), [#allocation8], 4294936192  ;;  %vm500_vm0 = vcmask 130048   ;;  %vm505_vm1 = vcmask 123904   ;;  %v7952_v0 = vmov 0.0   ;;  %p478_p6 = scmp.lt.s32.totalorder %s8032_s29, 1 }
   0xd   : > { %501 = vst.msk [vmem:[#allocation2 + $0x8] sm:$0xff] %vm500_vm0, %v7952_v0  ;;  %v7509_v1 = vld [vmem:[#allocation7 + $0x80] sm:$0xff]  ;;  %v7510_v2 = vld [vmem:[#allocation7 + $0x88] sm:$0xff]  ;;  %v7500_v3 = vld [vmem:[#allocation7 + $0x38] sm:$0xff]  ;;  %vm583_vm2 = vsmask.f32 7424 }
   0xe   : > { %503 = vst.msk [vmem:[#allocation2 + $0x18] sm:$0xff] %vm500_vm0, %v7952_v0  ;;  %v7518_v4 = vld [vmem:[#allocation7 + $0xc8] sm:$0xff]  ;;  %v7508_v5 = vld [vmem:[#allocation7 + $0x78] sm:$0xff]  ;;  %s8731_s29 = smov (!%p478_p6, %s8032_s29), 1  ;;  %666 = vmatpush.bf16.msra.mxu0 %v7509_v1  ;;  %687 = vmatpush.bf16.msra.mxu2 %v7510_v2  ;;  %v7499_v6 = vld [vmem:[#allocation7 + $0x30] sm:$0xff]  ;;  %vm522_vm3 = vcmask 1040384  }
   0xf   : > { %506 = vst.msk [vmem:[#allocation2 + $0x28] sm:$0x3] %vm505_vm1, %v7952_v0  ;;  %v7517_v7 = vld [vmem:[#allocation7 + $0xc0] sm:$0xff]  ;;  %875 = vmatpush.bf16.msra.mxu1 %v7518_v4  ;;  %s8059_s17 = sshll.u32 %s8731_s29, 4  ;;  %v7507_v16 = vld [vmem:[#allocation7 + $0x70] sm:$0xff]  ;;  %v7498_v20 = vld [vmem:[#allocation7 + $0x28] sm:$0xff] }
  0x10   : > { %499 = vst [vmem:[#allocation2] sm:$0xff] %v7952_v0  ;;  %v7501_v8 = vld [vmem:[#allocation7 + $0x40] sm:$0xff]  ;;  %v7516_v21 = vld [vmem:[#allocation7 + $0xb8] sm:$0xff]  ;;  %v7519_v22 = vld [vmem:[#allocation7 + $0xd0] sm:$0xff]  ;;  %s482_s20 = scalar_lea.vmem %s8716_s0, %s8059_s17  ;;  %vm810_vm4 = vcmask 1046528   ;;  %vm514_vm5 = vcmask 122880   ;;  %s487_s26 = scalar_lea.vmem %s8717_s1, %s8059_s17 }
  0x11   : > { %504 = vst [vmem:[#allocation2 + $0x20] sm:$0x3] %v7952_v0  ;;  %772 = vmatpush.bf16.msra.mxu3 %v7501_v8  ;;  %v7506_v28 = vld [vmem:[#allocation7 + $0x68] sm:$0xff]  ;;  %v7497_v29 = vld [vmem:[#allocation7 + $0x20] sm:$0xff]  ;;  %v7515_v30 = vld [vmem:[#allocation7 + $0xb0] sm:$0xff]  ;;  %vm507_vm6 = vcmask 654336   ;;  %s492_s29 = scalar_lea.vmem %s8718_s2, %s8059_s17  ;;  %s497_s27 = scalar_lea.vmem %s8729_s13, %s8059_s17 }
  0x12   : > { %511 = vst [vmem:[#allocation4] sm:$0xff] %v7952_v0  ;;  %751 = vmatpush.bf16.msrb.mxu2 %v7500_v3  ;;  %667 = vmatpush.bf16.msra.mxu0 %v7508_v5  ;;  %v8068_v33 = vld [vmem:[%s482_s20] sm:$0xff]  ;;  %v8070_v34 = vld [vmem:[%s482_s20 + $0x8] sm:$0xff]  ;;  %v7496_v39 = vld [vmem:[#allocation7 + $0x18] sm:$0xff]  ;;  %vm509_vm7 = vcmask 648192   ;;  %vm1691_vm8 = vcmask 523264  }
  0x13   : > { %512 = vst.msk [vmem:[#allocation4 + $0x8] sm:$0xff] %vm500_vm0, %v7952_v0  ;;  %876 = vmatpush.bf16.msra.mxu1 %v7517_v7  ;;  %v7505_v36 = vld [vmem:[#allocation7 + $0x60] sm:$0xff]  ;;  %v523_v38 = vrot.slane %v8068_v33, 7  ;;  %v7514_v40 = vld [vmem:[#allocation7 + $0xa8] sm:$0xff]  ;;  %v524_v42 = vrot.slane %v8070_v34, 7  ;;  %v7504_v43 = vld [vmem:[#allocation7 + $0x58] sm:$0xff] }
  0x14   : > { %513 = vst [vmem:[#allocation4 + $0x10] sm:$0x1] %v7952_v0  ;;  %v557_v10 = vld [vmem:[#allocation2 + $0x8] sm:$0xfe]  ;;  %v7495_v44 = vld [vmem:[#allocation7 + $0x10] sm:$0xff]  ;;  %v7513_v45 = vld [vmem:[#allocation7 + $0xa0] sm:$0xff] }
  0x15   : > { %516 = vst [vmem:[#allocation5] sm:$0xff] %v7952_v0  ;;  %v8051_v9 = vld [vmem:[#allocation2 + $0x18] sm:$0xff]  ;;  %v533_v14 = vld [vmem:[#allocation2 + $0x8] sm:$0xff]  ;;  %896 = vmatpush.bf16.msrb.mxu3 %v7519_v22  ;;  %v525_v46 = vsel %vm522_vm3, %v523_v38, %v524_v42  ;;  %v7503_v50 = vld [vmem:[#allocation7 + $0x50] sm:$0xff] }
  0x16   : > { %v559_v11 = vld [vmem:[#allocation2 + $0x28] sm:$0x1]  ;;  %517 = vst.msk [vmem:[#allocation5 + $0x8] sm:$0xff] %vm500_vm0, %v7952_v0  ;;  %v561_v12 = vpack.c.bf16 %v8051_v9, %v557_v10  ;;  %v8057_v15 = vpack.c.bf16 %v8051_v9, %v533_v14  ;;  %752 = vmatpush.bf16.msrb.mxu2 %v7499_v6  ;;  %v780_v25 = vld [vmem:[#allocation2 + $0x8] sm:$0xfc]  ;;  %668 = vmatpush.bf16.msra.mxu0 %v7507_v16  ;;  %v7512_v55 = vld [vmem:[#allocation7 + $0x98] sm:$0xff] }
  0x17   : > { %v563_v13 = vpack.c.bf16 %v559_v11, %v559_v11  ;;  %v782_v26 = vld [vmem:[#allocation2 + $0x28] sm:$0x3]  ;;  %v784_v31 = vpack.c.bf16 %v8051_v9, %v780_v25  ;;  %877 = vmatpush.bf16.msra.mxu1 %v7516_v21  ;;  %529 = vst [vmem:[#allocation2] sm:$0xfe] %v523_v38  ;;  %v7493_v1 = vld [vmem:[#allocation7] sm:$0xff]  ;;  %v7511_v2 = vld [vmem:[#allocation7 + $0x90] sm:$0xff] }
  0x18   : > { %v597_v17 = vshrl.u32 %v561_v12, 16  ;;  %v599_v18 = vshll.u32 %v561_v12, 16  ;;  %5833 = vmatmul.msk.bf16.vlgmr.msra.gmra.mxu3 %vm500_vm0, %v8057_v15  ;;  %v786_v32 = vpack.c.bf16 %v782_v26, %v782_v26  ;;  %531 = vst [vmem:[#allocation2 + $0x20] sm:$0x1] %v524_v42  ;;  %v7494_v54 = vld [vmem:[#allocation7 + $0x8] sm:$0xff]  ;;  %v7527_v12 = vld [vmem:[#allocation7 + $0x110] sm:$0xff] }
  0x19   : > { %v604_v19 = vshll.u32 %v563_v13, 16  ;;  %v814_v37 = vrot.slane %v784_v31, 1  ;;  %v7502_v62 = vld [vmem:[#allocation7 + $0x48] sm:$0xff]  ;;  %v7525_v14 = vld [vmem:[#allocation7 + $0x100] sm:$0xff]  ;;  %v7535_v22 = vld [vmem:[#allocation7 + $0x150] sm:$0xff]  ;;  %508 = vst.msk [vmem:[#allocation3] sm:$0xff] %vm507_vm6, %v7952_v0 }
  0x1a   : > { %v601_v23 = vrot.slane %v599_v18, 1  ;;  %753 = vmatpush.bf16.msrb.mxu2 %v7498_v20  ;;  %v815_v41 = vrot.slane %v786_v32, 1  ;;  %669 = vmatpush.bf16.msra.mxu0 %v7506_v28  ;;  %v7526_v13 = vld [vmem:[#allocation7 + $0x108] sm:$0xff]  ;;  %v7537_v16 = vld [vmem:[#allocation7 + $0x160] sm:$0xff]  ;;  %v7536_v18 = vld [vmem:[#allocation7 + $0x158] sm:$0xff] }
  0x1b   : > { %v606_v24 = vrot.slane %v604_v19, 1  ;;  %878 = vmatpush.bf16.msra.mxu1 %v7515_v30  ;;  %v7524_v19 = vld [vmem:[#allocation7 + $0xf8] sm:$0xff]  ;;  %1058 = vmatpush.bf16.msra.mxu3 %v7536_v18  ;;  %v7543_v25 = vld [vmem:[#allocation7 + $0x190] sm:$0xff]  ;;  %v7534_v28 = vld [vmem:[#allocation7 + $0x148] sm:$0xff]  ;;  %515 = vst.msk [vmem:[#allocation4 + $0x18] sm:$0x1] %vm514_vm5, %v7952_v0 }
  0x1c   : > { %v602_v27 = vor.u32 %v601_v23, %v597_v17  ;;  %v816_v47 = vsel %vm810_vm4, %v814_v37, %v815_v41  ;;  %v7545_v17 = vld [vmem:[#allocation7 + $0x1a0] sm:$0xff]  ;;  %v7544_v20 = vld [vmem:[#allocation7 + $0x198] sm:$0xff]  ;;  %v7523_v23 = vld [vmem:[#allocation7 + $0xf0] sm:$0xff]  ;;  %510 = vst.msk [vmem:[#allocation3 + $0x8] sm:$0x3] %vm509_vm7, %v7952_v0 }
  0x1d   : > { %v7522_v31 = vld [vmem:[#allocation7 + $0xe8] sm:$0xff]  ;;  %v7533_v42 = vld [vmem:[#allocation7 + $0x140] sm:$0xff]  ;;  %v7576_v0 = vld [vmem:[%s8723_s7 + $0x10] sm:$0xff] }
  0x1e   : > { %v607_v35 = vsel %vm583_vm2, %v602_v27, %v606_v24  ;;  %754 = vmatpush.bf16.msrb.mxu2 %v7497_v29  ;;  %670 = vmatpush.bf16.msra.mxu0 %v7505_v36  ;;  %v556_v48 = vld [vmem:[#allocation2] sm:$0xfe]  ;;  %v950_v24 = vld [vmem:[#allocation2 + $0x8] sm:$0xfe]  ;;  %v952_v27 = vld [vmem:[#allocation2 + $0x28] sm:$0x1] }
  0x1f   : > { %5796 = vmatmul.msk.bf16.vlgmr.msra.gmra.mxu2 %vm500_vm0, %v607_v35  ;;  %879 = vmatpush.bf16.msra.mxu1 %v7514_v40  ;;  %v779_v49 = vld [vmem:[#allocation2] sm:$0xfc]  ;;  %v558_v51 = vld [vmem:[#allocation2 + $0x20] sm:$0x1]  ;;  %v560_v52 = vpack.c.bf16 %v525_v46, %v556_v48  ;;  %v954_v26 = vpack.c.bf16 %v8051_v9, %v950_v24  ;;  %v956_v29 = vpack.c.bf16 %v952_v27, %v952_v27  ;;  %v7528_v35 = vld [vmem:[#allocation7 + $0x118] sm:$0xff] }
  0x20   : > { %v781_v53 = vld [vmem:[#allocation2 + $0x20] sm:$0x3]  ;;  %v562_v56 = vpack.c.bf16 %v558_v51, %v558_v51  ;;  %v783_v57 = vpack.c.bf16 %v525_v46, %v779_v49  ;;  %1059 = vmatpush.bf16.msra.mxu3 %v7535_v22  ;;  %v7542_v36 = vld [vmem:[#allocation7 + $0x188] sm:$0xff]  ;;  %v7540_v48 = vld [vmem:[#allocation7 + $0x178] sm:$0xff] }
  0x21   : > { %v785_v58 = vpack.c.bf16 %v781_v53, %v781_v53  ;;  %v585_v59 = vshrl.u32 %v560_v52, 16  ;;  %v587_v60 = vshll.u32 %v560_v52, 16  ;;  %v532_v4 = vld [vmem:[#allocation2] sm:$0xff]  ;;  %v991_v30 = vshll.u32 %v954_v26, 16  ;;  %v7520_v49 = vld [vmem:[#allocation7 + $0xd8] sm:$0xff]  ;;  %v7546_v52 = vld [vmem:[#allocation7 + $0x1a8] sm:$0xff] }
  0x22   : > { %755 = vmatpush.bf16.msrb.mxu2 %v7496_v39  ;;  %671 = vmatpush.bf16.msra.mxu0 %v7504_v43  ;;  %v592_v61 = vshll.u32 %v562_v56, 16  ;;  %v811_v5 = vrot.slane %v783_v57, 1  ;;  %v536_v10 = vpack.c.bf16 %v525_v46, %v532_v4  ;;  %v989_v37 = vshrl.u32 %v954_v26, 16  ;;  %v7521_v43 = vld [vmem:[#allocation7 + $0xe0] sm:$0xff]  ;;  %v7539_v53 = vld [vmem:[#allocation7 + $0x170] sm:$0xff]  ;;  %v7538_v57 = vld [vmem:[#allocation7 + $0x168] sm:$0xff] }
  0x23   : > { %880 = vmatpush.bf16.msra.mxu1 %v7513_v45  ;;  %v589_v63 = vrot.slane %v587_v60, 1  ;;  %v812_v6 = vrot.slane %v785_v58, 1  ;;  %v993_v38 = vrot.slane %v991_v30, 1  ;;  %v996_v39 = vshll.u32 %v956_v29, 16  ;;  %v7541_v46 = vld [vmem:[#allocation7 + $0x180] sm:$0xff] }
  0x24   : > { %v594_v3 = vrot.slane %v592_v61, 1  ;;  %1060 = vmatpush.bf16.msra.mxu3 %v7534_v28 }
  0x25   : > { %v590_v7 = vor.u32 %v589_v63, %v585_v59  ;;  %v813_v11 = vsel %vm810_vm4, %v811_v5, %v812_v6  ;;  %v994_v40 = vor.u32 %v993_v38, %v989_v37  ;;  %v998_v41 = vrot.slane %v996_v39, 1  ;;  %v1174_v59 = vld [vmem:[#allocation2 + $0x28] sm:$0x3]  ;;  %v7529_v5 = vld [vmem:[#allocation7 + $0x120] sm:$0xff] }
  0x26   : > { %756 = vmatpush.bf16.msrb.mxu2 %v7495_v44  ;;  %672 = vmatpush.bf16.msra.mxu0 %v7503_v50  ;;  %v7531_v50 = vld [vmem:[#allocation7 + $0x130] sm:$0xff] }
  0x27   : > { %881 = vmatpush.bf16.msra.mxu1 %v7512_v55  ;;  %v595_v8 = vsel %vm583_vm2, %v590_v7, %v594_v3  ;;  %v999_v45 = vsel %vm583_vm2, %v994_v40, %v998_v41  ;;  %v7530_v55 = vld [vmem:[#allocation7 + $0x128] sm:$0xff]  ;;  %v7883_v7 = vld [vmem:[%s8720_s4] ss:$0 sm:$0xff] }
  0x28   : > { %5870 = vmatmul.msk.bf16.vlgmr.msrb.gmra.mxu3 %vm500_vm0, %v816_v47  ;;  %v7532_v47 = vld [vmem:[#allocation7 + $0x138] sm:$0xff] }
  0x29   : > { %1061 = vmatpush.bf16.msra.mxu3 %v7533_v42 }
  0x2a   : > { %757 = vmatpush.bf16.msrb.mxu2 %v7494_v54  ;;  %673 = vmatpush.bf16.msra.mxu0 %v7502_v62  ;;  %v1178_v62 = vpack.c.bf16 %v1174_v59, %v1174_v59  ;;  %v7560_v59 = vld [vmem:[%s8721_s5 + $0x68] sm:$0xff] }
  0x2b   : > { %882 = vmatpush.bf16.msra.mxu1 %v7511_v2 }
  0x2c   : > { %v1206_v4 = vrot.slane %v1178_v62, 1  ;;  %v1354_v62 = vld [vmem:[#allocation5 + $0x8] sm:$0xff] }
  0x2d   : > { %674 = vmatmul.bf16.vlgmr.msra.gmra.mxu0 %v595_v8  ;;  %1062 = vmatpush.bf16.msra.mxu3 %v7532_v47 }
  0x2e   : > { %758 = vmatpush.bf16.msrb.mxu2 %v7493_v1  ;;  %883 = vmatmul.bf16.vlgmr.msra.gmra.mxu1 %v813_v11 }
  0x2f   : > { %1079 = vmatpush.bf16.msrb.mxu0 %v7537_v16  ;;  %1164 = vmatpush.bf16.msrb.mxu1 %v7528_v35 }
  0x31   : > { %759 = vmatmul.bf16.vlgmr.msrb.gmra.mxu2 %v536_v10  ;;  %1063 = vmatpush.bf16.msra.mxu3 %v7531_v50  ;;  %v7563_v50 = vld [vmem:[%s8721_s5 + $0x80] sm:$0xff] }
  0x32   : > { %1143 = vmatpush.bf16.msra.mxu2 %v7527_v12 }
  0x33   : > { %1266 = vmatpush.bf16.msra.mxu0 %v7545_v17  ;;  %1287 = vmatpush.bf16.msra.mxu1 %v7546_v52  ;;  %v7562_v52 = vld [vmem:[%s8721_s5 + $0x78] sm:$0xff] }
  0x35   : > { %1064 = vmatpush.bf16.msra.mxu3 %v7530_v55  ;;  %v7561_v55 = vld [vmem:[%s8721_s5 + $0x70] sm:$0xff] }
  0x36   : > { %1144 = vmatpush.bf16.msra.mxu2 %v7526_v13 }
  0x37   : > { %1267 = vmatpush.bf16.msra.mxu0 %v7544_v20 }
  0x39   : > { %1065 = vmatpush.bf16.msra.mxu3 %v7529_v5 }
  0x3a   : > { %1145 = vmatpush.bf16.msra.mxu2 %v7525_v14 }
  0x3b   : > { %1268 = vmatpush.bf16.msra.mxu0 %v7543_v25 }
  0x3d   : > { %5907 = vmatmul.msk.bf16.vlgmr.msrb.gmra.mxu0 %vm500_vm0, %v999_v45  ;;  %1457 = vmatpush.bf16.msrb.mxu3 %v7563_v50 }
  0x3e   : > { %1146 = vmatpush.bf16.msra.mxu2 %v7524_v19  ;;  %5944 = vmatmul.msk.bf16.vlgmr.msrb.gmra.mxu1 %vm500_vm0, %v8057_v15  ;;  %v1172_v15 = vld [vmem:[#allocation2 + $0x8] sm:$0xfc] }
  0x3f   : > { %1269 = vmatpush.bf16.msra.mxu0 %v7542_v36  ;;  %v1176_v61 = vpack.c.bf16 %v8051_v9, %v1172_v15  ;;  %v7571_v15 = vld [vmem:[%s8721_s5 + $0xc0] sm:$0xff] }
  0x41   : > { %v1205_v3 = vrot.slane %v1176_v61, 1  ;;  %1458 = vmatpush.bf16.msrb.mxu3 %v7562_v52  ;;  %v7570_v61 = vld [vmem:[%s8721_s5 + $0xb8] sm:$0xff] }
  0x42   : > { %1147 = vmatpush.bf16.msra.mxu2 %v7523_v23 }
  0x43   : > { %1270 = vmatpush.bf16.msra.mxu0 %v7541_v46  ;;  %v1207_v8 = vsel %vm810_vm4, %v1205_v3, %v1206_v4  ;;  %v7569_v3 = vld [vmem:[%s8721_s5 + $0xb0] sm:$0xff] }
  0x45   : > { %1459 = vmatpush.bf16.msrb.mxu3 %v7561_v55 }
  0x46   : > { %1148 = vmatpush.bf16.msra.mxu2 %v7522_v31 }
  0x47   : > { %1271 = vmatpush.bf16.msra.mxu0 %v7540_v48 }
  0x49   : > { %1460 = vmatpush.bf16.msrb.mxu3 %v7560_v59  ;;  %v1358_v59 = vld [vmem:[#allocation4 + $0x18] sm:$0x1] }
  0x4a   : > { %1149 = vmatpush.bf16.msra.mxu2 %v7521_v43 }
  0x4b   : > { %1272 = vmatpush.bf16.msra.mxu0 %v7539_v53  ;;  %v7553_v53 = vld [vmem:[%s8721_s5 + $0x30] sm:$0xff] }
  0x4e   : > { %1150 = vmatpush.bf16.msra.mxu2 %v7520_v49  ;;  %5981 = vmatmul.msk.bf16.vlgmr.msra.gmra.mxu1 %vm500_vm0, %v1207_v8  ;;  %v7564_v49 = vld [vmem:[%s8721_s5 + $0x88] sm:$0xff] }
  0x4f   : > { %1273 = vmatpush.bf16.msra.mxu0 %v7538_v57  ;;  %1477 = vmatpush.bf16.msrb.mxu1 %v7564_v49  ;;  %v7568_v8 = vld [vmem:[%s8721_s5 + $0xa8] sm:$0xff] }
  0x9b   : > { %v8081_v21 = vpop.f32.mrf.mxu3 }
  0xa2   : > { %v689_v32 = vpop.f32.mrf.mxu2 }
  0xa3   : > { %v776_v44 = vpop.f32.mrf.mxu3 }
  0xaa   : > { %v691_v51 = vpop.f32.mrf.mxu2  ;;  %v675_v54 = vpop.f32.mrf.mxu0 }
  0xab   : > { %v898_v56 = vpop.f32.mrf.mxu3  ;;  %v884_v58 = vpop.f32.mrf.mxu1  ;;  %v690_v60 = vadd.f32 %v689_v32, %v675_v54  ;;  %v7572_v54 = vld [vmem:[%s8721_s5 + $0xc8] sm:$0xff] }
  0xac   : > { %v899_v1 = vadd.f32 %v898_v56, %v884_v58  ;;  %1659 = vmatpush.bf16.msrb.mxu2 %v7572_v54  ;;  %v7552_v56 = vld [vmem:[%s8721_s5 + $0x28] sm:$0xff] }
  0xb0   : > { %1660 = vmatpush.bf16.msrb.mxu2 %v7571_v15  ;;  %v1356_v15 = vld [vmem:[#allocation4 + $0x8] sm:$0xfe] }
  0xb2   : > { %v677_v10 = vpop.f32.mrf.mxu0 }
  0xb3   : > { %v692_v12 = vadd.f32 %v691_v51, %v677_v10  ;;  %v900_v13 = vpop.f32.mrf.mxu3  ;;  %v886_v14 = vpop.f32.mrf.mxu1  ;;  %v7554_v51 = vld [vmem:[%s8721_s5 + $0x38] sm:$0xff]  ;;  %v7557_v10 = vld [vmem:[%s8721_s5 + $0x50] sm:$0xff] }
  0xb4   : > { %v760_v63 = vpop.f32.mrf.mxu2  ;;  %v901_v20 = vadd.f32 %v900_v13, %v886_v14  ;;  %1540 = vmatpush.bf16.msra.mxu1 %v7554_v51  ;;  %1661 = vmatpush.bf16.msrb.mxu2 %v7570_v61  ;;  %v7547_v13 = vld [vmem:[%s8721_s5] sm:$0xff]  ;;  %v7566_v14 = vld [vmem:[%s8721_s5 + $0x98] sm:$0xff] }
  0xb5   : > { %v761_v2 = vadd.f32 %v760_v63, %v690_v60  ;;  %v7551_v60 = vld [vmem:[%s8721_s5 + $0x20] sm:$0xff]  ;;  %v1380_v63 = vpack.c.bf16 %v1354_v62, %v1354_v62 }
  0xb7   : > { %v775_v6 = vadd.f32 %v8081_v21, %v761_v2  ;;  %v7550_v2 = vld [vmem:[%s8721_s5 + $0x18] sm:$0xff]  ;;  %6037 = vmatmul.msk.bf16.vlgmr.msrb.gmra.mxu1 %vm500_vm0, %v1380_v63  ;;  %v1567_v63 = vpack.c.bf16 %v1358_v59, %v1356_v15  ;;  %v7602_v15 = vld [vmem:[%s8723_s7 + $0xe0] sm:$0xff]  ;;  %v7596_v59 = vld [vmem:[%s8723_s7 + $0xb0] sm:$0xff] }
  0xb8   : > { %1541 = vmatpush.bf16.msra.mxu1 %v7553_v53  ;;  %1662 = vmatpush.bf16.msrb.mxu2 %v7569_v3 }
  0xb9   : > { %v903_v9 = vadd.f32 %v899_v1, %v775_v6  ;;  %v7559_v1 = vld [vmem:[%s8721_s5 + $0x60] sm:$0xff]  ;;  %v7558_v6 = vld [vmem:[%s8721_s5 + $0x58] sm:$0xff] }
  0xba   : > { %v1081_v57 = vpop.f32.mrf.mxu0  ;;  %1461 = vmatpush.bf16.msrb.mxu3 %v7559_v1 }
  0xbb   : > { %v909_v11 = vadd.f32 %v7883_v7, %v903_v9  ;;  %v1166_v58 = vpop.f32.mrf.mxu1  ;;  %v7548_v9 = vld [vmem:[%s8721_s5 + $0x8] sm:$0xff] }
  0xbc   : > { %v762_v16 = vpop.f32.mrf.mxu2  ;;  %1542 = vmatpush.bf16.msra.mxu1 %v7552_v56  ;;  %1663 = vmatpush.bf16.msrb.mxu2 %v7568_v8 }
  0xbd   : > { %v911_v17 = vmax.f32 %v909_v11, 0.0  ;;  %v763_v18 = vadd.f32 %v762_v16, %v692_v12  ;;  %v7567_v11 = vld [vmem:[%s8721_s5 + $0xa0] sm:$0xff]  ;;  %v7556_v12 = vld [vmem:[%s8721_s5 + $0x48] sm:$0xff] }
  0xbe   : > { %1462 = vmatpush.bf16.msrb.mxu3 %v7558_v6 }
  0xbf   : > { %v915_v19 = vrot.slane %v911_v17, 7  ;;  %v777_v21 = vadd.f32 %v776_v44, %v763_v18 }
  0xc0   : > { %1543 = vmatpush.bf16.msra.mxu1 %v7551_v60  ;;  %1664 = vmatpush.bf16.msrb.mxu2 %v7567_v11 }
  0xc1   : > { %921 = vst [vmem:[#allocation2] sm:$0xfe] %v915_v19  ;;  %v904_v22 = vadd.f32 %v901_v20, %v777_v21 }
  0xc2   : > { %v1083_v4 = vpop.f32.mrf.mxu0  ;;  %1463 = vmatpush.bf16.msrb.mxu3 %v7557_v10  ;;  %v1595_v10 = vshrl.u32 %v1567_v63, 16 }
  0xc3   : > { %v910_v23 = vadd.f32 %v7883_v7, %v904_v22  ;;  %v1168_v5 = vpop.f32.mrf.mxu1  ;;  %v7549_v7 = vld [vmem:[%s8721_s5 + $0x10] sm:$0xff] }
  0xc4   : > { %1544 = vmatpush.bf16.msra.mxu1 %v7550_v2  ;;  %1665 = vmatpush.bf16.msrb.mxu2 %v7566_v14 }
  0xc5   : > { %v912_v24 = vmax.f32 %v910_v23, 0.0 }
  0xc6   : > { %1464 = vmatpush.bf16.msrb.mxu3 %v7556_v12 }
  0xc7   : > { %v916_v25 = vrot.slane %v912_v24, 7  ;;  %v7884_v24 = vld [vmem:[%s8720_s4 + $0x1] ss:$0 sm:$0xff] }
  0xc8   : > { %v924_v26 = vld [vmem:[#allocation2] sm:$0xff]  ;;  %1545 = vmatpush.bf16.msra.mxu1 %v7549_v7 }
  0xc9   : > { %v949_v27 = vld [vmem:[#allocation2] sm:$0xfe]  ;;  %v917_v28 = vsel %vm522_vm3, %v915_v19, %v916_v25  ;;  %923 = vst [vmem:[#allocation2 + $0x20] sm:$0x1] %v916_v25  ;;  %v7573_v25 = vld [vmem:[%s8721_s5 + $0xd0] sm:$0xff] }
  0xca   : > { %v928_v29 = vpack.c.bf16 %v917_v28, %v924_v26  ;;  %v953_v30 = vpack.c.bf16 %v917_v28, %v949_v27  ;;  %v1171_v31 = vld [vmem:[#allocation2] sm:$0xfc]  ;;  %v7565_v26 = vld [vmem:[%s8721_s5 + $0x90] sm:$0xff] }
  0xcb   : > { %v1175_v35 = vpack.c.bf16 %v917_v28, %v1171_v31  ;;  %v1289_v17 = vpop.f32.mrf.mxu1  ;;  %v7555_v27 = vld [vmem:[%s8721_s5 + $0x40] sm:$0xff]  ;;  %1666 = vmatpush.bf16.msrb.mxu2 %v7565_v26  ;;  %v7575_v26 = vld [vmem:[%s8723_s7 + $0x8] sm:$0xff] }
  0xcc   : > { %1151 = vmatmul.bf16.vlgmr.msra.gmra.mxu2 %v928_v29  ;;  %v979_v32 = vshll.u32 %v953_v30, 16  ;;  %v977_v43 = vshrl.u32 %v953_v30, 16  ;;  %1546 = vmatpush.bf16.msra.mxu1 %v7548_v9 }
  0xcd   : > { %v1202_v41 = vrot.slane %v1175_v35, 1  ;;  %1560 = vmatpush.bf16.msrb.mxu0 %v7555_v27  ;;  %v7585_v27 = vld [vmem:[%s8723_s7 + $0x58] sm:$0xff] }
  0xce   : > { %v981_v40 = vrot.slane %v979_v32, 1 }
  0xd0   : > { %v1173_v36 = vld [vmem:[#allocation2 + $0x20] sm:$0x3]  ;;  %v982_v46 = vor.u32 %v981_v40, %v977_v43  ;;  %1547 = vmatpush.bf16.msra.mxu1 %v7547_v13 }
  0xd1   : > { %v951_v37 = vld [vmem:[#allocation2 + $0x20] sm:$0x1]  ;;  %v1177_v38 = vpack.c.bf16 %v1173_v36, %v1173_v36 }
  0xd2   : > { %v955_v39 = vpack.c.bf16 %v951_v37, %v951_v37 }
  0xd3   : > { %v1203_v42 = vrot.slane %v1177_v38, 1  ;;  %v1291_v31 = vpop.f32.mrf.mxu1 }
  0xd4   : > { %v984_v44 = vshll.u32 %v955_v39, 16 }
  0xd5   : > { %v1204_v45 = vsel %vm810_vm4, %v1202_v41, %v1203_v42 }
  0xd6   : > { %v986_v47 = vrot.slane %v984_v44, 1  ;;  %1274 = vmatmul.bf16.vlgmr.msra.gmra.mxu0 %v1204_v45  ;;  %v1352_v44 = vld [vmem:[#allocation4 + $0x8] sm:$0xff] }
  0xd8   : > { %v987_v48 = vsel %vm583_vm2, %v982_v46, %v986_v47 }
  0xd9   : > { %1066 = vmatmul.bf16.vlgmr.msra.gmra.mxu3 %v987_v48 }
  0xda   : > { %1679 = vmatpush.bf16.msra.mxu3 %v7573_v25  ;;  %v7580_v25 = vld [vmem:[%s8723_s7 + $0x30] sm:$0xff] }
 0x134   : > { %v1479_v12 = vpop.f32.mrf.mxu1 }
 0x13c   : > { %v1481_v13 = vpop.f32.mrf.mxu1 }
 0x14f   : > { %v1152_v18 = vpop.f32.mrf.mxu2 }
 0x153   : > { %v1275_v16 = vpop.f32.mrf.mxu0 }
 0x154   : > { %v1290_v22 = vadd.f32 %v1289_v17, %v1275_v16  ;;  %v7583_v17 = vld [vmem:[%s8723_s7 + $0x48] sm:$0xff] }
 0x155   : > { %1754 = vmatpush.bf16.msra.mxu0 %v7583_v17 }
 0x157   : > { %v1154_v36 = vpop.f32.mrf.mxu2 }
 0x15b   : > { %v1277_v30 = vpop.f32.mrf.mxu0 }
 0x15c   : > { %v1067_v19 = vpop.f32.mrf.mxu3  ;;  %v1292_v39 = vadd.f32 %v1291_v31, %v1277_v30  ;;  %v7574_v30 = vld [vmem:[%s8723_s7] sm:$0xff] }
 0x15d   : > { %v1082_v20 = vadd.f32 %v1081_v57, %v1067_v19  ;;  %v7588_v19 = vld [vmem:[%s8723_s7 + $0x70] sm:$0xff] }
 0x15f   : > { %v1153_v21 = vadd.f32 %v1152_v18, %v1082_v20  ;;  %v7578_v18 = vld [vmem:[%s8723_s7 + $0x20] sm:$0xff] }
 0x160   : > { %1800 = vmatpush.bf16.msrb.mxu1 %v7578_v18  ;;  %v7582_v20 = vld [vmem:[%s8723_s7 + $0x40] sm:$0xff] }
 0x161   : > { %v1167_v23 = vadd.f32 %v1166_v58, %v1153_v21  ;;  %v7577_v21 = vld [vmem:[%s8723_s7 + $0x18] sm:$0xff]  ;;  %1755 = vmatpush.bf16.msra.mxu0 %v7582_v20 }
 0x163   : > { %v1294_v28 = vadd.f32 %v1290_v22, %v1167_v23  ;;  %v7587_v22 = vld [vmem:[%s8723_s7 + $0x68] sm:$0xff]  ;;  %v7581_v23 = vld [vmem:[%s8723_s7 + $0x38] sm:$0xff] }
 0x164   : > { %v1069_v29 = vpop.f32.mrf.mxu3  ;;  %1801 = vmatpush.bf16.msrb.mxu1 %v7577_v21 }
 0x165   : > { %v1301_v32 = vadd.f32 %v7884_v24, %v1294_v28  ;;  %v1084_v35 = vadd.f32 %v1083_v4, %v1069_v29  ;;  %1756 = vmatpush.bf16.msra.mxu0 %v7581_v23  ;;  %v7579_v29 = vld [vmem:[%s8723_s7 + $0x28] sm:$0xff]  ;;  %v7613_v23 = vld [vmem:[%s8723_s7 + $0x138] sm:$0xff] }
 0x167   : > { %v8185_v37 = vadd.f32 %v1301_v32, %v8068_v33  ;;  %v1155_v38 = vadd.f32 %v1154_v36, %v1084_v35  ;;  %v1360_v33 = vpack.c.bf16 %v1352_v44, %v1352_v44  ;;  %v7584_v32 = vld [vmem:[%s8723_s7 + $0x50] sm:$0xff]  ;;  %v7885_v44 = vld [vmem:[%s8722_s6] ss:$0 sm:$0xff] }
 0x168   : > { %1802 = vmatpush.bf16.msrb.mxu1 %v7576_v0  ;;  %v7608_v0 = vld [vmem:[%s8723_s7 + $0x110] sm:$0xff] }
 0x169   : > { %1305 = vst [vmem:[#allocation5] sm:$0x1] %v8185_v37  ;;  %v1169_v40 = vadd.f32 %v1168_v5, %v1155_v38  ;;  %v1310_v41 = vrot.slane %v8185_v37, 2  ;;  %v1316_v42 = vrot.slane %v8185_v37, 4  ;;  %v1322_v43 = vrot.slane %v8185_v37, 6  ;;  %6074 = vmatmul.msk.bf16.vlgmr.msrb.gmra.mxu0 %vm500_vm0, %v1360_v33 }
 0x16a   : > { %v1307_v45 = vrot.slane %v8185_v37, 1  ;;  %v1313_v47 = vrot.slane %v8185_v37, 3  ;;  %v1319_v48 = vrot.slane %v8185_v37, 5  ;;  %v1325_v50 = vrot.slane %v8185_v37, 7  ;;  %1757 = vmatpush.bf16.msra.mxu0 %v7580_v25  ;;  %v7612_v25 = vld [vmem:[%s8723_s7 + $0x130] sm:$0xff] }
 0x16b   : > { %v1295_v46 = vadd.f32 %v1292_v39, %v1169_v40  ;;  %1312 = vst [vmem:[#allocation5 + $0x1] sm:$0x1] %v1310_v41  ;;  %v1597_v5 = vshll.u32 %v1567_v63, 16  ;;  %v7590_v63 = vld [vmem:[%s8723_s7 + $0x80] sm:$0xff] }
 0x16c   : > { %1318 = vst [vmem:[#allocation5 + $0x2] sm:$0x1] %v1316_v42  ;;  %1803 = vmatpush.bf16.msrb.mxu1 %v7575_v26  ;;  %v7607_v26 = vld [vmem:[%s8723_s7 + $0x108] sm:$0xff] }
 0x16d   : > { %v1302_v49 = vadd.f32 %v7884_v24, %v1295_v46  ;;  %1324 = vst [vmem:[#allocation5 + $0x3] sm:$0x1] %v1322_v43  ;;  %v1599_v9 = vrot.slane %v1597_v5, 1  ;;  %v7586_v24 = vld [vmem:[%s8723_s7 + $0x60] sm:$0xff] }
 0x16e   : > { %1309 = vst [vmem:[#allocation4 + $0x1] sm:$0x1] %v1307_v45  ;;  %1758 = vmatpush.bf16.msra.mxu0 %v7579_v29  ;;  %v7606_v29 = vld [vmem:[%s8723_s7 + $0x100] sm:$0xff] }
 0x16f   : > { %v8197_v51 = vadd.f32 %v1302_v49, %v8070_v34  ;;  %1315 = vst [vmem:[#allocation4 + $0x2] sm:$0x1] %v1313_v47  ;;  %v1600_v11 = vor.u32 %v1599_v9, %v1595_v10 }
 0x170   : > { %1321 = vst [vmem:[#allocation4 + $0x3] sm:$0x1] %v1319_v48  ;;  %1804 = vmatpush.bf16.msrb.mxu1 %v7574_v30  ;;  %v7616_v30 = vld [vmem:[%s8723_s7 + $0x150] sm:$0xff] }
 0x171   : > { %1328 = vst [vmem:[#allocation5 + $0x4] sm:$0x1] %v8197_v51  ;;  %v1333_v52 = vrot.slane %v8197_v51, 2  ;;  %v1339_v53 = vrot.slane %v8197_v51, 4  ;;  %v1345_v54 = vrot.slane %v8197_v51, 6  ;;  %v1330_v55 = vrot.slane %v8197_v51, 1 }
 0x172   : > { %1327 = vst [vmem:[#allocation4 + $0x4] sm:$0x1] %v1325_v50  ;;  %v1336_v56 = vrot.slane %v8197_v51, 3  ;;  %v1342_v34 = vrot.slane %v8197_v51, 5  ;;  %v1348_v57 = vrot.slane %v8197_v51, 7 }
 0x173   : > { %1335 = vst [vmem:[#allocation5 + $0x5] sm:$0x1] %v1333_v52 }
 0x174   : > { %1341 = vst [vmem:[#allocation5 + $0x6] sm:$0x1] %v1339_v53 }
 0x175   : > { %1347 = vst [vmem:[#allocation5 + $0x7] sm:$0x1] %v1345_v54 }
 0x176   : > { %1332 = vst [vmem:[#allocation4 + $0x5] sm:$0x1] %v1330_v55  ;;  %v7598_v55 = vld [vmem:[%s8723_s7 + $0xc0] sm:$0xff] }
 0x177   : > { %1338 = vst [vmem:[#allocation4 + $0x6] sm:$0x1] %v1336_v56  ;;  %v7593_v56 = vld [vmem:[%s8723_s7 + $0x98] sm:$0xff]  ;;  %1939 = vmatpush.bf16.msra.mxu2 %v7598_v55 }
 0x178   : > { %1344 = vst [vmem:[#allocation4 + $0x7] sm:$0x1] %v1342_v34  ;;  %v7603_v34 = vld [vmem:[%s8723_s7 + $0xe8] sm:$0xff]  ;;  %1985 = vmatpush.bf16.msrb.mxu0 %v7593_v56 }
 0x179   : > { %1350 = vst [vmem:[#allocation4 + $0x10] sm:$0x1] %v1348_v57  ;;  %v7597_v57 = vld [vmem:[%s8723_s7 + $0xb8] sm:$0xff] }
 0x17b   : > { %1940 = vmatpush.bf16.msra.mxu2 %v7597_v57  ;;  %v7623_v57 = vld [vmem:[%s8723_s7 + $0x188] sm:$0xff] }
 0x17c   : > { %v1353_v58 = vld [vmem:[#allocation5] sm:$0xff] }
 0x17d   : > { %v1379_v60 = vpack.c.bf16 %v1353_v58, %v1353_v58  ;;  %v7592_v58 = vld [vmem:[%s8723_s7 + $0x90] sm:$0xff] }
 0x17e   : > { %1986 = vmatpush.bf16.msrb.mxu0 %v7592_v58  ;;  %v7633_v58 = vld [vmem:[%s8723_s7 + $0x1d8] sm:$0xff] }
 0x17f   : > { %1465 = vmatmul.bf16.vlgmr.msrb.gmra.mxu3 %v1379_v60  ;;  %v1351_v61 = vld [vmem:[#allocation4] sm:$0xff]  ;;  %v7591_v60 = vld [vmem:[%s8723_s7 + $0x88] sm:$0xff]  ;;  %1941 = vmatpush.bf16.msra.mxu2 %v7596_v59 }
 0x180   : > { %v1355_v62 = vld [vmem:[#allocation4] sm:$0xfe]  ;;  %v1359_v1 = vpack.c.bf16 %v1351_v61, %v1351_v61  ;;  %v1357_v2 = vld [vmem:[#allocation4 + $0x10] sm:$0x1]  ;;  %1859 = vmatpush.bf16.msrb.mxu3 %v7588_v19  ;;  %v7601_v61 = vld [vmem:[%s8723_s7 + $0xd8] sm:$0xff] }
 0x181   : > { %v1566_v3 = vpack.c.bf16 %v1357_v2, %v1355_v62  ;;  %v7595_v62 = vld [vmem:[%s8723_s7 + $0xa8] sm:$0xff]  ;;  %v7594_v2 = vld [vmem:[%s8723_s7 + $0xa0] sm:$0xff] }
 0x182   : > { %1548 = vmatmul.bf16.vlgmr.msra.gmra.mxu1 %v1359_v1  ;;  %1987 = vmatpush.bf16.msrb.mxu0 %v7591_v60  ;;  %v7600_v1 = vld [vmem:[%s8723_s7 + $0xd0] sm:$0xff]  ;;  %v7622_v59 = vld [vmem:[%s8723_s7 + $0x180] sm:$0xff] }
 0x183   : > { %v1590_v4 = vshll.u32 %v1566_v3, 16  ;;  %v1588_v6 = vshrl.u32 %v1566_v3, 16  ;;  %2044 = vmatpush.bf16.msra.mxu1 %v7603_v34  ;;  %1942 = vmatpush.bf16.msra.mxu2 %v7595_v62  ;;  %v7589_v3 = vld [vmem:[%s8723_s7 + $0x78] sm:$0xff]  ;;  %v7632_v60 = vld [vmem:[%s8723_s7 + $0x1d0] sm:$0xff] }
 0x184   : > { %1860 = vmatpush.bf16.msrb.mxu3 %v7587_v22  ;;  %v7621_v62 = vld [vmem:[%s8723_s7 + $0x178] sm:$0xff] }
 0x185   : > { %v1592_v7 = vrot.slane %v1590_v4, 1  ;;  %v7599_v4 = vld [vmem:[%s8723_s7 + $0xc8] sm:$0xff] }
 0x186   : > { %1988 = vmatpush.bf16.msrb.mxu0 %v7590_v63  ;;  %v7631_v63 = vld [vmem:[%s8723_s7 + $0x1c8] sm:$0xff] }
 0x187   : > { %v1593_v8 = vor.u32 %v1592_v7, %v1588_v6  ;;  %2045 = vmatpush.bf16.msra.mxu1 %v7602_v15  ;;  %1943 = vmatpush.bf16.msra.mxu2 %v7594_v2  ;;  %v7627_v15 = vld [vmem:[%s8723_s7 + $0x1a8] sm:$0xff]  ;;  %v7620_v2 = vld [vmem:[%s8723_s7 + $0x170] sm:$0xff] }
 0x188   : > { %1861 = vmatpush.bf16.msrb.mxu3 %v7586_v24  ;;  %v7618_v24 = vld [vmem:[%s8723_s7 + $0x160] sm:$0xff] }
 0x189   : > { %1667 = vmatmul.bf16.vlgmr.msrb.gmra.mxu2 %v1593_v8  ;;  %v7886_v8 = vld [vmem:[%s8724_s8] ss:$0 sm:$0xff] }
 0x18a   : > { %1989 = vmatpush.bf16.msrb.mxu0 %v7589_v3  ;;  %v7630_v3 = vld [vmem:[%s8723_s7 + $0x1c0] sm:$0xff] }
 0x18b   : > { %2046 = vmatpush.bf16.msra.mxu1 %v7601_v61  ;;  %2171 = vmatpush.bf16.msrb.mxu2 %v7608_v0  ;;  %v7626_v61 = vld [vmem:[%s8723_s7 + $0x1a0] sm:$0xff] }
 0x18c   : > { %1862 = vmatpush.bf16.msrb.mxu3 %v7585_v27  ;;  %v7617_v27 = vld [vmem:[%s8723_s7 + $0x158] sm:$0xff] }
 0x18f   : > { %6129 = vmatmul.msk.bf16.vlgmr.msra.gmra.mxu3 %vm500_vm0, %v1600_v11  ;;  %2047 = vmatpush.bf16.msra.mxu1 %v7600_v1  ;;  %v7625_v1 = vld [vmem:[%s8723_s7 + $0x198] sm:$0xff] }
 0x190   : > { %1863 = vmatpush.bf16.msrb.mxu3 %v7584_v32  ;;  %2172 = vmatpush.bf16.msrb.mxu2 %v7607_v26  ;;  %v7605_v32 = vld [vmem:[%s8723_s7 + $0xf8] sm:$0xff]  ;;  %v7638_v26 = vld [vmem:[%s8725_s9 + $0x20] sm:$0xff] }
 0x193   : > { %2048 = vmatpush.bf16.msra.mxu1 %v7599_v4  ;;  %v7624_v4 = vld [vmem:[%s8723_s7 + $0x190] sm:$0xff] }
 0x194   : > { %2125 = vmatpush.bf16.msra.mxu3 %v7613_v23  ;;  %2173 = vmatpush.bf16.msrb.mxu2 %v7606_v29  ;;  %v7652_v29 = vld [vmem:[%s8725_s9 + $0xb8] sm:$0xff] }
 0x198   : > { %2126 = vmatpush.bf16.msra.mxu3 %v7612_v25  ;;  %2174 = vmatpush.bf16.msrb.mxu2 %v7605_v32  ;;  %v7653_v25 = vld [vmem:[%s8725_s9 + $0xc0] sm:$0xff]  ;;  %v7646_v32 = vld [vmem:[%s8725_s9 + $0x38] sm:$0xff] }
 0x1e6   : > { %v1562_v14 = vpop.f32.mrf.mxu0 }
 0x1ee   : > { %v1564_v16 = vpop.f32.mrf.mxu0 }
 0x1ff   : > { %v1549_v28 = vpop.f32.mrf.mxu1 }
 0x202   : > { %v1466_v31 = vpop.f32.mrf.mxu3 }
 0x203   : > { %v1480_v38 = vadd.f32 %v1479_v12, %v1466_v31  ;;  %v7610_v31 = vld [vmem:[%s8723_s7 + $0x120] sm:$0xff] }
 0x205   : > { %v1550_v40 = vadd.f32 %v1549_v28, %v1480_v38  ;;  %v7611_v28 = vld [vmem:[%s8723_s7 + $0x128] sm:$0xff]  ;;  %v7604_v38 = vld [vmem:[%s8723_s7 + $0xf0] sm:$0xff] }
 0x206   : > { %2127 = vmatpush.bf16.msra.mxu3 %v7611_v28  ;;  %2175 = vmatpush.bf16.msrb.mxu2 %v7604_v38  ;;  %v7647_v28 = vld [vmem:[%s8725_s9 + $0x40] sm:$0xff]  ;;  %v7641_v38 = vld [vmem:[%s8725_s9 + $0x88] sm:$0xff] }
 0x207   : > { %v1551_v35 = vpop.f32.mrf.mxu1  ;;  %v1563_v42 = vadd.f32 %v1562_v14, %v1550_v40 }
 0x208   : > { %v7615_v35 = vld [vmem:[%s8723_s7 + $0x148] sm:$0xff] }
 0x20a   : > { %v1468_v36 = vpop.f32.mrf.mxu3  ;;  %2128 = vmatpush.bf16.msra.mxu3 %v7610_v31  ;;  %v7642_v31 = vld [vmem:[%s8725_s9 + $0x90] sm:$0xff] }
 0x20b   : > { %v7609_v36 = vld [vmem:[%s8723_s7 + $0x118] sm:$0xff] }
 0x20c   : > { %v1668_v39 = vpop.f32.mrf.mxu2 }
 0x20e   : > { %2129 = vmatpush.bf16.msra.mxu3 %v7609_v36  ;;  %v7636_v36 = vld [vmem:[%s8725_s9 + $0x10] sm:$0xff] }
 0x212   : > { %v1681_v41 = vpop.f32.mrf.mxu3 }
 0x213   : > { %v1682_v43 = vadd.f32 %v1681_v41, %v1668_v39  ;;  %v7614_v39 = vld [vmem:[%s8723_s7 + $0x140] sm:$0xff] }
 0x214   : > { %v1670_v45 = vpop.f32.mrf.mxu2 }
 0x215   : > { %v1685_v46 = vadd.f32 %v1682_v43, %v1563_v42 }
 0x217   : > { %v8259_v47 = vadd.f32 %v7885_v44, %v1685_v46  ;;  %v7887_v44 = vld [vmem:[%s8724_s8 + $0x1] ss:$0 sm:$0xff] }
 0x219   : > { %1692 = vst.msk [vmem:[#allocation3 + $0x1] sm:$0xff] %vm1691_vm8, %v8259_v47 }
 0x21a   : > { %v1683_v33 = vpop.f32.mrf.mxu3 }
 0x220   : > { %v1705_v48 = vld [vmem:[#allocation3 + $0x1] sm:$0xff] }
 0x221   : > { %v1693_v49 = vld [vmem:[#allocation3] sm:$0xff]  ;;  %v1706_v52 = vpack.c.bf16 %v1705_v48, %v1705_v48 }
 0x222   : > { %v1810_v50 = vld [vmem:[#allocation3 + $0x2] sm:$0xff]  ;;  %v1694_v53 = vpack.c.bf16 %v1693_v49, %v1693_v49 }
 0x223   : > { %v1811_v54 = vpack.c.bf16 %v1810_v50, %v1810_v50  ;;  %6160 = vmatmul.msk.bf16.vlgmr.msra.gmra.mxu0 %vm507_vm6, %v1706_v52 }
 0x224   : > { %6181 = vmatmul.msk.bf16.vlgmr.msrb.gmra.mxu1 %vm507_vm6, %v1694_v53  ;;  %2230 = vmatpush.bf16.msra.mxu0 %v7618_v24  ;;  %v7648_v24 = vld [vmem:[%s8725_s9 + $0x48] sm:$0xff] }
 0x225   : > { %6212 = vmatmul.msk.bf16.vlgmr.msrb.gmra.mxu3 %vm507_vm6, %v1811_v54 }
 0x226   : > { %2357 = vmatpush.bf16.msrb.mxu3 %v7623_v57 }
 0x228   : > { %2231 = vmatpush.bf16.msra.mxu0 %v7617_v27  ;;  %v7643_v27 = vld [vmem:[%s8725_s9 + $0x98] sm:$0xff] }
 0x22a   : > { %2358 = vmatpush.bf16.msrb.mxu3 %v7622_v59  ;;  %v7654_v59 = vld [vmem:[%s8725_s9 + $0x50] sm:$0xff] }
 0x22c   : > { %2232 = vmatpush.bf16.msra.mxu0 %v7616_v30  ;;  %v7637_v30 = vld [vmem:[%s8725_s9 + $0x18] sm:$0xff] }
 0x22e   : > { %2359 = vmatpush.bf16.msrb.mxu3 %v7621_v62 }
 0x230   : > { %2233 = vmatpush.bf16.msra.mxu0 %v7615_v35  ;;  %v7651_v35 = vld [vmem:[%s8725_s9 + $0xb0] sm:$0xff] }
 0x232   : > { %2360 = vmatpush.bf16.msrb.mxu3 %v7620_v2 }
 0x234   : > { %2234 = vmatpush.bf16.msra.mxu0 %v7614_v39  ;;  %v7645_v39 = vld [vmem:[%s8725_s9 + $0x30] sm:$0xff] }
 0x2a0   : > { %v1760_v5 = vpop.f32.mrf.mxu0 }
 0x2a1   : > { %v1806_v6 = vpop.f32.mrf.mxu1 }
 0x2a2   : > { %v1807_v7 = vadd.f32 %v1806_v6, %v1760_v5  ;;  %v7619_v5 = vld [vmem:[%s8723_s7 + $0x168] sm:$0xff]  ;;  %v7629_v6 = vld [vmem:[%s8723_s7 + $0x1b8] sm:$0xff] }
 0x2a3   : > { %2361 = vmatpush.bf16.msrb.mxu3 %v7619_v5 }
 0x2a8   : > { %v1865_v10 = vpop.f32.mrf.mxu3  ;;  %v1762_v11 = vpop.f32.mrf.mxu0 }
 0x2a9   : > { %v1869_v9 = vadd.f32 %v1865_v10, %v1807_v7  ;;  %v1808_v12 = vpop.f32.mrf.mxu1  ;;  %v7888_v11 = vld [vmem:[%s8724_s8 + $0x2] ss:$0 sm:$0xff] }
 0x2ab   : > { %v1874_v13 = vadd.f32 %v7886_v8, %v1869_v9 }
 0x2ad   : > { %v1875_v14 = vmax.f32 %v1874_v13, 0.0 }
 0x2af   : > { %1876 = vst.msk [vmem:[#allocation3 + $0x1] sm:$0xff] %vm1691_vm8, %v1875_v14 }
 0x2b0   : > { %v1867_v16 = vpop.f32.mrf.mxu3 }
 0x2b6   : > { %v1890_v17 = vld [vmem:[#allocation3 + $0x1] sm:$0xff] }
 0x2b7   : > { %v1877_v18 = vld [vmem:[#allocation3] sm:$0xff]  ;;  %v1891_v20 = vpack.c.bf16 %v1890_v17, %v1890_v17 }
 0x2b8   : > { %v1995_v19 = vld [vmem:[#allocation3 + $0x2] sm:$0xff]  ;;  %v1878_v21 = vpack.c.bf16 %v1877_v18, %v1877_v18 }
 0x2b9   : > { %v1996_v22 = vpack.c.bf16 %v1995_v19, %v1995_v19  ;;  %6253 = vmatmul.msk.bf16.vlgmr.msra.gmra.mxu2 %vm507_vm6, %v1891_v20 }
 0x2ba   : > { %6274 = vmatmul.msk.bf16.vlgmr.msrb.gmra.mxu0 %vm507_vm6, %v1878_v21  ;;  %2416 = vmatpush.bf16.msra.mxu2 %v7633_v58 }
 0x2bb   : > { %6305 = vmatmul.msk.bf16.vlgmr.msra.gmra.mxu1 %vm507_vm6, %v1996_v22  ;;  %2507 = vmatpush.bf16.msrb.mxu0 %v7648_v24  ;;  %v7678_v24 = vld [vmem:[#allocation7 + $0x220] sm:$0xff] }
 0x2be   : > { %2417 = vmatpush.bf16.msra.mxu2 %v7632_v60  ;;  %v7659_v60 = vld [vmem:[%s8725_s9 + $0xc8] sm:$0xff] }
 0x2bf   : > { %2508 = vmatpush.bf16.msrb.mxu0 %v7647_v28 }
 0x2c2   : > { %2418 = vmatpush.bf16.msra.mxu2 %v7631_v63 }
 0x2c3   : > { %2509 = vmatpush.bf16.msrb.mxu0 %v7646_v32 }
 0x2c6   : > { %2419 = vmatpush.bf16.msra.mxu2 %v7630_v3 }
 0x2c7   : > { %2510 = vmatpush.bf16.msrb.mxu0 %v7645_v39 }
 0x2ca   : > { %2420 = vmatpush.bf16.msra.mxu2 %v7629_v6 }
 0x337   : > { %v1991_v40 = vpop.f32.mrf.mxu0 }
 0x338   : > { %v2050_v41 = vpop.f32.mrf.mxu1 }
 0x33c   : > { %v1945_v42 = vpop.f32.mrf.mxu2 }
 0x33d   : > { %v1992_v43 = vadd.f32 %v1991_v40, %v1945_v42  ;;  %v7650_v40 = vld [vmem:[%s8725_s9 + $0xa8] sm:$0xff]  ;;  %v7640_v42 = vld [vmem:[%s8725_s9 + $0x80] sm:$0xff] }
 0x33f   : > { %v1993_v45 = vpop.f32.mrf.mxu0  ;;  %v2054_v46 = vadd.f32 %v2050_v41, %v1992_v43  ;;  %v7635_v41 = vld [vmem:[%s8725_s9 + $0x8] sm:$0xff] }
 0x340   : > { %v2052_v33 = vpop.f32.mrf.mxu1  ;;  %v7644_v43 = vld [vmem:[%s8725_s9 + $0x28] sm:$0xff]  ;;  %v7634_v45 = vld [vmem:[%s8725_s9] sm:$0xff] }
 0x341   : > { %v2060_v48 = vadd.f32 %v7887_v44, %v2054_v46  ;;  %v7649_v44 = vld [vmem:[%s8725_s9 + $0xa0] sm:$0xff]  ;;  %v7639_v46 = vld [vmem:[%s8725_s9 + $0x78] sm:$0xff]  ;;  %v7658_v33 = vld [vmem:[%s8725_s9 + $0x70] sm:$0xff]  ;;  %2511 = vmatpush.bf16.msrb.mxu0 %v7644_v43 }
 0x342   : > { %v7685_v43 = vld [vmem:[#allocation7 + $0x258] sm:$0xff] }
 0x343   : > { %v8367_v49 = vadd.f32 %v2060_v48, %v8259_v47  ;;  %v7628_v47 = vld [vmem:[%s8723_s7 + $0x1b0] sm:$0xff]  ;;  %v7663_v48 = vld [vmem:[%s8725_s9 + $0xe8] sm:$0xff] }
 0x344   : > { %v1947_v50 = vpop.f32.mrf.mxu2  ;;  %2311 = vmatpush.bf16.msrb.mxu1 %v7628_v47 }
 0x345   : > { %2062 = vst.msk [vmem:[#allocation3 + $0x1] sm:$0xff] %vm1691_vm8, %v8367_v49  ;;  %v7657_v50 = vld [vmem:[%s8725_s9 + $0x68] sm:$0xff] }
 0x348   : > { %2312 = vmatpush.bf16.msrb.mxu1 %v7627_v15  ;;  %v7889_v15 = vld [vmem:[%s8724_s8 + $0x3] ss:$0 sm:$0xff] }
 0x34c   : > { %v2076_v52 = vld [vmem:[#allocation3 + $0x1] sm:$0xff]  ;;  %2313 = vmatpush.bf16.msrb.mxu1 %v7626_v61 }
 0x34d   : > { %v2063_v53 = vld [vmem:[#allocation3] sm:$0xff]  ;;  %v2077_v55 = vpack.c.bf16 %v2076_v52, %v2076_v52  ;;  %v7662_v52 = vld [vmem:[%s8725_s9 + $0xe0] sm:$0xff] }
 0x34e   : > { %v2181_v54 = vld [vmem:[#allocation3 + $0x2] sm:$0xff]  ;;  %v2064_v56 = vpack.c.bf16 %v2063_v53, %v2063_v53  ;;  %v7656_v53 = vld [vmem:[%s8725_s9 + $0x60] sm:$0xff] }
 0x34f   : > { %v2182_v34 = vpack.c.bf16 %v2181_v54, %v2181_v54  ;;  %6347 = vmatmul.msk.bf16.vlgmr.msra.gmra.mxu3 %vm507_vm6, %v2077_v55  ;;  %v7661_v54 = vld [vmem:[%s8725_s9 + $0xd8] sm:$0xff] }
 0x350   : > { %6368 = vmatmul.msk.bf16.vlgmr.msrb.gmra.mxu2 %vm507_vm6, %v2064_v56  ;;  %2314 = vmatpush.bf16.msrb.mxu1 %v7625_v1  ;;  %v7655_v56 = vld [vmem:[%s8725_s9 + $0x58] sm:$0xff] }
 0x351   : > { %6399 = vmatmul.msk.bf16.vlgmr.msra.gmra.mxu0 %vm507_vm6, %v2182_v34  ;;  %2607 = vmatpush.bf16.msra.mxu3 %v7638_v26  ;;  %v7660_v34 = vld [vmem:[%s8725_s9 + $0xd0] sm:$0xff]  ;;  %v2840_v26 = vld [vmem:[#allocation2 + $0x28] sm:$0x1] }
 0x352   : > { %2650 = vmatpush.bf16.msrb.mxu2 %v7643_v27  ;;  %2709 = vmatpush.bf16.msra.mxu0 %v7658_v33  ;;  %v2844_v32 = vpack.c.bf16 %v2840_v26, %v2840_v26 }
 0x354   : > { %2315 = vmatpush.bf16.msrb.mxu1 %v7624_v4  ;;  %v2884_v39 = vshll.u32 %v2844_v32, 16 }
 0x355   : > { %2608 = vmatpush.bf16.msra.mxu3 %v7637_v30 }
 0x356   : > { %2651 = vmatpush.bf16.msrb.mxu2 %v7642_v31  ;;  %2710 = vmatpush.bf16.msra.mxu0 %v7657_v50  ;;  %v7667_v31 = vld [vmem:[#allocation7 + $0x1c8] sm:$0xff] }
 0x358   : > { %2561 = vmatpush.bf16.msra.mxu1 %v7653_v25  ;;  %v7686_v25 = vld [vmem:[#allocation7 + $0x260] sm:$0xff] }
 0x359   : > { %2609 = vmatpush.bf16.msra.mxu3 %v7636_v36 }
 0x35a   : > { %2652 = vmatpush.bf16.msrb.mxu2 %v7641_v38  ;;  %2711 = vmatpush.bf16.msra.mxu0 %v7656_v53  ;;  %v7684_v53 = vld [vmem:[#allocation7 + $0x250] sm:$0xff] }
 0x35c   : > { %2562 = vmatpush.bf16.msra.mxu1 %v7652_v29 }
 0x35d   : > { %2610 = vmatpush.bf16.msra.mxu3 %v7635_v41  ;;  %v7677_v41 = vld [vmem:[#allocation7 + $0x218] sm:$0xff] }
 0x35e   : > { %2653 = vmatpush.bf16.msrb.mxu2 %v7640_v42  ;;  %2712 = vmatpush.bf16.msra.mxu0 %v7655_v56  ;;  %v2886_v42 = vrot.slane %v2884_v39, 1 }
 0x360   : > { %2563 = vmatpush.bf16.msra.mxu1 %v7651_v35 }
 0x361   : > { %2611 = vmatpush.bf16.msra.mxu3 %v7634_v45 }
 0x362   : > { %2654 = vmatpush.bf16.msrb.mxu2 %v7639_v46  ;;  %2713 = vmatpush.bf16.msra.mxu0 %v7654_v59  ;;  %v7676_v46 = vld [vmem:[#allocation7 + $0x210] sm:$0xff] }
 0x363   : > { %v7664_v59 = vld [vmem:[#allocation7 + $0x1b0] sm:$0xff] }
 0x364   : > { %2564 = vmatpush.bf16.msra.mxu1 %v7650_v40 }
 0x368   : > { %2565 = vmatpush.bf16.msra.mxu1 %v7649_v44  ;;  %v7666_v44 = vld [vmem:[#allocation7 + $0x1c0] sm:$0xff] }
 0x3ce   : > { %v2236_v7 = vpop.f32.mrf.mxu0 }
 0x3d2   : > { %v2131_v8 = vpop.f32.mrf.mxu3 }
 0x3d3   : > { %v2177_v10 = vpop.f32.mrf.mxu2 }
 0x3d4   : > { %v2178_v9 = vadd.f32 %v2177_v10, %v2131_v8 }
 0x3d6   : > { %v2240_v12 = vadd.f32 %v2236_v7, %v2178_v9  ;;  %v2238_v13 = vpop.f32.mrf.mxu0  ;;  %v7681_v9 = vld [vmem:[#allocation7 + $0x238] sm:$0xff] }
 0x3d8   : > { %v2246_v14 = vadd.f32 %v7888_v11, %v2240_v12  ;;  %v7689_v11 = vld [vmem:[#allocation7 + $0x278] sm:$0xff]  ;;  %v7670_v12 = vld [vmem:[#allocation7 + $0x1e0] sm:$0xff] }
 0x3da   : > { %v2247_v16 = vmax.f32 %v2246_v14, 0.0  ;;  %v2133_v17 = vpop.f32.mrf.mxu3 }
 0x3db   : > { %v2179_v18 = vpop.f32.mrf.mxu2  ;;  %v7688_v17 = vld [vmem:[#allocation7 + $0x270] sm:$0xff] }
 0x3dc   : > { %2248 = vst.msk [vmem:[#allocation3 + $0x1] sm:$0xff] %vm1691_vm8, %v2247_v16  ;;  %v7680_v16 = vld [vmem:[#allocation7 + $0x230] sm:$0xff]  ;;  %v7669_v18 = vld [vmem:[#allocation7 + $0x1d8] sm:$0xff] }
 0x3e3   : > { %v2262_v19 = vld [vmem:[#allocation3 + $0x1] sm:$0xff] }
 0x3e4   : > { %v2249_v20 = vld [vmem:[#allocation3] sm:$0xff]  ;;  %v2263_v22 = vpack.c.bf16 %v2262_v19, %v2262_v19  ;;  %v8527_v19 = vld [vmem:[#allocation2 + $0x18] sm:$0xff] }
 0x3e5   : > { %v2367_v21 = vld [vmem:[#allocation3 + $0x2] sm:$0xff]  ;;  %v2250_v23 = vpack.c.bf16 %v2249_v20, %v2249_v20  ;;  %v2838_v20 = vld [vmem:[#allocation2 + $0x8] sm:$0xfe] }
 0x3e6   : > { %v2368_v0 = vpack.c.bf16 %v2367_v21, %v2367_v21  ;;  %6441 = vmatmul.msk.bf16.vlgmr.msrb.gmra.mxu1 %vm507_vm6, %v2263_v22  ;;  %v7679_v21 = vld [vmem:[#allocation7 + $0x228] sm:$0xff] }
 0x3e7   : > { %6462 = vmatmul.msk.bf16.vlgmr.msrb.gmra.mxu3 %vm507_vm6, %v2250_v23  ;;  %2763 = vmatpush.bf16.msrb.mxu1 %v7663_v48  ;;  %v7687_v22 = vld [vmem:[#allocation7 + $0x268] sm:$0xff]  ;;  %v7668_v23 = vld [vmem:[#allocation7 + $0x1d0] sm:$0xff] }
 0x3e8   : > { %6493 = vmatmul.msk.bf16.vlgmr.msra.gmra.mxu2 %vm507_vm6, %v2368_v0  ;;  %2946 = vmatpush.bf16.msrb.mxu3 %v7680_v16  ;;  %v2842_v0 = vpack.c.bf16 %v8527_v19, %v2838_v20 }
 0x3e9   : > { %2967 = vmatpush.bf16.msra.mxu2 %v7681_v9 }
 0x3ea   : > { %v2877_v27 = vshrl.u32 %v2842_v0, 16  ;;  %v2879_v28 = vshll.u32 %v2842_v0, 16 }
 0x3eb   : > { %2764 = vmatpush.bf16.msrb.mxu1 %v7662_v52  ;;  %v7890_v52 = vld [vmem:[%s8726_s10] ss:$0 sm:$0xff] }
 0x3ec   : > { %2947 = vmatpush.bf16.msrb.mxu3 %v7679_v21  ;;  %v2881_v38 = vrot.slane %v2879_v28, 1 }
 0x3ee   : > { %v2882_v40 = vor.u32 %v2881_v38, %v2877_v27 }
 0x3ef   : > { %2765 = vmatpush.bf16.msrb.mxu1 %v7661_v54  ;;  %v7665_v54 = vld [vmem:[#allocation7 + $0x1b8] sm:$0xff] }
 0x3f0   : > { %2948 = vmatpush.bf16.msrb.mxu3 %v7678_v24  ;;  %v2887_v45 = vsel %vm583_vm2, %v2882_v40, %v2886_v42 }
 0x3f3   : > { %2766 = vmatpush.bf16.msrb.mxu1 %v7660_v34 }
 0x3f4   : > { %2949 = vmatpush.bf16.msrb.mxu3 %v7677_v41 }
 0x3f7   : > { %2767 = vmatpush.bf16.msrb.mxu1 %v7659_v60 }
 0x3f8   : > { %2950 = vmatpush.bf16.msrb.mxu3 %v7676_v46  ;;  %v7708_v46 = vld [vmem:[#allocation7 + $0x310] sm:$0xff] }
 0x463   : > { %v2317_v55 = vpop.f32.mrf.mxu1 }
 0x46a   : > { %v2363_v47 = vpop.f32.mrf.mxu3 }
 0x46b   : > { %v2364_v57 = vadd.f32 %v2363_v47, %v2317_v55  ;;  %v2422_v58 = vpop.f32.mrf.mxu2  ;;  %v2319_v61 = vpop.f32.mrf.mxu1  ;;  %v7675_v47 = vld [vmem:[#allocation7 + $0x208] sm:$0xff] }
 0x46c   : > { %2951 = vmatpush.bf16.msrb.mxu3 %v7675_v47  ;;  %v7674_v61 = vld [vmem:[#allocation7 + $0x200] sm:$0xff] }
 0x46d   : > { %v2426_v62 = vadd.f32 %v2422_v58, %v2364_v57 }
 0x46f   : > { %v2432_v63 = vadd.f32 %v7889_v15, %v2426_v62  ;;  %v7683_v15 = vld [vmem:[#allocation7 + $0x248] sm:$0xff]  ;;  %v7682_v62 = vld [vmem:[#allocation7 + $0x240] sm:$0xff] }
 0x470   : > { %2952 = vmatpush.bf16.msrb.mxu3 %v7674_v61  ;;  %v7713_v61 = vld [vmem:[#allocation7 + $0x338] sm:$0xff] }
 0x471   : > { %v2433_v1 = vadd.f32 %v2432_v63, %v8367_v49  ;;  %v7671_v49 = vld [vmem:[#allocation7 + $0x1e8] sm:$0xff] }
 0x472   : > { %v2365_v2 = vpop.f32.mrf.mxu3 }
 0x473   : > { %2434 = vst.msk [vmem:[#allocation3 + $0x1] sm:$0xff] %vm1691_vm8, %v2433_v1  ;;  %v2424_v3 = vpop.f32.mrf.mxu2 }
 0x474   : > { %v7673_v3 = vld [vmem:[#allocation7 + $0x1f8] sm:$0xff] }
 0x475   : > { %2953 = vmatpush.bf16.msrb.mxu3 %v7673_v3 }
 0x47a   : > { %v2458_v4 = vld [vmem:[#allocation3 + $0x1] sm:$0xff] }
 0x47b   : > { %v2435_v5 = vld [vmem:[#allocation3 + $0x2] sm:$0xff]  ;;  %v2459_v6 = vpack.c.bf16 %v2458_v4, %v2458_v4  ;;  %v7690_v4 = vld [vmem:[#allocation7 + $0x280] sm:$0xff] }
 0x47c   : > { %v2436_v7 = vpack.c.bf16 %v2435_v5, %v2435_v5  ;;  %v2660_v8 = vld [vmem:[#allocation3] sm:$0xff] }
 0x47d   : > { %6535 = vmatmul.msk.bf16.vlgmr.msrb.gmra.mxu0 %vm507_vm6, %v2459_v6  ;;  %6566 = vmatmul.msk.bf16.vlgmr.msra.gmra.mxu1 %vm507_vm6, %v2459_v6  ;;  %v2661_v10 = vpack.c.bf16 %v2660_v8, %v2660_v8  ;;  %v7672_v5 = vld [vmem:[#allocation7 + $0x1f0] sm:$0xff]  ;;  %v2813_v6 = vld [vmem:[#allocation2 + $0x8] sm:$0xff] }
 0x47e   : > { %6587 = vmatmul.msk.bf16.vlgmr.msra.gmra.mxu3 %vm507_vm6, %v2436_v7  ;;  %6608 = vmatmul.msk.bf16.vlgmr.msrb.gmra.mxu2 %vm507_vm6, %v2436_v7  ;;  %v8536_v7 = vpack.c.bf16 %v8527_v19, %v2813_v6 }
 0x47f   : > { %3031 = vmatpush.bf16.msrb.mxu0 %v7671_v49  ;;  %3154 = vmatpush.bf16.msrb.mxu2 %v7689_v11 }
 0x480   : > { %3175 = vmatpush.bf16.msra.mxu3 %v7690_v4  ;;  %3052 = vmatpush.bf16.msra.mxu1 %v7672_v5  ;;  %v7704_v4 = vld [vmem:[#allocation7 + $0x2f0] sm:$0xff] }
 0x481   : > { %v7692_v5 = vld [vmem:[#allocation7 + $0x290] sm:$0xff] }
 0x483   : > { %3032 = vmatpush.bf16.msrb.mxu0 %v7670_v12  ;;  %3155 = vmatpush.bf16.msrb.mxu2 %v7688_v17 }
 0x487   : > { %3033 = vmatpush.bf16.msrb.mxu0 %v7669_v18  ;;  %3156 = vmatpush.bf16.msrb.mxu2 %v7687_v22 }
 0x48b   : > { %3034 = vmatpush.bf16.msrb.mxu0 %v7668_v23  ;;  %3157 = vmatpush.bf16.msrb.mxu2 %v7686_v25 }
 0x48d   : > { %6639 = vmatmul.msk.bf16.vlgmr.msra.gmra.mxu0 %vm507_vm6, %v2661_v10  ;;  %6670 = vmatmul.msk.bf16.vlgmr.msrb.gmra.mxu1 %vm507_vm6, %v2661_v10 }
 0x48e   : > { %6707 = vmatmul.msk.bf16.vlgmr.msra.gmra.mxu2 %vm500_vm0, %v2887_v45  ;;  %v7696_v45 = vld [vmem:[#allocation7 + $0x2b0] sm:$0xff] }
 0x48f   : > { %3035 = vmatpush.bf16.msrb.mxu0 %v7667_v31  ;;  %3158 = vmatpush.bf16.msrb.mxu2 %v7685_v43  ;;  %v7698_v43 = vld [vmem:[#allocation7 + $0x2c0] sm:$0xff] }
 0x493   : > { %3036 = vmatpush.bf16.msrb.mxu0 %v7666_v44  ;;  %3159 = vmatpush.bf16.msrb.mxu2 %v7684_v53  ;;  %v7697_v44 = vld [vmem:[#allocation7 + $0x2b8] sm:$0xff]  ;;  %v7706_v53 = vld [vmem:[#allocation7 + $0x300] sm:$0xff] }
 0x497   : > { %3037 = vmatpush.bf16.msrb.mxu0 %v7665_v54  ;;  %3160 = vmatpush.bf16.msrb.mxu2 %v7683_v15  ;;  %v7694_v54 = vld [vmem:[#allocation7 + $0x2a0] sm:$0xff] }
 0x49b   : > { %3038 = vmatpush.bf16.msrb.mxu0 %v7664_v59  ;;  %3161 = vmatpush.bf16.msrb.mxu2 %v7682_v62 }
 0x49d   : > { %6744 = vmatmul.msk.bf16.vlgmr.msra.gmra.mxu1 %vm500_vm0, %v8536_v7 }
 0x49f   : > { %3359 = vmatpush.bf16.msra.mxu0 %v7708_v46 }
 0x4fa   : > { %v2513_v13 = vpop.f32.mrf.mxu0  ;;  %v2567_v14 = vpop.f32.mrf.mxu1 }
 0x501   : > { %v2613_v29 = vpop.f32.mrf.mxu3  ;;  %v2656_v30 = vpop.f32.mrf.mxu2 }
 0x502   : > { %v2515_v35 = vpop.f32.mrf.mxu0  ;;  %v2569_v36 = vpop.f32.mrf.mxu1  ;;  %v2614_v33 = vadd.f32 %v2613_v29, %v2513_v13  ;;  %v2657_v57 = vadd.f32 %v2656_v30, %v2567_v14 }
 0x503   : > { %v3060_v35 = vld [vmem:[#allocation2 + $0x8] sm:$0xfc]  ;;  %v3062_v36 = vld [vmem:[#allocation2 + $0x28] sm:$0x3] }
 0x504   : > { %v3064_v38 = vpack.c.bf16 %v8527_v19, %v3060_v35  ;;  %v3066_v39 = vpack.c.bf16 %v3062_v36, %v3062_v36 }
 0x506   : > { %v3093_v40 = vrot.slane %v3064_v38, 1  ;;  %v3094_v41 = vrot.slane %v3066_v39, 1 }
 0x508   : > { %v3095_v42 = vsel %vm810_vm4, %v3093_v40, %v3094_v41 }
 0x509   : > { %v2615_v48 = vpop.f32.mrf.mxu3  ;;  %v2658_v50 = vpop.f32.mrf.mxu2 }
 0x50a   : > { %v2715_v55 = vpop.f32.mrf.mxu0  ;;  %v2769_v56 = vpop.f32.mrf.mxu1  ;;  %v7707_v48 = vld [vmem:[#allocation7 + $0x308] sm:$0xff] }
 0x50b   : > { %v2773_v34 = vadd.f32 %v2715_v55, %v2614_v33  ;;  %v2774_v60 = vadd.f32 %v2769_v56, %v2657_v57  ;;  %v7716_v33 = vld [vmem:[#allocation7 + $0x350] sm:$0xff]  ;;  %v7695_v50 = vld [vmem:[#allocation7 + $0x2a8] sm:$0xff]  ;;  %3338 = vmatpush.bf16.msrb.mxu1 %v7707_v48  ;;  %v7714_v56 = vld [vmem:[#allocation7 + $0x340] sm:$0xff] }
 0x50c   : > { %v3230_v55 = vld [vmem:[#allocation2 + $0x8] sm:$0xfe]  ;;  %v3232_v57 = vld [vmem:[#allocation2 + $0x28] sm:$0x1] }
 0x50d   : > { %v2779_v58 = vadd.f32 %v7890_v52, %v2773_v34  ;;  %v2780_v2 = vadd.f32 %v7890_v52, %v2774_v60  ;;  %v7715_v52 = vld [vmem:[#allocation7 + $0x348] sm:$0xff]  ;;  %v3234_v34 = vpack.c.bf16 %v8527_v19, %v3230_v55  ;;  %v3236_v15 = vpack.c.bf16 %v3232_v57, %v3232_v57  ;;  %v7693_v60 = vld [vmem:[#allocation7 + $0x298] sm:$0xff] }
 0x50f   : > { %2781 = vst [vmem:[#allocation6] sm:$0x1] %v2779_v58  ;;  %3339 = vmatpush.bf16.msrb.mxu1 %v7706_v53  ;;  %v3271_v59 = vshll.u32 %v3234_v34, 16  ;;  %v3269_v62 = vshrl.u32 %v3234_v34, 16 }
 0x510   : > { %2783 = vst [vmem:[#allocation6 + $0x1] sm:$0x2] %v2779_v58 }
 0x511   : > { %2785 = vst [vmem:[#allocation6 + $0x2] sm:$0x4] %v2779_v58  ;;  %v2969_v47 = vpop.f32.mrf.mxu2 }
 0x512   : > { %2787 = vst [vmem:[#allocation6 + $0x3] sm:$0x8] %v2779_v58  ;;  %v2717_v63 = vpop.f32.mrf.mxu0  ;;  %v2771_v1 = vpop.f32.mrf.mxu1 }
 0x513   : > { %2789 = vst [vmem:[#allocation6 + $0x4] sm:$0x10] %v2779_v58  ;;  %v3273_v63 = vrot.slane %v3271_v59, 1  ;;  %v3276_v1 = vshll.u32 %v3236_v15, 16 }
 0x514   : > { %2791 = vst [vmem:[#allocation6 + $0x5] sm:$0x20] %v2779_v58 }
 0x515   : > { %2793 = vst [vmem:[#allocation6 + $0x6] sm:$0x40] %v2779_v58  ;;  %v3278_v3 = vrot.slane %v3276_v1, 1 }
 0x516   : > { %2795 = vst [vmem:[#allocation6 + $0x7] sm:$0x80] %v2779_v58  ;;  %v7705_v58 = vld [vmem:[#allocation7 + $0x2f8] sm:$0xff] }
 0x517   : > { %2782 = vst [vmem:[#allocation6 + $0x1] sm:$0x1] %v2780_v2  ;;  %3340 = vmatpush.bf16.msrb.mxu1 %v7705_v58 }
 0x518   : > { %2784 = vst [vmem:[#allocation6 + $0x2] sm:$0x2] %v2780_v2 }
 0x519   : > { %2786 = vst [vmem:[#allocation6 + $0x3] sm:$0x4] %v2780_v2 }
 0x51a   : > { %2788 = vst [vmem:[#allocation6 + $0x4] sm:$0x8] %v2780_v2 }
 0x51b   : > { %2790 = vst [vmem:[#allocation6 + $0x5] sm:$0x10] %v2780_v2  ;;  %3341 = vmatpush.bf16.msrb.mxu1 %v7704_v4 }
 0x51c   : > { %2792 = vst [vmem:[#allocation6 + $0x6] sm:$0x20] %v2780_v2 }
 0x51d   : > { %2794 = vst [vmem:[#allocation6 + $0x7] sm:$0x40] %v2780_v2 }
 0x51e   : > { %2796 = vst [vmem:[#allocation6 + $0x8] sm:$0x80] %v2780_v2  ;;  %v3274_v2 = vor.u32 %v3273_v63, %v3269_v62 }
 0x521   : > { %v2797_v8 = vld [vmem:[#allocation6] sm:$0xff] }
 0x522   : > { %v8541_v10 = vadd.f32 %v2797_v8, %v8185_v37  ;;  %v3279_v8 = vsel %vm583_vm2, %v3274_v2, %v3278_v3 }
 0x524   : > { %v2803_v49 = vrot.slane %v8541_v10, 7 }
 0x525   : > { %v2798_v9 = vld [vmem:[#allocation6 + $0x8] sm:$0xff] }
 0x526   : > { %v8545_v11 = vadd.f32 %v2798_v9, %v8197_v51  ;;  %2809 = vst [vmem:[#allocation2] sm:$0xfe] %v2803_v49  ;;  %v7703_v9 = vld [vmem:[#allocation7 + $0x2e8] sm:$0xff] }
 0x527   : > { %3342 = vmatpush.bf16.msrb.mxu1 %v7703_v9 }
 0x528   : > { %v2804_v12 = vrot.slane %v8545_v11, 7 }
 0x52a   : > { %2811 = vst [vmem:[#allocation2 + $0x20] sm:$0x1] %v2804_v12  ;;  %v2805_v13 = vsel %vm522_vm3, %v2803_v49, %v2804_v12  ;;  %v7712_v49 = vld [vmem:[#allocation7 + $0x330] sm:$0xff]  ;;  %v7711_v12 = vld [vmem:[#allocation7 + $0x328] sm:$0xff] }
 0x52d   : > { %v2812_v14 = vld [vmem:[#allocation2] sm:$0xff] }
 0x52e   : > { %v3059_v16 = vld [vmem:[#allocation2] sm:$0xfc]  ;;  %v2816_v18 = vpack.c.bf16 %v2805_v13, %v2812_v14  ;;  %v7691_v14 = vld [vmem:[#allocation7 + $0x288] sm:$0xff] }
 0x52f   : > { %v2837_v17 = vld [vmem:[#allocation2] sm:$0xfe]  ;;  %v3063_v20 = vpack.c.bf16 %v2805_v13, %v3059_v16 }
 0x530   : > { %v2841_v21 = vpack.c.bf16 %v2805_v13, %v2837_v17  ;;  %3039 = vmatmul.bf16.vlgmr.msrb.gmra.mxu0 %v2816_v18  ;;  %v2971_v13 = vpop.f32.mrf.mxu2  ;;  %v7702_v16 = vld [vmem:[#allocation7 + $0x2e0] sm:$0xff]  ;;  %v7699_v17 = vld [vmem:[#allocation7 + $0x2c8] sm:$0xff] }
 0x531   : > { %v3061_v22 = vld [vmem:[#allocation2 + $0x20] sm:$0x3]  ;;  %v3090_v23 = vrot.slane %v3063_v20, 1  ;;  %3546 = vmatpush.bf16.msrb.mxu0 %v7716_v33  ;;  %3444 = vmatpush.bf16.msra.mxu2 %v7699_v17  ;;  %v7725_v17 = vld [vmem:[%s8727_s11 + $0x38] sm:$0xff] }
 0x532   : > { %v2867_v37 = vshll.u32 %v2841_v21, 16  ;;  %v2839_v0 = vld [vmem:[#allocation2 + $0x20] sm:$0x1]  ;;  %v3065_v24 = vpack.c.bf16 %v3061_v22, %v3061_v22  ;;  %v2865_v25 = vshrl.u32 %v2841_v21, 16  ;;  %3343 = vmatpush.bf16.msrb.mxu1 %v7702_v16 }
 0x533   : > { %v2843_v51 = vpack.c.bf16 %v2839_v0, %v2839_v0  ;;  %v7710_v18 = vld [vmem:[#allocation7 + $0x320] sm:$0xff]  ;;  %v3054_v0 = vpop.f32.mrf.mxu1 }
 0x534   : > { %v2869_v26 = vrot.slane %v2867_v37, 1  ;;  %v3091_v27 = vrot.slane %v3065_v24, 1  ;;  %v7701_v37 = vld [vmem:[#allocation7 + $0x2d8] sm:$0xff] }
 0x535   : > { %v2872_v29 = vshll.u32 %v2843_v51, 16  ;;  %3547 = vmatpush.bf16.msrb.mxu0 %v7715_v52 }
 0x536   : > { %v2870_v28 = vor.u32 %v2869_v26, %v2865_v25  ;;  %v3092_v30 = vsel %vm810_vm4, %v3090_v23, %v3091_v27  ;;  %v7709_v23 = vld [vmem:[#allocation7 + $0x318] sm:$0xff]  ;;  %3344 = vmatpush.bf16.msrb.mxu1 %v7701_v37  ;;  %v7700_v25 = vld [vmem:[#allocation7 + $0x2d0] sm:$0xff] }
 0x537   : > { %v2874_v31 = vrot.slane %v2872_v29, 1  ;;  %3162 = vmatmul.bf16.vlgmr.msrb.gmra.mxu2 %v3092_v30  ;;  %v7891_v30 = vld [vmem:[%s8720_s4 + $0x2] ss:$0 sm:$0xff]  ;;  %v7721_v37 = vld [vmem:[%s8727_s11 + $0x18] sm:$0xff] }
 0x538   : > { %3654 = vmatpush.bf16.msrb.mxu2 %v7725_v17 }
 0x539   : > { %v2875_v32 = vsel %vm583_vm2, %v2870_v28, %v2874_v31  ;;  %3548 = vmatpush.bf16.msrb.mxu0 %v7714_v56  ;;  %v7717_v31 = vld [vmem:[#allocation7 + $0x358] sm:$0xff] }
 0x53a   : > { %2954 = vmatmul.bf16.vlgmr.msrb.gmra.mxu3 %v2875_v32  ;;  %3345 = vmatpush.bf16.msrb.mxu1 %v7700_v25 }
 0x53b   : > { %3423 = vmatpush.bf16.msrb.mxu3 %v7698_v43  ;;  %v3056_v39 = vpop.f32.mrf.mxu1 }
 0x53d   : > { %3549 = vmatpush.bf16.msrb.mxu0 %v7713_v61 }
 0x53e   : > { %3567 = vmatpush.bf16.msra.mxu1 %v7717_v31 }
 0x53f   : > { %3424 = vmatpush.bf16.msrb.mxu3 %v7697_v44 }
 0x540   : > { %6819 = vmatmul.msk.bf16.vlgmr.msra.gmra.mxu0 %vm500_vm0, %v3279_v8  ;;  %v3452_v8 = vld [vmem:[#allocation2 + $0x8] sm:$0xfc] }
 0x541   : > { %3550 = vmatpush.bf16.msrb.mxu0 %v7712_v49  ;;  %v3454_v49 = vld [vmem:[#allocation2 + $0x28] sm:$0x3]  ;;  %v3456_v9 = vpack.c.bf16 %v8527_v19, %v3452_v8 }
 0x542   : > { %v7727_v8 = vld [vmem:[#allocation7 + $0x368] sm:$0xff] }
 0x543   : > { %3425 = vmatpush.bf16.msrb.mxu3 %v7696_v45 }
 0x545   : > { %3551 = vmatpush.bf16.msrb.mxu0 %v7711_v12  ;;  %v3458_v12 = vpack.c.bf16 %v3454_v49, %v3454_v49 }
 0x547   : > { %3426 = vmatpush.bf16.msrb.mxu3 %v7695_v50  ;;  %6856 = vmatmul.msk.bf16.vlgmr.msra.gmra.mxu2 %vm500_vm0, %v8536_v7 }
 0x549   : > { %3552 = vmatpush.bf16.msrb.mxu0 %v7710_v18  ;;  %v7724_v18 = vld [vmem:[%s8727_s11 + $0x30] sm:$0xff] }
 0x54a   : > { %6781 = vmatmul.msk.bf16.vlgmr.msra.gmra.mxu3 %vm500_vm0, %v3095_v42  ;;  %3655 = vmatpush.bf16.msrb.mxu2 %v7724_v18  ;;  %v7743_v18 = vld [vmem:[#allocation7 + $0x3e8] sm:$0xff] }
 0x54b   : > { %3427 = vmatpush.bf16.msrb.mxu3 %v7694_v54 }
 0x54d   : > { %3553 = vmatpush.bf16.msrb.mxu0 %v7709_v23 }
 0x54f   : > { %3428 = vmatpush.bf16.msrb.mxu3 %v7693_v60 }
 0x553   : > { %3429 = vmatpush.bf16.msrb.mxu3 %v7692_v5 }
 0x557   : > { %3430 = vmatpush.bf16.msrb.mxu3 %v7691_v14  ;;  %v3486_v14 = vrot.slane %v3458_v12, 1  ;;  %v7747_v12 = vld [vmem:[#allocation7 + $0x408] sm:$0xff] }
 0x5ad   : > { %v3040_v22 = vpop.f32.mrf.mxu0 }
 0x5b5   : > { %v3042_v35 = vpop.f32.mrf.mxu0 }
 0x5ba   : > { %v3163_v51 = vpop.f32.mrf.mxu2 }
 0x5bd   : > { %v2955_v6 = vpop.f32.mrf.mxu3  ;;  %v3361_v23 = vpop.f32.mrf.mxu0 }
 0x5be   : > { %v2970_v21 = vadd.f32 %v2969_v47, %v2955_v6 }
 0x5c0   : > { %v3041_v24 = vadd.f32 %v3040_v22, %v2970_v21  ;;  %v7722_v21 = vld [vmem:[%s8727_s11 + $0x20] sm:$0xff]  ;;  %v7720_v22 = vld [vmem:[%s8727_s11 + $0x10] sm:$0xff] }
 0x5c2   : > { %v3055_v27 = vadd.f32 %v3054_v0, %v3041_v24  ;;  %v3165_v41 = vpop.f32.mrf.mxu2  ;;  %v7719_v0 = vld [vmem:[%s8727_s11 + $0x8] sm:$0xff]  ;;  %v7718_v24 = vld [vmem:[%s8727_s11] sm:$0xff] }
 0x5c5   : > { %v2957_v20 = vpop.f32.mrf.mxu3  ;;  %v3363_v25 = vpop.f32.mrf.mxu0 }
 0x5c6   : > { %v2972_v28 = vadd.f32 %v2971_v13, %v2957_v20  ;;  %v3485_v13 = vrot.slane %v3456_v9, 1  ;;  %v7723_v20 = vld [vmem:[%s8727_s11 + $0x28] sm:$0xff] }
 0x5c7   : > { %3656 = vmatpush.bf16.msrb.mxu2 %v7723_v20  ;;  %v7726_v20 = vld [vmem:[#allocation7 + $0x360] sm:$0xff] }
 0x5c8   : > { %v3043_v36 = vadd.f32 %v3042_v35, %v2972_v28  ;;  %v3487_v16 = vsel %vm810_vm4, %v3485_v13, %v3486_v14  ;;  %v7738_v14 = vld [vmem:[#allocation7 + $0x3c0] sm:$0xff] }
 0x5ca   : > { %v3057_v43 = vadd.f32 %v3056_v39, %v3043_v36  ;;  %v3446_v28 = vpop.f32.mrf.mxu2 }
 0x5cb   : > { %3657 = vmatpush.bf16.msrb.mxu2 %v7722_v21  ;;  %v7737_v21 = vld [vmem:[#allocation7 + $0x3b8] sm:$0xff] }
 0x5cd   : > { %v3177_v26 = vpop.f32.mrf.mxu3 }
 0x5ce   : > { %v3178_v29 = vadd.f32 %v3177_v26, %v3163_v51 }
 0x5cf   : > { %3658 = vmatpush.bf16.msrb.mxu2 %v7721_v37  ;;  %v3731_v37 = vld [vmem:[#allocation2 + $0x8] sm:$0xfe] }
 0x5d0   : > { %v3182_v32 = vadd.f32 %v3178_v29, %v3055_v27 }
 0x5d2   : > { %v3189_v38 = vadd.f32 %v7891_v30, %v3182_v32 }
 0x5d3   : > { %3659 = vmatpush.bf16.msrb.mxu2 %v7720_v22 }
 0x5d4   : > { %v3191_v40 = vmax.f32 %v3189_v38, 0.0 }
 0x5d5   : > { %v3179_v42 = vpop.f32.mrf.mxu3 }
 0x5d6   : > { %v3195_v44 = vrot.slane %v3191_v40, 7  ;;  %v3180_v45 = vadd.f32 %v3179_v42, %v3165_v41  ;;  %v3448_v41 = vpop.f32.mrf.mxu2 }
 0x5d7   : > { %3660 = vmatpush.bf16.msrb.mxu2 %v7719_v0  ;;  %v3735_v0 = vpack.c.bf16 %v8527_v19, %v3731_v37 }
 0x5d8   : > { %3201 = vst [vmem:[#allocation2] sm:$0xfe] %v3195_v44  ;;  %v3183_v46 = vadd.f32 %v3180_v45, %v3057_v43  ;;  %v7892_v43 = vld [vmem:[%s8720_s4 + $0x3] ss:$0 sm:$0xff] }
 0x5da   : > { %v3190_v33 = vadd.f32 %v7891_v30, %v3183_v46 }
 0x5db   : > { %3661 = vmatpush.bf16.msrb.mxu2 %v7718_v24  ;;  %v7745_v24 = vld [vmem:[#allocation7 + $0x3f8] sm:$0xff] }
 0x5dc   : > { %v3192_v48 = vmax.f32 %v3190_v33, 0.0 }
 0x5de   : > { %v3196_v50 = vrot.slane %v3192_v48, 7 }
 0x5df   : > { %v3204_v52 = vld [vmem:[#allocation2] sm:$0xff] }
 0x5e0   : > { %v3229_v53 = vld [vmem:[#allocation2] sm:$0xfe]  ;;  %v3197_v54 = vsel %vm522_vm3, %v3195_v44, %v3196_v50  ;;  %3203 = vst [vmem:[#allocation2 + $0x20] sm:$0x1] %v3196_v50 }
 0x5e1   : > { %v3208_v55 = vpack.c.bf16 %v3197_v54, %v3204_v52  ;;  %v3233_v56 = vpack.c.bf16 %v3197_v54, %v3229_v53  ;;  %v3451_v34 = vld [vmem:[#allocation2] sm:$0xfc] }
 0x5e2   : > { %v3455_v57 = vpack.c.bf16 %v3197_v54, %v3451_v34  ;;  %v7732_v34 = vld [vmem:[#allocation7 + $0x390] sm:$0xff] }
 0x5e3   : > { %3431 = vmatmul.bf16.vlgmr.msrb.gmra.mxu3 %v3208_v55  ;;  %v3259_v47 = vshll.u32 %v3233_v56, 16  ;;  %v3257_v1 = vshrl.u32 %v3233_v56, 16  ;;  %v7733_v56 = vld [vmem:[#allocation7 + $0x398] sm:$0xff] }
 0x5e4   : > { %v3482_v62 = vrot.slane %v3455_v57, 1  ;;  %3924 = vmatpush.bf16.msra.mxu0 %v7733_v56  ;;  %v7751_v57 = vld [vmem:[#allocation7 + $0x428] sm:$0xff] }
 0x5e5   : > { %v3261_v61 = vrot.slane %v3259_v47, 1  ;;  %v7731_v47 = vld [vmem:[#allocation7 + $0x388] sm:$0xff]  ;;  %4047 = vmatpush.bf16.msra.mxu2 %v7751_v57 }
 0x5e6   : > { %v3691_v57 = vld [vmem:[%s492_s29 + $0x8] sm:$0xff] }
 0x5e7   : > { %v3453_v58 = vld [vmem:[#allocation2 + $0x20] sm:$0x3]  ;;  %v3262_v4 = vor.u32 %v3261_v61, %v3257_v1  ;;  %v7740_v1 = vld [vmem:[#allocation7 + $0x3d0] sm:$0xff] }
 0x5e8   : > { %v3231_v15 = vld [vmem:[#allocation2 + $0x20] sm:$0x1]  ;;  %v3457_v59 = vpack.c.bf16 %v3453_v58, %v3453_v58  ;;  %3925 = vmatpush.bf16.msra.mxu0 %v7732_v34  ;;  %v3687_v34 = vld [vmem:[%s487_s26 + $0x8] sm:$0xff] }
 0x5e9   : > { %v3235_v60 = vpack.c.bf16 %v3231_v15, %v3231_v15  ;;  %v7742_v58 = vld [vmem:[#allocation7 + $0x3e0] sm:$0xff] }
 0x5ea   : > { %v3483_v63 = vrot.slane %v3457_v59, 1  ;;  %v7730_v15 = vld [vmem:[#allocation7 + $0x380] sm:$0xff]  ;;  %3839 = vmatpush.bf16.msra.mxu3 %v7742_v58 }
 0x5eb   : > { %v3264_v2 = vshll.u32 %v3235_v60, 16  ;;  %v7750_v59 = vld [vmem:[#allocation7 + $0x420] sm:$0xff]  ;;  %v7729_v60 = vld [vmem:[#allocation7 + $0x378] sm:$0xff] }
 0x5ec   : > { %v3484_v3 = vsel %vm810_vm4, %v3482_v62, %v3483_v63  ;;  %3926 = vmatpush.bf16.msra.mxu0 %v7731_v47  ;;  %4048 = vmatpush.bf16.msra.mxu2 %v7750_v59  ;;  %v7749_v62 = vld [vmem:[#allocation7 + $0x418] sm:$0xff] }
 0x5ed   : > { %v3266_v5 = vrot.slane %v3264_v2, 1  ;;  %3554 = vmatmul.bf16.vlgmr.msrb.gmra.mxu0 %v3484_v3  ;;  %v7728_v2 = vld [vmem:[#allocation7 + $0x370] sm:$0xff] }
 0x5ef   : > { %v3267_v6 = vsel %vm583_vm2, %v3262_v4, %v3266_v5  ;;  %v7748_v4 = vld [vmem:[#allocation7 + $0x410] sm:$0xff] }
 0x5f0   : > { %3346 = vmatmul.bf16.vlgmr.msrb.gmra.mxu1 %v3267_v6  ;;  %3927 = vmatpush.bf16.msra.mxu0 %v7730_v15  ;;  %v7739_v6 = vld [vmem:[#allocation7 + $0x3c8] sm:$0xff] }
 0x5f1   : > { %4049 = vmatpush.bf16.msra.mxu2 %v7749_v62  ;;  %3860 = vmatpush.bf16.msrb.mxu1 %v7743_v18  ;;  %v3953_v18 = vld [vmem:[#allocation2 + $0x8] sm:$0xfc] }
 0x5f4   : > { %3928 = vmatpush.bf16.msra.mxu0 %v7729_v60 }
 0x5f5   : > { %4050 = vmatpush.bf16.msra.mxu2 %v7748_v4 }
 0x5f8   : > { %3929 = vmatpush.bf16.msra.mxu0 %v7728_v2 }
 0x5f9   : > { %4051 = vmatpush.bf16.msra.mxu2 %v7747_v12 }
 0x5fc   : > { %3930 = vmatpush.bf16.msra.mxu0 %v7727_v8 }
 0x600   : > { %6893 = vmatmul.msk.bf16.vlgmr.msra.gmra.mxu1 %vm500_vm0, %v3487_v16  ;;  %v7746_v16 = vld [vmem:[#allocation7 + $0x400] sm:$0xff]  ;;  %3931 = vmatpush.bf16.msra.mxu0 %v7726_v20  ;;  %v3955_v20 = vld [vmem:[#allocation2 + $0x28] sm:$0x3] }
 0x601   : > { %4052 = vmatpush.bf16.msra.mxu2 %v7746_v16  ;;  %v3959_v37 = vpack.c.bf16 %v3955_v20, %v3955_v20 }
 0x605   : > { %4053 = vmatpush.bf16.msra.mxu2 %v7745_v24  ;;  %v7760_v24 = vld [vmem:[#allocation7 + $0x470] sm:$0xff] }
 0x666   : > { %v3432_v27 = vpop.f32.mrf.mxu3 }
 0x66a   : > { %v3555_v30 = vpop.f32.mrf.mxu0 }
 0x66d   : > { %v3347_v51 = vpop.f32.mrf.mxu1 }
 0x66e   : > { %v3362_v29 = vadd.f32 %v3361_v23, %v3347_v51  ;;  %v3434_v38 = vpop.f32.mrf.mxu3  ;;  %v3733_v23 = vld [vmem:[#allocation2 + $0x28] sm:$0x1] }
 0x66f   : > { %v3737_v51 = vpack.c.bf16 %v3733_v23, %v3733_v23  ;;  %v3987_v23 = vrot.slane %v3959_v37, 1 }
 0x670   : > { %v3433_v32 = vadd.f32 %v3432_v27, %v3362_v29  ;;  %v3770_v27 = vshrl.u32 %v3735_v0, 16 }
 0x672   : > { %v3447_v39 = vadd.f32 %v3446_v28, %v3433_v32  ;;  %v3557_v44 = vpop.f32.mrf.mxu0  ;;  %v3772_v28 = vshll.u32 %v3735_v0, 16 }
 0x674   : > { %v3774_v32 = vrot.slane %v3772_v28, 1  ;;  %v7769_v28 = vld [vmem:[#allocation7 + $0x4b8] sm:$0xff] }
 0x675   : > { %v3349_v26 = vpop.f32.mrf.mxu1 }
 0x676   : > { %v3364_v35 = vadd.f32 %v3363_v25, %v3349_v26 }
 0x678   : > { %v3435_v40 = vadd.f32 %v3434_v38, %v3364_v35  ;;  %v7744_v35 = vld [vmem:[#allocation7 + $0x3f0] sm:$0xff]  ;;  %v3775_v38 = vor.u32 %v3774_v32, %v3770_v27  ;;  %v7778_v27 = vld [vmem:[#allocation7 + $0x500] sm:$0xff] }
 0x679   : > { %4054 = vmatpush.bf16.msra.mxu2 %v7744_v35  ;;  %v8633_v35 = vld [vmem:[#allocation2 + $0x18] sm:$0xff] }
 0x67a   : > { %v3449_v46 = vadd.f32 %v3448_v41, %v3435_v40  ;;  %v7735_v40 = vld [vmem:[#allocation7 + $0x3a8] sm:$0xff] }
 0x67d   : > { %v3569_v31 = vpop.f32.mrf.mxu1 }
 0x67e   : > { %v3570_v36 = vadd.f32 %v3569_v31, %v3555_v30  ;;  %v7736_v30 = vld [vmem:[#allocation7 + $0x3b0] sm:$0xff]  ;;  %v3777_v31 = vshll.u32 %v3737_v51, 16  ;;  %v7759_v51 = vld [vmem:[#allocation7 + $0x468] sm:$0xff] }
 0x680   : > { %v3574_v42 = vadd.f32 %v3570_v36, %v3447_v39  ;;  %v3779_v36 = vrot.slane %v3777_v31, 1  ;;  %v7756_v31 = vld [vmem:[#allocation7 + $0x450] sm:$0xff] }
 0x682   : > { %v3581_v48 = vadd.f32 %v7892_v43, %v3574_v42  ;;  %v3780_v39 = vsel %vm583_vm2, %v3775_v38, %v3779_v36  ;;  %v4123_v36 = vld [vmem:[#allocation2 + $0x8] sm:$0xfe]  ;;  %v7776_v38 = vld [vmem:[#allocation7 + $0x4f0] sm:$0xff] }
 0x683   : > { %6963 = vmatmul.msk.bf16.vlgmr.msrb.gmra.mxu1 %vm500_vm0, %v3780_v39  ;;  %v4127_v39 = vpack.c.bf16 %v8633_v35, %v4123_v36 }
 0x684   : > { %v3583_v53 = vadd.f32 %v3581_v48, %v8541_v10  ;;  %v7893_v10 = vld [vmem:[%s8728_s12] ss:$0 sm:$0xff] }
 0x685   : > { %v3571_v45 = vpop.f32.mrf.mxu1 }
 0x686   : > { %v3572_v33 = vadd.f32 %v3571_v45, %v3557_v44  ;;  %v3686_v45 = vld [vmem:[%s487_s26] sm:$0xff] }
 0x688   : > { %v3575_v50 = vadd.f32 %v3572_v33, %v3449_v46  ;;  %v7752_v46 = vld [vmem:[#allocation7 + $0x430] sm:$0xff]  ;;  %v7734_v33 = vld [vmem:[#allocation7 + $0x3a0] sm:$0xff] }
 0x689   : > { %3945 = vmatpush.bf16.msra.mxu1 %v7734_v33 }
 0x68a   : > { %v3582_v52 = vadd.f32 %v7892_v43, %v3575_v50  ;;  %v3690_v50 = vld [vmem:[%s492_s29] sm:$0xff] }
 0x68c   : > { %v3584_v54 = vadd.f32 %v3582_v52, %v8545_v11  ;;  %v7741_v11 = vld [vmem:[#allocation7 + $0x3d8] sm:$0xff] }
 0x68d   : > { %3840 = vmatpush.bf16.msra.mxu3 %v7741_v11  ;;  %4231 = vmatpush.bf16.msrb.mxu1 %v7769_v28 }
 0x68e   : > { %v3585_v55 = vpack.c.bf16 %v3584_v54, %v3583_v53 }
 0x690   : > { %3662 = vmatmul.bf16.vlgmr.msrb.gmra.mxu2 %v3585_v55 }
 0x691   : > { %3841 = vmatpush.bf16.msra.mxu3 %v7740_v1 }
 0x693   : > { %7000 = vmatmul.msk.bf16.vlgmr.msra.gmra.mxu1 %vm500_vm0, %v8536_v7 }
 0x695   : > { %3842 = vmatpush.bf16.msra.mxu3 %v7739_v6 }
 0x699   : > { %3843 = vmatpush.bf16.msra.mxu3 %v7738_v14 }
 0x69d   : > { %3844 = vmatpush.bf16.msra.mxu3 %v7737_v21  ;;  %v3957_v21 = vpack.c.bf16 %v8527_v19, %v3953_v18  ;;  %v7777_v19 = vld [vmem:[#allocation7 + $0x4f8] sm:$0xff] }
 0x6a1   : > { %3845 = vmatpush.bf16.msra.mxu3 %v7736_v30  ;;  %v7768_v30 = vld [vmem:[#allocation7 + $0x4b0] sm:$0xff] }
 0x6a2   : > { %4232 = vmatpush.bf16.msrb.mxu1 %v7768_v30 }
 0x6a5   : > { %3846 = vmatpush.bf16.msra.mxu3 %v7735_v40  ;;  %v4125_v40 = vld [vmem:[#allocation2 + $0x28] sm:$0x1] }
 0x6a9   : > { %4068 = vmatpush.bf16.msrb.mxu3 %v7752_v46  ;;  %v4162_v46 = vshrl.u32 %v4127_v39, 16 }
 0x700   : > { %v3862_v32 = vpop.f32.mrf.mxu1 }
 0x713   : > { %v3663_v61 = vpop.f32.mrf.mxu2 }
 0x714   : > { %v8600_v63 = vadd.f32 %v7893_v10, %v3663_v61 }
 0x716   : > { %v3668_v3 = vand.u32 2147483647, %v8600_v63  ;;  %vm3680_vm9 = vcmp.ge.f32.partialorder %v8600_v63, 0.0 }
 0x718   : > { %v3670_v5 = vsub.f32 0.0, %v3668_v3 }
 0x71a   : > { %v3672_v49 = vmul.f32 1.442695, %v3670_v5 }
 0x71b   : > { %v3665_v9 = vpop.f32.mrf.mxu2 }
 0x71c   : > { %7899 = vpow2.f32 %v3672_v49  ;;  %v8603_v13 = vadd.f32 %v7893_v10, %v3665_v9 }
 0x71e   : > { %v3669_v17 = vand.u32 2147483647, %v8603_v13  ;;  %vm3681_vm10 = vcmp.ge.f32.partialorder %v8603_v13, 0.0 }
 0x720   : > { %v3671_v22 = vsub.f32 0.0, %v3669_v17 }
 0x722   : > { %v7900_v25 = vpop.eup %7899  ;;  %v3674_v26 = vmul.f32 1.442695, %v3671_v22  ;;  %v3986_v22 = vrot.slane %v3957_v21, 1 }
 0x723   : > { %v3676_v29 = vadd.f32 1.0, %v7900_v25 }
 0x724   : > { %7901 = vpow2.f32 %v3674_v26  ;;  %v3988_v0 = vsel %vm810_vm4, %v3986_v22, %v3987_v23  ;;  %v7770_v26 = vld [vmem:[#allocation7 + $0x4c0] sm:$0xff] }
 0x725   : > { %7903 = vrcp.f32 %v3676_v29  ;;  %4252 = vmatpush.bf16.msrb.mxu0 %v7770_v26  ;;  %v7757_v29 = vld [vmem:[#allocation7 + $0x458] sm:$0xff] }
 0x72a   : > { %v7902_v41 = vpop.eup %7901 }
 0x72b   : > { %v7904_v42 = vpop.eup %7903  ;;  %v3677_v43 = vadd.f32 1.0, %v7902_v41 }
 0x72c   : > { %v3682_v44 = vmul.f32 %v7904_v42, %v7900_v25  ;;  %v7758_v25 = vld [vmem:[#allocation7 + $0x460] sm:$0xff] }
 0x72d   : > { %7905 = vrcp.f32 %v3677_v43  ;;  %v4164_v43 = vshll.u32 %v4127_v39, 16 }
 0x72e   : > { %v3684_v48 = vsel %vm3680_vm9, %v7904_v42, %v3682_v44  ;;  %v4129_v42 = vpack.c.bf16 %v4125_v40, %v4125_v40  ;;  %v7755_v44 = vld [vmem:[#allocation7 + $0x448] sm:$0xff] }
 0x72f   : > { %v3688_v52 = vmul.f32 %v3686_v45, %v3684_v48  ;;  %v7775_v45 = vld [vmem:[#allocation7 + $0x4e8] sm:$0xff]  ;;  %v4166_v33 = vrot.slane %v4164_v43, 1 }
 0x730   : > { %v4169_v48 = vshll.u32 %v4129_v42, 16 }
 0x731   : > { %v8618_v53 = vadd.f32 %v3690_v50, %v3688_v52  ;;  %v4167_v50 = vor.u32 %v4166_v33, %v4162_v46 }
 0x732   : > { %v4171_v52 = vrot.slane %v4169_v48, 1 }
 0x733   : > { %v7906_v54 = vpop.eup %7905  ;;  %v3696_v55 = vrot.slane %v8618_v53, 7 }
 0x734   : > { %v3683_v56 = vmul.f32 %v7906_v54, %v7902_v41  ;;  %v7767_v41 = vld [vmem:[#allocation7 + $0x4a8] sm:$0xff] }
 0x735   : > { %3702 = vst [vmem:[#allocation2] sm:$0xfe] %v3696_v55  ;;  %4233 = vmatpush.bf16.msrb.mxu1 %v7767_v41 }
 0x736   : > { %v3685_v47 = vsel %vm3681_vm10, %v7906_v54, %v3683_v56  ;;  %v7766_v54 = vld [vmem:[#allocation7 + $0x4a0] sm:$0xff] }
 0x737   : > { %v3689_v58 = vmul.f32 %v3687_v34, %v3685_v47  ;;  %v4172_v34 = vsel %vm583_vm2, %v4167_v50, %v4171_v52  ;;  %v7774_v47 = vld [vmem:[#allocation7 + $0x4e0] sm:$0xff] }
 0x739   : > { %v8622_v15 = vadd.f32 %v3691_v57, %v3689_v58  ;;  %4234 = vmatpush.bf16.msrb.mxu1 %v7766_v54  ;;  %v3864_v57 = vpop.f32.mrf.mxu1  ;;  %v7765_v58 = vld [vmem:[#allocation7 + $0x498] sm:$0xff] }
 0x73b   : > { %v3697_v59 = vrot.slane %v8622_v15, 7 }
 0x73c   : > { %v3705_v10 = vld [vmem:[#allocation2] sm:$0xff] }
 0x73d   : > { %v3730_v11 = vld [vmem:[#allocation2] sm:$0xfe]  ;;  %v3698_v60 = vsel %vm522_vm3, %v3696_v55, %v3697_v59  ;;  %3704 = vst [vmem:[#allocation2 + $0x20] sm:$0x1] %v3697_v59  ;;  %v7773_v59 = vld [vmem:[#allocation7 + $0x4d8] sm:$0xff]  ;;  %4235 = vmatpush.bf16.msrb.mxu1 %v7765_v58 }
 0x73e   : > { %v3709_v61 = vpack.c.bf16 %v3698_v60, %v3705_v10  ;;  %v3734_v62 = vpack.c.bf16 %v3698_v60, %v3730_v11  ;;  %v3952_v63 = vld [vmem:[#allocation2] sm:$0xfc]  ;;  %v7753_v10 = vld [vmem:[#allocation7 + $0x438] sm:$0xff]  ;;  %v7764_v11 = vld [vmem:[#allocation7 + $0x490] sm:$0xff] }
 0x73f   : > { %v3956_v2 = vpack.c.bf16 %v3698_v60, %v3952_v63  ;;  %v7754_v55 = vld [vmem:[#allocation7 + $0x440] sm:$0xff]  ;;  %v7761_v60 = vld [vmem:[#allocation7 + $0x478] sm:$0xff] }
 0x740   : > { %3932 = vmatmul.bf16.vlgmr.msra.gmra.mxu0 %v3709_v61  ;;  %v3760_v1 = vshll.u32 %v3734_v62, 16  ;;  %v3758_v9 = vshrl.u32 %v3734_v62, 16  ;;  %v7772_v61 = vld [vmem:[#allocation7 + $0x4d0] sm:$0xff]  ;;  %4337 = vmatpush.bf16.msrb.mxu2 %v7761_v60 }
 0x741   : > { %v3983_v49 = vrot.slane %v3956_v2, 1  ;;  %4439 = vmatpush.bf16.msra.mxu0 %v7778_v27  ;;  %4236 = vmatpush.bf16.msrb.mxu1 %v7764_v11 }
 0x742   : > { %v3762_v8 = vrot.slane %v3760_v1, 1  ;;  %v7763_v1 = vld [vmem:[#allocation7 + $0x488] sm:$0xff] }
 0x744   : > { %v3954_v3 = vld [vmem:[#allocation2 + $0x20] sm:$0x3]  ;;  %v3763_v14 = vor.u32 %v3762_v8, %v3758_v9 }
 0x745   : > { %v3732_v4 = vld [vmem:[#allocation2 + $0x20] sm:$0x1]  ;;  %v3958_v5 = vpack.c.bf16 %v3954_v3, %v3954_v3  ;;  %4440 = vmatpush.bf16.msra.mxu0 %v7777_v19  ;;  %v7771_v3 = vld [vmem:[#allocation7 + $0x4c8] sm:$0xff]  ;;  %4237 = vmatpush.bf16.msrb.mxu1 %v7763_v1  ;;  %v7797_v1 = vld [vmem:[#allocation7 + $0x598] sm:$0xff] }
 0x746   : > { %v3736_v6 = vpack.c.bf16 %v3732_v4, %v3732_v4  ;;  %v3947_v4 = vpop.f32.mrf.mxu1  ;;  %v7762_v8 = vld [vmem:[#allocation7 + $0x480] sm:$0xff] }
 0x747   : > { %v3984_v7 = vrot.slane %v3958_v5, 1 }
 0x748   : > { %v3765_v12 = vshll.u32 %v3736_v6, 16 }
 0x749   : > { %v3985_v13 = vsel %vm810_vm4, %v3983_v49, %v3984_v7  ;;  %4441 = vmatpush.bf16.msra.mxu0 %v7776_v38  ;;  %v4098_v49 = vld [vmem:[#allocation2 + $0x8] sm:$0xff]  ;;  %4238 = vmatpush.bf16.msrb.mxu1 %v7762_v8 }
 0x74a   : > { %v3767_v16 = vrot.slane %v3765_v12, 1  ;;  %4055 = vmatmul.bf16.vlgmr.msra.gmra.mxu2 %v3985_v13  ;;  %v8639_v9 = vpack.c.bf16 %v8633_v35, %v4098_v49  ;;  %v7783_v8 = vld [vmem:[#allocation7 + $0x528] sm:$0xff] }
 0x74b   : > { %v4515_v49 = vld [vmem:[#allocation2 + $0x8] sm:$0xfe] }
 0x74c   : > { %v3768_v17 = vsel %vm583_vm2, %v3763_v14, %v3767_v16  ;;  %v7894_v16 = vld [vmem:[%s8720_s4 + $0x4] ss:$0 sm:$0xff] }
 0x74d   : > { %3847 = vmatmul.bf16.vlgmr.msra.gmra.mxu3 %v3768_v17  ;;  %4442 = vmatpush.bf16.msra.mxu0 %v7775_v45  ;;  %v7779_v17 = vld [vmem:[#allocation7 + $0x508] sm:$0xff] }
 0x74e   : > { %4316 = vmatpush.bf16.msra.mxu3 %v7760_v24  ;;  %4460 = vmatpush.bf16.msra.mxu1 %v7779_v17  ;;  %v3949_v22 = vpop.f32.mrf.mxu1 }
 0x750   : > { %7075 = vmatmul.msk.bf16.vlgmr.msrb.gmra.mxu0 %vm500_vm0, %v4172_v34 }
 0x751   : > { %4443 = vmatpush.bf16.msra.mxu0 %v7774_v47  ;;  %v4345_v47 = vld [vmem:[#allocation2 + $0x8] sm:$0xfc] }
 0x752   : > { %4317 = vmatpush.bf16.msra.mxu3 %v7759_v51  ;;  %v4349_v58 = vpack.c.bf16 %v8633_v35, %v4345_v47 }
 0x755   : > { %4444 = vmatpush.bf16.msra.mxu0 %v7773_v59 }
 0x756   : > { %4318 = vmatpush.bf16.msra.mxu3 %v7758_v25 }
 0x759   : > { %4445 = vmatpush.bf16.msra.mxu0 %v7772_v61  ;;  %v7787_v61 = vld [vmem:[#allocation7 + $0x548] sm:$0xff] }
 0x75a   : > { %4319 = vmatpush.bf16.msra.mxu3 %v7757_v29  ;;  %7112 = vmatmul.msk.bf16.vlgmr.msrb.gmra.mxu2 %vm500_vm0, %v8639_v9 }
 0x75d   : > { %7037 = vmatmul.msk.bf16.vlgmr.msrb.gmra.mxu3 %vm500_vm0, %v3988_v0  ;;  %4446 = vmatpush.bf16.msra.mxu0 %v7771_v3  ;;  %v7796_v3 = vld [vmem:[#allocation7 + $0x590] sm:$0xff] }
 0x75e   : > { %4320 = vmatpush.bf16.msra.mxu3 %v7756_v31  ;;  %4623 = vmatpush.bf16.msra.mxu2 %v7796_v3 }
 0x762   : > { %4321 = vmatpush.bf16.msra.mxu3 %v7755_v44 }
 0x766   : > { %4322 = vmatpush.bf16.msra.mxu3 %v7754_v55 }
 0x76a   : > { %4323 = vmatpush.bf16.msra.mxu3 %v7753_v10  ;;  %v4378_v10 = vrot.slane %v4349_v58, 1 }
 0x76e   : > { %4644 = vmatpush.bf16.msrb.mxu3 %v7797_v1 }
 0x7bd   : > { %v3933_v2 = vpop.f32.mrf.mxu0 }
 0x7c5   : > { %v3935_v20 = vpop.f32.mrf.mxu0 }
 0x7cd   : > { %v4056_v6 = vpop.f32.mrf.mxu2 }
 0x7d0   : > { %v3848_v56 = vpop.f32.mrf.mxu3 }
 0x7d1   : > { %v3863_v63 = vadd.f32 %v3862_v32, %v3848_v56 }
 0x7d3   : > { %v3934_v5 = vadd.f32 %v3933_v2, %v3863_v63  ;;  %v7785_v63 = vld [vmem:[#allocation7 + $0x538] sm:$0xff] }
 0x7d4   : > { %v7805_v2 = vld [vmem:[#allocation7 + $0x5d8] sm:$0xff] }
 0x7d5   : > { %v3948_v12 = vadd.f32 %v3947_v4, %v3934_v5  ;;  %v4058_v0 = vpop.f32.mrf.mxu2  ;;  %v7784_v4 = vld [vmem:[#allocation7 + $0x530] sm:$0xff] }
 0x7d6   : > { %v7804_v5 = vld [vmem:[#allocation7 + $0x5d0] sm:$0xff] }
 0x7d8   : > { %v3850_v62 = vpop.f32.mrf.mxu3 }
 0x7d9   : > { %v3865_v13 = vadd.f32 %v3864_v57, %v3850_v62  ;;  %v4347_v57 = vld [vmem:[#allocation2 + $0x28] sm:$0x3]  ;;  %v7786_v62 = vld [vmem:[#allocation7 + $0x540] sm:$0xff] }
 0x7da   : > { %v4351_v59 = vpack.c.bf16 %v4347_v57, %v4347_v57 }
 0x7db   : > { %v3936_v21 = vadd.f32 %v3935_v20, %v3865_v13  ;;  %v4254_v13 = vpop.f32.mrf.mxu0  ;;  %v7782_v20 = vld [vmem:[#allocation7 + $0x520] sm:$0xff] }
 0x7dc   : > { %v4379_v11 = vrot.slane %v4351_v59, 1 }
 0x7dd   : > { %v3950_v51 = vadd.f32 %v3949_v22, %v3936_v21  ;;  %v7802_v21 = vld [vmem:[#allocation7 + $0x5c0] sm:$0xff] }
 0x7de   : > { %v4380_v60 = vsel %vm810_vm4, %v4378_v10, %v4379_v11 }
 0x7e0   : > { %v4070_v7 = vpop.f32.mrf.mxu3 }
 0x7e1   : > { %v4071_v14 = vadd.f32 %v4070_v7, %v4056_v6  ;;  %v7795_v6 = vld [vmem:[#allocation7 + $0x588] sm:$0xff] }
 0x7e2   : > { %4624 = vmatpush.bf16.msra.mxu2 %v7795_v6  ;;  %v7803_v7 = vld [vmem:[#allocation7 + $0x5c8] sm:$0xff] }
 0x7e3   : > { %v4075_v18 = vadd.f32 %v4071_v14, %v3948_v12  ;;  %v4519_v12 = vpack.c.bf16 %v8633_v35, %v4515_v49  ;;  %v4517_v14 = vld [vmem:[#allocation2 + $0x28] sm:$0x1] }
 0x7e4   : > { %v4521_v17 = vpack.c.bf16 %v4517_v14, %v4517_v14 }
 0x7e5   : > { %v4082_v37 = vadd.f32 %v7894_v16, %v4075_v18  ;;  %v4556_v18 = vshll.u32 %v4519_v12, 16 }
 0x7e7   : > { %v4084_v23 = vmax.f32 %v4082_v37, 0.0  ;;  %v4554_v37 = vshrl.u32 %v4519_v12, 16  ;;  %v4558_v22 = vrot.slane %v4556_v18, 1 }
 0x7e8   : > { %v4072_v24 = vpop.f32.mrf.mxu3 }
 0x7e9   : > { %v4088_v25 = vrot.slane %v4084_v23, 7  ;;  %v4073_v26 = vadd.f32 %v4072_v24, %v4058_v0  ;;  %v4561_v23 = vshll.u32 %v4521_v17, 16  ;;  %v4559_v0 = vor.u32 %v4558_v22, %v4554_v37 }
 0x7eb   : > { %4094 = vst [vmem:[#allocation2] sm:$0xfe] %v4088_v25  ;;  %v4076_v27 = vadd.f32 %v4073_v26, %v3950_v51  ;;  %v4563_v24 = vrot.slane %v4561_v23, 1  ;;  %v7793_v51 = vld [vmem:[#allocation7 + $0x578] sm:$0xff] }
 0x7ed   : > { %v4083_v28 = vadd.f32 %v7894_v16, %v4076_v27  ;;  %v7794_v16 = vld [vmem:[#allocation7 + $0x580] sm:$0xff]  ;;  %v4564_v27 = vsel %vm583_vm2, %v4559_v0, %v4563_v24 }
 0x7ee   : > { %4625 = vmatpush.bf16.msra.mxu2 %v7794_v16 }
 0x7ef   : > { %v4085_v29 = vmax.f32 %v4083_v28, 0.0  ;;  %v7801_v28 = vld [vmem:[#allocation7 + $0x5b8] sm:$0xff] }
 0x7f1   : > { %v4089_v19 = vrot.slane %v4085_v29, 7  ;;  %v7792_v29 = vld [vmem:[#allocation7 + $0x570] sm:$0xff] }
 0x7f2   : > { %v4097_v30 = vld [vmem:[#allocation2] sm:$0xff]  ;;  %4626 = vmatpush.bf16.msra.mxu2 %v7793_v51 }
 0x7f3   : > { %v4122_v31 = vld [vmem:[#allocation2] sm:$0xfe]  ;;  %v4090_v32 = vsel %vm522_vm3, %v4088_v25, %v4089_v19  ;;  %4096 = vst [vmem:[#allocation2 + $0x20] sm:$0x1] %v4089_v19  ;;  %v7781_v25 = vld [vmem:[#allocation7 + $0x518] sm:$0xff]  ;;  %v7800_v19 = vld [vmem:[#allocation7 + $0x5b0] sm:$0xff] }
 0x7f4   : > { %v4101_v36 = vpack.c.bf16 %v4090_v32, %v4097_v30  ;;  %v4126_v38 = vpack.c.bf16 %v4090_v32, %v4122_v31  ;;  %v4344_v39 = vld [vmem:[#allocation2] sm:$0xfc]  ;;  %v4256_v30 = vpop.f32.mrf.mxu0  ;;  %v7780_v31 = vld [vmem:[#allocation7 + $0x510] sm:$0xff] }
 0x7f5   : > { %v4348_v41 = vpack.c.bf16 %v4090_v32, %v4344_v39  ;;  %v7791_v32 = vld [vmem:[#allocation7 + $0x568] sm:$0xff] }
 0x7f6   : > { %4324 = vmatmul.bf16.vlgmr.msra.gmra.mxu3 %v4101_v36  ;;  %v4152_v40 = vshll.u32 %v4126_v38, 16  ;;  %v4150_v50 = vshrl.u32 %v4126_v38, 16  ;;  %4627 = vmatpush.bf16.msra.mxu2 %v7792_v29  ;;  %v7799_v36 = vld [vmem:[#allocation7 + $0x5a8] sm:$0xff] }
 0x7f7   : > { %v4375_v33 = vrot.slane %v4348_v41, 1  ;;  %4831 = vmatpush.bf16.msra.mxu3 %v7805_v2 }
 0x7f8   : > { %v4154_v46 = vrot.slane %v4152_v40, 1  ;;  %v7790_v40 = vld [vmem:[#allocation7 + $0x560] sm:$0xff] }
 0x7fa   : > { %v4346_v42 = vld [vmem:[#allocation2 + $0x20] sm:$0x3]  ;;  %v4155_v55 = vor.u32 %v4154_v46, %v4150_v50  ;;  %4628 = vmatpush.bf16.msra.mxu2 %v7791_v32  ;;  %v7789_v46 = vld [vmem:[#allocation7 + $0x558] sm:$0xff] }
 0x7fb   : > { %v4124_v43 = vld [vmem:[#allocation2 + $0x20] sm:$0x1]  ;;  %v4350_v44 = vpack.c.bf16 %v4346_v42, %v4346_v42  ;;  %4832 = vmatpush.bf16.msra.mxu3 %v7804_v5  ;;  %v7813_v32 = vld [vmem:[#allocation7 + $0x618] sm:$0xff] }
 0x7fc   : > { %v4128_v45 = vpack.c.bf16 %v4124_v43, %v4124_v43  ;;  %v7798_v42 = vld [vmem:[#allocation7 + $0x5a0] sm:$0xff]  ;;  %v4339_v43 = vpop.f32.mrf.mxu2 }
 0x7fd   : > { %v4376_v48 = vrot.slane %v4350_v44, 1 }
 0x7fe   : > { %v4157_v52 = vshll.u32 %v4128_v45, 16  ;;  %4629 = vmatpush.bf16.msra.mxu2 %v7790_v40  ;;  %v7823_v40 = vld [vmem:[#allocation7 + $0x668] sm:$0xff] }
 0x7ff   : > { %v4377_v54 = vsel %vm810_vm4, %v4375_v33, %v4376_v48  ;;  %4833 = vmatpush.bf16.msra.mxu3 %v7803_v7 }
 0x800   : > { %v4159_v56 = vrot.slane %v4157_v52, 1  ;;  %4447 = vmatmul.bf16.vlgmr.msra.gmra.mxu0 %v4377_v54  ;;  %v7895_v54 = vld [vmem:[%s8720_s4 + $0x5] ss:$0 sm:$0xff] }
 0x802   : > { %v4160_v34 = vsel %vm583_vm2, %v4155_v55, %v4159_v56  ;;  %4630 = vmatpush.bf16.msra.mxu2 %v7789_v46  ;;  %v7806_v55 = vld [vmem:[#allocation7 + $0x5e0] sm:$0xff]  ;;  %v7788_v56 = vld [vmem:[#allocation7 + $0x550] sm:$0xff] }
 0x803   : > { %4239 = vmatmul.bf16.vlgmr.msrb.gmra.mxu1 %v4160_v34  ;;  %4834 = vmatpush.bf16.msra.mxu3 %v7802_v21  ;;  %v7830_v46 = vld [vmem:[#allocation7 + $0x6a0] sm:$0xff] }
 0x804   : > { %4708 = vmatpush.bf16.msrb.mxu1 %v7787_v61  ;;  %4729 = vmatpush.bf16.msrb.mxu0 %v7788_v56  ;;  %v4341_v59 = vpop.f32.mrf.mxu2  ;;  %v7809_v56 = vld [vmem:[#allocation7 + $0x5f8] sm:$0xff] }
 0x806   : > { %7187 = vmatmul.msk.bf16.vlgmr.msrb.gmra.mxu3 %vm500_vm0, %v4564_v27  ;;  %4852 = vmatpush.bf16.msrb.mxu2 %v7806_v55 }
 0x807   : > { %4835 = vmatpush.bf16.msra.mxu3 %v7801_v28 }
 0x808   : > { %4709 = vmatpush.bf16.msrb.mxu1 %v7786_v62  ;;  %5015 = vmatpush.bf16.msra.mxu0 %v7823_v40 }
 0x80b   : > { %4836 = vmatpush.bf16.msra.mxu3 %v7800_v19 }
 0x80c   : > { %4710 = vmatpush.bf16.msrb.mxu1 %v7785_v63 }
 0x80f   : > { %4837 = vmatpush.bf16.msra.mxu3 %v7799_v36  ;;  %v7812_v36 = vld [vmem:[#allocation7 + $0x610] sm:$0xff] }
 0x810   : > { %4711 = vmatpush.bf16.msrb.mxu1 %v7784_v4  ;;  %7224 = vmatmul.msk.bf16.vlgmr.msrb.gmra.mxu0 %vm500_vm0, %v8639_v9 }
 0x813   : > { %7149 = vmatmul.msk.bf16.vlgmr.msra.gmra.mxu1 %vm500_vm0, %v4380_v60  ;;  %4838 = vmatpush.bf16.msra.mxu3 %v7798_v42  ;;  %v7831_v42 = vld [vmem:[#allocation7 + $0x6a8] sm:$0xff] }
 0x814   : > { %4712 = vmatpush.bf16.msrb.mxu1 %v7783_v8 }
 0x818   : > { %4713 = vmatpush.bf16.msrb.mxu1 %v7782_v20 }
 0x81c   : > { %4714 = vmatpush.bf16.msrb.mxu1 %v7781_v25  ;;  %v4737_v25 = vld [vmem:[#allocation2 + $0x8] sm:$0xfc] }
 0x81d   : > { %v4741_v27 = vpack.c.bf16 %v8633_v35, %v4737_v25 }
 0x81f   : > { %v4770_v29 = vrot.slane %v4741_v27, 1 }
 0x820   : > { %4715 = vmatpush.bf16.msrb.mxu1 %v7780_v31  ;;  %v7814_v31 = vld [vmem:[#allocation7 + $0x620] sm:$0xff] }
 0x879   : > { %v4325_v41 = vpop.f32.mrf.mxu3 }
 0x87d   : > { %v4448_v45 = vpop.f32.mrf.mxu0 }
 0x880   : > { %v4240_v26 = vpop.f32.mrf.mxu1 }
 0x881   : > { %v4255_v39 = vadd.f32 %v4254_v13, %v4240_v26  ;;  %v4327_v47 = vpop.f32.mrf.mxu3  ;;  %v4739_v26 = vld [vmem:[#allocation2 + $0x28] sm:$0x3] }
 0x882   : > { %v4743_v28 = vpack.c.bf16 %v4739_v26, %v4739_v26 }
 0x883   : > { %v4326_v44 = vadd.f32 %v4325_v41, %v4255_v39  ;;  %v7832_v39 = vld [vmem:[#allocation7 + $0x6b0] sm:$0xff]  ;;  %v7811_v41 = vld [vmem:[#allocation7 + $0x608] sm:$0xff] }
 0x884   : > { %v4771_v19 = vrot.slane %v4743_v28, 1 }
 0x885   : > { %v4340_v48 = vadd.f32 %v4339_v43, %v4326_v44  ;;  %v4450_v11 = vpop.f32.mrf.mxu0  ;;  %v7822_v43 = vld [vmem:[#allocation7 + $0x660] sm:$0xff] }
 0x886   : > { %v7810_v44 = vld [vmem:[#allocation7 + $0x600] sm:$0xff]  ;;  %5016 = vmatpush.bf16.msra.mxu0 %v7822_v43 }
 0x888   : > { %v4242_v38 = vpop.f32.mrf.mxu1 }
 0x889   : > { %v4257_v50 = vadd.f32 %v4256_v30, %v4242_v38  ;;  %v4772_v30 = vsel %vm810_vm4, %v4770_v29, %v4771_v19  ;;  %v7824_v38 = vld [vmem:[#allocation7 + $0x670] sm:$0xff] }
 0x88a   : > { %5036 = vmatpush.bf16.msra.mxu1 %v7824_v38 }
 0x88b   : > { %v4328_v57 = vadd.f32 %v4327_v47, %v4257_v50  ;;  %v4909_v50 = vld [vmem:[#allocation2 + $0x28] sm:$0x1] }
 0x88d   : > { %v4342_v61 = vadd.f32 %v4341_v59, %v4328_v57 }
 0x890   : > { %v4462_v33 = vpop.f32.mrf.mxu1 }
 0x891   : > { %v4463_v52 = vadd.f32 %v4462_v33, %v4448_v45  ;;  %v4907_v45 = vld [vmem:[#allocation2 + $0x8] sm:$0xfe] }
 0x892   : > { %v4911_v33 = vpack.c.bf16 %v8633_v35, %v4907_v45 }
 0x893   : > { %v4467_v34 = vadd.f32 %v4463_v52, %v4340_v48  ;;  %v4646_v48 = vpop.f32.mrf.mxu3  ;;  %v7821_v52 = vld [vmem:[#allocation7 + $0x658] sm:$0xff] }
 0x894   : > { %v4948_v55 = vshll.u32 %v4911_v33, 16  ;;  %5017 = vmatpush.bf16.msra.mxu0 %v7821_v52  ;;  %v4946_v47 = vshrl.u32 %v4911_v33, 16 }
 0x895   : > { %v4474_v58 = vadd.f32 %v7895_v54, %v4467_v34  ;;  %v7829_v34 = vld [vmem:[#allocation7 + $0x698] sm:$0xff] }
 0x896   : > { %v4950_v57 = vrot.slane %v4948_v55, 1 }
 0x897   : > { %v8659_v10 = vadd.f32 %v4474_v58, %v8618_v53 }
 0x898   : > { %v4464_v60 = vpop.f32.mrf.mxu1  ;;  %v4951_v59 = vor.u32 %v4950_v57, %v4946_v47 }
 0x899   : > { %v4480_v62 = vrot.slane %v8659_v10, 7  ;;  %v4465_v63 = vadd.f32 %v4464_v60, %v4450_v11  ;;  %v7820_v60 = vld [vmem:[#allocation7 + $0x650] sm:$0xff] }
 0x89a   : > { %5018 = vmatpush.bf16.msra.mxu0 %v7820_v60 }
 0x89b   : > { %4486 = vst [vmem:[#allocation2] sm:$0xfe] %v4480_v62  ;;  %v4468_v1 = vadd.f32 %v4465_v63, %v4342_v61  ;;  %v7808_v61 = vld [vmem:[#allocation7 + $0x5f0] sm:$0xff] }
 0x89d   : > { %v4475_v2 = vadd.f32 %v7895_v54, %v4468_v1  ;;  %v4913_v54 = vpack.c.bf16 %v4909_v50, %v4909_v50  ;;  %v7828_v1 = vld [vmem:[#allocation7 + $0x690] sm:$0xff] }
 0x89f   : > { %v8665_v3 = vadd.f32 %v4475_v2, %v8622_v15  ;;  %v4953_v58 = vshll.u32 %v4913_v54, 16  ;;  %v7819_v2 = vld [vmem:[#allocation7 + $0x648] sm:$0xff] }
 0x8a0   : > { %5019 = vmatpush.bf16.msra.mxu0 %v7819_v2 }
 0x8a1   : > { %v4481_v4 = vrot.slane %v8665_v3, 7  ;;  %v4955_v11 = vrot.slane %v4953_v58, 1 }
 0x8a2   : > { %v4489_v5 = vld [vmem:[#allocation2] sm:$0xff] }
 0x8a3   : > { %v4514_v53 = vld [vmem:[#allocation2] sm:$0xfe]  ;;  %v4482_v6 = vsel %vm522_vm3, %v4480_v62, %v4481_v4  ;;  %4488 = vst [vmem:[#allocation2 + $0x20] sm:$0x1] %v4481_v4  ;;  %v4956_v63 = vsel %vm583_vm2, %v4951_v59, %v4955_v11  ;;  %v7827_v4 = vld [vmem:[#allocation7 + $0x688] sm:$0xff] }
 0x8a4   : > { %v4493_v8 = vpack.c.bf16 %v4482_v6, %v4489_v5  ;;  %v4518_v49 = vpack.c.bf16 %v4482_v6, %v4514_v53  ;;  %v4736_v7 = vld [vmem:[#allocation2] sm:$0xfc]  ;;  %v4648_v5 = vpop.f32.mrf.mxu3  ;;  %v7807_v53 = vld [vmem:[#allocation7 + $0x5e8] sm:$0xff] }
 0x8a5   : > { %v4740_v13 = vpack.c.bf16 %v4482_v6, %v4736_v7  ;;  %v7818_v6 = vld [vmem:[#allocation7 + $0x640] sm:$0xff] }
 0x8a6   : > { %4716 = vmatmul.bf16.vlgmr.msrb.gmra.mxu1 %v4493_v8  ;;  %v4544_v12 = vshll.u32 %v4518_v49, 16  ;;  %v4542_v37 = vshrl.u32 %v4518_v49, 16  ;;  %v7815_v8 = vld [vmem:[#allocation7 + $0x628] sm:$0xff]  ;;  %v7826_v49 = vld [vmem:[#allocation7 + $0x680] sm:$0xff]  ;;  %5020 = vmatpush.bf16.msra.mxu0 %v7818_v6  ;;  %v7841_v6 = vld [vmem:[#allocation7 + $0x6f8] sm:$0xff] }
 0x8a7   : > { %v4767_v15 = vrot.slane %v4740_v13, 1  ;;  %5223 = vmatpush.bf16.msrb.mxu1 %v7832_v39  ;;  %5121 = vmatpush.bf16.msrb.mxu3 %v7815_v8  ;;  %v7817_v13 = vld [vmem:[#allocation7 + $0x638] sm:$0xff]  ;;  %v7840_v8 = vld [vmem:[#allocation7 + $0x6f0] sm:$0xff] }
 0x8a8   : > { %v4546_v20 = vrot.slane %v4544_v12, 1 }
 0x8aa   : > { %v4738_v14 = vld [vmem:[#allocation2 + $0x20] sm:$0x3]  ;;  %v4547_v0 = vor.u32 %v4546_v20, %v4542_v37  ;;  %5021 = vmatpush.bf16.msra.mxu0 %v7817_v13 }
 0x8ab   : > { %v4516_v16 = vld [vmem:[#allocation2 + $0x20] sm:$0x1]  ;;  %v4742_v17 = vpack.c.bf16 %v4738_v14, %v4738_v14  ;;  %5224 = vmatpush.bf16.msrb.mxu1 %v7831_v42 }
 0x8ac   : > { %v4520_v18 = vpack.c.bf16 %v4516_v16, %v4516_v16  ;;  %v7825_v16 = vld [vmem:[#allocation7 + $0x678] sm:$0xff]  ;;  %v7850_v13 = vld [vmem:[#allocation7 + $0x740] sm:$0xff] }
 0x8ad   : > { %v4768_v21 = vrot.slane %v4742_v17, 1  ;;  %v4731_v17 = vpop.f32.mrf.mxu0 }
 0x8ae   : > { %v4549_v22 = vshll.u32 %v4520_v18, 16 }
 0x8af   : > { %v4769_v23 = vsel %vm810_vm4, %v4767_v15, %v4768_v21  ;;  %5225 = vmatpush.bf16.msrb.mxu1 %v7830_v46  ;;  %v7816_v15 = vld [vmem:[#allocation7 + $0x630] sm:$0xff] }
 0x8b0   : > { %v4551_v24 = vrot.slane %v4549_v22, 1  ;;  %4839 = vmatmul.bf16.vlgmr.msra.gmra.mxu3 %v4769_v23  ;;  %5022 = vmatpush.bf16.msra.mxu0 %v7816_v15  ;;  %v7857_v15 = vld [vmem:[#allocation7 + $0x778] sm:$0xff] }
 0x8b1   : > { %5407 = vmatpush.bf16.msra.mxu3 %v7850_v13 }
 0x8b2   : > { %v4552_v51 = vsel %vm583_vm2, %v4547_v0, %v4551_v24  ;;  %v7896_v0 = vld [vmem:[%s8720_s4 + $0x6] ss:$0 sm:$0xff]  ;;  %v7833_v24 = vld [vmem:[#allocation7 + $0x6b8] sm:$0xff] }
 0x8b3   : > { %4631 = vmatmul.bf16.vlgmr.msra.gmra.mxu2 %v4552_v51  ;;  %5226 = vmatpush.bf16.msrb.mxu1 %v7829_v34 }
 0x8b4   : > { %5100 = vmatpush.bf16.msra.mxu2 %v7814_v31  ;;  %5244 = vmatpush.bf16.msrb.mxu0 %v7833_v24 }
 0x8b5   : > { %v4733_v27 = vpop.f32.mrf.mxu0 }
 0x8b6   : > { %7299 = vmatmul.msk.bf16.vlgmr.msra.gmra.mxu1 %vm500_vm0, %v4956_v63  ;;  %v5131_v63 = vld [vmem:[#allocation2 + $0x28] sm:$0x3] }
 0x8b7   : > { %5227 = vmatpush.bf16.msrb.mxu1 %v7828_v1  ;;  %v5135_v2 = vpack.c.bf16 %v5131_v63, %v5131_v63 }
 0x8b8   : > { %5101 = vmatpush.bf16.msra.mxu2 %v7813_v32 }
 0x8bb   : > { %5228 = vmatpush.bf16.msrb.mxu1 %v7827_v4 }
 0x8bc   : > { %5102 = vmatpush.bf16.msra.mxu2 %v7812_v36 }
 0x8bf   : > { %5229 = vmatpush.bf16.msrb.mxu1 %v7826_v49  ;;  %v7839_v49 = vld [vmem:[#allocation7 + $0x6e8] sm:$0xff] }
 0x8c0   : > { %5103 = vmatpush.bf16.msra.mxu2 %v7811_v41  ;;  %7336 = vmatmul.msk.bf16.vlgmr.msrb.gmra.mxu3 %vm500_vm0, %v8639_v9 }
 0x8c3   : > { %7261 = vmatmul.msk.bf16.vlgmr.msrb.gmra.mxu2 %vm500_vm0, %v4772_v30  ;;  %5230 = vmatpush.bf16.msrb.mxu1 %v7825_v16  ;;  %v7849_v16 = vld [vmem:[#allocation7 + $0x738] sm:$0xff] }
 0x8c4   : > { %5104 = vmatpush.bf16.msra.mxu2 %v7810_v44  ;;  %5408 = vmatpush.bf16.msra.mxu3 %v7849_v16 }
 0x8c8   : > { %5105 = vmatpush.bf16.msra.mxu2 %v7809_v56 }
 0x8cc   : > { %5106 = vmatpush.bf16.msra.mxu2 %v7808_v61 }
 0x8d0   : > { %5107 = vmatpush.bf16.msra.mxu2 %v7807_v53 }
 0x923   : > { %v4717_v14 = vpop.f32.mrf.mxu1 }
 0x92b   : > { %v4719_v25 = vpop.f32.mrf.mxu1 }
 0x933   : > { %v4840_v20 = vpop.f32.mrf.mxu3 }
 0x936   : > { %v4632_v62 = vpop.f32.mrf.mxu2 }
 0x937   : > { %v4647_v12 = vadd.f32 %v4646_v48, %v4632_v62  ;;  %v5129_v62 = vld [vmem:[#allocation2 + $0x8] sm:$0xfc] }
 0x938   : > { %v5133_v1 = vpack.c.bf16 %v8633_v35, %v5129_v62  ;;  %v7858_v35 = vld [vmem:[#allocation7 + $0x780] sm:$0xff] }
 0x939   : > { %v4718_v18 = vadd.f32 %v4717_v14, %v4647_v12  ;;  %v7859_v12 = vld [vmem:[#allocation7 + $0x788] sm:$0xff]  ;;  %v7838_v14 = vld [vmem:[#allocation7 + $0x6e0] sm:$0xff] }
 0x93a   : > { %v5162_v4 = vrot.slane %v5133_v1, 1 }
 0x93b   : > { %v4732_v37 = vadd.f32 %v4731_v17, %v4718_v18  ;;  %v4842_v29 = vpop.f32.mrf.mxu3  ;;  %v7837_v17 = vld [vmem:[#allocation7 + $0x6d8] sm:$0xff] }
 0x93c   : > { %v8688_v18 = vld [vmem:[#allocation2 + $0x18] sm:$0xff] }
 0x93e   : > { %v4634_v7 = vpop.f32.mrf.mxu2 }
 0x93f   : > { %v4649_v22 = vadd.f32 %v4648_v5, %v4634_v7  ;;  %v5163_v5 = vrot.slane %v5135_v2, 1  ;;  %v7851_v7 = vld [vmem:[#allocation7 + $0x748] sm:$0xff] }
 0x940   : > { %5428 = vmatpush.bf16.msrb.mxu2 %v7851_v7 }
 0x941   : > { %v4720_v9 = vadd.f32 %v4719_v25, %v4649_v22  ;;  %v5164_v53 = vsel %vm810_vm4, %v5162_v4, %v5163_v5  ;;  %v5301_v22 = vld [vmem:[#allocation2 + $0x28] sm:$0x1]  ;;  %v7856_v25 = vld [vmem:[#allocation7 + $0x770] sm:$0xff] }
 0x943   : > { %v4734_v30 = vadd.f32 %v4733_v27, %v4720_v9 }
 0x946   : > { %v4854_v21 = vpop.f32.mrf.mxu2 }
 0x947   : > { %v4855_v23 = vadd.f32 %v4854_v21, %v4840_v20  ;;  %v5299_v20 = vld [vmem:[#allocation2 + $0x8] sm:$0xfe] }
 0x948   : > { %v5303_v21 = vpack.c.bf16 %v8688_v18, %v5299_v20 }
 0x949   : > { %v4859_v51 = vadd.f32 %v4855_v23, %v4732_v37  ;;  %v5038_v37 = vpop.f32.mrf.mxu1  ;;  %v7848_v23 = vld [vmem:[#allocation7 + $0x730] sm:$0xff] }
 0x94a   : > { %v5340_v24 = vshll.u32 %v5303_v21, 16  ;;  %5409 = vmatpush.bf16.msra.mxu3 %v7848_v23  ;;  %v5338_v9 = vshrl.u32 %v5303_v21, 16 }
 0x94b   : > { %v4866_v26 = vadd.f32 %v7896_v0, %v4859_v51  ;;  %v7836_v51 = vld [vmem:[#allocation7 + $0x6d0] sm:$0xff] }
 0x94d   : > { %v4868_v28 = vmax.f32 %v4866_v26, 0.0  ;;  %v5342_v26 = vrot.slane %v5340_v24, 1 }
 0x94e   : > { %v4856_v19 = vpop.f32.mrf.mxu2 }
 0x94f   : > { %v4872_v31 = vrot.slane %v4868_v28, 7  ;;  %v4857_v32 = vadd.f32 %v4856_v19, %v4842_v29  ;;  %v5343_v28 = vor.u32 %v5342_v26, %v5338_v9  ;;  %v7847_v19 = vld [vmem:[#allocation7 + $0x728] sm:$0xff] }
 0x950   : > { %5410 = vmatpush.bf16.msra.mxu3 %v7847_v19 }
 0x951   : > { %4878 = vst [vmem:[#allocation2] sm:$0xfe] %v4872_v31  ;;  %v4860_v36 = vadd.f32 %v4857_v32, %v4734_v30  ;;  %v7835_v30 = vld [vmem:[#allocation7 + $0x6c8] sm:$0xff] }
 0x953   : > { %v4867_v38 = vadd.f32 %v7896_v0, %v4860_v36  ;;  %v5305_v0 = vpack.c.bf16 %v5301_v22, %v5301_v22  ;;  %v7855_v36 = vld [vmem:[#allocation7 + $0x768] sm:$0xff] }
 0x955   : > { %v4869_v39 = vmax.f32 %v4867_v38, 0.0  ;;  %v5345_v27 = vshll.u32 %v5305_v0, 16  ;;  %v7846_v38 = vld [vmem:[#allocation7 + $0x720] sm:$0xff] }
 0x956   : > { %5411 = vmatpush.bf16.msra.mxu3 %v7846_v38 }
 0x957   : > { %v4873_v40 = vrot.slane %v4869_v39, 7  ;;  %v5347_v29 = vrot.slane %v5345_v27, 1  ;;  %v7834_v39 = vld [vmem:[#allocation7 + $0x6c0] sm:$0xff] }
 0x958   : > { %v4881_v41 = vld [vmem:[#allocation2] sm:$0xff] }
 0x959   : > { %v4906_v42 = vld [vmem:[#allocation2] sm:$0xfe]  ;;  %v4874_v43 = vsel %vm522_vm3, %v4872_v31, %v4873_v40  ;;  %4880 = vst [vmem:[#allocation2 + $0x20] sm:$0x1] %v4873_v40  ;;  %v5348_v32 = vsel %vm583_vm2, %v5343_v28, %v5347_v29  ;;  %v5040_v40 = vpop.f32.mrf.mxu1 }
 0x95a   : > { %v4885_v44 = vpack.c.bf16 %v4874_v43, %v4881_v41  ;;  %v4910_v45 = vpack.c.bf16 %v4874_v43, %v4906_v42  ;;  %v5128_v46 = vld [vmem:[#allocation2] sm:$0xfc]  ;;  %v7845_v42 = vld [vmem:[#allocation7 + $0x718] sm:$0xff] }
 0x95b   : > { %v5132_v48 = vpack.c.bf16 %v4874_v43, %v5128_v46  ;;  %v7854_v41 = vld [vmem:[#allocation7 + $0x760] sm:$0xff]  ;;  %v7853_v43 = vld [vmem:[#allocation7 + $0x758] sm:$0xff]  ;;  %5412 = vmatpush.bf16.msra.mxu3 %v7845_v42  ;;  %v7844_v46 = vld [vmem:[#allocation7 + $0x710] sm:$0xff] }
 0x95c   : > { %5108 = vmatmul.bf16.vlgmr.msra.gmra.mxu2 %v4885_v44  ;;  %v4936_v33 = vshll.u32 %v4910_v45, 16  ;;  %v4934_v57 = vshrl.u32 %v4910_v45, 16 }
 0x95d   : > { %v5159_v34 = vrot.slane %v5132_v48, 1  ;;  %5615 = vmatpush.bf16.msra.mxu2 %v7859_v12  ;;  %v7852_v48 = vld [vmem:[#allocation7 + $0x750] sm:$0xff] }
 0x95e   : > { %v4938_v56 = vrot.slane %v4936_v33, 1 }
 0x95f   : > { %5413 = vmatpush.bf16.msra.mxu3 %v7844_v46 }
 0x960   : > { %v5130_v50 = vld [vmem:[#allocation2 + $0x20] sm:$0x3]  ;;  %v4939_v11 = vor.u32 %v4938_v56, %v4934_v57 }
 0x961   : > { %v4908_v52 = vld [vmem:[#allocation2 + $0x20] sm:$0x1]  ;;  %v5134_v54 = vpack.c.bf16 %v5130_v50, %v5130_v50  ;;  %5616 = vmatpush.bf16.msra.mxu2 %v7858_v35  ;;  %v5123_v50 = vpop.f32.mrf.mxu3 }
 0x962   : > { %v4912_v55 = vpack.c.bf16 %v4908_v52, %v4908_v52 }
 0x963   : > { %v5160_v47 = vrot.slane %v5134_v54, 1 }
 0x964   : > { %v4941_v58 = vshll.u32 %v4912_v55, 16  ;;  %v7843_v55 = vld [vmem:[#allocation7 + $0x708] sm:$0xff] }
 0x965   : > { %v5161_v59 = vsel %vm810_vm4, %v5159_v34, %v5160_v47  ;;  %5617 = vmatpush.bf16.msra.mxu2 %v7857_v15  ;;  %5414 = vmatpush.bf16.msra.mxu3 %v7843_v55 }
 0x966   : > { %v4943_v60 = vrot.slane %v4941_v58, 1  ;;  %5231 = vmatmul.bf16.vlgmr.msrb.gmra.mxu1 %v5161_v59  ;;  %v7897_v58 = vld [vmem:[%s8720_s4 + $0x7] ss:$0 sm:$0xff]  ;;  %v7860_v59 = vld [vmem:[#allocation7 + $0x790] sm:$0xff] }
 0x968   : > { %v4944_v61 = vsel %vm583_vm2, %v4939_v11, %v4943_v60  ;;  %v7842_v11 = vld [vmem:[#allocation7 + $0x700] sm:$0xff]  ;;  %v5274_v60 = vld [vmem:[#allocation2 + $0x8] sm:$0xff] }
 0x969   : > { %5023 = vmatmul.bf16.vlgmr.msra.gmra.mxu0 %v4944_v61  ;;  %5618 = vmatpush.bf16.msra.mxu2 %v7856_v25  ;;  %v5278_v62 = vpack.c.bf16 %v8688_v18, %v5274_v60  ;;  %v5125_v4 = vpop.f32.mrf.mxu3 }
 0x96a   : > { %5492 = vmatpush.bf16.msra.mxu0 %v7841_v6  ;;  %5636 = vmatpush.bf16.msrb.mxu3 %v7860_v59 }
 0x96b   : > { %5513 = vmatpush.bf16.msra.mxu1 %v7842_v11 }
 0x96c   : > { %7411 = vmatmul.msk.bf16.vlgmr.msrb.gmra.mxu2 %vm500_vm0, %v5348_v32  ;;  %v5523_v32 = vld [vmem:[#allocation2 + $0x28] sm:$0x3] }
 0x96d   : > { %5619 = vmatpush.bf16.msra.mxu2 %v7855_v36  ;;  %v5527_v38 = vpack.c.bf16 %v5523_v32, %v5523_v32 }
 0x96e   : > { %5493 = vmatpush.bf16.msra.mxu0 %v7840_v8 }
 0x971   : > { %5620 = vmatpush.bf16.msra.mxu2 %v7854_v41 }
 0x972   : > { %5494 = vmatpush.bf16.msra.mxu0 %v7839_v49 }
 0x975   : > { %5621 = vmatpush.bf16.msra.mxu2 %v7853_v43 }
 0x976   : > { %5495 = vmatpush.bf16.msra.mxu0 %v7838_v14  ;;  %7448 = vmatmul.msk.bf16.vlgmr.msra.gmra.mxu1 %vm500_vm0, %v5278_v62 }
 0x979   : > { %7373 = vmatmul.msk.bf16.vlgmr.msrb.gmra.mxu0 %vm500_vm0, %v5164_v53  ;;  %5622 = vmatpush.bf16.msra.mxu2 %v7852_v48 }
 0x97a   : > { %5496 = vmatpush.bf16.msra.mxu0 %v7837_v17 }
 0x97e   : > { %5497 = vmatpush.bf16.msra.mxu0 %v7836_v51 }
 0x982   : > { %5498 = vmatpush.bf16.msra.mxu0 %v7835_v30 }
 0x986   : > { %5499 = vmatpush.bf16.msra.mxu0 %v7834_v39 }
 0x9df   : > { %v5109_v33 = vpop.f32.mrf.mxu2 }
 0x9e3   : > { %v5232_v54 = vpop.f32.mrf.mxu1 }
 0x9e6   : > { %v5024_v31 = vpop.f32.mrf.mxu0 }
 0x9e7   : > { %v5039_v45 = vadd.f32 %v5038_v37, %v5024_v31  ;;  %v5111_v63 = vpop.f32.mrf.mxu2  ;;  %v5521_v31 = vld [vmem:[#allocation2 + $0x8] sm:$0xfc] }
 0x9e8   : > { %v5525_v36 = vpack.c.bf16 %v8688_v18, %v5521_v31 }
 0x9e9   : > { %v5110_v52 = vadd.f32 %v5109_v33, %v5039_v45 }
 0x9ea   : > { %v5554_v39 = vrot.slane %v5525_v36, 1 }
 0x9eb   : > { %v5124_v34 = vadd.f32 %v5123_v50, %v5110_v52  ;;  %v5234_v53 = vpop.f32.mrf.mxu1 }
 0x9ee   : > { %v5026_v44 = vpop.f32.mrf.mxu0 }
 0x9ef   : > { %v5041_v47 = vadd.f32 %v5040_v40, %v5026_v44  ;;  %v5555_v40 = vrot.slane %v5527_v38, 1  ;;  %v5430_v42 = vpop.f32.mrf.mxu2 }
 0x9f1   : > { %v5112_v1 = vadd.f32 %v5111_v63, %v5041_v47  ;;  %v5556_v41 = vsel %vm810_vm4, %v5554_v39, %v5555_v40 }
 0x9f3   : > { %v5126_v8 = vadd.f32 %v5125_v4, %v5112_v1  ;;  %v5515_v48 = vpop.f32.mrf.mxu1 }
 0x9f6   : > { %v5246_v56 = vpop.f32.mrf.mxu0 }
 0x9f7   : > { %v5247_v57 = vadd.f32 %v5246_v56, %v5232_v54  ;;  %v5432_v44 = vpop.f32.mrf.mxu2 }
 0x9f9   : > { %v5251_v61 = vadd.f32 %v5247_v57, %v5124_v34  ;;  %v7898_v34 = vld [vmem:[%s8720_s4 + $0x8] ss:$0 sm:$0xff] }
 0x9fb   : > { %v5258_v2 = vadd.f32 %v7897_v58, %v5251_v61  ;;  %v5517_v11 = vpop.f32.mrf.mxu1 }
 0x9fd   : > { %v5260_v5 = vadd.f32 %v5258_v2, %v8659_v10 }
 0x9fe   : > { %v5248_v6 = vpop.f32.mrf.mxu0 }
 0x9ff   : > { %v5264_v49 = vrot.slane %v5260_v5, 7  ;;  %v5249_v7 = vadd.f32 %v5248_v6, %v5234_v53 }
 0xa01   : > { %5270 = vst [vmem:[#allocation2] sm:$0xfe] %v5264_v49  ;;  %v5252_v12 = vadd.f32 %v5249_v7, %v5126_v8 }
 0xa03   : > { %v5259_v13 = vadd.f32 %v7897_v58, %v5252_v12 }
 0xa05   : > { %v5261_v14 = vadd.f32 %v5259_v13, %v8665_v3 }
 0xa07   : > { %v5265_v35 = vrot.slane %v5261_v14, 7 }
 0xa08   : > { %v5273_v16 = vld [vmem:[#allocation2] sm:$0xff] }
 0xa09   : > { %v5298_v17 = vld [vmem:[#allocation2] sm:$0xfe]  ;;  %v5266_v20 = vsel %vm522_vm3, %v5264_v49, %v5265_v35  ;;  %5272 = vst [vmem:[#allocation2 + $0x20] sm:$0x1] %v5265_v35 }
 0xa0a   : > { %v5277_v15 = vpack.c.bf16 %v5266_v20, %v5273_v16  ;;  %v5302_v10 = vpack.c.bf16 %v5266_v20, %v5298_v17  ;;  %v5520_v21 = vld [vmem:[#allocation2] sm:$0xfc] }
 0xa0b   : > { %v5524_v22 = vpack.c.bf16 %v5266_v20, %v5520_v21 }
 0xa0c   : > { %5500 = vmatmul.bf16.vlgmr.msra.gmra.mxu0 %v5277_v15  ;;  %v5328_v37 = vshll.u32 %v5302_v10, 16  ;;  %v5326_v3 = vshrl.u32 %v5302_v10, 16 }
 0xa0d   : > { %v5551_v9 = vrot.slane %v5524_v22, 1 }
 0xa0e   : > { %v5330_v25 = vrot.slane %v5328_v37, 1 }
 0xa10   : > { %v5522_v23 = vld [vmem:[#allocation2 + $0x20] sm:$0x3]  ;;  %v5331_v29 = vor.u32 %v5330_v25, %v5326_v3 }
 0xa11   : > { %v5300_v0 = vld [vmem:[#allocation2 + $0x20] sm:$0x1]  ;;  %v5526_v24 = vpack.c.bf16 %v5522_v23, %v5522_v23 }
 0xa12   : > { %v5304_v51 = vpack.c.bf16 %v5300_v0, %v5300_v0 }
 0xa13   : > { %v5552_v26 = vrot.slane %v5526_v24, 1 }
 0xa14   : > { %v5333_v27 = vshll.u32 %v5304_v51, 16 }
 0xa15   : > { %v5553_v28 = vsel %vm810_vm4, %v5551_v9, %v5552_v26 }
 0xa16   : > { %v5335_v19 = vrot.slane %v5333_v27, 1  ;;  %5623 = vmatmul.bf16.vlgmr.msra.gmra.mxu2 %v5553_v28 }
 0xa18   : > { %v5336_v30 = vsel %vm583_vm2, %v5331_v29, %v5335_v19 }
 0xa19   : > { %5415 = vmatmul.bf16.vlgmr.msra.gmra.mxu3 %v5336_v30 }
 0xa29   : > { %7485 = vmatmul.msk.bf16.vlgmr.msrb.gmra.mxu3 %vm500_vm0, %v5556_v41 }
 0xa89   : > { %v5501_v33 = vpop.f32.mrf.mxu0 }
 0xa91   : > { %v5503_v57 = vpop.f32.mrf.mxu0 }
 0xa99   : > { %v5624_v52 = vpop.f32.mrf.mxu2 }
 0xa9c   : > { %v5416_v43 = vpop.f32.mrf.mxu3 }
 0xa9d   : > { %v5431_v46 = vadd.f32 %v5430_v42, %v5416_v43 }
 0xa9f   : > { %v5502_v50 = vadd.f32 %v5501_v33, %v5431_v46 }
 0xaa1   : > { %v5516_v55 = vadd.f32 %v5515_v48, %v5502_v50  ;;  %v5626_v60 = vpop.f32.mrf.mxu2 }
 0xaa4   : > { %v5418_v45 = vpop.f32.mrf.mxu3 }
 0xaa5   : > { %v5433_v18 = vadd.f32 %v5432_v44, %v5418_v45 }
 0xaa7   : > { %v5504_v58 = vadd.f32 %v5503_v57, %v5433_v18 }
 0xaa9   : > { %v5518_v62 = vadd.f32 %v5517_v11, %v5504_v58 }
 0xaac   : > { %v5638_v54 = vpop.f32.mrf.mxu3 }
 0xaad   : > { %v5639_v56 = vadd.f32 %v5638_v54, %v5624_v52 }
 0xaaf   : > { %v5643_v47 = vadd.f32 %v5639_v56, %v5516_v55 }
 0xab1   : > { %v5650_v59 = vadd.f32 %v7898_v34, %v5643_v47 }
 0xab3   : > { %5652 = vst [vmem:[%s497_s27] sm:$0xff] %v5650_v59 }
 0xab4   : > { %v5640_v61 = vpop.f32.mrf.mxu3 }
 0xab5   : > { %v5641_v63 = vadd.f32 %v5640_v61, %v5626_v60 }
 0xab7   : > { %v5644_v1 = vadd.f32 %v5641_v63, %v5518_v62 }
 0xab9   : > { %v5651_v2 = vadd.f32 %v7898_v34, %v5644_v1 }
 0xabb   : > { %5653 = vst [vmem:[%s497_s27 + $0x8] sm:$0xff] %v5651_v2 }
 0xabc PF: > { %s24_s25 = sadd.s32 1, %s7947_s25  }
 0xabd   : > { %p21_p7 = scmp.ge.s32.totalorder %s24_s25, 4  }
 0xabf   :  { %23 = sbr.rel (!%p21_p7) target bundleno = 1 (0x1), region = 168 }
 0xac4   :  { %5675 = vsyncpa [#allocation8], 1 }
 0xac5   :  { %5677 = vsyncpa [#allocation8 + $0x1], 1 }

</bundles_post_ra>
